<compile_context>
chip_gen: v5e
topology: v5e:2x2
jax: 0.10.0
libtpu: 0.0.40
codegen_flags: <defaults>
</compile_context>

<pallas_src>
from functools import partial

import jax
import jax.numpy as jnp
from jax.experimental import pallas as pl
from jax.experimental.pallas import tpu as pltpu

MXU_DTYPE = jnp.bfloat16            # MXU operand dtype (accumulation stays f32)
VMEM_LIMIT_BYTES = 32 * 1024 * 1024  # safe on v5e/v6e (128 MiB) and v7x (64 MiB)


def _silu(x):
    return x * jax.nn.sigmoid(x)


# ----------------------------------------------------------------------------
# Pallas kernels
# ----------------------------------------------------------------------------

def _stem_kernel(x_ref, w12_ref, b12_ref, wb1_ref, bb1_ref, o_ref, *, c_, mxu_dtype):
    """Fused C3.cv1 + C3.cv2 + Bottleneck0.cv1 (all 1x1 conv + bias + SiLU).

    x_ref   : (1, c1, tm) channel-major token tile straight from the NCHW input
              (NCHW -> token-major transpose happens in-register on the XLU,
               instead of a separate XLA transpose with an HBM round trip).
    w12_ref : (c1, 2*c_)  packed [cv1 | cv2] weights (bf16, resident).
    wb1_ref : (c_, c_)    bottleneck-0 cv1 weight (bf16, resident).
    o_ref   : (1, tm, 3*c_) packed token-major slab [y1 | y2 | t0] (one wide store).
    """
    xt = x_ref[0].T.astype(mxu_dtype)                                   # (tm, c1)
    y12 = jnp.dot(xt, w12_ref[...], preferred_element_type=jnp.float32) + b12_ref[...]
    y12 = _silu(y12)                                                    # f32 epilogue
    t0 = jnp.dot(y12[:, :c_].astype(mxu_dtype), wb1_ref[...],
                 preferred_element_type=jnp.float32) + bb1_ref[...]
    t0 = _silu(t0)
    o_ref[0] = jnp.concatenate([y12, t0], axis=-1).astype(o_ref.dtype)


def _conv3x3_silu(tp_ref, w_ref, b_ref, *, H, W, mxu_dtype):
    """3x3, stride-1, 'same' conv (+ bias + SiLU) as 9 shifted MXU matmuls.

    tp_ref : (1, H+2, W+2, Cin) zero-padded NHWC tile (one batch element).
    w_ref  : (9, Cin, Cout) taps, index = ky*3 + kx (bf16).
    returns: (H*W, Cout) f32, token-major.
    """
    cout = w_ref.shape[-1]
    acc = jnp.zeros((H * W, cout), jnp.float32)
    for ky in range(3):
        for kx in range(3):
            sl = tp_ref[0, ky:ky + H, kx:kx + W, :]                     # (H, W, Cin)
            sl = sl.reshape(H * W, sl.shape[-1]).astype(mxu_dtype)
            acc = acc + jnp.dot(sl, w_ref[ky * 3 + kx],
                                preferred_element_type=jnp.float32)
    acc = acc + b_ref[...]
    return _silu(acc)


def _tail_math(tp_ref, h, y2, wb2_ref, bb2_ref, w3a_ref, w3b_ref, b3_ref, *,
               H, W, add, mxu_dtype):
    """Last Bottleneck's 3x3 conv + SiLU + residual, fused with C3.cv3.

    The channel concat cat(m_out, y2) is folded into two matmuls against the
    split cv3 weight.  Returns the channel-major (c2, H*W) result so the store
    is lane-dense and the final NCHW layout is a free reshape in the wrapper.
    """
    u = _conv3x3_silu(tp_ref, wb2_ref, bb2_ref, H=H, W=W, mxu_dtype=mxu_dtype)
    m = h + u if add else u
    out = (jnp.dot(m.astype(mxu_dtype), w3a_ref[...], preferred_element_type=jnp.float32)
           + jnp.dot(y2.astype(mxu_dtype), w3b_ref[...], preferred_element_type=jnp.float32)
           + b3_ref[...])
    return _silu(out).T


def _tail_shared_kernel(tp_ref, src_ref, wb2_ref, bb2_ref, w3a_ref, w3b_ref, b3_ref,
                        o_ref, *, c_, H, W, add, mxu_dtype):
    """Tail for n == 1: both h (= y1) and y2 come from the stem slab."""
    s = src_ref[0].astype(jnp.float32)
    o_ref[0] = _tail_math(tp_ref, s[:, :c_], s[:, c_:2 * c_],
                          wb2_ref, bb2_ref, w3a_ref, w3b_ref, b3_ref,
                          H=H, W=W, add=add, mxu_dtype=mxu_dtype).astype(o_ref.dtype)


def _tail_split_kernel(tp_ref, h_ref, stem_ref, wb2_ref, bb2_ref, w3a_ref, w3b_ref,
                       b3_ref, o_ref, *, c_, H, W, add, mxu_dtype):
    """Tail for n >= 2: h comes from the previous bottleneck slab, y2 from the stem."""
    h = h_ref[0][:, :c_].astype(jnp.float32)
    y2 = stem_ref[0][:, c_:2 * c_].astype(jnp.float32)
    o_ref[0] = _tail_math(tp_ref, h, y2,
                          wb2_ref, bb2_ref, w3a_ref, w3b_ref, b3_ref,
                          H=H, W=W, add=add, mxu_dtype=mxu_dtype).astype(o_ref.dtype)


def _mid_bneck_kernel(tp_ref, hsrc_ref, wb2_ref, bb2_ref, wb1n_ref, bb1n_ref, o_ref, *,
                      c_, H, W, add, mxu_dtype):
    """Bottleneck i (i < n-1): 3x3 conv + SiLU + residual, fused with the NEXT
    bottleneck's 1x1 cv1.  Emits the packed slab [y_i | t_{i+1}]."""
    u = _conv3x3_silu(tp_ref, wb2_ref, bb2_ref, H=H, W=W, mxu_dtype=mxu_dtype)
    h = hsrc_ref[0][:, :c_].astype(jnp.float32)
    y = h + u if add else u
    t_next = jnp.dot(y.astype(mxu_dtype), wb1n_ref[...],
                     preferred_element_type=jnp.float32) + bb1n_ref[...]
    t_next = _silu(t_next)
    o_ref[0] = jnp.concatenate([y, t_next], axis=-1).astype(o_ref.dtype)


# ----------------------------------------------------------------------------
# Forward wrapper
# ----------------------------------------------------------------------------

def _pick_token_tile(total, target):
    """Largest divisor of `total` that is <= target and a multiple of 8."""
    if total <= target:
        return total
    for cand in range(min(target, total), 7, -1):
        if cand % 8 == 0 and total % cand == 0:
            return cand
    return total


def _compiler_params(n_axes):
    return pltpu.CompilerParams(
        dimension_semantics=("parallel",) * n_axes,
        vmem_limit_bytes=VMEM_LIMIT_BYTES,
    )


@partial(jax.jit, static_argnames=("shortcut", "token_tile"))
def c3_forward(x_nchw, params, *, shortcut=True, token_tile=512):
    """C3 forward pass (NCHW in, NCHW out) built from fused Pallas TPU kernels."""
    mxu_dtype = MXU_DTYPE
    B, c1, H, W = x_nchw.shape
    HW = H * W
    c_ = params["cv1_w"].shape[1]
    c2 = params["cv3_w"].shape[1]
    blocks = params["m"]
    n = len(blocks)
    f32 = jnp.float32
    tm = _pick_token_tile(HW, token_tile)

    # -- tiny parameter packing / bf16 casts (folded-BN Conv weights) -------
    w12 = jnp.concatenate([params["cv1_w"], params["cv2_w"]], axis=1).astype(mxu_dtype)
    b12 = jnp.concatenate([params["cv1_b"], params["cv2_b"]]).reshape(1, 2 * c_).astype(f32)
    wb1_0 = blocks[0]["b1_w"].astype(mxu_dtype)
    bb1_0 = blocks[0]["b1_b"].reshape(1, c_).astype(f32)
    w3a = params["cv3_w"][:c_].astype(mxu_dtype)       # cv3 rows hit by the m-branch
    w3b = params["cv3_w"][c_:].astype(mxu_dtype)       # cv3 rows hit by cv2(x)
    b3 = params["cv3_b"].reshape(1, c2).astype(f32)

    # -- stage 1: fused cv1 + cv2 + bottleneck0.cv1, token-tiled -------------
    x_cm = x_nchw.reshape(B, c1, HW)                   # free reshape of NCHW
    stem = pl.pallas_call(
        partial(_stem_kernel, c_=c_, mxu_dtype=mxu_dtype),
        out_shape=jax.ShapeDtypeStruct((B, HW, 3 * c_), f32),
        grid=(B, HW // tm),
        in_specs=[
            pl.BlockSpec((1, c1, tm), lambda b, j: (b, 0, j)),
            pl.BlockSpec((c1, 2 * c_), lambda b, j: (0, 0)),
            pl.BlockSpec((1, 2 * c_), lambda b, j: (0, 0)),
            pl.BlockSpec((c_, c_), lambda b, j: (0, 0)),
            pl.BlockSpec((1, c_), lambda b, j: (0, 0)),
        ],
        out_specs=pl.BlockSpec((1, tm, 3 * c_), lambda b, j: (b, j, 0)),
        compiler_params=_compiler_params(2),
    )(x_cm, w12, b12, wb1_0, bb1_0)

    def pad_t(t_tok):
        # TODO(synk): handle the 3x3 halo inside the kernel (masked shifts /
        # Element-offset index_map) instead of this small JAX-side pad round trip.
        return jnp.pad(t_tok.reshape(B, H, W, c_), ((0, 0), (1, 1), (1, 1), (0, 0)))

    src = stem                                         # slab whose channel block 0 is h_i
    tp = pad_t(stem[:, :, 2 * c_:3 * c_])              # padded t for bottleneck 0

    # -- stage 2: bottlenecks 0 .. n-2 (3x3 + residual + next cv1), per batch --
    for i in range(n - 1):
        blk, nxt = blocks[i], blocks[i + 1]
        src_w = src.shape[-1]
        mid = pl.pallas_call(
            partial(_mid_bneck_kernel, c_=c_, H=H, W=W, add=shortcut, mxu_dtype=mxu_dtype),
            out_shape=jax.ShapeDtypeStruct((B, HW, 2 * c_), f32),
            grid=(B,),
            in_specs=[
                pl.BlockSpec((1, H + 2, W + 2, c_), lambda b: (b, 0, 0, 0)),
                pl.BlockSpec((1, HW, src_w), lambda b: (b, 0, 0)),
                pl.BlockSpec((9, c_, c_), lambda b: (0, 0, 0)),
                pl.BlockSpec((1, c_), lambda b: (0, 0)),
                pl.BlockSpec((c_, c_), lambda b: (0, 0)),
                pl.BlockSpec((1, c_), lambda b: (0, 0)),
            ],
            out_specs=pl.BlockSpec((1, HW, 2 * c_), lambda b: (b, 0, 0)),
            compiler_params=_compiler_params(1),
        )(tp, src,
          blk["b2_w"].astype(mxu_dtype), blk["b2_b"].reshape(1, c_).astype(f32),
          nxt["b1_w"].astype(mxu_dtype), nxt["b1_b"].reshape(1, c_).astype(f32))
        src = mid
        tp = pad_t(mid[:, :, c_:2 * c_])

    # -- stage 3: last bottleneck's 3x3 + residual, fused with cv3 -----------
    last = blocks[n - 1]
    wb2 = last["b2_w"].astype(mxu_dtype)
    bb2 = last["b2_b"].reshape(1, c_).astype(f32)
    out_shape = jax.ShapeDtypeStruct((B, c2, HW), x_nchw.dtype)
    spatial_spec = pl.BlockSpec((1, H + 2, W + 2, c_), lambda b: (b, 0, 0, 0))
    wtap_spec = pl.BlockSpec((9, c_, c_), lambda b: (0, 0, 0))
    wmat_spec = pl.BlockSpec((c_, c2), lambda b: (0, 0))
    out_spec = pl.BlockSpec((1, c2, HW), lambda b: (b, 0, 0))

    def bvec_spec(width):
        return pl.BlockSpec((1, width), lambda b: (0, 0))

    if n == 1:
        out_cm = pl.pallas_call(
            partial(_tail_shared_kernel, c_=c_, H=H, W=W, add=shortcut, mxu_dtype=mxu_dtype),
            out_shape=out_shape,
            grid=(B,),
            in_specs=[spatial_spec,
                      pl.BlockSpec((1, HW, 3 * c_), lambda b: (b, 0, 0)),
                      wtap_spec, bvec_spec(c_), wmat_spec, wmat_spec, bvec_spec(c2)],
            out_specs=out_spec,
            compiler_params=_compiler_params(1),
        )(tp, stem, wb2, bb2, w3a, w3b, b3)
    else:
        out_cm = pl.pallas_call(
            partial(_tail_split_kernel, c_=c_, H=H, W=W, add=shortcut, mxu_dtype=mxu_dtype),
            out_shape=out_shape,
            grid=(B,),
            in_specs=[spatial_spec,
                      pl.BlockSpec((1, HW, 2 * c_), lambda b: (b, 0, 0)),
                      pl.BlockSpec((1, HW, 3 * c_), lambda b: (b, 0, 0)),
                      wtap_spec, bvec_spec(c_), wmat_spec, wmat_spec, bvec_spec(c2)],
            out_specs=out_spec,
            compiler_params=_compiler_params(1),
        )(tp, src, stem, wb2, bb2, w3a, w3b, b3)

    return out_cm.reshape(B, c2, H, W)                 # channel-major -> NCHW is free


# ----------------------------------------------------------------------------
# Synthetic parameters + pure-JAX reference
# ----------------------------------------------------------------------------

def init_c3_params(key, c1, c2, n=1, e=0.5):
    """Deterministic synthetic params; BatchNorm folded into conv weight/bias."""
    c_ = int(c2 * e)

    def conv_init(k, cin, cout):
        kw, kb = jax.random.split(k)
        w = 0.5 * (cin ** -0.5) * jax.random.normal(kw, (cin, cout), jnp.float32)
        b = 0.02 * jax.random.normal(kb, (cout,), jnp.float32)
        return w, b

    keys = jax.random.split(key, 3 + 2 * n)
    cv1_w, cv1_b = conv_init(keys[0], c1, c_)
    cv2_w, cv2_b = conv_init(keys[1], c1, c_)
    cv3_w, cv3_b = conv_init(keys[2], 2 * c_, c2)
    m = []
    for i in range(n):
        b1_w, b1_b = conv_init(keys[3 + 2 * i], c_, c_)
        kw, kb = jax.random.split(keys[4 + 2 * i])
        b2_w = 0.5 * ((9 * c_) ** -0.5) * jax.random.normal(kw, (9, c_, c_), jnp.float32)
        b2_b = 0.02 * jax.random.normal(kb, (c_,), jnp.float32)
        m.append({"b1_w": b1_w, "b1_b": b1_b, "b2_w": b2_w, "b2_b": b2_b})
    return {"cv1_w": cv1_w, "cv1_b": cv1_b, "cv2_w": cv2_w, "cv2_b": cv2_b,
            "cv3_w": cv3_w, "cv3_b": cv3_b, "m": m}


@partial(jax.jit, static_argnames=("shortcut",))
def c3_reference(x_nchw, params, *, shortcut=True):
    """Pure-JAX/XLA f32 reference for the C3 forward pass."""
    x = jnp.transpose(x_nchw, (0, 2, 3, 1)).astype(jnp.float32)
    c_ = params["cv1_w"].shape[1]

    def conv1x1(t, w, b):
        return _silu(jnp.einsum("bhwc,cd->bhwd", t, w) + b)

    y1 = conv1x1(x, params["cv1_w"], params["cv1_b"])
    y2 = conv1x1(x, params["cv2_w"], params["cv2_b"])
    h = y1
    for blk in params["m"]:
        t = conv1x1(h, blk["b1_w"], blk["b1_b"])
        k = blk["b2_w"].reshape(3, 3, c_, c_)
        u = jax.lax.conv_general_dilated(t, k, (1, 1), "SAME",
                                         dimension_numbers=("NHWC", "HWIO", "NHWC"))
        u = _silu(u + blk["b2_b"])
        h = h + u if shortcut else u
    cat = jnp.concatenate([h, y2], axis=-1)
    out = _silu(jnp.einsum("bhwc,cd->bhwd", cat, params["cv3_w"]) + params["cv3_b"])
    return jnp.transpose(out, (0, 3, 1, 2))


if __name__ == "__main__":
    B, c1, c2, H, W = 2, 64, 64, 16, 16
    key = jax.random.PRNGKey(0)

    # n=1 exercises stem + fused tail; n=2 additionally exercises the mid kernel.
    for n in (1, 2):
        key, kp, kx = jax.random.split(key, 3)
        params = init_c3_params(kp, c1, c2, n=n, e=0.5)
        x = jax.random.normal(kx, (B, c1, H, W), jnp.float32)

        out = jax.block_until_ready(c3_forward(x, params, shortcut=True))
        ref = jax.block_until_ready(c3_reference(x, params, shortcut=True))

        assert out.shape == (B, c2, H, W) and out.dtype == jnp.float32
        assert bool(jnp.all(jnp.isfinite(out)))
        rel = float(jnp.max(jnp.abs(out - ref)) / (jnp.max(jnp.abs(ref)) + 1e-8))
        assert rel < 5e-2, f"n={n}: relative error {rel} too large"

    print("KERNEL_OK")
</pallas_src>

<mosaic_0001>
module attributes {stable_mosaic.version = 11 : i64} {
  func.func @_stem_kernel(%arg0: i32, %arg1: i32, %arg2: memref<1x64x256xf32, #tpu.memory_space<vmem>>, %arg3: memref<64x64xbf16, #tpu.memory_space<vmem>>, %arg4: memref<1x64xf32, #tpu.memory_space<vmem>>, %arg5: memref<32x32xbf16, #tpu.memory_space<vmem>>, %arg6: memref<1x32xf32, #tpu.memory_space<vmem>>, %arg7: memref<1x256x96xf32, #tpu.memory_space<vmem>>) attributes {dimension_semantics = [#tpu.dimension_semantics<parallel>, #tpu.dimension_semantics<parallel>], iteration_bounds = array<i64: 2, 1>, scalar_prefetch = 0 : i64, scratch_operands = 0 : i64, tpu.core_type = #tpu.core_type<tc>, window_params = [{transform_indices = @transform_0, window_bounds = array<i64: 1, 64, 256>}, {pipeline_mode = #tpu.pipeline_mode<synchronous>, transform_indices = @transform_1, window_bounds = array<i64: 64, 64>}, {pipeline_mode = #tpu.pipeline_mode<synchronous>, transform_indices = @transform_2, window_bounds = array<i64: 1, 64>}, {pipeline_mode = #tpu.pipeline_mode<synchronous>, transform_indices = @transform_3, window_bounds = array<i64: 32, 32>}, {pipeline_mode = #tpu.pipeline_mode<synchronous>, transform_indices = @transform_4, window_bounds = array<i64: 1, 32>}, {transform_indices = @transform_5, window_bounds = array<i64: 1, 256, 96>}]} {
    %c0 = arith.constant 0 : index
    %c0_0 = arith.constant 0 : index
    %c0_1 = arith.constant 0 : index
    %0 = vector.load %arg2[%c0, %c0_0, %c0_1] : memref<1x64x256xf32, #tpu.memory_space<vmem>>, vector<1x64x256xf32>
    %1 = vector.shape_cast %0 : vector<1x64x256xf32> to vector<64x256xf32>
    %2 = tpu.transpose %1, [1, 0] : vector<64x256xf32> -> vector<256x64xf32>
    %3 = arith.truncf %2 : vector<256x64xf32> to vector<256x64xbf16>
    %c0_2 = arith.constant 0 : index
    %c0_3 = arith.constant 0 : index
    %4 = vector.load %arg3[%c0_2, %c0_3] : memref<64x64xbf16, #tpu.memory_space<vmem>>, vector<64x64xbf16>
    %cst = arith.constant dense<0.000000e+00> : vector<256x64xf32>
    %5 = tpu.matmul %3, %4, %cst {dimension_numbers = #tpu.dot_dimension_numbers<[1], [0], [0], [1], [0, 0, 1, 1], [], []>} : vector<256x64xbf16>, vector<64x64xbf16>, vector<256x64xf32> -> vector<256x64xf32>
    %c0_4 = arith.constant 0 : index
    %c0_5 = arith.constant 0 : index
    %6 = vector.load %arg4[%c0_4, %c0_5] : memref<1x64xf32, #tpu.memory_space<vmem>>, vector<1x64xf32>
    %7 = vector.broadcast %6 : vector<1x64xf32> to vector<256x64xf32>
    %8 = arith.addf %5, %7 : vector<256x64xf32>
    %9 = arith.negf %8 : vector<256x64xf32>
    %10 = math.exp %9 : vector<256x64xf32>
    %cst_6 = arith.constant 1.000000e+00 : f32
    %11 = vector.broadcast %cst_6 : f32 to vector<256x64xf32>
    %12 = arith.addf %11, %10 : vector<256x64xf32>
    %13 = arith.divf %11, %12 : vector<256x64xf32>
    %14 = arith.mulf %8, %13 : vector<256x64xf32>
    %15 = vector.extract_strided_slice %14 {offsets = [0, 0], sizes = [256, 32], strides = [1, 1]} : vector<256x64xf32> to vector<256x32xf32>
    %16 = arith.truncf %15 : vector<256x32xf32> to vector<256x32xbf16>
    %c0_7 = arith.constant 0 : index
    %c0_8 = arith.constant 0 : index
    %17 = vector.load %arg5[%c0_7, %c0_8] : memref<32x32xbf16, #tpu.memory_space<vmem>>, vector<32x32xbf16>
    %cst_9 = arith.constant dense<0.000000e+00> : vector<256x32xf32>
    %18 = tpu.matmul %16, %17, %cst_9 {dimension_numbers = #tpu.dot_dimension_numbers<[1], [0], [0], [1], [0, 0, 1, 1], [], []>} : vector<256x32xbf16>, vector<32x32xbf16>, vector<256x32xf32> -> vector<256x32xf32>
    %c0_10 = arith.constant 0 : index
    %c0_11 = arith.constant 0 : index
    %19 = vector.load %arg6[%c0_10, %c0_11] : memref<1x32xf32, #tpu.memory_space<vmem>>, vector<1x32xf32>
    %20 = vector.broadcast %19 : vector<1x32xf32> to vector<256x32xf32>
    %21 = arith.addf %18, %20 : vector<256x32xf32>
    %22 = arith.negf %21 : vector<256x32xf32>
    %23 = math.exp %22 : vector<256x32xf32>
    %cst_12 = arith.constant 1.000000e+00 : f32
    %24 = vector.broadcast %cst_12 : f32 to vector<256x32xf32>
    %25 = arith.addf %24, %23 : vector<256x32xf32>
    %26 = arith.divf %24, %25 : vector<256x32xf32>
    %27 = arith.mulf %21, %26 : vector<256x32xf32>
    %28 = tpu.concatenate %14, %27 in 1 : vector<256x64xf32>, vector<256x32xf32> -> vector<256x96xf32>
    %c0_13 = arith.constant 0 : index
    %c0_14 = arith.constant 0 : index
    %c0_15 = arith.constant 0 : index
    %29 = vector.load %arg7[%c0_13, %c0_14, %c0_15] : memref<1x256x96xf32, #tpu.memory_space<vmem>>, vector<1x256x96xf32>
    %30 = vector.shape_cast %29 : vector<1x256x96xf32> to vector<256x96xf32>
    %31 = vector.shape_cast %28 : vector<256x96xf32> to vector<1x256x96xf32>
    tpu.vector_store %arg7[%c0_13, %c0_14, %c0_15], %31 {strides = array<i32>} : memref<1x256x96xf32, #tpu.memory_space<vmem>>, vector<1x256x96xf32>,
    return
  }
  func.func @transform_0(%arg0: i32, %arg1: i32) -> (i32, i32, i32) {
    %c0_i32 = arith.constant 0 : i32
    %c0_i32_0 = arith.constant 0 : i32
    return %arg0, %c0_i32, %arg1 : i32, i32, i32
  }
  func.func @transform_1(%arg0: i32, %arg1: i32) -> (i32, i32) {
    %c0_i32 = arith.constant 0 : i32
    %c0_i32_0 = arith.constant 0 : i32
    %c0_i32_1 = arith.constant 0 : i32
    return %c0_i32, %c0_i32_0 : i32, i32
  }
  func.func @transform_2(%arg0: i32, %arg1: i32) -> (i32, i32) {
    %c0_i32 = arith.constant 0 : i32
    %c0_i32_0 = arith.constant 0 : i32
    %c0_i32_1 = arith.constant 0 : i32
    return %c0_i32, %c0_i32_0 : i32, i32
  }
  func.func @transform_3(%arg0: i32, %arg1: i32) -> (i32, i32) {
    %c0_i32 = arith.constant 0 : i32
    %c0_i32_0 = arith.constant 0 : i32
    %c0_i32_1 = arith.constant 0 : i32
    return %c0_i32, %c0_i32_0 : i32, i32
  }
  func.func @transform_4(%arg0: i32, %arg1: i32) -> (i32, i32) {
    %c0_i32 = arith.constant 0 : i32
    %c0_i32_0 = arith.constant 0 : i32
    %c0_i32_1 = arith.constant 0 : i32
    return %c0_i32, %c0_i32_0 : i32, i32
  }
  func.func @transform_5(%arg0: i32, %arg1: i32) -> (i32, i32, i32) {
    %c0_i32 = arith.constant 0 : i32
    %c0_i32_0 = arith.constant 0 : i32
    return %arg0, %arg1, %c0_i32 : i32, i32, i32
  }
}

module attributes {stable_mosaic.version = 11 : i64} {
  func.func @_tail_shared_kernel(%arg0: i32, %arg1: memref<1x18x18x32xf32, #tpu.memory_space<vmem>>, %arg2: memref<1x256x96xf32, #tpu.memory_space<vmem>>, %arg3: memref<9x32x32xbf16, #tpu.memory_space<vmem>>, %arg4: memref<1x32xf32, #tpu.memory_space<vmem>>, %arg5: memref<32x64xbf16, #tpu.memory_space<vmem>>, %arg6: memref<32x64xbf16, #tpu.memory_space<vmem>>, %arg7: memref<1x64xf32, #tpu.memory_space<vmem>>, %arg8: memref<1x64x256xf32, #tpu.memory_space<vmem>>) attributes {dimension_semantics = [#tpu.dimension_semantics<parallel>], iteration_bounds = array<i64: 2>, scalar_prefetch = 0 : i64, scratch_operands = 0 : i64, tpu.core_type = #tpu.core_type<tc>, window_params = [{transform_indices = @transform_0, window_bounds = array<i64: 1, 18, 18, 32>}, {transform_indices = @transform_1, window_bounds = array<i64: 1, 256, 96>}, {pipeline_mode = #tpu.pipeline_mode<synchronous>, transform_indices = @transform_2, window_bounds = array<i64: 9, 32, 32>}, {pipeline_mode = #tpu.pipeline_mode<synchronous>, transform_indices = @transform_3, window_bounds = array<i64: 1, 32>}, {pipeline_mode = #tpu.pipeline_mode<synchronous>, transform_indices = @transform_4, window_bounds = array<i64: 32, 64>}, {pipeline_mode = #tpu.pipeline_mode<synchronous>, transform_indices = @transform_5, window_bounds = array<i64: 32, 64>}, {pipeline_mode = #tpu.pipeline_mode<synchronous>, transform_indices = @transform_6, window_bounds = array<i64: 1, 64>}, {transform_indices = @transform_7, window_bounds = array<i64: 1, 64, 256>}]} {
    %c0 = arith.constant 0 : index
    %c0_0 = arith.constant 0 : index
    %c0_1 = arith.constant 0 : index
    %0 = vector.load %arg2[%c0, %c0_0, %c0_1] : memref<1x256x96xf32, #tpu.memory_space<vmem>>, vector<1x256x96xf32>
    %1 = vector.shape_cast %0 : vector<1x256x96xf32> to vector<256x96xf32>
    %2 = vector.extract_strided_slice %1 {offsets = [0, 0], sizes = [256, 32], strides = [1, 1]} : vector<256x96xf32> to vector<256x32xf32>
    %3 = vector.extract_strided_slice %1 {offsets = [0, 32], sizes = [256, 32], strides = [1, 1]} : vector<256x96xf32> to vector<256x32xf32>
    %cst = arith.constant 0.000000e+00 : f32
    %4 = vector.broadcast %cst : f32 to vector<256x32xf32>
    %c0_2 = arith.constant 0 : index
    %c0_3 = arith.constant 0 : index
    %c0_4 = arith.constant 0 : index
    %c0_5 = arith.constant 0 : index
    %5 = vector.load %arg1[%c0_2, %c0_3, %c0_4, %c0_5] : memref<1x18x18x32xf32, #tpu.memory_space<vmem>>, vector<1x16x16x32xf32>
    %6 = vector.shape_cast %5 : vector<1x16x16x32xf32> to vector<16x16x32xf32>
    %7 = vector.shape_cast %6 : vector<16x16x32xf32> to vector<256x32xf32>
    %8 = arith.truncf %7 : vector<256x32xf32> to vector<256x32xbf16>
    %c0_6 = arith.constant 0 : index
    %c0_7 = arith.constant 0 : index
    %c0_8 = arith.constant 0 : index
    %9 = vector.load %arg3[%c0_6, %c0_7, %c0_8] : memref<9x32x32xbf16, #tpu.memory_space<vmem>>, vector<1x32x32xbf16>
    %10 = vector.shape_cast %9 : vector<1x32x32xbf16> to vector<32x32xbf16>
    %cst_9 = arith.constant dense<0.000000e+00> : vector<256x32xf32>
    %11 = tpu.matmul %8, %10, %cst_9 {dimension_numbers = #tpu.dot_dimension_numbers<[1], [0], [0], [1], [0, 0, 1, 1], [], []>} : vector<256x32xbf16>, vector<32x32xbf16>, vector<256x32xf32> -> vector<256x32xf32>
    %12 = arith.addf %4, %11 : vector<256x32xf32>
    %c0_10 = arith.constant 0 : index
    %c0_11 = arith.constant 0 : index
    %c1 = arith.constant 1 : index
    %c0_12 = arith.constant 0 : index
    %13 = vector.load %arg1[%c0_10, %c0_11, %c1, %c0_12] : memref<1x18x18x32xf32, #tpu.memory_space<vmem>>, vector<1x16x16x32xf32>
    %14 = vector.shape_cast %13 : vector<1x16x16x32xf32> to vector<16x16x32xf32>
    %15 = vector.shape_cast %14 : vector<16x16x32xf32> to vector<256x32xf32>
    %16 = arith.truncf %15 : vector<256x32xf32> to vector<256x32xbf16>
    %c1_13 = arith.constant 1 : index
    %c0_14 = arith.constant 0 : index
    %c0_15 = arith.constant 0 : index
    %17 = vector.load %arg3[%c1_13, %c0_14, %c0_15] : memref<9x32x32xbf16, #tpu.memory_space<vmem>>, vector<1x32x32xbf16>
    %18 = vector.shape_cast %17 : vector<1x32x32xbf16> to vector<32x32xbf16>
    %cst_16 = arith.constant dense<0.000000e+00> : vector<256x32xf32>
    %19 = tpu.matmul %16, %18, %cst_16 {dimension_numbers = #tpu.dot_dimension_numbers<[1], [0], [0], [1], [0, 0, 1, 1], [], []>} : vector<256x32xbf16>, vector<32x32xbf16>, vector<256x32xf32> -> vector<256x32xf32>
    %20 = arith.addf %12, %19 : vector<256x32xf32>
    %c0_17 = arith.constant 0 : index
    %c0_18 = arith.constant 0 : index
    %c2 = arith.constant 2 : index
    %c0_19 = arith.constant 0 : index
    %21 = vector.load %arg1[%c0_17, %c0_18, %c2, %c0_19] : memref<1x18x18x32xf32, #tpu.memory_space<vmem>>, vector<1x16x16x32xf32>
    %22 = vector.shape_cast %21 : vector<1x16x16x32xf32> to vector<16x16x32xf32>
    %23 = vector.shape_cast %22 : vector<16x16x32xf32> to vector<256x32xf32>
    %24 = arith.truncf %23 : vector<256x32xf32> to vector<256x32xbf16>
    %c2_20 = arith.constant 2 : index
    %c0_21 = arith.constant 0 : index
    %c0_22 = arith.constant 0 : index
    %25 = vector.load %arg3[%c2_20, %c0_21, %c0_22] : memref<9x32x32xbf16, #tpu.memory_space<vmem>>, vector<1x32x32xbf16>
    %26 = vector.shape_cast %25 : vector<1x32x32xbf16> to vector<32x32xbf16>
    %cst_23 = arith.constant dense<0.000000e+00> : vector<256x32xf32>
    %27 = tpu.matmul %24, %26, %cst_23 {dimension_numbers = #tpu.dot_dimension_numbers<[1], [0], [0], [1], [0, 0, 1, 1], [], []>} : vector<256x32xbf16>, vector<32x32xbf16>, vector<256x32xf32> -> vector<256x32xf32>
    %28 = arith.addf %20, %27 : vector<256x32xf32>
    %c0_24 = arith.constant 0 : index
    %c1_25 = arith.constant 1 : index
    %c0_26 = arith.constant 0 : index
    %c0_27 = arith.constant 0 : index
    %29 = vector.load %arg1[%c0_24, %c1_25, %c0_26, %c0_27] : memref<1x18x18x32xf32, #tpu.memory_space<vmem>>, vector<1x16x16x32xf32>
    %30 = vector.shape_cast %29 : vector<1x16x16x32xf32> to vector<16x16x32xf32>
    %31 = vector.shape_cast %30 : vector<16x16x32xf32> to vector<256x32xf32>
    %32 = arith.truncf %31 : vector<256x32xf32> to vector<256x32xbf16>
    %c3 = arith.constant 3 : index
    %c0_28 = arith.constant 0 : index
    %c0_29 = arith.constant 0 : index
    %33 = vector.load %arg3[%c3, %c0_28, %c0_29] : memref<9x32x32xbf16, #tpu.memory_space<vmem>>, vector<1x32x32xbf16>
    %34 = vector.shape_cast %33 : vector<1x32x32xbf16> to vector<32x32xbf16>
    %cst_30 = arith.constant dense<0.000000e+00> : vector<256x32xf32>
    %35 = tpu.matmul %32, %34, %cst_30 {dimension_numbers = #tpu.dot_dimension_numbers<[1], [0], [0], [1], [0, 0, 1, 1], [], []>} : vector<256x32xbf16>, vector<32x32xbf16>, vector<256x32xf32> -> vector<256x32xf32>
    %36 = arith.addf %28, %35 : vector<256x32xf32>
    %c0_31 = arith.constant 0 : index
    %c1_32 = arith.constant 1 : index
    %c1_33 = arith.constant 1 : index
    %c0_34 = arith.constant 0 : index
    %37 = vector.load %arg1[%c0_31, %c1_32, %c1_33, %c0_34] : memref<1x18x18x32xf32, #tpu.memory_space<vmem>>, vector<1x16x16x32xf32>
    %38 = vector.shape_cast %37 : vector<1x16x16x32xf32> to vector<16x16x32xf32>
    %39 = vector.shape_cast %38 : vector<16x16x32xf32> to vector<256x32xf32>
    %40 = arith.truncf %39 : vector<256x32xf32> to vector<256x32xbf16>
    %c4 = arith.constant 4 : index
    %c0_35 = arith.constant 0 : index
    %c0_36 = arith.constant 0 : index
    %41 = vector.load %arg3[%c4, %c0_35, %c0_36] : memref<9x32x32xbf16, #tpu.memory_space<vmem>>, vector<1x32x32xbf16>
    %42 = vector.shape_cast %41 : vector<1x32x32xbf16> to vector<32x32xbf16>
    %cst_37 = arith.constant dense<0.000000e+00> : vector<256x32xf32>
    %43 = tpu.matmul %40, %42, %cst_37 {dimension_numbers = #tpu.dot_dimension_numbers<[1], [0], [0], [1], [0, 0, 1, 1], [], []>} : vector<256x32xbf16>, vector<32x32xbf16>, vector<256x32xf32> -> vector<256x32xf32>
    %44 = arith.addf %36, %43 : vector<256x32xf32>
    %c0_38 = arith.constant 0 : index
    %c1_39 = arith.constant 1 : index
    %c2_40 = arith.constant 2 : index
    %c0_41 = arith.constant 0 : index
    %45 = vector.load %arg1[%c0_38, %c1_39, %c2_40, %c0_41] : memref<1x18x18x32xf32, #tpu.memory_space<vmem>>, vector<1x16x16x32xf32>
    %46 = vector.shape_cast %45 : vector<1x16x16x32xf32> to vector<16x16x32xf32>
    %47 = vector.shape_cast %46 : vector<16x16x32xf32> to vector<256x32xf32>
    %48 = arith.truncf %47 : vector<256x32xf32> to vector<256x32xbf16>
    %c5 = arith.constant 5 : index
    %c0_42 = arith.constant 0 : index
    %c0_43 = arith.constant 0 : index
    %49 = vector.load %arg3[%c5, %c0_42, %c0_43] : memref<9x32x32xbf16, #tpu.memory_space<vmem>>, vector<1x32x32xbf16>
    %50 = vector.shape_cast %49 : vector<1x32x32xbf16> to vector<32x32xbf16>
    %cst_44 = arith.constant dense<0.000000e+00> : vector<256x32xf32>
    %51 = tpu.matmul %48, %50, %cst_44 {dimension_numbers = #tpu.dot_dimension_numbers<[1], [0], [0], [1], [0, 0, 1, 1], [], []>} : vector<256x32xbf16>, vector<32x32xbf16>, vector<256x32xf32> -> vector<256x32xf32>
    %52 = arith.addf %44, %51 : vector<256x32xf32>
    %c0_45 = arith.constant 0 : index
    %c2_46 = arith.constant 2 : index
    %c0_47 = arith.constant 0 : index
    %c0_48 = arith.constant 0 : index
    %53 = vector.load %arg1[%c0_45, %c2_46, %c0_47, %c0_48] : memref<1x18x18x32xf32, #tpu.memory_space<vmem>>, vector<1x16x16x32xf32>
    %54 = vector.shape_cast %53 : vector<1x16x16x32xf32> to vector<16x16x32xf32>
    %55 = vector.shape_cast %54 : vector<16x16x32xf32> to vector<256x32xf32>
    %56 = arith.truncf %55 : vector<256x32xf32> to vector<256x32xbf16>
    %c6 = arith.constant 6 : index
    %c0_49 = arith.constant 0 : index
    %c0_50 = arith.constant 0 : index
    %57 = vector.load %arg3[%c6, %c0_49, %c0_50] : memref<9x32x32xbf16, #tpu.memory_space<vmem>>, vector<1x32x32xbf16>
    %58 = vector.shape_cast %57 : vector<1x32x32xbf16> to vector<32x32xbf16>
    %cst_51 = arith.constant dense<0.000000e+00> : vector<256x32xf32>
    %59 = tpu.matmul %56, %58, %cst_51 {dimension_numbers = #tpu.dot_dimension_numbers<[1], [0], [0], [1], [0, 0, 1, 1], [], []>} : vector<256x32xbf16>, vector<32x32xbf16>, vector<256x32xf32> -> vector<256x32xf32>
    %60 = arith.addf %52, %59 : vector<256x32xf32>
    %c0_52 = arith.constant 0 : index
    %c2_53 = arith.constant 2 : index
    %c1_54 = arith.constant 1 : index
    %c0_55 = arith.constant 0 : index
    %61 = vector.load %arg1[%c0_52, %c2_53, %c1_54, %c0_55] : memref<1x18x18x32xf32, #tpu.memory_space<vmem>>, vector<1x16x16x32xf32>
    %62 = vector.shape_cast %61 : vector<1x16x16x32xf32> to vector<16x16x32xf32>
    %63 = vector.shape_cast %62 : vector<16x16x32xf32> to vector<256x32xf32>
    %64 = arith.truncf %63 : vector<256x32xf32> to vector<256x32xbf16>
    %c7 = arith.constant 7 : index
    %c0_56 = arith.constant 0 : index
    %c0_57 = arith.constant 0 : index
    %65 = vector.load %arg3[%c7, %c0_56, %c0_57] : memref<9x32x32xbf16, #tpu.memory_space<vmem>>, vector<1x32x32xbf16>
    %66 = vector.shape_cast %65 : vector<1x32x32xbf16> to vector<32x32xbf16>
    %cst_58 = arith.constant dense<0.000000e+00> : vector<256x32xf32>
    %67 = tpu.matmul %64, %66, %cst_58 {dimension_numbers = #tpu.dot_dimension_numbers<[1], [0], [0], [1], [0, 0, 1, 1], [], []>} : vector<256x32xbf16>, vector<32x32xbf16>, vector<256x32xf32> -> vector<256x32xf32>
    %68 = arith.addf %60, %67 : vector<256x32xf32>
    %c0_59 = arith.constant 0 : index
    %c2_60 = arith.constant 2 : index
    %c2_61 = arith.constant 2 : index
    %c0_62 = arith.constant 0 : index
    %69 = vector.load %arg1[%c0_59, %c2_60, %c2_61, %c0_62] : memref<1x18x18x32xf32, #tpu.memory_space<vmem>>, vector<1x16x16x32xf32>
    %70 = vector.shape_cast %69 : vector<1x16x16x32xf32> to vector<16x16x32xf32>
    %71 = vector.shape_cast %70 : vector<16x16x32xf32> to vector<256x32xf32>
    %72 = arith.truncf %71 : vector<256x32xf32> to vector<256x32xbf16>
    %c8 = arith.constant 8 : index
    %c0_63 = arith.constant 0 : index
    %c0_64 = arith.constant 0 : index
    %73 = vector.load %arg3[%c8, %c0_63, %c0_64] : memref<9x32x32xbf16, #tpu.memory_space<vmem>>, vector<1x32x32xbf16>
    %74 = vector.shape_cast %73 : vector<1x32x32xbf16> to vector<32x32xbf16>
    %cst_65 = arith.constant dense<0.000000e+00> : vector<256x32xf32>
    %75 = tpu.matmul %72, %74, %cst_65 {dimension_numbers = #tpu.dot_dimension_numbers<[1], [0], [0], [1], [0, 0, 1, 1], [], []>} : vector<256x32xbf16>, vector<32x32xbf16>, vector<256x32xf32> -> vector<256x32xf32>
    %76 = arith.addf %68, %75 : vector<256x32xf32>
    %c0_66 = arith.constant 0 : index
    %c0_67 = arith.constant 0 : index
    %77 = vector.load %arg4[%c0_66, %c0_67] : memref<1x32xf32, #tpu.memory_space<vmem>>, vector<1x32xf32>
    %78 = vector.broadcast %77 : vector<1x32xf32> to vector<256x32xf32>
    %79 = arith.addf %76, %78 : vector<256x32xf32>
    %80 = arith.negf %79 : vector<256x32xf32>
    %81 = math.exp %80 : vector<256x32xf32>
    %cst_68 = arith.constant 1.000000e+00 : f32
    %82 = vector.broadcast %cst_68 : f32 to vector<256x32xf32>
    %83 = arith.addf %82, %81 : vector<256x32xf32>
    %84 = arith.divf %82, %83 : vector<256x32xf32>
    %85 = arith.mulf %79, %84 : vector<256x32xf32>
    %86 = arith.addf %2, %85 : vector<256x32xf32>
    %87 = arith.truncf %86 : vector<256x32xf32> to vector<256x32xbf16>
    %c0_69 = arith.constant 0 : index
    %c0_70 = arith.constant 0 : index
    %88 = vector.load %arg5[%c0_69, %c0_70] : memref<32x64xbf16, #tpu.memory_space<vmem>>, vector<32x64xbf16>
    %cst_71 = arith.constant dense<0.000000e+00> : vector<256x64xf32>
    %89 = tpu.matmul %87, %88, %cst_71 {dimension_numbers = #tpu.dot_dimension_numbers<[1], [0], [0], [1], [0, 0, 1, 1], [], []>} : vector<256x32xbf16>, vector<32x64xbf16>, vector<256x64xf32> -> vector<256x64xf32>
    %90 = arith.truncf %3 : vector<256x32xf32> to vector<256x32xbf16>
    %c0_72 = arith.constant 0 : index
    %c0_73 = arith.constant 0 : index
    %91 = vector.load %arg6[%c0_72, %c0_73] : memref<32x64xbf16, #tpu.memory_space<vmem>>, vector<32x64xbf16>
    %cst_74 = arith.constant dense<0.000000e+00> : vector<256x64xf32>
    %92 = tpu.matmul %90, %91, %cst_74 {dimension_numbers = #tpu.dot_dimension_numbers<[1], [0], [0], [1], [0, 0, 1, 1], [], []>} : vector<256x32xbf16>, vector<32x64xbf16>, vector<256x64xf32> -> vector<256x64xf32>
    %93 = arith.addf %89, %92 : vector<256x64xf32>
    %c0_75 = arith.constant 0 : index
    %c0_76 = arith.constant 0 : index
    %94 = vector.load %arg7[%c0_75, %c0_76] : memref<1x64xf32, #tpu.memory_space<vmem>>, vector<1x64xf32>
    %95 = vector.broadcast %94 : vector<1x64xf32> to vector<256x64xf32>
    %96 = arith.addf %93, %95 : vector<256x64xf32>
    %97 = arith.negf %96 : vector<256x64xf32>
    %98 = math.exp %97 : vector<256x64xf32>
    %cst_77 = arith.constant 1.000000e+00 : f32
    %99 = vector.broadcast %cst_77 : f32 to vector<256x64xf32>
    %100 = arith.addf %99, %98 : vector<256x64xf32>
    %101 = arith.divf %99, %100 : vector<256x64xf32>
    %102 = arith.mulf %96, %101 : vector<256x64xf32>
    %103 = tpu.transpose %102, [1, 0] : vector<256x64xf32> -> vector<64x256xf32>
    %c0_78 = arith.constant 0 : index
    %c0_79 = arith.constant 0 : index
    %c0_80 = arith.constant 0 : index
    %104 = vector.load %arg8[%c0_78, %c0_79, %c0_80] : memref<1x64x256xf32, #tpu.memory_space<vmem>>, vector<1x64x256xf32>
    %105 = vector.shape_cast %104 : vector<1x64x256xf32> to vector<64x256xf32>
    %106 = vector.shape_cast %103 : vector<64x256xf32> to vector<1x64x256xf32>
    tpu.vector_store %arg8[%c0_78, %c0_79, %c0_80], %106 {strides = array<i32>} : memref<1x64x256xf32, #tpu.memory_space<vmem>>, vector<1x64x256xf32>,
    return
  }
  func.func @transform_0(%arg0: i32) -> (i32, i32, i32, i32) {
    %c0_i32 = arith.constant 0 : i32
    %c0_i32_0 = arith.constant 0 : i32
    %c0_i32_1 = arith.constant 0 : i32
    %c0_i32_2 = arith.constant 0 : i32
    return %arg0, %c0_i32, %c0_i32_0, %c0_i32_1 : i32, i32, i32, i32
  }
  func.func @transform_1(%arg0: i32) -> (i32, i32, i32) {
    %c0_i32 = arith.constant 0 : i32
    %c0_i32_0 = arith.constant 0 : i32
    %c0_i32_1 = arith.constant 0 : i32
    return %arg0, %c0_i32, %c0_i32_0 : i32, i32, i32
  }
  func.func @transform_2(%arg0: i32) -> (i32, i32, i32) {
    %c0_i32 = arith.constant 0 : i32
    %c0_i32_0 = arith.constant 0 : i32
    %c0_i32_1 = arith.constant 0 : i32
    %c0_i32_2 = arith.constant 0 : i32
    return %c0_i32, %c0_i32_0, %c0_i32_1 : i32, i32, i32
  }
  func.func @transform_3(%arg0: i32) -> (i32, i32) {
    %c0_i32 = arith.constant 0 : i32
    %c0_i32_0 = arith.constant 0 : i32
    %c0_i32_1 = arith.constant 0 : i32
    return %c0_i32, %c0_i32_0 : i32, i32
  }
  func.func @transform_4(%arg0: i32) -> (i32, i32) {
    %c0_i32 = arith.constant 0 : i32
    %c0_i32_0 = arith.constant 0 : i32
    %c0_i32_1 = arith.constant 0 : i32
    return %c0_i32, %c0_i32_0 : i32, i32
  }
  func.func @transform_5(%arg0: i32) -> (i32, i32) {
    %c0_i32 = arith.constant 0 : i32
    %c0_i32_0 = arith.constant 0 : i32
    %c0_i32_1 = arith.constant 0 : i32
    return %c0_i32, %c0_i32_0 : i32, i32
  }
  func.func @transform_6(%arg0: i32) -> (i32, i32) {
    %c0_i32 = arith.constant 0 : i32
    %c0_i32_0 = arith.constant 0 : i32
    %c0_i32_1 = arith.constant 0 : i32
    return %c0_i32, %c0_i32_0 : i32, i32
  }
  func.func @transform_7(%arg0: i32) -> (i32, i32, i32) {
    %c0_i32 = arith.constant 0 : i32
    %c0_i32_0 = arith.constant 0 : i32
    %c0_i32_1 = arith.constant 0 : i32
    return %arg0, %c0_i32, %c0_i32_0 : i32, i32, i32
  }
}

</mosaic_0001>

<bundles_post_ra>
// kernel: c3_forward.2
= control target key start
LH: loop header
LB: loop body
LE: loop exit
PB: predicated region body
PF: predicated region fallthrough
CT: control target
= control target key end

     0   :  { %s2851_s18 = smov 0   ;;  %s2853_s19 = smov 0   ;;  %s4622_s0 = inlined_call_operand.vmem [shape: f32[2,64,256], index: 0, kind: input, shape index: {}]   ;;  %s4623_s1 = inlined_call_operand.vmem [shape: bf16[64,64], index: 1, kind: input, shape index: {}]   ;;  %s4624_s2 = inlined_call_operand.vmem [shape: f32[1,64], index: 2, kind: input, shape index: {}]   ;;  %s4625_s3 = inlined_call_operand.vmem [shape: bf16[32,32], index: 3, kind: input, shape index: {}]   ;;  %s4626_s4 = inlined_call_operand.vmem [shape: f32[1,32], index: 4, kind: input, shape index: {}]   ;;  %s4627_s5 = inlined_call_operand.vmem [shape: f32[2,256,96], index: 5, kind: output, shape index: {}]  }
   0x1   :  { %s2855_s20 = smov 0  }
   0x2 LB: > { %s27_s21 = sadd.s32 1, %s2814_s19  ;;  %p2273_p0 = scmp.ge.s32.totalorder %s2818_s20, 1  ;;  %s2818_s20 = sphi %s2855_s20, %s15_s20   ;;  %s2814_s19 = sphi %s2853_s19, %s4787_s19   ;;  %s2810_s18 = sphi %s2851_s18, %s4786_s18  }
   0x3   : > { %p29_p1 = scmp.ge.s32.totalorder %s27_s21, 2  ;;  %p208_p2 = scmp.lt.s32.totalorder %s2818_s20, 3 }
   0x5   : > { %s4789_s21 = smov (%p29_p1, %s27_s21), 0  ;;  %p209_p3 = pnand %p2273_p0, %p208_p2 }
   0x7   : > { %212 = sbr.rel (%p209_p3) target bundleno = 830 (0x33e), region = 40 }
   0xc   : > { %p245_p4 = scmp.lt.s32.totalorder %s2810_s18, 1  ;;  %v2405_v12 = vld [vmem:[%s4623_s1 + $0x18] sm:$0xff]  ;;  %v2404_v25 = vld [vmem:[%s4623_s1 + $0x10] sm:$0xff]  ;;  %v2403_v26 = vld [vmem:[%s4623_s1 + $0x8] sm:$0xff]  ;;  %vm397_vm0 = vcmask 523264   ;;  %vm1211_vm9 = vcmask 261120  }
   0xd   : > { %450 = vmatpush.bf16.msra.mxu0 %v2405_v12  ;;  %2408 = vmatpush.bf16.msra.mxu2 %v2405_v12  ;;  %v2402_v27 = vld [vmem:[%s4623_s1] sm:$0xff]  ;;  %s2820_s23 = smov 64  }
   0xe   : > { %s4791_s18 = smov (!%p245_p4, %s2810_s18), 1 }
   0xf   : > { %s2400_s22 = sshll.u32 %s4791_s18, 7  ;;  %s2401_s24 = sshll.u32 %s4791_s18, 8 }
  0x10   : > { %s2875_s25 = scalar_lea.vmem %s4622_s0, %s2400_s22  ;;  %s4156_s26 = scalar_lea.vmem %s4627_s5, %s2401_s24 }
  0x11   : > { %v265_v0 = vld [vmem:[%s2875_s25] sm:$0xff]  ;;  %v266_v1 = vld [vmem:[%s2875_s25 + $0x8] sm:$0xff]  ;;  %v267_v3 = vld [vmem:[%s2875_s25 + $0x10] sm:$0xff]  ;;  %451 = vmatpush.bf16.msra.mxu0 %v2404_v25  ;;  %2409 = vmatpush.bf16.msra.mxu2 %v2404_v25 }
  0x12   : > { %v2440_v2 = vpack.i.bf16 %v266_v1, %v265_v0  ;;  %v268_v4 = vld [vmem:[%s2875_s25 + $0x18] sm:$0xff]  ;;  %v269_v6 = vld [vmem:[%s2875_s25 + $0x20] sm:$0xff]  ;;  %v270_v7 = vld [vmem:[%s2875_s25 + $0x28] sm:$0xff] }
  0x13   : > { %v2442_v5 = vpack.i.bf16 %v268_v4, %v267_v3  ;;  %v2444_v8 = vpack.i.bf16 %v270_v7, %v269_v6  ;;  %v271_v9 = vld [vmem:[%s2875_s25 + $0x30] sm:$0xff]  ;;  %v272_v10 = vld [vmem:[%s2875_s25 + $0x38] sm:$0xff]  ;;  %v273_v13 = vld [vmem:[%s2875_s25 + $0x40] sm:$0xff] }
  0x14   : > { %2441 = vxpose.xlu0.b32.start [1/8] (short) %v2440_v2, 128  ;;  %v2446_v11 = vpack.i.bf16 %v272_v10, %v271_v9  ;;  %v274_v14 = vld [vmem:[%s2875_s25 + $0x48] sm:$0xff]  ;;  %v275_v16 = vld [vmem:[%s2875_s25 + $0x50] sm:$0xff]  ;;  %v276_v17 = vld [vmem:[%s2875_s25 + $0x58] sm:$0xff] }
  0x15   : > { %v2448_v15 = vpack.i.bf16 %v274_v14, %v273_v13  ;;  %v2450_v18 = vpack.i.bf16 %v276_v17, %v275_v16  ;;  %v277_v19 = vld [vmem:[%s2875_s25 + $0x60] sm:$0xff]  ;;  %v278_v20 = vld [vmem:[%s2875_s25 + $0x68] sm:$0xff]  ;;  %v279_v22 = vld [vmem:[%s2875_s25 + $0x70] sm:$0xff]  ;;  %452 = vmatpush.bf16.msra.mxu0 %v2403_v26  ;;  %2410 = vmatpush.bf16.msra.mxu2 %v2403_v26 }
  0x16   : > { %v2452_v21 = vpack.i.bf16 %v278_v20, %v277_v19  ;;  %v280_v23 = vld [vmem:[%s2875_s25 + $0x78] sm:$0xff] }
  0x17   : > { %v2454_v24 = vpack.i.bf16 %v280_v23, %v279_v22 }
  0x19   : > { %453 = vmatpush.bf16.msra.mxu0 %v2402_v27  ;;  %2411 = vmatpush.bf16.msra.mxu2 %v2402_v27 }
  0x1c   : > { %2443 = vxpose.xlu0.b32.cont [2/8] (short) %v2442_v5, 128 }
  0x24   : > { %2445 = vxpose.xlu0.b32.cont [3/8] (short) %v2444_v8, 128 }
  0x2c   : > { %2447 = vxpose.xlu0.b32.cont [4/8] (short) %v2446_v11, 128 }
  0x34   : > { %2449 = vxpose.xlu0.b32.cont [5/8] (short) %v2448_v15, 128 }
  0x3c   : > { %2451 = vxpose.xlu0.b32.cont [6/8] (short) %v2450_v18, 128 }
  0x44   : > { %2453 = vxpose.xlu0.b32.cont [7/8] (short) %v2452_v21, 128 }
  0x4c   : > { %2455 = vxpose.xlu0.b32.end [8/8] (short) %v2454_v24, 128 }
  0xb8   : > { %v2456_v28 = vpop.trf.xlu0 }
  0xb9   : > { %v2460_v29 = vunpack.i.h.bf16 %v2456_v28  ;;  %v2457_v30 = vunpack.i.l.bf16 %v2456_v28  ;;  %v2924_v28 = vld [vmem:[%s4624_s2] ss:$0 sm:$0xff] }
  0xc0   : > { %v2461_v31 = vpop.trf.xlu0 }
  0xc1   : > { %v2465_v32 = vunpack.i.h.bf16 %v2461_v31  ;;  %v2462_v33 = vunpack.i.l.bf16 %v2461_v31 }
  0xc3   : > { %v345_v34 = vpack.c.bf16 %v2462_v33, %v2457_v30  ;;  %v353_v35 = vpack.c.bf16 %v2465_v32, %v2460_v29 }
  0xc5   : > { %2294 = vmatmul.msk.bf16.vlgmr.msra.gmra.mxu0 %vm397_vm0, %v345_v34  ;;  %2302 = vmatmul.msk.bf16.vlgmr.msra.gmra.mxu2 %vm397_vm0, %v353_v35  ;;  %v2407_v34 = vld [vmem:[%s4625_s3 + $0x8] sm:$0xff] }
  0xc6   : > { %1266 = vmatpush.bf16.msra.mxu1 %v2407_v34  ;;  %2412 = vmatpush.bf16.msra.mxu3 %v2407_v34 }
  0xc8   : > { %v2466_v36 = vpop.trf.xlu0 }
  0xc9   : > { %v2470_v37 = vunpack.i.h.bf16 %v2466_v36  ;;  %v2467_v38 = vunpack.i.l.bf16 %v2466_v36 }
  0xd0   : > { %v2471_v39 = vpop.trf.xlu0 }
  0xd1   : > { %v2475_v40 = vunpack.i.h.bf16 %v2471_v39  ;;  %v2472_v41 = vunpack.i.l.bf16 %v2471_v39 }
  0xd3   : > { %v346_v42 = vpack.c.bf16 %v2472_v41, %v2467_v38  ;;  %v354_v43 = vpack.c.bf16 %v2475_v40, %v2470_v37  ;;  %v2406_v40 = vld [vmem:[%s4625_s3] sm:$0xff] }
  0xd4   : > { %1267 = vmatpush.bf16.msra.mxu1 %v2406_v40  ;;  %2413 = vmatpush.bf16.msra.mxu3 %v2406_v40 }
  0xd5   : > { %2295 = vmatmul.msk.bf16.gmra.mxu0 %vm397_vm0, %v346_v42  ;;  %2303 = vmatmul.msk.bf16.gmra.mxu2 %vm397_vm0, %v354_v43 }
  0xd8   : > { %v2476_v44 = vpop.trf.xlu0 }
  0xd9   : > { %v2480_v45 = vunpack.i.h.bf16 %v2476_v44  ;;  %v2477_v46 = vunpack.i.l.bf16 %v2476_v44 }
  0xe0   : > { %v2481_v47 = vpop.trf.xlu0 }
  0xe1   : > { %v2485_v48 = vunpack.i.h.bf16 %v2481_v47  ;;  %v2482_v49 = vunpack.i.l.bf16 %v2481_v47 }
  0xe3   : > { %v347_v50 = vpack.c.bf16 %v2482_v49, %v2477_v46  ;;  %v355_v51 = vpack.c.bf16 %v2485_v48, %v2480_v45 }
  0xe5   : > { %2296 = vmatmul.msk.bf16.gmra.mxu0 %vm397_vm0, %v347_v50  ;;  %2304 = vmatmul.msk.bf16.gmra.mxu2 %vm397_vm0, %v355_v51 }
  0xe8   : > { %v2486_v52 = vpop.trf.xlu0 }
  0xe9   : > { %v2490_v53 = vunpack.i.h.bf16 %v2486_v52  ;;  %v2487_v54 = vunpack.i.l.bf16 %v2486_v52 }
  0xf0   : > { %v2491_v55 = vpop.trf.xlu0 }
  0xf1   : > { %v2495_v56 = vunpack.i.h.bf16 %v2491_v55  ;;  %v2492_v57 = vunpack.i.l.bf16 %v2491_v55 }
  0xf3   : > { %v348_v58 = vpack.c.bf16 %v2492_v57, %v2487_v54  ;;  %v356_v59 = vpack.c.bf16 %v2495_v56, %v2490_v53 }
  0xf5   : > { %2297 = vmatmul.msk.bf16.gmra.mxu0 %vm397_vm0, %v348_v58  ;;  %2305 = vmatmul.msk.bf16.gmra.mxu2 %vm397_vm0, %v356_v59 }
  0xf8   : > { %v2496_v60 = vpop.trf.xlu0 }
  0xf9   : > { %v2500_v61 = vunpack.i.h.bf16 %v2496_v60  ;;  %v2497_v62 = vunpack.i.l.bf16 %v2496_v60 }
 0x100   : > { %v2501_v63 = vpop.trf.xlu0 }
 0x101   : > { %v2505_v0 = vunpack.i.h.bf16 %v2501_v63  ;;  %v2502_v1 = vunpack.i.l.bf16 %v2501_v63 }
 0x103   : > { %v349_v2 = vpack.c.bf16 %v2502_v1, %v2497_v62  ;;  %v357_v3 = vpack.c.bf16 %v2505_v0, %v2500_v61 }
 0x105   : > { %2298 = vmatmul.msk.bf16.gmra.mxu0 %vm397_vm0, %v349_v2  ;;  %2306 = vmatmul.msk.bf16.gmra.mxu2 %vm397_vm0, %v357_v3 }
 0x108   : > { %v2506_v4 = vpop.trf.xlu0 }
 0x109   : > { %v2510_v5 = vunpack.i.h.bf16 %v2506_v4  ;;  %v2507_v6 = vunpack.i.l.bf16 %v2506_v4 }
 0x110   : > { %v2511_v7 = vpop.trf.xlu0 }
 0x111   : > { %v2515_v8 = vunpack.i.h.bf16 %v2511_v7  ;;  %v2512_v9 = vunpack.i.l.bf16 %v2511_v7 }
 0x113   : > { %v350_v10 = vpack.c.bf16 %v2512_v9, %v2507_v6  ;;  %v358_v11 = vpack.c.bf16 %v2515_v8, %v2510_v5 }
 0x115   : > { %2299 = vmatmul.msk.bf16.gmra.mxu0 %vm397_vm0, %v350_v10  ;;  %2307 = vmatmul.msk.bf16.gmra.mxu2 %vm397_vm0, %v358_v11 }
 0x118   : > { %v2516_v12 = vpop.trf.xlu0 }
 0x119   : > { %v2520_v13 = vunpack.i.h.bf16 %v2516_v12  ;;  %v2517_v14 = vunpack.i.l.bf16 %v2516_v12 }
 0x120   : > { %v2521_v15 = vpop.trf.xlu0 }
 0x121   : > { %v2525_v16 = vunpack.i.h.bf16 %v2521_v15  ;;  %v2522_v17 = vunpack.i.l.bf16 %v2521_v15 }
 0x123   : > { %v351_v18 = vpack.c.bf16 %v2522_v17, %v2517_v14  ;;  %v359_v19 = vpack.c.bf16 %v2525_v16, %v2520_v13 }
 0x125   : > { %2300 = vmatmul.msk.bf16.gmra.mxu0 %vm397_vm0, %v351_v18  ;;  %2308 = vmatmul.msk.bf16.gmra.mxu2 %vm397_vm0, %v359_v19 }
 0x128   : > { %v2526_v20 = vpop.trf.xlu0 }
 0x129   : > { %v2530_v21 = vunpack.i.h.bf16 %v2526_v20  ;;  %v2527_v22 = vunpack.i.l.bf16 %v2526_v20 }
 0x130   : > { %v2531_v23 = vpop.trf.xlu0 }
 0x131   : > { %v2535_v24 = vunpack.i.h.bf16 %v2531_v23  ;;  %v2532_v25 = vunpack.i.l.bf16 %v2531_v23 }
 0x133   : > { %v352_v26 = vpack.c.bf16 %v2532_v25, %v2527_v22  ;;  %v360_v27 = vpack.c.bf16 %v2535_v24, %v2530_v21 }
 0x135   : > { %2301 = vmatmul.msk.bf16.gmra.mxu0 %vm397_vm0, %v352_v26  ;;  %2309 = vmatmul.msk.bf16.gmra.mxu2 %vm397_vm0, %v360_v27 }
 0x142   : > { %v455_v29 = vpop.f32.mrf.mxu0 }
 0x143   : > { %v2927_v30 = vadd.f32 %v2924_v28, %v455_v29 }
 0x145   : > { %v2310_v31 = vmul.f32 -1.442695, %v2927_v30 }
 0x147   : > { %2538 = vpow2.f32 %v2310_v31 }
 0x148   : > { %v2930_v32 = vpop.f32.mrf.mxu2 }
 0x149   : > { %v3009_v26 = vadd.f32 %v2924_v28, %v2930_v32 }
 0x14a   : > { %v457_v33 = vpop.f32.mrf.mxu0 }
 0x14b   : > { %v2936_v35 = vadd.f32 %v2924_v28, %v457_v33 }
 0x14d   : > { %v2539_v36 = vpop.eup %2538  ;;  %v2311_v37 = vmul.f32 -1.442695, %v2936_v35 }
 0x14e   : > { %v2939_v38 = vadd.f32 1.0, %v2539_v36 }
 0x14f   : > { %2540 = vpow2.f32 %v2311_v37 }
 0x150   : > { %v2941_v39 = vpop.f32.mrf.mxu2  ;;  %2542 = vrcp.f32 %v2939_v38  ;;  %v674_v12 = vand.u32 2147483648, %v2939_v38  ;;  %vm668_vm4 = vweird.f32 %v2939_v38  ;;  %v672_v17 = vand.u32 2147483647, %v2939_v38 }
 0x152   : > { %v460_v41 = vpop.f32.mrf.mxu0  ;;  %v675_v25 = vor.u32 1.1754944e-38, %v674_v12  ;;  %vm673_vm8 = vcmp.eq.f32.partialorder %v672_v17, 8.507059e+37 }
 0x153   : > { %v2947_v42 = vadd.f32 %v2924_v28, %v460_v41 }
 0x155   : > { %v2541_v43 = vpop.eup %2540  ;;  %v2312_v44 = vmul.f32 -1.442695, %v2947_v42 }
 0x156   : > { %v632_v45 = vadd.f32 1.0, %v2541_v43  ;;  %v2951_v47 = vpop.eup %2542 }
 0x157   : > { %2544 = vpow2.f32 %v2312_v44  ;;  %v664_v53 = vmul.f32 %v2951_v47, %v2939_v38  ;;  %vm669_vm2 = vweird.f32 %v2951_v47  ;;  %v3024_v44 = vmul.f32 -1.442695, %v3009_v26 }
 0x158   : > { %v500_v46 = vpop.f32.mrf.mxu2  ;;  %2546 = vrcp.f32 %v632_v45  ;;  %v689_v13 = vand.u32 2147483648, %v632_v45  ;;  %vm683_vm3 = vweird.f32 %v632_v45  ;;  %v687_v14 = vand.u32 2147483647, %v632_v45  ;;  %vm2997_vm6 = vmor %vm668_vm4, %vm669_vm2 }
 0x159   : > { %v2954_v48 = vadd.f32 %v2924_v28, %v500_v46  ;;  %v665_v59 = vsub.f32 1.0, %v664_v53 }
 0x15a   : > { %v462_v49 = vpop.f32.mrf.mxu0  ;;  %v690_v27 = vor.u32 1.1754944e-38, %v689_v13  ;;  %vm688_vm7 = vcmp.eq.f32.partialorder %v687_v14, 8.507059e+37 }
 0x15b   : > { %v2957_v50 = vadd.f32 %v2924_v28, %v462_v49  ;;  %v2328_v51 = vmul.f32 -1.442695, %v2954_v48  ;;  %v666_v2 = vmul.f32 %v2951_v47, %v665_v59 }
 0x15d   : > { %v2545_v52 = vpop.eup %2544  ;;  %2548 = vpow2.f32 %v2328_v51  ;;  %v2313_v56 = vmul.f32 -1.442695, %v2957_v50  ;;  %v667_v11 = vadd.f32 %v2951_v47, %v666_v2 }
 0x15e   : > { %v2547_v54 = vpop.eup %2546  ;;  %v2962_v55 = vadd.f32 1.0, %v2545_v52 }
 0x15f   : > { %v679_v57 = vmul.f32 %v2547_v54, %v632_v45  ;;  %vm684_vm1 = vweird.f32 %v2547_v54  ;;  %v671_v24 = vsel %vm2997_vm6, %v2951_v47, %v667_v11 }
 0x160   : > { %v502_v58 = vpop.f32.mrf.mxu2  ;;  %2550 = vrcp.f32 %v2962_v55  ;;  %vm2990_vm5 = vmor %vm683_vm3, %vm684_vm1  ;;  %v702_v37 = vand.u32 2147483647, %v2962_v55  ;;  %v676_v38 = vsel %vm673_vm8, %v675_v25, %v671_v24  ;;  %v704_v32 = vand.u32 2147483648, %v2962_v55 }
 0x161   : > { %v680_v60 = vsub.f32 1.0, %v679_v57  ;;  %2552 = vpow2.f32 %v2313_v56  ;;  %v2967_v62 = vadd.f32 %v2924_v28, %v502_v58  ;;  %v3035_v53 = vmul.f32 %v676_v38, %v2927_v30 }
 0x162   : > { %v465_v61 = vpop.f32.mrf.mxu0  ;;  %vm698_vm10 = vweird.f32 %v2962_v55  ;;  %vm3038_vm11 = vcmp.eq.f32.partialorder %v702_v37, 8.507059e+37  ;;  %v705_v57 = vor.u32 1.1754944e-38, %v704_v32 }
 0x163   : > { %v2970_v63 = vadd.f32 %v2924_v28, %v465_v61  ;;  %v681_v0 = vmul.f32 %v2547_v54, %v680_v60  ;;  %v2549_v1 = vpop.eup %2548  ;;  %v2329_v3 = vmul.f32 -1.442695, %v2967_v62 }
 0x164   : > { %v2974_v4 = vadd.f32 1.0, %v2549_v1 }
 0x165   : > { %2554 = vpow2.f32 %v2329_v3  ;;  %v2314_v6 = vmul.f32 -1.442695, %v2970_v63  ;;  %v682_v7 = vadd.f32 %v2547_v54, %v681_v0 }
 0x166   : > { %v2976_v5 = vpop.eup %2550  ;;  %2556 = vrcp.f32 %v2974_v4  ;;  %v944_v59 = vand.u32 2147483648, %v2974_v4  ;;  %vm938_vm6 = vweird.f32 %v2974_v4 }
 0x167   : > { %v694_v8 = vmul.f32 %v2976_v5, %v2962_v55  ;;  %v2553_v10 = vpop.eup %2552  ;;  %2558 = vpow2.f32 %v2314_v6  ;;  %v686_v21 = vsel %vm2990_vm5, %v2547_v54, %v682_v7  ;;  %vm699_vm12 = vweird.f32 %v2976_v5 }
 0x168   : > { %v505_v9 = vpop.f32.mrf.mxu2  ;;  %v2985_v15 = vadd.f32 1.0, %v2553_v10  ;;  %v691_v36 = vsel %vm688_vm7, %v690_v27, %v686_v21  ;;  %vm3060_vm13 = vmor %vm698_vm10, %vm699_vm12 }
 0x169   : > { %v2995_v19 = vadd.f32 %v2924_v28, %v505_v9  ;;  %v695_v22 = vsub.f32 1.0, %v694_v8  ;;  %v3029_v47 = vmul.f32 %v691_v36, %v2936_v35 }
 0x16a   : > { %v467_v16 = vpop.f32.mrf.mxu0  ;;  %2560 = vrcp.f32 %v2985_v15  ;;  %v717_v61 = vand.u32 2147483647, %v2985_v15  ;;  %v719_v7 = vand.u32 2147483648, %v2985_v15  ;;  %vm713_vm1 = vweird.f32 %v2985_v15 }
 0x16b   : > { %v2555_v23 = vpop.eup %2554  ;;  %v2330_v33 = vmul.f32 -1.442695, %v2995_v19  ;;  %v3017_v34 = vadd.f32 %v2924_v28, %v467_v16  ;;  %v696_v40 = vmul.f32 %v2976_v5, %v695_v22  ;;  %v1175_v0 = vpack.c.bf16 %v3029_v47, %v3035_v53 }
 0x16c   : > { %v3011_v29 = vpop.eup %2556  ;;  %v3013_v31 = vadd.f32 1.0, %v2555_v23  ;;  %vm718_vm3 = vcmp.eq.f32.partialorder %v717_v61, 8.507059e+37  ;;  %v720_v23 = vor.u32 1.1754944e-38, %v719_v7 }
 0x16d   : > { %v2559_v43 = vpop.eup %2558  ;;  %v934_v45 = vmul.f32 %v3011_v29, %v2974_v4  ;;  %v2315_v51 = vmul.f32 -1.442695, %v3017_v34  ;;  %v697_v35 = vadd.f32 %v2976_v5, %v696_v40  ;;  %vm939_vm15 = vweird.f32 %v3011_v29  ;;  %2350 = vmatmul.msk.bf16.vlgmr.msra.gmra.mxu1 %vm1211_vm9, %v1175_v0 }
 0x16e   : > { %2562 = vrcp.f32 %v3013_v31  ;;  %v3031_v49 = vadd.f32 1.0, %v2559_v43  ;;  %vm953_vm4 = vweird.f32 %v3013_v31  ;;  %v959_v38 = vand.u32 2147483648, %v3013_v31  ;;  %vm3118_vm8 = vmor %vm938_vm6, %vm939_vm15 }
 0x16f   : > { %2564 = vpow2.f32 %v2330_v33  ;;  %v935_v58 = vsub.f32 1.0, %v934_v45  ;;  %v701_v10 = vsel %vm3060_vm13, %v2976_v5, %v697_v35  ;;  %v957_v40 = vand.u32 2147483647, %v3013_v31 }
 0x170   : > { %v507_v41 = vpop.f32.mrf.mxu2  ;;  %v2561_v46 = vpop.eup %2560  ;;  %2566 = vrcp.f32 %v3031_v49  ;;  %v706_v25 = vsel %vm3038_vm11, %v705_v57, %v701_v10  ;;  %v942_v43 = vand.u32 2147483647, %v2974_v4  ;;  %v945_v45 = vor.u32 1.1754944e-38, %v944_v59 }
 0x171   : > { %v709_v56 = vmul.f32 %v2561_v46, %v2985_v15  ;;  %2568 = vpow2.f32 %v2315_v51  ;;  %v3053_v1 = vadd.f32 %v2924_v28, %v507_v41  ;;  %vm714_vm14 = vweird.f32 %v2561_v46 }
 0x172   : > { %v470_v52 = vpop.f32.mrf.mxu0  ;;  %v936_v12 = vmul.f32 %v3011_v29, %v935_v58  ;;  %vm3080_vm2 = vmor %vm713_vm1, %vm714_vm14  ;;  %v3130_v57 = vmul.f32 %v706_v25, %v2947_v42  ;;  %v960_v59 = vor.u32 1.1754944e-38, %v959_v38  ;;  %vm958_vm10 = vcmp.eq.f32.partialorder %v957_v40, 8.507059e+37 }
 0x173   : > { %v710_v30 = vsub.f32 1.0, %v709_v56  ;;  %v3056_v2 = vadd.f32 %v2924_v28, %v470_v52  ;;  %v2331_v55 = vmul.f32 -1.442695, %v3053_v1  ;;  %v732_v61 = vand.u32 2147483647, %v3031_v49 }
 0x174   : > { %v3047_v60 = vpop.eup %2562  ;;  %v937_v33 = vadd.f32 %v3011_v29, %v936_v12  ;;  %vm943_vm11 = vcmp.eq.f32.partialorder %v942_v43, 8.507059e+37  ;;  %v734_v42 = vand.u32 2147483648, %v3031_v49  ;;  %v3150_v10 = vadd.f32 %v2924_v28, %v2941_v39 }
 0x175   : > { %v711_v6 = vmul.f32 %v2561_v46, %v710_v30  ;;  %v949_v8 = vmul.f32 %v3047_v60, %v3013_v31  ;;  %v2565_v9 = vpop.eup %2564  ;;  %2570 = vpow2.f32 %v2331_v55  ;;  %v2316_v15 = vmul.f32 -1.442695, %v3056_v2 }
 0x176   : > { %v3075_v16 = vadd.f32 1.0, %v2565_v9  ;;  %v3077_v17 = vpop.eup %2566  ;;  %vm954_vm5 = vweird.f32 %v3047_v60  ;;  %v941_v58 = vsel %vm3118_vm8, %v3011_v29, %v937_v33  ;;  %vm728_vm12 = vweird.f32 %v3031_v49 }
 0x177   : > { %v712_v13 = vadd.f32 %v2561_v46, %v711_v6  ;;  %v950_v14 = vsub.f32 1.0, %v949_v8  ;;  %v2569_v21 = vpop.eup %2568  ;;  %v724_v27 = vmul.f32 %v3077_v17, %v3031_v49  ;;  %vm3109_vm7 = vmor %vm953_vm4, %vm954_vm5  ;;  %v946_v7 = vsel %vm943_vm11, %v945_v45, %v941_v58 }
 0x178   : > { %v510_v11 = vpop.f32.mrf.mxu2  ;;  %2572 = vrcp.f32 %v3075_v16  ;;  %v3102_v32 = vadd.f32 1.0, %v2569_v21  ;;  %vm3158_vm13 = vcmp.eq.f32.partialorder %v732_v61, 8.507059e+37  ;;  %v974_v5 = vand.u32 2147483648, %v3075_v16 }
 0x179   : > { %v3086_v18 = vadd.f32 %v2924_v28, %v510_v11  ;;  %v716_v22 = vsel %vm3080_vm2, %v2561_v46, %v712_v13  ;;  %v951_v24 = vmul.f32 %v3047_v60, %v950_v14  ;;  %2574 = vpow2.f32 %v2316_v15 }
 0x17a   : > { %v472_v20 = vpop.f32.mrf.mxu0  ;;  %v721_v36 = vsel %vm718_vm3, %v720_v23, %v716_v22  ;;  %v725_v31 = vsub.f32 1.0, %v724_v27  ;;  %2576 = vrcp.f32 %v3102_v32  ;;  %v3167_v39 = vmul.f32 %v946_v7, %v2954_v48 }
 0x17b   : > { %v952_v37 = vadd.f32 %v3047_v60, %v951_v24  ;;  %v2332_v41 = vmul.f32 -1.442695, %v3086_v18  ;;  %v3114_v51 = vadd.f32 %v2924_v28, %v472_v20  ;;  %v2571_v52 = vpop.eup %2570  ;;  %v3123_v56 = vmul.f32 %v721_v36, %v2957_v50 }
 0x17c   : > { %v3135_v30 = vadd.f32 1.0, %v2571_v52  ;;  %v726_v8 = vmul.f32 %v3077_v17, %v725_v31  ;;  %4663 = vst [vmem:[#allocation3_spill] sm:$0xff] %v3167_v39  ;;  %v735_v20 = vor.u32 1.1754944e-38, %v734_v42  ;;  %v972_v21 = vand.u32 2147483647, %v3075_v16 }
 0x17d   : > { %v956_v4 = vsel %vm3109_vm7, %v3047_v60, %v952_v37  ;;  %2578 = vpow2.f32 %v2332_v41  ;;  %v2317_v60 = vmul.f32 -1.442695, %v3114_v51  ;;  %v1176_v9 = vpack.c.bf16 %v3123_v56, %v3130_v57 }
 0x17e   : > { %v3137_v50 = vpop.eup %2572  ;;  %v961_v3 = vsel %vm958_vm10, %v960_v59, %v956_v4  ;;  %2580 = vrcp.f32 %v3135_v30  ;;  %v727_v23 = vadd.f32 %v3077_v17, %v726_v8  ;;  %vm729_vm14 = vweird.f32 %v3077_v17 }
 0x17f   : > { %v964_v6 = vmul.f32 %v3137_v50, %v3075_v16  ;;  %v2575_v29 = vpop.eup %2574  ;;  %v3156_v13 = vmul.f32 %v961_v3, %v2967_v62  ;;  %2582 = vpow2.f32 %v2317_v60  ;;  %vm968_vm15 = vweird.f32 %v3075_v16  ;;  %2351 = vmatmul.msk.bf16.gmra.mxu1 %vm1211_vm9, %v1176_v9  ;;  %vm3192_vm1 = vmor %vm728_vm12, %vm729_vm14 }
 0x180   : > { %v512_v35 = vpop.f32.mrf.mxu2  ;;  %v3153_v11 = vadd.f32 1.0, %v2575_v29  ;;  %v2577_v12 = vpop.eup %2576  ;;  %v749_v27 = vand.u32 2147483648, %v3102_v32  ;;  %v975_v37 = vor.u32 1.1754944e-38, %v974_v5  ;;  %vm3196_vm2 = vcmp.eq.f32.partialorder %v972_v21, 8.507059e+37 }
 0x181   : > { %v965_v55 = vsub.f32 1.0, %v964_v6  ;;  %4660 = vst [vmem:[#allocation2_spill] sm:$0xff] %v3156_v13  ;;  %v3164_v15 = vadd.f32 %v2924_v28, %v512_v35  ;;  %v739_v22 = vmul.f32 %v2577_v12, %v3102_v32  ;;  %v1184_v41 = vpack.c.bf16 %v3156_v13, %v3167_v39 }
 0x182   : > { %v475_v0 = vpop.f32.mrf.mxu0  ;;  %2584 = vrcp.f32 %v3153_v11  ;;  %vm744_vm3 = vweird.f32 %v2577_v12  ;;  %v747_v54 = vand.u32 2147483647, %v3102_v32  ;;  %v731_v49 = vsel %vm3192_vm1, %v3077_v17, %v727_v23 }
 0x183   : > { %v2579_v62 = vpop.eup %2578  ;;  %v966_v48 = vmul.f32 %v3137_v50, %v965_v55  ;;  %v740_v25 = vsub.f32 1.0, %v739_v22  ;;  %v2333_v38 = vmul.f32 -1.442695, %v3164_v15  ;;  %v3184_v40 = vadd.f32 %v2924_v28, %v475_v0  ;;  %2359 = vmatmul.msk.bf16.vlgmr.msra.gmra.mxu3 %vm1211_vm9, %v1184_v41 }
 0x184   : > { %v3178_v33 = vadd.f32 1.0, %v2579_v62  ;;  %v3180_v36 = vpop.eup %2580  ;;  %vm969_vm4 = vweird.f32 %v3137_v50  ;;  %vm743_vm5 = vweird.f32 %v3102_v32  ;;  %v750_v59 = vor.u32 1.1754944e-38, %v749_v27 }
 0x185   : > { %v741_v52 = vmul.f32 %v2577_v12, %v740_v25  ;;  %v979_v4 = vmul.f32 %v3180_v36, %v3135_v30  ;;  %v2583_v31 = vpop.eup %2582  ;;  %v967_v35 = vadd.f32 %v3137_v50, %v966_v48  ;;  %vm745_vm6 = vmor %vm743_vm5, %vm744_vm3  ;;  %v2318_v17 = vmul.f32 -1.442695, %v3184_v40 }
 0x186   : > { %2586 = vrcp.f32 %v3178_v33  ;;  %v3213_v0 = vadd.f32 1.0, %v2583_v31  ;;  %v736_v32 = vsel %vm3158_vm13, %v735_v20, %v731_v49  ;;  %vm748_vm7 = vcmp.eq.f32.partialorder %v747_v54, 8.507059e+37  ;;  %vm3227_vm8 = vmor %vm968_vm15, %vm969_vm4 }
 0x187   : > { %v742_v58 = vadd.f32 %v2577_v12, %v741_v52  ;;  %v980_v61 = vsub.f32 1.0, %v979_v4  ;;  %2588 = vpow2.f32 %v2333_v38  ;;  %vm983_vm10 = vweird.f32 %v3135_v30 }
 0x188   : > { %v515_v24 = vpop.f32.mrf.mxu2  ;;  %v3211_v60 = vpop.eup %2584  ;;  %2590 = vrcp.f32 %v3213_v0  ;;  %v971_v55 = vsel %vm3227_vm8, %v3137_v50, %v967_v35  ;;  %v989_v16 = vand.u32 2147483648, %v3135_v30  ;;  %v3249_v62 = vmul.f32 %v736_v32, %v2970_v63 }
 0x189   : > { %v3217_v3 = vadd.f32 %v2924_v28, %v515_v24  ;;  %v746_v42 = vsel %vm745_vm6, %v2577_v12, %v742_v58  ;;  %v754_v6 = vmul.f32 %v3211_v60, %v3153_v11  ;;  %v981_v8 = vmul.f32 %v3180_v36, %v980_v61 }
 0x18a   : > { %v477_v43 = vpop.f32.mrf.mxu0  ;;  %v751_v7 = vsel %vm748_vm7, %v750_v59, %v746_v42  ;;  %v987_v12 = vand.u32 2147483647, %v3135_v30  ;;  %2592 = vpow2.f32 %v2318_v17  ;;  %v762_v50 = vand.u32 2147483647, %v3153_v11 }
 0x18b   : > { %v755_v14 = vsub.f32 1.0, %v754_v6  ;;  %v3242_v20 = vmul.f32 %v751_v7, %v3017_v34  ;;  %v2334_v21 = vmul.f32 -1.442695, %v3217_v3  ;;  %v3246_v22 = vadd.f32 %v2924_v28, %v477_v43 }
 0x18c   : > { %v3239_v5 = vpop.eup %2586  ;;  %v764_v23 = vand.u32 2147483648, %v3153_v11  ;;  %v976_v34 = vsel %vm3196_vm2, %v975_v37, %v971_v55  ;;  %v982_v27 = vadd.f32 %v3180_v36, %v981_v8  ;;  %vm984_vm11 = vweird.f32 %v3180_v36 }
 0x18d   : > { %v994_v24 = vmul.f32 %v3239_v5, %v3178_v33  ;;  %v2589_v25 = vpop.eup %2588  ;;  %2594 = vpow2.f32 %v2334_v21  ;;  %vm3259_vm12 = vcmp.eq.f32.partialorder %v987_v12, 8.507059e+37  ;;  %v990_v38 = vor.u32 1.1754944e-38, %v989_v16  ;;  %vm3275_vm14 = vmor %vm983_vm10, %vm984_vm11 }
 0x18e   : > { %v756_v41 = vmul.f32 %v3211_v60, %v755_v14  ;;  %v3264_v43 = vadd.f32 1.0, %v2589_v25  ;;  %v2591_v45 = vpop.eup %2590  ;;  %vm758_vm13 = vweird.f32 %v3153_v11  ;;  %v2319_v37 = vmul.f32 -1.442695, %v3246_v22 }
 0x18f   : > { %v995_v52 = vsub.f32 1.0, %v994_v24  ;;  %v1177_v46 = vpack.c.bf16 %v3242_v20, %v3249_v62  ;;  %v3271_v54 = vmul.f32 %v976_v34, %v2995_v19  ;;  %vm3279_vm15 = vcmp.eq.f32.partialorder %v762_v50, 8.507059e+37 }
 0x190   : > { %v517_v9 = vpop.f32.mrf.mxu2  ;;  %v765_v49 = vor.u32 1.1754944e-38, %v764_v23  ;;  %v1002_v35 = vand.u32 2147483647, %v3178_v33  ;;  %v769_v58 = vmul.f32 %v2591_v45, %v3213_v0  ;;  %v2593_v59 = vpop.eup %2592  ;;  %v986_v19 = vsel %vm3275_vm14, %v3180_v36, %v982_v27 }
 0x191   : > { %4672 = vst [vmem:[#allocation4_spill] sm:$0xff] %v3271_v54  ;;  %vm998_vm1 = vweird.f32 %v3178_v33  ;;  %v1004_v30 = vand.u32 2147483648, %v3178_v33  ;;  %2596 = vrcp.f32 %v3264_v43  ;;  %2352 = vmatmul.msk.bf16.gmra.mxu1 %vm1211_vm9, %v1177_v46  ;;  %v3293_v61 = vadd.f32 %v2924_v28, %v517_v9 }
 0x192   : > { %v480_v48 = vpop.f32.mrf.mxu0  ;;  %v757_v17 = vadd.f32 %v3211_v60, %v756_v41  ;;  %vm759_vm2 = vweird.f32 %v3211_v60  ;;  %v770_v32 = vsub.f32 1.0, %v769_v58  ;;  %v777_v42 = vand.u32 2147483647, %v3213_v0 }
 0x193   : > { %v2595_v36 = vpop.eup %2594  ;;  %v996_v29 = vmul.f32 %v3239_v5, %v995_v52  ;;  %v779_v7 = vand.u32 2147483648, %v3213_v0  ;;  %v3300_v8 = vadd.f32 1.0, %v2593_v59  ;;  %2598 = vpow2.f32 %v2319_v37  ;;  %vm3308_vm4 = vmor %vm758_vm13, %vm759_vm2 }
 0x194   : > { %v991_v9 = vsel %vm3259_vm12, %v990_v38, %v986_v19  ;;  %v771_v55 = vmul.f32 %v2591_v45, %v770_v32  ;;  %vm774_vm3 = vweird.f32 %v2591_v45  ;;  %v3304_v12 = vadd.f32 1.0, %v2595_v36 }
 0x195   : > { %vm3312_vm5 = vcmp.eq.f32.partialorder %v1002_v35, 8.507059e+37  ;;  %vm773_vm6 = vweird.f32 %v3213_v0  ;;  %2600 = vrcp.f32 %v3300_v8  ;;  %v2335_v21 = vmul.f32 -1.442695, %v3293_v61 }
 0x196   : > { %v761_v50 = vsel %vm3308_vm4, %v3211_v60, %v757_v17  ;;  %v772_v23 = vadd.f32 %v2591_v45, %v771_v55  ;;  %2602 = vrcp.f32 %v3304_v12  ;;  %v3324_v11 = vadd.f32 %v2924_v28, %v480_v48  ;;  %vm775_vm8 = vmor %vm773_vm6, %vm774_vm3 }
 0x197   : > { %v2597_v25 = vpop.eup %2596  ;;  %v3327_v34 = vmul.f32 %v991_v9, %v3053_v1  ;;  %v997_v0 = vadd.f32 %v3239_v5, %v996_v29  ;;  %vm999_vm7 = vweird.f32 %v3239_v5  ;;  %v1005_v27 = vor.u32 1.1754944e-38, %v1004_v30 }
 0x198   : > { %v520_v6 = vpop.f32.mrf.mxu2  ;;  %v776_v63 = vsel %vm775_vm8, %v2591_v45, %v772_v23  ;;  %vm778_vm10 = vcmp.eq.f32.partialorder %v777_v42, 8.507059e+37  ;;  %v780_v60 = vor.u32 1.1754944e-38, %v779_v7  ;;  %v1009_v38 = vmul.f32 %v2597_v25, %v3264_v43  ;;  %vm3339_vm12 = vmor %vm998_vm1, %vm999_vm7 }
 0x199   : > { %4681 = vst [vmem:[#allocation5_spill] sm:$0xff] %v3327_v34  ;;  %v2599_v41 = vpop.eup %2598  ;;  %v766_v48 = vsel %vm3279_vm15, %v765_v49, %v761_v50  ;;  %vm1013_vm11 = vweird.f32 %v3264_v43  ;;  %v1017_v1 = vand.u32 2147483647, %v3264_v43  ;;  %2604 = vpow2.f32 %v2335_v21 }
 0x19a   : > { %v482_v24 = vpop.f32.mrf.mxu0  ;;  %v781_v45 = vsel %vm778_vm10, %v780_v60, %v776_v63  ;;  %v1010_v37 = vsub.f32 1.0, %v1009_v38  ;;  %v3343_v46 = vadd.f32 1.0, %v2599_v41  ;;  %v2320_v4 = vmul.f32 -1.442695, %v3324_v11 }
 0x19b   : > { %v3346_v35 = vpop.eup %2600  ;;  %v1001_v31 = vsel %vm3339_vm12, %v3239_v5, %v997_v0  ;;  %vm1014_vm13 = vweird.f32 %v2597_v25  ;;  %v1185_v33 = vpack.c.bf16 %v3327_v34, %v3271_v54  ;;  %v3354_v49 = vadd.f32 %v2924_v28, %v520_v6 }
 0x19c   : > { %v3356_v58 = vpop.eup %2602  ;;  %v1011_v59 = vmul.f32 %v2597_v25, %v1010_v37  ;;  %v784_v19 = vmul.f32 %v3346_v35, %v3300_v8  ;;  %2606 = vrcp.f32 %v3343_v46  ;;  %v3362_v30 = vadd.f32 %v2924_v28, %v482_v24  ;;  %vm3379_vm14 = vmor %vm1013_vm11, %vm1014_vm13 }
 0x19d   : > { %v3365_v5 = vmul.f32 %v766_v48, %v3056_v2  ;;  %v3368_v32 = vmul.f32 %v781_v45, %v3114_v51  ;;  %v1019_v42 = vand.u32 2147483648, %v3264_v43  ;;  %v1024_v6 = vmul.f32 %v3356_v58, %v3304_v12  ;;  %2360 = vmatmul.msk.bf16.gmra.mxu3 %vm1211_vm9, %v1185_v33 }
 0x19e   : > { %v1006_v36 = vsel %vm3312_vm5, %v1005_v27, %v1001_v31  ;;  %v1012_v29 = vadd.f32 %v2597_v25, %v1011_v59  ;;  %v785_v7 = vsub.f32 1.0, %v784_v19  ;;  %2608 = vpow2.f32 %v2320_v4 }
 0x19f   : > { %v2605_v9 = vpop.eup %2604  ;;  %v792_v51 = vand.u32 2147483647, %v3300_v8  ;;  %v1025_v55 = vsub.f32 1.0, %v1024_v6  ;;  %v2336_v16 = vmul.f32 -1.442695, %v3354_v49  ;;  %v1020_v0 = vor.u32 1.1754944e-38, %v1019_v42 }
 0x1a0   : > { %v522_v17 = vpop.f32.mrf.mxu2  ;;  %v1016_v14 = vsel %vm3379_vm14, %v2597_v25, %v1012_v29  ;;  %v786_v50 = vmul.f32 %v3346_v35, %v785_v7  ;;  %v3391_v23 = vadd.f32 1.0, %v2605_v9  ;;  %v2321_v43 = vmul.f32 -1.442695, %v3362_v30 }
 0x1a1   : > { %v3386_v21 = vadd.f32 %v2924_v28, %v522_v17  ;;  %v794_v27 = vand.u32 2147483648, %v3300_v8  ;;  %2610 = vpow2.f32 %v2336_v16  ;;  %v1178_v63 = vpack.c.bf16 %v3368_v32, %v3365_v5 }
 0x1a2   : > { %v485_v24 = vpop.f32.mrf.mxu0  ;;  %v2607_v60 = vpop.eup %2606  ;;  %v3398_v38 = vmul.f32 %v1006_v36, %v3086_v18  ;;  %vm1018_vm15 = vcmp.eq.f32.partialorder %v1017_v1, 8.507059e+37  ;;  %vm788_vm1 = vweird.f32 %v3300_v8  ;;  %2612 = vrcp.f32 %v3391_v23 }
 0x1a3   : > { %v1021_v25 = vsel %vm1018_vm15, %v1020_v0, %v1016_v14  ;;  %vm789_vm2 = vweird.f32 %v3346_v35  ;;  %vm3403_vm3 = vcmp.eq.f32.partialorder %v792_v51, 8.507059e+37  ;;  %v799_v48 = vmul.f32 %v2607_v60, %v3343_v46  ;;  %2353 = vmatmul.msk.bf16.gmra.mxu1 %vm1211_vm9, %v1178_v63 }
 0x1a4   : > { %4686 = vst [vmem:[#allocation6_spill] sm:$0xff] %v3398_v38  ;;  %v2609_v52 = vpop.eup %2608  ;;  %v787_v18 = vadd.f32 %v3346_v35, %v786_v50  ;;  %v1026_v1 = vmul.f32 %v3356_v58, %v1025_v55  ;;  %2614 = vpow2.f32 %v2321_v43  ;;  %v2337_v45 = vmul.f32 -1.442695, %v3386_v21  ;;  %vm3425_vm5 = vmor %vm788_vm1, %vm789_vm2 }
 0x1a5   : > { %v795_v37 = vor.u32 1.1754944e-38, %v794_v27  ;;  %vm1028_vm4 = vweird.f32 %v3304_v12  ;;  %v1032_v4 = vand.u32 2147483647, %v3304_v12  ;;  %v800_v31 = vsub.f32 1.0, %v799_v48 }
 0x1a6   : > { %v3415_v33 = vmul.f32 %v1021_v25, %v3164_v15  ;;  %v807_v59 = vand.u32 2147483647, %v3343_v46  ;;  %v809_v19 = vand.u32 2147483648, %v3343_v46  ;;  %v3419_v17 = vadd.f32 1.0, %v2609_v52 }
 0x1a7   : > { %v2611_v42 = vpop.eup %2610  ;;  %v801_v36 = vmul.f32 %v2607_v60, %v800_v31  ;;  %vm804_vm6 = vweird.f32 %v2607_v60  ;;  %2616 = vpow2.f32 %v2337_v45  ;;  %v3430_v15 = vadd.f32 %v2924_v28, %v485_v24 }
 0x1a8   : > { %4689 = vst [vmem:[#allocation7_spill] sm:$0xff] %v3415_v33  ;;  %v3432_v29 = vpop.eup %2612  ;;  %v791_v7 = vsel %vm3425_vm5, %v3346_v35, %v787_v18  ;;  %v1027_v9 = vadd.f32 %v3356_v58, %v1026_v1  ;;  %vm1029_vm7 = vweird.f32 %v3356_v58  ;;  %2618 = vrcp.f32 %v3419_v17  ;;  %v525_v55 = vpop.f32.mrf.mxu2 }
 0x1a9   : > { %v802_v8 = vadd.f32 %v2607_v60, %v801_v36  ;;  %vm803_vm8 = vweird.f32 %v3343_v46  ;;  %v1039_v2 = vmul.f32 %v3432_v29, %v3391_v23  ;;  %v3443_v51 = vadd.f32 1.0, %v2611_v42  ;;  %vm3456_vm11 = vmor %vm1028_vm4, %vm1029_vm7 }
 0x1aa   : > { %v2615_v16 = vpop.eup %2614  ;;  %v1034_v14 = vand.u32 2147483648, %v3304_v12  ;;  %vm805_vm10 = vmor %vm803_vm8, %vm804_vm6  ;;  %v810_v35 = vor.u32 1.1754944e-38, %v809_v19  ;;  %v2322_v50 = vmul.f32 -1.442695, %v3430_v15  ;;  %v1186_v43 = vpack.c.bf16 %v3415_v33, %v3398_v38  ;;  %v487_v24 = vpop.f32.mrf.mxu0 }
 0x1ab   : > { %v796_v46 = vsel %vm3403_vm3, %v795_v37, %v791_v7  ;;  %v806_v27 = vsel %vm805_vm10, %v2607_v60, %v802_v8  ;;  %vm808_vm12 = vcmp.eq.f32.partialorder %v807_v59, 8.507059e+37  ;;  %v1040_v63 = vsub.f32 1.0, %v1039_v2 }
 0x1ac   : > { %v1031_v25 = vsel %vm3456_vm11, %v3356_v58, %v1027_v9  ;;  %v811_v48 = vsel %vm808_vm12, %v810_v35, %v806_v27  ;;  %2620 = vrcp.f32 %v3443_v51  ;;  %v3464_v41 = vadd.f32 1.0, %v2615_v16 }
 0x1ad   : > { %v2617_v52 = vpop.eup %2616  ;;  %v3467_v18 = vmul.f32 %v811_v48, %v3246_v22  ;;  %v1041_v12 = vmul.f32 %v3432_v29, %v1040_v63  ;;  %2622 = vpow2.f32 %v2322_v50  ;;  %2361 = vmatmul.msk.bf16.gmra.mxu3 %vm1211_vm9, %v1186_v43  ;;  %v3472_v60 = vadd.f32 %v2924_v28, %v525_v55 }
 0x1ae   : > { %v3474_v1 = vpop.eup %2618  ;;  %v2327_v58 = vmul.f32 -1.442695, %v3150_v10  ;;  %v1035_v45 = vor.u32 1.1754944e-38, %v1034_v14  ;;  %v1047_v37 = vand.u32 2147483647, %v3391_v23  ;;  %2624 = vrcp.f32 %v3464_v41 }
 0x1af   : > { %v3480_v22 = vmul.f32 %v796_v46, %v3184_v40  ;;  %vm1033_vm13 = vcmp.eq.f32.partialorder %v1032_v4, 8.507059e+37  ;;  %v1049_v31 = vand.u32 2147483648, %v3391_v23  ;;  %v814_v59 = vmul.f32 %v3474_v1, %v3419_v17 }
 0x1b0   : > { %2626 = vpow2.f32 %v3024_v44  ;;  %v1036_v19 = vsel %vm1033_vm13, %v1035_v45, %v1031_v25  ;;  %vm1044_vm14 = vweird.f32 %v3432_v29  ;;  %v3487_v42 = vadd.f32 1.0, %v2617_v52  ;;  %v527_v14 = vpop.f32.mrf.mxu2 }
 0x1b1   : > { %v1042_v6 = vadd.f32 %v3432_v29, %v1041_v12  ;;  %v815_v36 = vsub.f32 1.0, %v814_v59  ;;  %v2338_v7 = vmul.f32 -1.442695, %v3472_v60  ;;  %v1179_v40 = vpack.c.bf16 %v3467_v18, %v3480_v22 }
 0x1b2   : > { %v3493_v4 = vpop.eup %2620  ;;  %2628 = vpow2.f32 %v2327_v58  ;;  %vm1043_vm15 = vweird.f32 %v3391_v23  ;;  %vm3496_vm1 = vcmp.eq.f32.partialorder %v1047_v37, 8.507059e+37  ;;  %v822_v9 = vand.u32 2147483647, %v3419_v17  ;;  %v490_v0 = vpop.f32.mrf.mxu0 }
 0x1b3   : > { %v2623_v8 = vpop.eup %2622  ;;  %v1050_v2 = vor.u32 1.1754944e-38, %v1049_v31  ;;  %v816_v55 = vmul.f32 %v3474_v1, %v815_v36  ;;  %v824_v16 = vand.u32 2147483648, %v3419_v17  ;;  %2630 = vrcp.f32 %v3487_v42  ;;  %2354 = vmatmul.msk.bf16.gmra.mxu1 %vm1211_vm9, %v1179_v40  ;;  %vm3510_vm2 = vmor %vm1043_vm15, %vm1044_vm14 }
 0x1b4   : > { %v2625_v35 = vpop.eup %2624  ;;  %v3506_v23 = vmul.f32 %v1036_v19, %v3217_v3  ;;  %vm818_vm3 = vweird.f32 %v3419_v17  ;;  %v3515_v43 = vadd.f32 1.0, %v2623_v8  ;;  %v3518_v46 = vadd.f32 %v2924_v28, %v487_v24 }
 0x1b5   : > { %v1046_v27 = vsel %vm3510_vm2, %v3432_v29, %v1042_v6  ;;  %v1054_v3 = vmul.f32 %v3493_v4, %v3443_v51  ;;  %v829_v63 = vmul.f32 %v2625_v35, %v3464_v41  ;;  %2632 = vpow2.f32 %v2338_v7 }
 0x1b6   : > { %4696 = vst [vmem:[#allocation8_spill] sm:$0xff] %v3506_v23  ;;  %v3526_v25 = vpop.eup %2626  ;;  %vm3528_vm4 = vcmp.eq.f32.partialorder %v822_v9, 8.507059e+37  ;;  %v837_v24 = vand.u32 2147483647, %v3464_v41  ;;  %v839_v52 = vand.u32 2147483648, %v3464_v41  ;;  %2634 = vrcp.f32 %v3515_v43 }
 0x1b7   : > { %v817_v29 = vadd.f32 %v3474_v1, %v816_v55  ;;  %vm819_vm5 = vweird.f32 %v3474_v1  ;;  %v825_v12 = vor.u32 1.1754944e-38, %v824_v16  ;;  %v830_v58 = vsub.f32 1.0, %v829_v63 }
 0x1b8   : > { %v2629_v45 = vpop.eup %2628  ;;  %v1051_v37 = vsel %vm3496_vm1, %v1050_v2, %v1046_v27  ;;  %v1064_v31 = vand.u32 2147483648, %v3443_v51  ;;  %vm833_vm6 = vweird.f32 %v3464_v41  ;;  %v2323_v59 = vmul.f32 -1.442695, %v3518_v46  ;;  %vm3549_vm8 = vmor %vm818_vm3, %vm819_vm5  ;;  %v530_v41 = vpop.f32.mrf.mxu2 }
 0x1b9   : > { %v3542_v19 = vpop.eup %2630  ;;  %v1055_v6 = vsub.f32 1.0, %v1054_v3  ;;  %v831_v36 = vmul.f32 %v2625_v35, %v830_v58  ;;  %vm834_vm7 = vweird.f32 %v2625_v35  ;;  %v3545_v7 = vadd.f32 %v2924_v28, %v527_v14  ;;  %v3576_v3 = vld [vmem:[%s4624_s2] ss:$0 sm:$0xff] }
 0x1ba   : > { %vm1059_vm10 = vweird.f32 %v3493_v4  ;;  %vm3554_vm11 = vcmp.eq.f32.partialorder %v837_v24, 8.507059e+37  ;;  %v840_v9 = vor.u32 1.1754944e-38, %v839_v52  ;;  %v1069_v8 = vmul.f32 %v3542_v19, %v3487_v42  ;;  %vm835_vm12 = vmor %vm833_vm6, %vm834_vm7 }
 0x1bb   : > { %v2633_v2 = vpop.eup %2632  ;;  %v821_v28 = vsel %vm3549_vm8, %v3474_v1, %v817_v29  ;;  %v832_v17 = vadd.f32 %v2625_v35, %v831_v36  ;;  %2636 = vpow2.f32 %v2323_v59  ;;  %v2339_v55 = vmul.f32 -1.442695, %v3545_v7 }
 0x1bc   : > { %v3564_v16 = vpop.eup %2634  ;;  %v3567_v14 = vmul.f32 %v1051_v37, %v3293_v61  ;;  %v1070_v50 = vsub.f32 1.0, %v1069_v8  ;;  %v3571_v27 = vadd.f32 1.0, %v2633_v2  ;;  %v3579_v1 = vadd.f32 %v3576_v3, %v490_v0  ;;  %v492_v0 = vpop.f32.mrf.mxu0 }
 0x1bd   : > { %v1056_v63 = vmul.f32 %v3493_v4, %v1055_v6  ;;  %v836_v24 = vsel %vm835_vm12, %v2625_v35, %v832_v17  ;;  %v844_v61 = vmul.f32 %v3564_v16, %v3515_v43  ;;  %2638 = vpow2.f32 %v2339_v55 }
 0x1be   : > { %4705 = vst [vmem:[#allocation9_spill] sm:$0xff] %v3567_v14  ;;  %v826_v52 = vsel %vm3528_vm4, %v825_v12, %v821_v28  ;;  %v841_v29 = vsel %vm3554_vm11, %v840_v9, %v836_v24  ;;  %v1071_v58 = vmul.f32 %v3542_v19, %v1070_v50  ;;  %2640 = vrcp.f32 %v3571_v27 }
 0x1bf   : > { %v3591_v37 = vmul.f32 %v841_v29, %v3362_v30  ;;  %vm1073_vm13 = vweird.f32 %v3487_v42  ;;  %vm1074_vm14 = vweird.f32 %v3542_v19  ;;  %v1079_v35 = vand.u32 2147483648, %v3487_v42 }
 0x1c0   : > { %v1072_v48 = vadd.f32 %v3542_v19, %v1071_v58  ;;  %v2324_v12 = vmul.f32 -1.442695, %v3579_v1  ;;  %v1187_v59 = vpack.c.bf16 %v3567_v14, %v3506_v23  ;;  %v3601_v6 = vadd.f32 %v3576_v3, %v530_v41  ;;  %vm3621_vm1 = vmor %vm1073_vm13, %vm1074_vm14 }
 0x1c1   : > { %v2637_v36 = vpop.eup %2636  ;;  %v3604_v30 = vmul.f32 %v826_v52, %v3324_v11  ;;  %v1057_v40 = vadd.f32 %v3493_v4, %v1056_v63  ;;  %v845_v44 = vsub.f32 1.0, %v844_v61  ;;  %v3608_v9 = vadd.f32 %v3576_v3, %v492_v0 }
 0x1c2   : > { %v1077_v8 = vand.u32 2147483647, %v3487_v42  ;;  %v3611_v2 = vadd.f32 1.0, %v2637_v36  ;;  %2642 = vpow2.f32 %v2324_v12  ;;  %2362 = vmatmul.msk.bf16.gmra.mxu3 %vm1211_vm9, %v1187_v59  ;;  %v2340_v28 = vmul.f32 -1.442695, %v3601_v6 }
 0x1c3   : > { %v2639_v17 = vpop.eup %2638  ;;  %vm1058_vm15 = vweird.f32 %v3443_v51  ;;  %v1062_v11 = vand.u32 2147483647, %v3443_v51  ;;  %v2325_v50 = vmul.f32 -1.442695, %v3608_v9  ;;  %v1180_v63 = vpack.c.bf16 %v3591_v37, %v3604_v30 }
 0x1c4   : > { %v3628_v24 = vpop.eup %2640  ;;  %v3630_v61 = vadd.f32 1.0, %v2629_v45  ;;  %vm3634_vm2 = vmor %vm1058_vm15, %vm1059_vm10  ;;  %v1065_v42 = vor.u32 1.1754944e-38, %v1064_v31  ;;  %v1076_v41 = vsel %vm3621_vm1, %v3542_v19, %v1072_v48  ;;  %2644 = vrcp.f32 %v3611_v2 }
 0x1c5   : > { %v1061_v52 = vsel %vm3634_vm2, %v3493_v4, %v1057_v40  ;;  %v1080_v29 = vor.u32 1.1754944e-38, %v1079_v35  ;;  %v846_v45 = vmul.f32 %v3564_v16, %v845_v44  ;;  %v1084_v58 = vmul.f32 %v3628_v24, %v3571_v27  ;;  %2355 = vmatmul.msk.bf16.gmra.mxu1 %vm1211_vm9, %v1180_v63  ;;  %v532_v44 = vpop.f32.mrf.mxu2 }
 0x1c6   : > { %vm1078_vm3 = vcmp.eq.f32.partialorder %v1077_v8, 8.507059e+37  ;;  %v852_v31 = vand.u32 2147483647, %v3515_v43  ;;  %v3650_v0 = vadd.f32 1.0, %v2639_v17  ;;  %2646 = vpow2.f32 %v2340_v28 }
 0x1c7   : > { %vm1063_vm4 = vcmp.eq.f32.partialorder %v1062_v11, 8.507059e+37  ;;  %v1081_v19 = vsel %vm1078_vm3, %v1080_v29, %v1076_v41  ;;  %v854_v48 = vand.u32 2147483648, %v3515_v43  ;;  %2648 = vpow2.f32 %v2325_v50 }
 0x1c8   : > { %v2643_v4 = vpop.eup %2642  ;;  %v3654_v35 = vadd.f32 1.0, %v3526_v25  ;;  %v1066_v12 = vsel %vm1063_vm4, %v1065_v42, %v1061_v52  ;;  %2650 = vrcp.f32 %v3650_v0  ;;  %v847_v59 = vadd.f32 %v3564_v16, %v846_v45 }
 0x1c9   : > { %vm849_vm5 = vweird.f32 %v3564_v16  ;;  %v1085_v36 = vsub.f32 1.0, %v1084_v58  ;;  %v3659_v40 = vadd.f32 1.0, %v2643_v4  ;;  %2652 = vrcp.f32 %v3630_v61 }
 0x1ca   : > { %v2645_v8 = vpop.eup %2644  ;;  %v3663_v28 = vmul.f32 %v1081_v19, %v3386_v21  ;;  %vm848_vm6 = vweird.f32 %v3515_v43  ;;  %vm3666_vm7 = vcmp.eq.f32.partialorder %v852_v31, 8.507059e+37  ;;  %v3671_v17 = vmul.f32 %v1066_v12, %v3354_v49 }
 0x1cb   : > { %v855_v11 = vor.u32 1.1754944e-38, %v854_v48  ;;  %v859_v55 = vmul.f32 %v2645_v8, %v3611_v2  ;;  %2654 = vrcp.f32 %v3659_v40  ;;  %vm3675_vm8 = vmor %vm848_vm6, %vm849_vm5  ;;  %vm1088_vm10 = vweird.f32 %v3571_v27 }
 0x1cc   : > { %4710 = vst [vmem:[#allocation10_spill] sm:$0xff] %v3663_v28  ;;  %v2647_v50 = vpop.eup %2646  ;;  %v1092_v21 = vand.u32 2147483647, %v3571_v27  ;;  %v1094_v43 = vand.u32 2147483648, %v3571_v27  ;;  %v3683_v51 = vadd.f32 %v3576_v3, %v532_v44  ;;  %v851_v42 = vsel %vm3675_vm8, %v3564_v16, %v847_v59 }
 0x1cd   : > { %4713 = vst [vmem:[#allocation11_spill] sm:$0xff] %v3671_v17  ;;  %v2649_v49 = vpop.eup %2648  ;;  %v1086_v41 = vmul.f32 %v3628_v24, %v1085_v36  ;;  %v860_v52 = vsub.f32 1.0, %v859_v55  ;;  %v3689_v29 = vadd.f32 1.0, %v2647_v50  ;;  %v867_v58 = vand.u32 2147483647, %v3611_v2 }
 0x1ce   : > { %v2651_v45 = vpop.eup %2650  ;;  %v869_v31 = vand.u32 2147483648, %v3611_v2  ;;  %v3693_v19 = vadd.f32 1.0, %v2649_v49  ;;  %v1188_v3 = vpack.c.bf16 %v3663_v28, %v3671_v17  ;;  %vm863_vm11 = vweird.f32 %v3611_v2 }
 0x1cf   : > { %v861_v48 = vmul.f32 %v2645_v8, %v860_v52  ;;  %vm864_vm12 = vweird.f32 %v2645_v8  ;;  %v1099_v16 = vmul.f32 %v2651_v45, %v3650_v0  ;;  %v3699_v4 = vpop.eup %2652  ;;  %v856_v12 = vsel %vm3666_vm7, %v855_v11, %v851_v42 }
 0x1d0   : > { %vm1089_vm13 = vweird.f32 %v3628_v24  ;;  %2656 = vrcp.f32 %v3689_v29  ;;  %v2341_v59 = vmul.f32 -1.442695, %v3683_v51  ;;  %v1087_v44 = vadd.f32 %v3628_v24, %v1086_v41  ;;  %vm865_vm14 = vmor %vm863_vm11, %vm864_vm12 }
 0x1d1   : > { %v3706_v36 = vpop.eup %2654  ;;  %v862_v55 = vadd.f32 %v2645_v8, %v861_v48  ;;  %v1100_v2 = vsub.f32 1.0, %v1099_v16  ;;  %2658 = vrcp.f32 %v3693_v19  ;;  %vm868_vm15 = vcmp.eq.f32.partialorder %v867_v58, 8.507059e+37  ;;  %vm3722_vm2 = vmor %vm1088_vm10, %vm1089_vm13 }
 0x1d2   : > { %v870_v50 = vor.u32 1.1754944e-38, %v869_v31  ;;  %v1109_v25 = vand.u32 2147483648, %v3650_v0  ;;  %v874_v11 = vmul.f32 %v3706_v36, %v3659_v40  ;;  %2363 = vmatmul.msk.bf16.gmra.mxu3 %vm1211_vm9, %v1188_v3  ;;  %vm1104_vm1 = vweird.f32 %v2651_v45 }
 0x1d3   : > { %v866_v63 = vsel %vm865_vm14, %v2645_v8, %v862_v55  ;;  %v1101_v49 = vmul.f32 %v2651_v45, %v1100_v2  ;;  %v1107_v42 = vand.u32 2147483647, %v3650_v0  ;;  %v3716_v41 = vmul.f32 %v856_v12, %v3430_v15 }
 0x1d4   : > { %v871_v58 = vsel %vm868_vm15, %v870_v50, %v866_v63  ;;  %v875_v31 = vsub.f32 1.0, %v874_v11  ;;  %2660 = vpow2.f32 %v2341_v59  ;;  %v1091_v8 = vsel %vm3722_vm2, %v3628_v24, %v1087_v44 }
 0x1d5   : > { %v3730_v3 = vmul.f32 %v871_v58, %v3518_v46  ;;  %v1102_v15 = vadd.f32 %v2651_v45, %v1101_v49  ;;  %vm1103_vm3 = vweird.f32 %v3650_v0  ;;  %2662 = vrcp.f32 %v3654_v35 }
 0x1d6   : > { %v3733_v48 = vpop.eup %2656  ;;  %v1095_v27 = vor.u32 1.1754944e-38, %v1094_v43  ;;  %vm1105_vm4 = vmor %vm1103_vm3, %vm1104_vm1  ;;  %v1110_v16 = vor.u32 1.1754944e-38, %v1109_v25  ;;  %v876_v12 = vmul.f32 %v3706_v36, %v875_v31  ;;  %vm1093_vm5 = vcmp.eq.f32.partialorder %v1092_v21, 8.507059e+37 }
 0x1d7   : > { %v2659_v59 = vpop.eup %2658  ;;  %v1106_v55 = vsel %vm1105_vm4, %v2651_v45, %v1102_v15  ;;  %vm1108_vm6 = vcmp.eq.f32.partialorder %v1107_v42, 8.507059e+37  ;;  %v1181_v46 = vpack.c.bf16 %v3730_v3, %v3716_v41  ;;  %v1114_v0 = vmul.f32 %v3733_v48, %v3689_v29 }
 0x1d8   : > { %v1096_v24 = vsel %vm1093_vm5, %v1095_v27, %v1091_v8  ;;  %v1111_v44 = vsel %vm1108_vm6, %v1110_v16, %v1106_v55  ;;  %v889_v2 = vmul.f32 %v2659_v59, %v3693_v19  ;;  %v877_v43 = vadd.f32 %v3706_v36, %v876_v12 }
 0x1d9   : > { %vm879_vm7 = vweird.f32 %v3706_v36  ;;  %2356 = vmatmul.msk.bf16.gmra.mxu1 %vm1211_vm9, %v1181_v46  ;;  %v3746_v21 = vmul.f32 %v1111_v44, %v3545_v7  ;;  %vm878_vm8 = vweird.f32 %v3659_v40  ;;  %v884_v45 = vand.u32 2147483648, %v3659_v40 }
 0x1da   : > { %v2661_v50 = vpop.eup %2660  ;;  %v890_v25 = vsub.f32 1.0, %v889_v2  ;;  %v3751_v11 = vmul.f32 %v1096_v24, %v3472_v60  ;;  %v882_v63 = vand.u32 2147483647, %v3659_v40  ;;  %v899_v49 = vand.u32 2147483648, %v3693_v19  ;;  %vm3759_vm10 = vmor %vm878_vm8, %vm879_vm7 }
 0x1db   : > { %4718 = vst [vmem:[#allocation12_spill] sm:$0xff] %v3746_v21  ;;  %v3755_v42 = vadd.f32 1.0, %v2661_v50  ;;  %v3757_v52 = vpop.eup %2662  ;;  %v1115_v7 = vsub.f32 1.0, %v1114_v0  ;;  %vm894_vm11 = vweird.f32 %v2659_v59  ;;  %v897_v8 = vand.u32 2147483647, %v3693_v19 }
 0x1dc   : > { %4719 = vst [vmem:[#allocation13_spill] sm:$0xff] %v3751_v11  ;;  %v891_v31 = vmul.f32 %v2659_v59, %v890_v25  ;;  %v919_v60 = vmul.f32 %v3699_v4, %v3630_v61  ;;  %v881_v40 = vsel %vm3759_vm10, %v3706_v36, %v877_v43  ;;  %v885_v15 = vor.u32 1.1754944e-38, %v884_v45 }
 0x1dd   : > { %2664 = vrcp.f32 %v3755_v42  ;;  %vm893_vm12 = vweird.f32 %v3693_v19  ;;  %v1189_v16 = vpack.c.bf16 %v3746_v21, %v3751_v11  ;;  %v904_v12 = vmul.f32 %v3757_v52, %v3654_v35 }
 0x1de   : > { %v892_v27 = vadd.f32 %v2659_v59, %v891_v31  ;;  %vm883_vm13 = vcmp.eq.f32.partialorder %v882_v63, 8.507059e+37  ;;  %vm895_vm14 = vmor %vm893_vm12, %vm894_vm11  ;;  %v900_v55 = vor.u32 1.1754944e-38, %v899_v49  ;;  %v1116_v24 = vmul.f32 %v3733_v48, %v1115_v7 }
 0x1df   : > { %v886_v46 = vsel %vm883_vm13, %v885_v15, %v881_v40  ;;  %vm898_vm15 = vcmp.eq.f32.partialorder %v897_v8, 8.507059e+37  ;;  %v920_v36 = vsub.f32 1.0, %v919_v60  ;;  %v905_v43 = vsub.f32 1.0, %v904_v12 }
 0x1e0   : > { %v896_v44 = vsel %vm895_vm14, %v2659_v59, %v892_v27  ;;  %v3781_v50 = vmul.f32 %v886_v46, %v3579_v1  ;;  %v1117_v45 = vadd.f32 %v3733_v48, %v1116_v24  ;;  %vm1119_vm1 = vweird.f32 %v3733_v48  ;;  %v3814_v24 = vld [vmem:[%s4626_s4] ss:$0 sm:$0xff] }
 0x1e1   : > { %v901_v0 = vsel %vm898_vm15, %v900_v55, %v896_v44  ;;  %v921_v59 = vmul.f32 %v3699_v4, %v920_v36  ;;  %v1124_v63 = vand.u32 2147483648, %v3689_v29  ;;  %vm1118_vm2 = vweird.f32 %v3689_v29 }
 0x1e2   : > { %v3777_v2 = vmul.f32 %v901_v0, %v3608_v9  ;;  %2364 = vmatmul.msk.bf16.gmra.mxu3 %vm1211_vm9, %v1189_v16  ;;  %4723 = vst [vmem:[#allocation15_spill] sm:$0xff] %v3781_v50  ;;  %v1122_v49 = vand.u32 2147483647, %v3689_v29  ;;  %v906_v1 = vmul.f32 %v3757_v52, %v905_v43  ;;  %vm909_vm3 = vweird.f32 %v3757_v52  ;;  %vm3794_vm4 = vmor %vm1118_vm2, %vm1119_vm1 }
 0x1e3   : > { %v2665_v19 = vpop.eup %2664  ;;  %v1139_v31 = vand.u32 2147483648, %v3755_v42  ;;  %v1121_v8 = vsel %vm3794_vm4, %v3733_v48, %v1117_v45  ;;  %v1137_v40 = vand.u32 2147483647, %v3755_v42  ;;  %v922_v29 = vadd.f32 %v3699_v4, %v921_v59 }
 0x1e4   : > { %4722 = vst [vmem:[#allocation14_spill] sm:$0xff] %v3777_v2  ;;  %v1129_v25 = vmul.f32 %v2665_v19, %v3755_v42  ;;  %v1182_v9 = vpack.c.bf16 %v3777_v2, %v3781_v50  ;;  %vm1134_vm5 = vweird.f32 %v2665_v19  ;;  %vm923_vm6 = vweird.f32 %v3630_v61 }
 0x1e5   : > { %vm924_vm7 = vweird.f32 %v3699_v4  ;;  %v1125_v15 = vor.u32 1.1754944e-38, %v1124_v63  ;;  %v929_v27 = vand.u32 2147483648, %v3630_v61  ;;  %vm1123_vm8 = vcmp.eq.f32.partialorder %v1122_v49, 8.507059e+37 }
 0x1e6   : > { %v1130_v58 = vsub.f32 1.0, %v1129_v25  ;;  %vm1133_vm10 = vweird.f32 %v3755_v42  ;;  %v907_v48 = vadd.f32 %v3757_v52, %v906_v1  ;;  %v927_v12 = vand.u32 2147483647, %v3630_v61  ;;  %vm3819_vm12 = vmor %vm923_vm6, %vm924_vm7 }
 0x1e7   : > { %v1126_v55 = vsel %vm1123_vm8, %v1125_v15, %v1121_v8  ;;  %vm1135_vm11 = vmor %vm1133_vm10, %vm1134_vm5  ;;  %v1140_v46 = vor.u32 1.1754944e-38, %v1139_v31  ;;  %v914_v44 = vand.u32 2147483648, %v3654_v35  ;;  %vm1138_vm13 = vcmp.eq.f32.partialorder %v1137_v40, 8.507059e+37 }
 0x1e8   : > { %v1131_v60 = vmul.f32 %v2665_v19, %v1130_v58  ;;  %vm908_vm14 = vweird.f32 %v3654_v35  ;;  %v912_v0 = vand.u32 2147483647, %v3654_v35  ;;  %v926_v43 = vsel %vm3819_vm12, %v3699_v4, %v922_v29 }
 0x1e9   : > { %2357 = vmatmul.msk.bf16.gmra.mxu1 %vm1211_vm9, %v1182_v9  ;;  %vm910_vm15 = vmor %vm908_vm14, %vm909_vm3  ;;  %v930_v25 = vor.u32 1.1754944e-38, %v929_v27  ;;  %v3831_v61 = vmul.f32 %v1126_v55, %v3601_v6  ;;  %vm928_vm1 = vcmp.eq.f32.partialorder %v927_v12, 8.507059e+37  ;;  %v915_v9 = vor.u32 1.1754944e-38, %v914_v44 }
 0x1ea   : > { %v1132_v16 = vadd.f32 %v2665_v19, %v1131_v60  ;;  %v911_v63 = vsel %vm910_vm15, %v3757_v52, %v907_v48  ;;  %vm913_vm2 = vcmp.eq.f32.partialorder %v912_v0, 8.507059e+37 }
 0x1eb   : > { %4728 = vst [vmem:[#allocation16_spill] sm:$0xff] %v3831_v61  ;;  %v931_v49 = vsel %vm928_vm1, %v930_v25, %v926_v43  ;;  %v916_v1 = vsel %vm913_vm2, %v915_v9, %v911_v63 }
 0x1ec   : > { %v1136_v42 = vsel %vm1135_vm11, %v2665_v19, %v1132_v16  ;;  %v1269_v19 = vpop.f32.mrf.mxu1  ;;  %v3842_v6 = vmul.f32 %v931_v49, %v3150_v10 }
 0x1ed   : > { %v1141_v45 = vsel %vm1138_vm13, %v1140_v46, %v1136_v42  ;;  %v1270_v35 = vadd.f32 %v3814_v24, %v1269_v19 }
 0x1ee   : > { %v3834_v59 = vmul.f32 %v1141_v45, %v3683_v51  ;;  %4730 = vst [vmem:[#allocation18_spill] sm:$0xff] %v3842_v6  ;;  %v3845_v51 = vmul.f32 %v916_v1, %v3009_v26 }
 0x1ef   : > { %v2366_v58 = vmul.f32 -1.442695, %v1270_v35 }
 0x1f0   : > { %4729 = vst [vmem:[#allocation17_spill] sm:$0xff] %v3834_v59  ;;  %v1190_v4 = vpack.c.bf16 %v3834_v59, %v3831_v61  ;;  %v1183_v7 = vpack.c.bf16 %v3842_v6, %v3845_v51 }
 0x1f1   : > { %2666 = vpow2.f32 %v2366_v58  ;;  %4731 = vst [vmem:[#allocation19_spill] sm:$0xff] %v3845_v51 }
 0x1f2   : > { %2365 = vmatmul.msk.bf16.gmra.mxu3 %vm1211_vm9, %v1190_v4 }
 0x1f4   : > { %v1271_v52 = vpop.f32.mrf.mxu1 }
 0x1f5   : > { %v1272_v31 = vadd.f32 %v3814_v24, %v1271_v52 }
 0x1f7   : > { %v2667_v8 = vpop.eup %2666  ;;  %v2367_v60 = vmul.f32 -1.442695, %v1272_v31 }
 0x1f8   : > { %v1445_v40 = vadd.f32 1.0, %v2667_v8 }
 0x1f9   : > { %2358 = vmatmul.msk.bf16.gmra.mxu1 %vm1211_vm9, %v1183_v7  ;;  %2668 = vpow2.f32 %v2367_v60 }
 0x1fa   : > { %2670 = vrcp.f32 %v1445_v40  ;;  %v1488_v36 = vand.u32 2147483648, %v1445_v40  ;;  %v1486_v42 = vand.u32 2147483647, %v1445_v40  ;;  %vm1482_vm3 = vweird.f32 %v1445_v40 }
 0x1fc   : > { %v1274_v29 = vpop.f32.mrf.mxu1  ;;  %v1489_v9 = vor.u32 1.1754944e-38, %v1488_v36  ;;  %vm1487_vm5 = vcmp.eq.f32.partialorder %v1486_v42, 8.507059e+37 }
 0x1fd   : > { %v3852_v10 = vadd.f32 %v3814_v24, %v1274_v29 }
 0x1ff   : > { %v2669_v15 = vpop.eup %2668  ;;  %v2368_v26 = vmul.f32 -1.442695, %v3852_v10 }
 0x200   : > { %v2671_v27 = vpop.eup %2670  ;;  %v1446_v16 = vadd.f32 1.0, %v2669_v15 }
 0x201   : > { %2672 = vpow2.f32 %v2368_v26  ;;  %v1478_v48 = vmul.f32 %v2671_v27, %v1445_v40  ;;  %vm1483_vm9 = vweird.f32 %v2671_v27 }
 0x202   : > { %2674 = vrcp.f32 %v1446_v16  ;;  %vm1484_vm4 = vmor %vm1482_vm3, %vm1483_vm9  ;;  %v1503_v1 = vand.u32 2147483648, %v1446_v16  ;;  %v1501_v60 = vand.u32 2147483647, %v1446_v16  ;;  %vm1497_vm7 = vweird.f32 %v1446_v16 }
 0x203   : > { %v1479_v12 = vsub.f32 1.0, %v1478_v48 }
 0x204   : > { %v1276_v55 = vpop.f32.mrf.mxu1  ;;  %v1504_v48 = vor.u32 1.1754944e-38, %v1503_v1  ;;  %vm1502_vm10 = vcmp.eq.f32.partialorder %v1501_v60, 8.507059e+37 }
 0x205   : > { %v3856_v46 = vadd.f32 %v3814_v24, %v1276_v55  ;;  %v1480_v44 = vmul.f32 %v2671_v27, %v1479_v12 }
 0x206   : > { %v3864_v42 = vpop.f32.mrf.mxu3 }
 0x207   : > { %v2673_v0 = vpop.eup %2672  ;;  %v2369_v43 = vmul.f32 -1.442695, %v3856_v46  ;;  %v1481_v45 = vadd.f32 %v2671_v27, %v1480_v44 }
 0x208   : > { %v2675_v25 = vpop.eup %2674  ;;  %v1447_v19 = vadd.f32 1.0, %v2673_v0 }
 0x209   : > { %v1493_v63 = vmul.f32 %v2675_v25, %v1446_v16  ;;  %2676 = vpow2.f32 %v2369_v43  ;;  %v1485_v49 = vsel %vm1484_vm4, %v2671_v27, %v1481_v45  ;;  %vm1498_vm6 = vweird.f32 %v2675_v25 }
 0x20a   : > { %2678 = vrcp.f32 %v1447_v19  ;;  %v1490_v58 = vsel %vm1487_vm5, %v1489_v9, %v1485_v49  ;;  %vm1499_vm8 = vmor %vm1497_vm7, %vm1498_vm6  ;;  %vm1512_vm12 = vweird.f32 %v1447_v19 }
 0x20b   : > { %v1494_v4 = vsub.f32 1.0, %v1493_v63  ;;  %v1957_v7 = vmul.f32 %v1490_v58, %v1270_v35  ;;  %v1518_v58 = vand.u32 2147483648, %v1447_v19 }
 0x20d   : > { %v1495_v8 = vmul.f32 %v2675_v25, %v1494_v4  ;;  %2021 = vrot.lane.b32.xlu1 %v1957_v7, %s2820_s23 }
 0x20e   : > { %v1279_v52 = vpop.f32.mrf.mxu1 }
 0x20f   : > { %v3860_v29 = vadd.f32 %v3814_v24, %v1279_v52  ;;  %v2677_v40 = vpop.eup %2676  ;;  %v1496_v15 = vadd.f32 %v2675_v25, %v1495_v8  ;;  %v1519_v8 = vor.u32 1.1754944e-38, %v1518_v58 }
 0x210   : > { %v2679_v27 = vpop.eup %2678  ;;  %v1448_v12 = vadd.f32 1.0, %v2677_v40 }
 0x211   : > { %v2370_v26 = vmul.f32 -1.442695, %v3860_v29  ;;  %v1500_v55 = vsel %vm1499_vm8, %v2675_v25, %v1496_v15  ;;  %v1508_v35 = vmul.f32 %v2679_v27, %v1447_v19  ;;  %vm1513_vm11 = vweird.f32 %v2679_v27 }
 0x212   : > { %v1505_v44 = vsel %vm1502_vm10, %v1504_v48, %v1500_v55  ;;  %vm1514_vm13 = vmor %vm1512_vm12, %vm1513_vm11  ;;  %v1533_v40 = vand.u32 2147483648, %v1448_v12  ;;  %v1531_v15 = vand.u32 2147483647, %v1448_v12  ;;  %vm1527_vm1 = vweird.f32 %v1448_v12 }
 0x213   : > { %2680 = vpow2.f32 %v2370_v26  ;;  %v1958_v36 = vmul.f32 %v1505_v44, %v1272_v31  ;;  %v1509_v43 = vsub.f32 1.0, %v1508_v35  ;;  %v1516_v31 = vand.u32 2147483647, %v1447_v19  ;;  %v3871_v26 = vpop.f32.mrf.mxu3 }
 0x214   : > { %2682 = vrcp.f32 %v1448_v12  ;;  %vm1532_vm9 = vcmp.eq.f32.partialorder %v1531_v15, 8.507059e+37 }
 0x215   : > { %2023 = vrot.lane.b32.xlu1 %v1958_v36, %s2820_s23  ;;  %v1510_v16 = vmul.f32 %v2679_v27, %v1509_v43  ;;  %vm1517_vm15 = vcmp.eq.f32.partialorder %v1516_v31, 8.507059e+37  ;;  %v1534_v43 = vor.u32 1.1754944e-38, %v1533_v40 }
 0x216   : > { %v1281_v0 = vpop.f32.mrf.mxu1 }
 0x217   : > { %v3867_v45 = vadd.f32 %v3814_v24, %v1281_v0  ;;  %v1511_v4 = vadd.f32 %v2679_v27, %v1510_v16 }
 0x219   : > { %v2681_v63 = vpop.eup %2680  ;;  %v2371_v49 = vmul.f32 -1.442695, %v3867_v45  ;;  %v1515_v7 = vsel %vm1514_vm13, %v2679_v27, %v1511_v4 }
 0x21a   : > { %v2683_v9 = vpop.eup %2682  ;;  %v1449_v25 = vadd.f32 1.0, %v2681_v63  ;;  %v1520_v55 = vsel %vm1517_vm15, %v1519_v8, %v1515_v7 }
 0x21b   : > { %v1523_v1 = vmul.f32 %v2683_v9, %v1448_v12  ;;  %vm1528_vm14 = vweird.f32 %v2683_v9  ;;  %v1959_v36 = vmul.f32 %v1520_v55, %v3852_v10 }
 0x21c   : > { %2684 = vrcp.f32 %v1449_v25  ;;  %vm1529_vm2 = vmor %vm1527_vm1, %vm1528_vm14  ;;  %v1548_v12 = vand.u32 2147483648, %v1449_v25  ;;  %v1546_v31 = vand.u32 2147483647, %v1449_v25  ;;  %vm1542_vm4 = vweird.f32 %v1449_v25 }
 0x21d   : > { %v1524_v52 = vsub.f32 1.0, %v1523_v1  ;;  %2686 = vpow2.f32 %v2371_v49  ;;  %2025 = vrot.lane.b32.xlu2 %v1959_v36, %s2820_s23 }
 0x21e   : > { %v1549_v8 = vor.u32 1.1754944e-38, %v1548_v12  ;;  %vm1547_vm6 = vcmp.eq.f32.partialorder %v1546_v31, 8.507059e+37 }
 0x21f   : > { %v1525_v60 = vmul.f32 %v2683_v9, %v1524_v52 }
 0x220   : > { %v1284_v48 = vpop.f32.mrf.mxu1 }
 0x221   : > { %v1526_v35 = vadd.f32 %v2683_v9, %v1525_v60  ;;  %v3874_v44 = vadd.f32 %v3814_v24, %v1284_v48  ;;  %v3883_v60 = vpop.f32.mrf.mxu3 }
 0x222   : > { %v2685_v19 = vpop.eup %2684 }
 0x223   : > { %v2687_v27 = vpop.eup %2686  ;;  %v1530_v0 = vsel %vm1529_vm2, %v2683_v9, %v1526_v35  ;;  %v1538_v16 = vmul.f32 %v2685_v19, %v1449_v25  ;;  %v2372_v49 = vmul.f32 -1.442695, %v3874_v44  ;;  %vm1543_vm3 = vweird.f32 %v2685_v19 }
 0x224   : > { %v1450_v63 = vadd.f32 1.0, %v2687_v27  ;;  %v1535_v4 = vsel %vm1532_vm9, %v1534_v43, %v1530_v0  ;;  %vm1544_vm5 = vmor %vm1542_vm4, %vm1543_vm3 }
 0x225   : > { %v1539_v58 = vsub.f32 1.0, %v1538_v16  ;;  %v1960_v52 = vmul.f32 %v1535_v4, %v3856_v46 }
 0x226   : > { %2688 = vrcp.f32 %v1450_v63  ;;  %v1563_v0 = vand.u32 2147483648, %v1450_v63  ;;  %vm1557_vm8 = vweird.f32 %v1450_v63 }
 0x227   : > { %v1540_v1 = vmul.f32 %v2685_v19, %v1539_v58  ;;  %2690 = vpow2.f32 %v2372_v49  ;;  %2027 = vrot.lane.b32.xlu2 %v1960_v52, %s2820_s23 }
 0x228   : > { %v1286_v10 = vpop.f32.mrf.mxu1 }
 0x229   : > { %v1541_v9 = vadd.f32 %v2685_v19, %v1540_v1  ;;  %v3881_v7 = vadd.f32 %v3814_v24, %v1286_v10  ;;  %v3892_v58 = vpop.f32.mrf.mxu3 }
 0x22b   : > { %v1545_v40 = vsel %vm1544_vm5, %v2685_v19, %v1541_v9  ;;  %v2373_v55 = vmul.f32 -1.442695, %v3881_v7  ;;  %v1561_v19 = vand.u32 2147483647, %v1450_v63 }
 0x22c   : > { %v2689_v15 = vpop.eup %2688  ;;  %v1550_v48 = vsel %vm1547_vm6, %v1549_v8, %v1545_v40 }
 0x22d   : > { %v1961_v46 = vmul.f32 %v1550_v48, %v3860_v29  ;;  %v1553_v35 = vmul.f32 %v2689_v15, %v1450_v63  ;;  %v2691_v36 = vpop.eup %2690  ;;  %2692 = vpow2.f32 %v2373_v55  ;;  %vm1558_vm7 = vweird.f32 %v2689_v15 }
 0x22e   : > { %v1451_v27 = vadd.f32 1.0, %v2691_v36  ;;  %vm1559_vm10 = vmor %vm1557_vm8, %vm1558_vm7  ;;  %v1564_v29 = vor.u32 1.1754944e-38, %v1563_v0  ;;  %vm1562_vm11 = vcmp.eq.f32.partialorder %v1561_v19, 8.507059e+37 }
 0x22f   : > { %v1554_v25 = vsub.f32 1.0, %v1553_v35  ;;  %2029 = vrot.lane.b32.xlu1 %v1961_v46, %s2820_s23 }
 0x230   : > { %v1289_v43 = vpop.f32.mrf.mxu1  ;;  %2694 = vrcp.f32 %v1451_v27  ;;  %v1578_v55 = vand.u32 2147483648, %v1451_v27  ;;  %v1576_v35 = vand.u32 2147483647, %v1451_v27  ;;  %vm1572_vm13 = vweird.f32 %v1451_v27 }
 0x231   : > { %v1555_v16 = vmul.f32 %v2689_v15, %v1554_v25  ;;  %v3890_v49 = vadd.f32 %v3814_v24, %v1289_v43  ;;  %v3900_v25 = vpop.f32.mrf.mxu3 }
 0x232   : > { %v1579_v43 = vor.u32 1.1754944e-38, %v1578_v55  ;;  %vm1577_vm15 = vcmp.eq.f32.partialorder %v1576_v35, 8.507059e+37 }
 0x233   : > { %v1556_v4 = vadd.f32 %v2689_v15, %v1555_v16  ;;  %v2693_v1 = vpop.eup %2692  ;;  %v2374_v52 = vmul.f32 -1.442695, %v3890_v49 }
 0x234   : > { %v1452_v8 = vadd.f32 1.0, %v2693_v1 }
 0x235   : > { %v1560_v12 = vsel %vm1559_vm10, %v2689_v15, %v1556_v4 }
 0x236   : > { %v1565_v31 = vsel %vm1562_vm11, %v1564_v29, %v1560_v12  ;;  %v2695_v10 = vpop.eup %2694  ;;  %2696 = vrcp.f32 %v1452_v8  ;;  %vm1587_vm2 = vweird.f32 %v1452_v8 }
 0x237   : > { %v1962_v9 = vmul.f32 %v1565_v31, %v3867_v45  ;;  %v1568_v40 = vmul.f32 %v2695_v10, %v1451_v27  ;;  %2698 = vpow2.f32 %v2374_v52  ;;  %vm1573_vm12 = vweird.f32 %v2695_v10 }
 0x238   : > { %v1291_v48 = vpop.f32.mrf.mxu1  ;;  %vm1574_vm14 = vmor %vm1572_vm13, %vm1573_vm12  ;;  %v1593_v52 = vand.u32 2147483648, %v1452_v8 }
 0x239   : > { %2031 = vrot.lane.b32.xlu2 %v1962_v9, %s2820_s23  ;;  %v1569_v63 = vsub.f32 1.0, %v1568_v40  ;;  %v3898_v46 = vadd.f32 %v3814_v24, %v1291_v48  ;;  %v1591_v40 = vand.u32 2147483647, %v1452_v8  ;;  %v3905_v35 = vpop.f32.mrf.mxu3 }
 0x23b   : > { %v1570_v15 = vmul.f32 %v2695_v10, %v1569_v63  ;;  %v2375_v45 = vmul.f32 -1.442695, %v3898_v46  ;;  %vm1592_vm3 = vcmp.eq.f32.partialorder %v1591_v40, 8.507059e+37 }
 0x23c   : > { %v2697_v0 = vpop.eup %2696 }
 0x23d   : > { %v1571_v36 = vadd.f32 %v2695_v10, %v1570_v15  ;;  %v2699_v16 = vpop.eup %2698  ;;  %v1583_v4 = vmul.f32 %v2697_v0, %v1452_v8  ;;  %2700 = vpow2.f32 %v2375_v45  ;;  %vm1588_vm1 = vweird.f32 %v2697_v0 }
 0x23e   : > { %v1453_v9 = vadd.f32 1.0, %v2699_v16  ;;  %vm1589_vm9 = vmor %vm1587_vm2, %vm1588_vm1  ;;  %v3912_v45 = vadd.f32 %v3814_v24, %v3864_v42 }
 0x23f   : > { %v1575_v19 = vsel %vm1574_vm14, %v2695_v10, %v1571_v36  ;;  %v1584_v1 = vsub.f32 1.0, %v1583_v4  ;;  %v1594_v10 = vor.u32 1.1754944e-38, %v1593_v52 }
 0x240   : > { %v1580_v29 = vsel %vm1577_vm15, %v1579_v43, %v1575_v19  ;;  %2702 = vrcp.f32 %v1453_v9  ;;  %v2384_v4 = vmul.f32 -1.442695, %v3912_v45  ;;  %v1606_v52 = vand.u32 2147483647, %v1453_v9 }
 0x241   : > { %v1963_v12 = vmul.f32 %v1580_v29, %v3874_v44  ;;  %v1585_v27 = vmul.f32 %v2697_v0, %v1584_v1  ;;  %v3920_v29 = vadd.f32 %v3814_v24, %v3871_v26  ;;  %v1608_v1 = vand.u32 2147483648, %v1453_v9 }
 0x242   : > { %v1294_v31 = vpop.f32.mrf.mxu1  ;;  %vm1602_vm5 = vweird.f32 %v1453_v9  ;;  %vm1607_vm7 = vcmp.eq.f32.partialorder %v1606_v52, 8.507059e+37 }
 0x243   : > { %2033 = vrot.lane.b32.xlu1 %v1963_v12, %s2820_s23  ;;  %v2701_v48 = vpop.eup %2700  ;;  %v1586_v63 = vadd.f32 %v2697_v0, %v1585_v27  ;;  %v3908_v36 = vadd.f32 %v3814_v24, %v1294_v31  ;;  %v2385_v40 = vmul.f32 -1.442695, %v3920_v29  ;;  %v1609_v26 = vor.u32 1.1754944e-38, %v1608_v1 }
 0x244   : > { %v1454_v55 = vadd.f32 1.0, %v2701_v48 }
 0x245   : > { %v1590_v15 = vsel %vm1589_vm9, %v2697_v0, %v1586_v63  ;;  %v2376_v0 = vmul.f32 -1.442695, %v3908_v36  ;;  %v3926_v63 = vpop.f32.mrf.mxu3 }
 0x246   : > { %v1595_v44 = vsel %vm1592_vm3, %v1594_v10, %v1590_v15  ;;  %2704 = vrcp.f32 %v1454_v55  ;;  %v2703_v16 = vpop.eup %2702  ;;  %vm1617_vm10 = vweird.f32 %v1454_v55  ;;  %v4076_v23 = vadd.f32 %v3814_v24, %v3926_v63 }
 0x247   : > { %v1964_v43 = vmul.f32 %v1595_v44, %v3881_v7  ;;  %v1598_v8 = vmul.f32 %v2703_v16, %v1453_v9  ;;  %vm1603_vm4 = vweird.f32 %v2703_v16  ;;  %2706 = vpow2.f32 %v2376_v0 }
 0x248   : > { %2708 = vpow2.f32 %v2384_v4  ;;  %vm1604_vm6 = vmor %vm1602_vm5, %vm1603_vm4 }
 0x249   : > { %2035 = vrot.lane.b32.xlu2 %v1964_v43, %s2820_s23  ;;  %v1599_v12 = vsub.f32 1.0, %v1598_v8  ;;  %v1621_v43 = vand.u32 2147483647, %v1454_v55  ;;  %v1623_v8 = vand.u32 2147483648, %v1454_v55 }
 0x24a   : > { %v1296_v19 = vpop.f32.mrf.mxu1 }
 0x24b   : > { %v3923_v42 = vadd.f32 %v3814_v24, %v1296_v19  ;;  %v1600_v31 = vmul.f32 %v2703_v16, %v1599_v12  ;;  %v1624_v1 = vor.u32 1.1754944e-38, %v1623_v8  ;;  %vm1622_vm12 = vcmp.eq.f32.partialorder %v1621_v43, 8.507059e+37 }
 0x24c   : > { %v2705_v7 = vpop.eup %2704 }
 0x24d   : > { %v1613_v27 = vmul.f32 %v2705_v7, %v1454_v55  ;;  %v1601_v48 = vadd.f32 %v2703_v16, %v1600_v31  ;;  %v2377_v15 = vmul.f32 -1.442695, %v3923_v42  ;;  %vm1618_vm8 = vweird.f32 %v2705_v7  ;;  %v2707_v9 = vpop.eup %2706  ;;  %v3937_v55 = vpop.f32.mrf.mxu3 }
 0x24e   : > { %v2709_v59 = vpop.eup %2708  ;;  %vm1619_vm11 = vmor %vm1617_vm10, %vm1618_vm8  ;;  %v1455_v52 = vadd.f32 1.0, %v2707_v9 }
 0x24f   : > { %v1614_v10 = vsub.f32 1.0, %v1613_v27  ;;  %v1605_v44 = vsel %vm1604_vm6, %v2703_v16, %v1601_v48  ;;  %2710 = vpow2.f32 %v2377_v15 }
 0x250   : > { %v1610_v19 = vsel %vm1607_vm7, %v1609_v26, %v1605_v44  ;;  %2712 = vpow2.f32 %v2385_v40  ;;  %v3934_v40 = vadd.f32 1.0, %v2709_v59  ;;  %v1636_v9 = vand.u32 2147483647, %v1455_v52 }
 0x251   : > { %v1615_v12 = vmul.f32 %v2705_v7, %v1614_v10  ;;  %v1965_v0 = vmul.f32 %v1610_v19, %v3890_v49  ;;  %2714 = vrcp.f32 %v1455_v52  ;;  %vm1632_vm14 = vweird.f32 %v1455_v52 }
 0x252   : > { %2716 = vrcp.f32 %v3934_v40  ;;  %vm1637_vm1 = vcmp.eq.f32.partialorder %v1636_v9, 8.507059e+37  ;;  %vm1752_vm5 = vweird.f32 %v3934_v40 }
 0x253   : > { %v1616_v31 = vadd.f32 %v2705_v7, %v1615_v12  ;;  %2037 = vrot.lane.b32.xlu1 %v1965_v0, %s2820_s23 }
 0x255   : > { %v1620_v16 = vsel %vm1619_vm11, %v2705_v7, %v1616_v31  ;;  %v2711_v26 = vpop.eup %2710  ;;  %v3943_v7 = vadd.f32 %v3814_v24, %v3883_v60  ;;  %v1638_v31 = vand.u32 2147483648, %v1455_v52 }
 0x256   : > { %v1299_v4 = vpop.f32.mrf.mxu1  ;;  %v1625_v48 = vsel %vm1622_vm12, %v1624_v1, %v1620_v16  ;;  %v2713_v10 = vpop.eup %2712  ;;  %v3939_v15 = vadd.f32 1.0, %v2711_v26 }
 0x257   : > { %v3932_v27 = vadd.f32 %v3814_v24, %v1299_v4  ;;  %v1966_v49 = vmul.f32 %v1625_v48, %v3898_v46  ;;  %v3948_v59 = vadd.f32 1.0, %v2713_v10  ;;  %v3952_v46 = vadd.f32 %v3814_v24, %v3892_v58  ;;  %v2715_v8 = vpop.eup %2714  ;;  %v3960_v16 = vpop.f32.mrf.mxu3 }
 0x258   : > { %2718 = vrcp.f32 %v3939_v15  ;;  %v2386_v19 = vmul.f32 -1.442695, %v3943_v7  ;;  %v1628_v60 = vmul.f32 %v2715_v8, %v1455_v52  ;;  %v3958_v4 = vpop.eup %2716  ;;  %vm1633_vm13 = vweird.f32 %v2715_v8 }
 0x259   : > { %v2378_v44 = vmul.f32 -1.442695, %v3932_v27  ;;  %2039 = vrot.lane.b32.xlu2 %v1966_v49, %s2820_s23  ;;  %v2387_v12 = vmul.f32 -1.442695, %v3952_v46  ;;  %vm1634_vm15 = vmor %vm1632_vm14, %vm1633_vm13  ;;  %v1651_v28 = vand.u32 2147483647, %v3939_v15  ;;  %vm1647_vm9 = vweird.f32 %v3939_v15 }
 0x25a   : > { %v1629_v0 = vsub.f32 1.0, %v1628_v60  ;;  %vm1753_vm8 = vweird.f32 %v3958_v4  ;;  %vm1767_vm14 = vweird.f32 %v3948_v59 }
 0x25b   : > { %2720 = vpow2.f32 %v2378_v44  ;;  %v1748_v44 = vmul.f32 %v3958_v4, %v3934_v40  ;;  %vm1652_vm4 = vcmp.eq.f32.partialorder %v1651_v28, 8.507059e+37  ;;  %vm4044_vm13 = vmor %vm1752_vm5, %vm1753_vm8 }
 0x25c   : > { %2722 = vrcp.f32 %v3948_v59  ;;  %v1630_v58 = vmul.f32 %v2715_v8, %v1629_v0  ;;  %v1639_v0 = vor.u32 1.1754944e-38, %v1638_v31 }
 0x25d   : > { %2724 = vpow2.f32 %v2386_v19 }
 0x25e   : > { %v1301_v43 = vpop.f32.mrf.mxu1  ;;  %v2719_v1 = vpop.eup %2718  ;;  %2726 = vpow2.f32 %v2387_v12  ;;  %v1631_v60 = vadd.f32 %v2715_v8, %v1630_v58  ;;  %v1653_v12 = vand.u32 2147483648, %v3939_v15 }
 0x25f   : > { %v3963_v48 = vadd.f32 %v3814_v24, %v1301_v43  ;;  %v1643_v10 = vmul.f32 %v2719_v1, %v3939_v15  ;;  %vm1648_vm2 = vweird.f32 %v2719_v1  ;;  %v3990_v15 = vpop.f32.mrf.mxu3 }
 0x260   : > { %v1635_v43 = vsel %vm1634_vm15, %v2715_v8, %v1631_v60  ;;  %vm1649_vm3 = vmor %vm1647_vm9, %vm1648_vm2  ;;  %v1749_v60 = vsub.f32 1.0, %v1748_v44 }
 0x261   : > { %v2721_v49 = vpop.eup %2720  ;;  %v1644_v6 = vsub.f32 1.0, %v1643_v10  ;;  %v2379_v61 = vmul.f32 -1.442695, %v3963_v48  ;;  %v1640_v11 = vsel %vm1637_vm1, %v1639_v0, %v1635_v43  ;;  %v1758_v0 = vand.u32 2147483648, %v3934_v40 }
 0x262   : > { %v3968_v19 = vpop.eup %2722  ;;  %v3970_v21 = vadd.f32 1.0, %v2721_v49  ;;  %v1967_v9 = vmul.f32 %v1640_v11, %v3908_v36  ;;  %v3984_v49 = vadd.f32 %v3814_v24, %v3905_v35 }
 0x263   : > { %v2725_v14 = vpop.eup %2724  ;;  %v1645_v33 = vmul.f32 %v2719_v1, %v1644_v6  ;;  %v1763_v52 = vmul.f32 %v3968_v19, %v3948_v59  ;;  %v1654_v6 = vor.u32 1.1754944e-38, %v1653_v12  ;;  %vm1768_vm10 = vweird.f32 %v3968_v19 }
 0x264   : > { %2728 = vrcp.f32 %v3970_v21  ;;  %v2727_v31 = vpop.eup %2726  ;;  %v3980_v8 = vadd.f32 1.0, %v2725_v14  ;;  %2041 = vrot.lane.b32.xlu1 %v1967_v9, %s2820_s23  ;;  %v2389_v28 = vmul.f32 -1.442695, %v3984_v49  ;;  %v1750_v9 = vmul.f32 %v3958_v4, %v1749_v60  ;;  %vm4059_vm1 = vmor %vm1767_vm14, %vm1768_vm10 }
 0x265   : > { %v1646_v58 = vadd.f32 %v2719_v1, %v1645_v33  ;;  %2730 = vpow2.f32 %v2379_v61  ;;  %v1764_v33 = vsub.f32 1.0, %v1763_v52  ;;  %v3988_v36 = vadd.f32 1.0, %v2727_v31 }
 0x266   : > { %v1304_v26 = vpop.f32.mrf.mxu1  ;;  %v1756_v61 = vand.u32 2147483647, %v3934_v40  ;;  %2732 = vrcp.f32 %v3980_v8  ;;  %v1668_v60 = vand.u32 2147483648, %v3970_v21  ;;  %vm1662_vm11 = vweird.f32 %v3970_v21 }
 0x267   : > { %v1650_v11 = vsel %vm1649_vm3, %v2719_v1, %v1646_v58  ;;  %v3993_v35 = vadd.f32 %v3814_v24, %v1304_v26  ;;  %v1759_v26 = vor.u32 1.1754944e-38, %v1758_v0  ;;  %2734 = vrcp.f32 %v3988_v36 }
 0x268   : > { %v1655_v14 = vsel %vm1652_vm4, %v1654_v6, %v1650_v11  ;;  %v4011_v58 = vadd.f32 %v3814_v24, %v3900_v25  ;;  %vm4013_vm6 = vcmp.eq.f32.partialorder %v1756_v61, 8.507059e+37  ;;  %v1751_v25 = vadd.f32 %v3958_v4, %v1750_v9 }
 0x269   : > { %v1968_v12 = vmul.f32 %v1655_v14, %v3923_v42  ;;  %v2380_v52 = vmul.f32 -1.442695, %v3993_v35  ;;  %v1765_v42 = vmul.f32 %v3968_v19, %v1764_v33  ;;  %v1666_v14 = vand.u32 2147483647, %v3970_v21 }
 0x26a   : > { %v2729_v43 = vpop.eup %2728  ;;  %v1773_v61 = vand.u32 2147483648, %v3948_v59  ;;  %v4034_v9 = vadd.f32 %v3814_v24, %v3937_v55  ;;  %v1786_v63 = vand.u32 2147483647, %v3980_v8  ;;  %v1803_v40 = vand.u32 2147483648, %v3988_v36 }
 0x26b   : > { %v1658_v1 = vmul.f32 %v2729_v43, %v3970_v21  ;;  %2043 = vrot.lane.b32.xlu2 %v1968_v12, %s2820_s23  ;;  %v2731_v31 = vpop.eup %2730  ;;  %2736 = vpow2.f32 %v2380_v52  ;;  %vm1663_vm7 = vweird.f32 %v2729_v43  ;;  %v1771_v21 = vand.u32 2147483647, %v3948_v59 }
 0x26c   : > { %v4018_v11 = vadd.f32 1.0, %v2731_v31  ;;  %2738 = vpow2.f32 %v2389_v28  ;;  %v4026_v12 = vpop.eup %2732  ;;  %v2388_v28 = vmul.f32 -1.442695, %v4011_v58  ;;  %vm4036_vm12 = vmor %vm1662_vm11, %vm1663_vm7  ;;  %vm1667_vm15 = vcmp.eq.f32.partialorder %v1666_v14, 8.507059e+37 }
 0x26d   : > { %v1659_v6 = vsub.f32 1.0, %v1658_v1  ;;  %v1766_v1 = vadd.f32 %v3968_v19, %v1765_v42  ;;  %v4040_v17 = vpop.eup %2734  ;;  %v1778_v59 = vmul.f32 %v4026_v12, %v3980_v8  ;;  %v1788_v31 = vand.u32 2147483648, %v3980_v8 }
 0x26e   : > { %v1306_v10 = vpop.f32.mrf.mxu1  ;;  %2740 = vrcp.f32 %v4018_v11  ;;  %v1774_v51 = vor.u32 1.1754944e-38, %v1773_v61  ;;  %v1793_v34 = vmul.f32 %v4040_v17, %v3988_v36  ;;  %vm1772_vm2 = vcmp.eq.f32.partialorder %v1771_v21, 8.507059e+37 }
 0x26f   : > { %v3998_v44 = vadd.f32 %v3814_v24, %v1306_v10  ;;  %v1660_v33 = vmul.f32 %v2729_v43, %v1659_v6  ;;  %v1669_v6 = vor.u32 1.1754944e-38, %v1668_v60  ;;  %vm1782_vm9 = vweird.f32 %v3980_v8 }
 0x270   : > { %vm1783_vm4 = vweird.f32 %v4026_v12  ;;  %vm1797_vm5 = vweird.f32 %v3988_v36  ;;  %v4118_v13 = vor.u32 1.1754944e-38, %v1803_v40  ;;  %vm4137_vm10 = vcmp.eq.f32.partialorder %v1786_v63, 8.507059e+37 }
 0x271   : > { %v2381_v0 = vmul.f32 -1.442695, %v3998_v44  ;;  %v1661_v52 = vadd.f32 %v2729_v43, %v1660_v33  ;;  %v4052_v33 = vpop.f32.mrf.mxu3  ;;  %v2737_v60 = vpop.eup %2736  ;;  %vm2149_vm14 = vcmask 785408  }
 0x272   : > { %v2739_v14 = vpop.eup %2738 }
 0x273   : > { %2742 = vpow2.f32 %v2381_v0  ;;  %v1665_v55 = vsel %vm4036_vm12, %v2729_v43, %v1661_v52  ;;  %v1755_v0 = vsel %vm4044_vm13, %v3958_v4, %v1751_v25  ;;  %v1770_v52 = vsel %vm4059_vm1, %v3968_v19, %v1766_v1 }
 0x274   : > { %v1670_v43 = vsel %vm1667_vm15, %v1669_v6, %v1665_v55  ;;  %v4070_v25 = vadd.f32 1.0, %v2737_v60  ;;  %v2741_v42 = vpop.eup %2740  ;;  %2744 = vpow2.f32 %v2388_v28  ;;  %v2391_v6 = vmul.f32 -1.442695, %v4034_v9  ;;  %vm4166_vm15 = vmor %vm1782_vm9, %vm1783_vm4 }
 0x275   : > { %v1969_v4 = vmul.f32 %v1670_v43, %v3932_v27  ;;  %v4081_v19 = vsel %vm4013_vm6, %v1759_v26, %v1755_v0  ;;  %v1673_v27 = vmul.f32 %v2741_v42, %v4018_v11  ;;  %v4086_v1 = vsel %vm1772_vm2, %v1774_v51, %v1770_v52 }
 0x276   : > { %v1309_v55 = vpop.f32.mrf.mxu1  ;;  %2746 = vrcp.f32 %v4070_v25  ;;  %v1779_v28 = vsub.f32 1.0, %v1778_v59  ;;  %v4089_v60 = vor.u32 1.1754944e-38, %v1788_v31  ;;  %v4092_v10 = vadd.f32 1.0, %v2739_v14 }
 0x277   : > { %2045 = vrot.lane.b32.xlu1 %v1969_v4, %s2820_s23  ;;  %v1674_v26 = vsub.f32 1.0, %v1673_v27  ;;  %v4095_v21 = vadd.f32 %v3814_v24, %v1309_v55  ;;  %v1794_v0 = vsub.f32 1.0, %v1793_v34  ;;  %v2390_v43 = vmul.f32 -1.442695, %v4076_v23  ;;  %v4099_v52 = vpop.permute.xlu2 %2025 }
 0x278   : > { %2748 = vpow2.f32 %v2391_v6  ;;  %v1683_v51 = vand.u32 2147483648, %v4018_v11  ;;  %vm1678_vm3 = vweird.f32 %v2741_v42  ;;  %v1681_v31 = vand.u32 2147483647, %v4018_v11 }
 0x279   : > { %v2743_v61 = vpop.eup %2742  ;;  %v1675_v59 = vmul.f32 %v2741_v42, %v1674_v26  ;;  %v1780_v55 = vmul.f32 %v4026_v12, %v1779_v28  ;;  %v1801_v34 = vand.u32 2147483647, %v3988_v36  ;;  %v4110_v6 = vadd.f32 %v3814_v24, %v3990_v15  ;;  %v1341_v26 = vpop.f32.mrf.mxu3 }
 0x27a   : > { %v4103_v14 = vadd.f32 1.0, %v2743_v61  ;;  %v2745_v4 = vpop.eup %2744  ;;  %2750 = vrcp.f32 %v4092_v10  ;;  %vm1677_vm6 = vweird.f32 %v4018_v11  ;;  %v2382_v28 = vmul.f32 -1.442695, %v4095_v21 }
 0x27b   : > { %v1676_v61 = vadd.f32 %v2741_v42, %v1675_v59  ;;  %2752 = vpow2.f32 %v2390_v43  ;;  %vm1679_vm7 = vmor %vm1677_vm6, %vm1678_vm3  ;;  %v1684_v15 = vor.u32 1.1754944e-38, %v1683_v51  ;;  %v1795_v50 = vmul.f32 %v4040_v17, %v1794_v0 }
 0x27c   : > { %v4112_v27 = vpop.eup %2746  ;;  %vm1682_vm8 = vcmp.eq.f32.partialorder %v1681_v31, 8.507059e+37  ;;  %2754 = vrcp.f32 %v4103_v14  ;;  %v4126_v11 = vadd.f32 1.0, %v2745_v4  ;;  %v2393_v40 = vmul.f32 -1.442695, %v4110_v6 }
 0x27d   : > { %v1688_v38 = vmul.f32 %v4112_v27, %v4070_v25  ;;  %v1680_v54 = vsel %vm1679_vm7, %v2741_v42, %v1676_v61  ;;  %v4133_v51 = vadd.f32 %v3814_v24, %v3960_v16  ;;  %v1698_v42 = vand.u32 2147483648, %v4070_v25 }
 0x27e   : > { %v2749_v59 = vpop.eup %2748  ;;  %v1685_v39 = vsel %vm1682_vm8, %v1684_v15, %v1680_v54  ;;  %2756 = vpow2.f32 %v2382_v28  ;;  %vm4141_vm11 = vcmp.eq.f32.partialorder %v1801_v34, 8.507059e+37  ;;  %vm1693_vm12 = vweird.f32 %v4112_v27 }
 0x27f   : > { %v1689_v43 = vsub.f32 1.0, %v1688_v38  ;;  %v4129_v2 = vpop.permute.xlu1 %2021  ;;  %v1970_v0 = vmul.f32 %v1685_v39, %v3963_v48  ;;  %v1696_v38 = vand.u32 2147483647, %v4070_v25  ;;  %v4149_v16 = vadd.f32 %v3814_v24, %v1341_v26 }
 0x280   : > { %v4151_v39 = vpop.eup %2750  ;;  %v1781_v48 = vadd.f32 %v4026_v12, %v1780_v55  ;;  %v1796_v63 = vadd.f32 %v4040_v17, %v1795_v50  ;;  %vm1798_vm13 = vweird.f32 %v4040_v17  ;;  %v4170_v61 = vadd.f32 1.0, %v2749_v59 }
 0x281   : > { %v1690_v54 = vmul.f32 %v4112_v27, %v1689_v43  ;;  %2047 = vrot.lane.b32.xlu2 %v1970_v0, %s2820_s23  ;;  %v2753_v34 = vpop.eup %2752  ;;  %2758 = vpow2.f32 %v2393_v40  ;;  %vm1692_vm1 = vweird.f32 %v4070_v25  ;;  %v2028_v55 = vpop.permute.xlu2 %2027  ;;  %v2392_v28 = vmul.f32 -1.442695, %v4133_v51  ;;  %vm4185_vm9 = vmor %vm1797_vm5, %vm1798_vm13 }
 0x282   : > { %v2755_v26 = vpop.eup %2754  ;;  %2760 = vrcp.f32 %v4126_v11  ;;  %vm1694_vm2 = vmor %vm1692_vm1, %vm1693_vm12  ;;  %v1699_v8 = vor.u32 1.1754944e-38, %v1698_v42  ;;  %v2119_v15 = vsel %vm397_vm0, %v3130_v57, %v4099_v52  ;;  %vm1697_vm3 = vcmp.eq.f32.partialorder %v1696_v38, 8.507059e+37  ;;  %v4202_v42 = vpop.f32.mrf.mxu3 }
 0x283   : > { %v1691_v50 = vadd.f32 %v4112_v27, %v1690_v54  ;;  %v2395_v40 = vmul.f32 -1.442695, %v4149_v16  ;;  %v1703_v43 = vmul.f32 %v2755_v26, %v4103_v14  ;;  %2152 = vst.msk [vmem:[%s4156_s26 + $0x10] sm:$0xff] %vm2149_vm14, %v2119_v15  ;;  %v1785_v57 = vsel %vm4166_vm15, %v4026_v12, %v1781_v48 }
 0x284   : > { %v2757_v0 = vpop.eup %2756  ;;  %v1800_v36 = vsel %vm4185_vm9, %v4040_v17, %v1796_v63  ;;  %v1823_v52 = vmul.f32 %v4151_v39, %v4092_v10  ;;  %v4204_v54 = vadd.f32 1.0, %v2753_v34  ;;  %2762 = vrcp.f32 %v4170_v61  ;;  %v1311_v17 = vpop.f32.mrf.mxu1 }
 0x285   : > { %v1695_v59 = vsel %vm1694_vm2, %v4112_v27, %v1691_v50  ;;  %v1704_v50 = vsub.f32 1.0, %v1703_v43  ;;  %2764 = vpow2.f32 %v2392_v28  ;;  %v1713_v12 = vand.u32 2147483648, %v4103_v14 }
 0x286   : > { %v1700_v27 = vsel %vm1697_vm3, %v1699_v8, %v1695_v59  ;;  %v4209_v48 = vadd.f32 1.0, %v2757_v0  ;;  %v2120_v63 = vsel %vm397_vm0, %v3123_v56, %v2028_v55  ;;  %2766 = vpow2.f32 %v2395_v40  ;;  %v2795_v55 = vld [vmem:[%s4626_s4] ss:$0 sm:$0xff] }
 0x287   : > { %v1971_v38 = vmul.f32 %v1700_v27, %v3993_v35  ;;  %v2759_v24 = vpop.eup %2758  ;;  %v1705_v8 = vmul.f32 %v2755_v26, %v1704_v50  ;;  %vm1708_vm4 = vweird.f32 %v2755_v26  ;;  %v1711_v34 = vand.u32 2147483647, %v4103_v14  ;;  %2153 = vst.msk [vmem:[%s4156_s26 + $0x18] sm:$0xff] %vm2149_vm14, %v2120_v63  ;;  %v2024_v35 = vpop.permute.xlu1 %2023 }
 0x288   : > { %v4217_v28 = vpop.eup %2760  ;;  %v1790_v15 = vsel %vm4137_vm10, %v4089_v60, %v1785_v57  ;;  %v1805_v56 = vsel %vm4141_vm11, %v4118_v13, %v1800_v36  ;;  %v4229_v25 = vadd.f32 %v2795_v55, %v4052_v33  ;;  %2768 = vrcp.f32 %v4209_v48 }
 0x289   : > { %2049 = vrot.lane.b32.xlu1 %v1971_v38, %s2820_s23  ;;  %v1824_v59 = vsub.f32 1.0, %v1823_v52  ;;  %v1706_v40 = vadd.f32 %v2755_v26, %v1705_v8  ;;  %vm1707_vm5 = vweird.f32 %v4103_v14  ;;  %v4233_v31 = vadd.f32 %v2795_v55, %v1311_v17 }
 0x28a   : > { %v4235_v4 = vadd.f32 1.0, %v2759_v24  ;;  %vm1709_vm6 = vmor %vm1707_vm5, %vm1708_vm4  ;;  %v1714_v13 = vor.u32 1.1754944e-38, %v1713_v12  ;;  %v2117_v33 = vsel %vm397_vm0, %v3035_v53, %v4129_v2  ;;  %v2118_v43 = vsel %vm397_vm0, %v3029_v47, %v2024_v35  ;;  %v4243_v0 = vpop.eup %2762 }
 0x28b   : > { %2770 = vrcp.f32 %v4204_v54  ;;  %v1710_v14 = vsel %vm1709_vm6, %v2755_v26, %v1706_v40  ;;  %vm1712_vm7 = vcmp.eq.f32.partialorder %v1711_v34, 8.507059e+37  ;;  %2150 = vst.msk [vmem:[%s4156_s26] sm:$0xff] %vm2149_vm14, %v2117_v33  ;;  %v2765_v36 = vpop.eup %2764  ;;  %v1808_v52 = vmul.f32 %v4217_v28, %v4126_v11 }
 0x28c   : > { %v2394_v53 = vmul.f32 -1.442695, %v4229_v25  ;;  %v1715_v2 = vsel %vm1712_vm7, %v1714_v13, %v1710_v14  ;;  %2151 = vst.msk [vmem:[%s4156_s26 + $0x8] sm:$0xff] %vm2149_vm14, %v2118_v43  ;;  %v2767_v47 = vpop.eup %2766  ;;  %v1975_v27 = vmul.f32 %v4081_v19, %v3912_v45  ;;  %v1976_v26 = vmul.f32 %v4086_v1, %v3920_v29  ;;  %v1346_v45 = vpop.f32.mrf.mxu3 }
 0x28d   : > { %v1972_v38 = vmul.f32 %v1715_v2, %v3998_v44  ;;  %v4264_v12 = vmul.f32 %v1790_v15, %v3943_v7  ;;  %v1978_v17 = vmul.f32 %v1805_v56, %v3952_v46  ;;  %v1853_v63 = vmul.f32 %v4243_v0, %v4170_v61 }
 0x28e   : > { %v2769_v50 = vpop.eup %2768  ;;  %2772 = vrcp.f32 %v4235_v4  ;;  %v1825_v29 = vmul.f32 %v4151_v39, %v1824_v59  ;;  %vm1827_vm8 = vweird.f32 %v4092_v10  ;;  %v1831_v44 = vand.u32 2147483647, %v4092_v10 }
 0x28f   : > { %v1718_v19 = vmul.f32 %v2769_v50, %v4209_v48  ;;  %2051 = vrot.lane.b32.xlu2 %v1972_v38, %s2820_s23  ;;  %v1809_v7 = vsub.f32 1.0, %v1808_v52  ;;  %v4276_v46 = vadd.f32 1.0, %v2765_v36  ;;  %2774 = vpow2.f32 %v2394_v53 }
 0x290   : > { %v4279_v1 = vadd.f32 %v2795_v55, %v4202_v42  ;;  %vm1813_vm10 = vweird.f32 %v4217_v28  ;;  %v4284_v8 = vadd.f32 1.0, %v2767_v47  ;;  %v4286_v35 = vadd.f32 %v2795_v55, %v1346_v45 }
 0x291   : > { %2059 = vrot.lane.b32.xlu1 %v1976_v26, %s2820_s23  ;;  %v4281_v24 = vpop.eup %2770  ;;  %v1719_v34 = vsub.f32 1.0, %v1718_v19  ;;  %vm1828_vm11 = vweird.f32 %v4151_v39  ;;  %v1833_v15 = vand.u32 2147483648, %v4092_v10  ;;  %v1854_v56 = vsub.f32 1.0, %v1853_v63 }
 0x292   : > { %v1728_v59 = vand.u32 2147483648, %v4209_v48  ;;  %v1826_v42 = vadd.f32 %v4151_v39, %v1825_v29  ;;  %vm1723_vm12 = vweird.f32 %v2769_v50  ;;  %v1810_v33 = vmul.f32 %v4217_v28, %v1809_v7  ;;  %vm4302_vm13 = vmor %vm1827_vm8, %vm1828_vm11 }
 0x293   : > { %v2032_v60 = vpop.permute.xlu2 %2031  ;;  %v1720_v40 = vmul.f32 %v2769_v50, %v1719_v34  ;;  %v1838_v55 = vmul.f32 %v4281_v24, %v4204_v54  ;;  %v2396_v43 = vmul.f32 -1.442695, %v4279_v1  ;;  %vm1722_vm15 = vweird.f32 %v4209_v48 }
 0x294   : > { %v2122_v57 = vsel %vm397_vm0, %v3242_v20, %v2032_v60  ;;  %v2383_v20 = vmul.f32 -1.442695, %v4233_v31  ;;  %v1726_v60 = vand.u32 2147483647, %v4209_v48  ;;  %v4293_v13 = vpop.eup %2772  ;;  %v2397_v36 = vmul.f32 -1.442695, %v4286_v35  ;;  %vm1724_vm2 = vmor %vm1722_vm15, %vm1723_vm12 }
 0x295   : > { %2155 = vst.msk [vmem:[%s4156_s26 + $0x28] sm:$0xff] %vm2149_vm14, %v2122_v57  ;;  %v1721_v57 = vadd.f32 %v2769_v50, %v1720_v40  ;;  %v2775_v52 = vpop.eup %2774  ;;  %vm4309_vm1 = vcmp.eq.f32.partialorder %v1831_v44, 8.507059e+37  ;;  %v1834_v2 = vor.u32 1.1754944e-38, %v1833_v15  ;;  %v1855_v47 = vmul.f32 %v4243_v0, %v1854_v56 }
 0x296   : > { %2776 = vpow2.f32 %v2383_v20  ;;  %v1729_v10 = vor.u32 1.1754944e-38, %v1728_v59  ;;  %v1830_v38 = vsel %vm4302_vm13, %v4151_v39, %v1826_v42  ;;  %v1883_v48 = vmul.f32 %v4293_v13, %v4235_v4 }
 0x297   : > { %2778 = vrcp.f32 %v4276_v46  ;;  %v1725_v20 = vsel %vm1724_vm2, %v2769_v50, %v1721_v57  ;;  %vm1727_vm9 = vcmp.eq.f32.partialorder %v1726_v60, 8.507059e+37  ;;  %2057 = vrot.lane.b32.xlu2 %v1975_v27, %s2820_s23  ;;  %v1839_v45 = vsub.f32 1.0, %v1838_v55 }
 0x298   : > { %2780 = vrcp.f32 %v4284_v8  ;;  %v1730_v29 = vsel %vm1727_vm9, %v1729_v10, %v1725_v20  ;;  %v1811_v19 = vadd.f32 %v4217_v28, %v1810_v33  ;;  %v4325_v7 = vadd.f32 1.0, %v2775_v52 }
 0x299   : > { %2063 = vrot.lane.b32.xlu1 %v1978_v17, %s2820_s23  ;;  %2782 = vpow2.f32 %v2396_v43  ;;  %v1973_v39 = vmul.f32 %v1730_v29, %v4095_v21  ;;  %v1835_v27 = vsel %vm4309_vm1, %v1834_v2, %v1830_v38  ;;  %v1856_v17 = vadd.f32 %v4243_v0, %v1855_v47 }
 0x29a   : > { %2784 = vpow2.f32 %v2397_v36  ;;  %vm1858_vm3 = vweird.f32 %v4243_v0  ;;  %vm1812_vm4 = vweird.f32 %v4126_v11  ;;  %v1818_v21 = vand.u32 2147483648, %v4126_v11 }
 0x29b   : > { %v1863_v15 = vand.u32 2147483648, %v4170_v61  ;;  %v1884_v56 = vsub.f32 1.0, %v1883_v48  ;;  %2053 = vrot.lane.b32.xlu0 %v1973_v39, %s2820_s23  ;;  %vm4346_vm5 = vmor %vm1812_vm4, %vm1813_vm10  ;;  %v1816_v42 = vand.u32 2147483647, %v4126_v11  ;;  %v1840_v40 = vmul.f32 %v4281_v24, %v1839_v45 }
 0x29c   : > { %v2777_v26 = vpop.eup %2776  ;;  %vm1857_vm6 = vweird.f32 %v4170_v61  ;;  %v1861_v60 = vand.u32 2147483647, %v4170_v61  ;;  %v1980_v55 = vmul.f32 %v1835_v27, %v3984_v49  ;;  %2786 = vrcp.f32 %v4325_v7 }
 0x29d   : > { %v4330_v50 = vpop.eup %2778  ;;  %v4336_v34 = vadd.f32 1.0, %v2777_v26  ;;  %vm4357_vm7 = vmor %vm1857_vm6, %vm1858_vm3  ;;  %v1815_v61 = vsel %vm4346_vm5, %v4217_v28, %v1811_v19  ;;  %v1819_v53 = vor.u32 1.1754944e-38, %v1818_v21  ;;  %v1864_v2 = vor.u32 1.1754944e-38, %v1863_v15 }
 0x29e   : > { %v1868_v14 = vmul.f32 %v4330_v50, %v4276_v46  ;;  %v1860_v49 = vsel %vm4357_vm7, %v4243_v0, %v1856_v17  ;;  %vm1817_vm8 = vcmp.eq.f32.partialorder %v1816_v42, 8.507059e+37  ;;  %v1841_v28 = vadd.f32 %v4281_v24, %v1840_v40 }
 0x29f   : > { %2788 = vrcp.f32 %v4336_v34  ;;  %2061 = vrot.lane.b32.xlu2 %v4264_v12, %s2820_s23  ;;  %vm1843_vm10 = vweird.f32 %v4281_v24  ;;  %vm1862_vm11 = vcmp.eq.f32.partialorder %v1861_v60, 8.507059e+37  ;;  %v1820_v0 = vsel %vm1817_vm8, %v1819_v53, %v1815_v61 }
 0x2a0   : > { %v1865_v47 = vsel %vm1862_vm11, %v1864_v2, %v1860_v49  ;;  %v1869_v10 = vsub.f32 1.0, %v1868_v14  ;;  %vm1842_vm12 = vweird.f32 %v4204_v54  ;;  %v1848_v38 = vand.u32 2147483648, %v4204_v54 }
 0x2a1   : > { %v2030_v63 = vpop.permute.xlu1 %2029  ;;  %2067 = vrot.lane.b32.xlu1 %v1980_v55, %s2820_s23  ;;  %vm4391_vm13 = vmor %vm1842_vm12, %vm1843_vm10  ;;  %v1846_v45 = vand.u32 2147483647, %v4204_v54  ;;  %vm1888_vm15 = vweird.f32 %v4293_v13  ;;  %v1979_v19 = vmul.f32 %v1820_v0, %v4011_v58  ;;  %v1982_v27 = vmul.f32 %v1865_v47, %v4034_v9 }
 0x2a2   : > { %v2121_v44 = vsel %vm397_vm0, %v3249_v62, %v2030_v63  ;;  %v4338_v62 = vpop.eup %2780  ;;  %v1845_v39 = vsel %vm4391_vm13, %v4281_v24, %v1841_v28  ;;  %v1893_v17 = vand.u32 2147483648, %v4235_v4  ;;  %v1870_v21 = vmul.f32 %v4330_v50, %v1869_v10 }
 0x2a3   : > { %2154 = vst.msk [vmem:[%s4156_s26 + $0x20] sm:$0xff] %vm2149_vm14, %v2121_v44  ;;  %v2036_v33 = vpop.permute.xlu2 %2035  ;;  %v2783_v57 = vpop.eup %2782  ;;  %v1913_v36 = vmul.f32 %v4338_v62, %v4284_v8  ;;  %vm1887_vm1 = vweird.f32 %v4235_v4  ;;  %v1891_v54 = vand.u32 2147483647, %v4235_v4  ;;  %v1849_v15 = vor.u32 1.1754944e-38, %v1848_v38 }
 0x2a4   : > { %v2124_v11 = vsel %vm397_vm0, %v3368_v32, %v2036_v33  ;;  %v2785_v52 = vpop.eup %2784  ;;  %v1885_v32 = vmul.f32 %v4293_v13, %v1884_v56  ;;  %v4383_v26 = vadd.f32 1.0, %v2783_v57  ;;  %vm4410_vm2 = vmor %vm1887_vm1, %vm1888_vm15  ;;  %vm1847_vm9 = vcmp.eq.f32.partialorder %v1846_v45, 8.507059e+37 }
 0x2a5   : > { %2157 = vst.msk [vmem:[%s4156_s26 + $0x38] sm:$0xff] %vm2149_vm14, %v2124_v11  ;;  %v1914_v48 = vsub.f32 1.0, %v1913_v36  ;;  %v4387_v20 = vadd.f32 1.0, %v2785_v52  ;;  %v4389_v12 = vpop.eup %2786  ;;  %v1850_v59 = vsel %vm1847_vm9, %v1849_v15, %v1845_v39  ;;  %v1894_v42 = vor.u32 1.1754944e-38, %v1893_v17  ;;  %v4776_v17 = vld [vmem:[#allocation19_spill] sm:$0xff] }
 0x2a6   : > { %v1886_v29 = vadd.f32 %v4293_v13, %v1885_v32  ;;  %v4398_v44 = vpop.eup %2788  ;;  %2790 = vrcp.f32 %v4383_v26  ;;  %v1898_v58 = vmul.f32 %v4389_v12, %v4325_v7  ;;  %v1871_v40 = vadd.f32 %v4330_v50, %v1870_v21  ;;  %v4768_v32 = vld [vmem:[#allocation14_spill] sm:$0xff] }
 0x2a7   : > { %v1915_v9 = vmul.f32 %v4338_v62, %v1914_v48  ;;  %2792 = vrcp.f32 %v4387_v20  ;;  %v1733_v4 = vmul.f32 %v4398_v44, %v4336_v34  ;;  %2065 = vrot.lane.b32.xlu2 %v1979_v19, %s2820_s23  ;;  %vm1873_vm3 = vweird.f32 %v4330_v50 }
 0x2a8   : > { %v1890_v24 = vsel %vm4410_vm2, %v4293_v13, %v1886_v29  ;;  %v1878_v60 = vand.u32 2147483648, %v4276_v46  ;;  %vm1892_vm4 = vcmp.eq.f32.partialorder %v1891_v54, 8.507059e+37  ;;  %v1899_v55 = vsub.f32 1.0, %v1898_v58 }
 0x2a9   : > { %2071 = vrot.lane.b32.xlu1 %v1982_v27, %s2820_s23  ;;  %v1895_v33 = vsel %vm1892_vm4, %v1894_v42, %v1890_v24  ;;  %v1916_v13 = vadd.f32 %v4338_v62, %v1915_v9  ;;  %vm1918_vm5 = vweird.f32 %v4338_v62  ;;  %vm1872_vm6 = vweird.f32 %v4276_v46 }
 0x2aa   : > { %v1734_v14 = vsub.f32 1.0, %v1733_v4  ;;  %v1981_v57 = vmul.f32 %v1850_v59, %v4076_v23  ;;  %vm4436_vm7 = vmor %vm1872_vm6, %vm1873_vm3  ;;  %v1876_v49 = vand.u32 2147483647, %v4276_v46  ;;  %vm1917_vm8 = vweird.f32 %v4284_v8 }
 0x2ab   : > { %v1923_v36 = vand.u32 2147483648, %v4284_v8  ;;  %v1879_v53 = vor.u32 1.1754944e-38, %v1878_v60  ;;  %v1984_v2 = vmul.f32 %v1895_v33, %v4110_v6  ;;  %vm4444_vm10 = vmor %vm1917_vm8, %vm1918_vm5  ;;  %v1921_v23 = vand.u32 2147483647, %v4284_v8  ;;  %v4782_v60 = vld [vmem:[#allocation10_spill] sm:$0xff] }
 0x2ac   : > { %v4430_v43 = vpop.eup %2790  ;;  %v1875_v46 = vsel %vm4436_vm7, %v4330_v50, %v1871_v40  ;;  %v1900_v47 = vmul.f32 %v4389_v12, %v1899_v55  ;;  %v1920_v6 = vsel %vm4444_vm10, %v4338_v62, %v1916_v13  ;;  %v1735_v38 = vmul.f32 %v4398_v44, %v1734_v14 }
 0x2ad   : > { %v4433_v11 = vpop.eup %2792  ;;  %v1928_v8 = vmul.f32 %v4430_v43, %v4383_v26  ;;  %vm1877_vm11 = vcmp.eq.f32.partialorder %v1876_v49, 8.507059e+37  ;;  %v1924_v50 = vor.u32 1.1754944e-38, %v1923_v36  ;;  %vm1922_vm12 = vcmp.eq.f32.partialorder %v1921_v23, 8.507059e+37 }
 0x2ae   : > { %v1880_v62 = vsel %vm1877_vm11, %v1879_v53, %v1875_v46  ;;  %vm1903_vm13 = vweird.f32 %v4389_v12  ;;  %v1736_v29 = vadd.f32 %v4398_v44, %v1735_v38  ;;  %vm1738_vm15 = vweird.f32 %v4398_v44  ;;  %v4772_v38 = vld [vmem:[#allocation6_spill] sm:$0xff] }
 0x2af   : > { %2069 = vrot.lane.b32.xlu2 %v1981_v57, %s2820_s23  ;;  %v1925_v48 = vsel %vm1922_vm12, %v1924_v50, %v1920_v6  ;;  %v1929_v63 = vsub.f32 1.0, %v1928_v8  ;;  %v1983_v19 = vmul.f32 %v1880_v62, %v4133_v51  ;;  %vm1902_vm1 = vweird.f32 %v4325_v7  ;;  %v4771_v6 = vld [vmem:[#allocation15_spill] sm:$0xff]  ;;  %v4773_v62 = vld [vmem:[#allocation2_spill] sm:$0xff] }
 0x2b0   : > { %v1908_v39 = vand.u32 2147483648, %v4325_v7  ;;  %v1743_v27 = vand.u32 2147483648, %v4336_v34  ;;  %vm4479_vm2 = vmor %vm1902_vm1, %vm1903_vm13  ;;  %v1906_v21 = vand.u32 2147483647, %v4325_v7  ;;  %v1986_v54 = vmul.f32 %v1925_v48, %v4149_v16 }
 0x2b1   : > { %2075 = vrot.lane.b32.xlu1 %v1984_v2, %s2820_s23  ;;  %vm1737_vm9 = vweird.f32 %v4336_v34  ;;  %v1741_v15 = vand.u32 2147483647, %v4336_v34  ;;  %v1930_v56 = vmul.f32 %v4430_v43, %v1929_v63  ;;  %vm1933_vm6 = vweird.f32 %v4430_v43 }
 0x2b2   : > { %vm1739_vm3 = vmor %vm1737_vm9, %vm1738_vm15  ;;  %v1909_v16 = vor.u32 1.1754944e-38, %v1908_v39  ;;  %v1744_v7 = vor.u32 1.1754944e-38, %v1743_v27  ;;  %vm1907_vm4 = vcmp.eq.f32.partialorder %v1906_v21, 8.507059e+37  ;;  %vm1948_vm7 = vweird.f32 %v4433_v11 }
 0x2b3   : > { %v2040_v28 = vpop.permute.xlu2 %2039  ;;  %v1740_v9 = vsel %vm1739_vm3, %v4398_v44, %v1736_v29  ;;  %vm1742_vm5 = vcmp.eq.f32.partialorder %v1741_v15, 8.507059e+37  ;;  %vm1932_vm8 = vweird.f32 %v4383_v26  ;;  %v1936_v44 = vand.u32 2147483647, %v4383_v26 }
 0x2b4   : > { %v2126_v10 = vsel %vm397_vm0, %v3467_v18, %v2040_v28  ;;  %v1901_v18 = vadd.f32 %v4389_v12, %v1900_v47  ;;  %v1745_v24 = vsel %vm1742_vm5, %v1744_v7, %v1740_v9  ;;  %v1938_v59 = vand.u32 2147483648, %v4383_v26  ;;  %vm4504_vm10 = vmor %vm1932_vm8, %vm1933_vm6  ;;  %v4769_v28 = vld [vmem:[#allocation3_spill] sm:$0xff] }
 0x2b5   : > { %v2034_v52 = vpop.permute.xlu1 %2033  ;;  %2159 = vst.msk [vmem:[%s4156_s26 + $0x48] sm:$0xff] %vm2149_vm14, %v2126_v10  ;;  %v1953_v42 = vand.u32 2147483648, %v4387_v20  ;;  %vm1947_vm11 = vweird.f32 %v4387_v20  ;;  %v1951_v33 = vand.u32 2147483647, %v4387_v20  ;;  %v1974_v55 = vmul.f32 %v1745_v24, %v4233_v31 }
 0x2b6   : > { %v2123_v0 = vsel %vm397_vm0, %v3365_v5, %v2034_v52  ;;  %v1943_v5 = vmul.f32 %v4433_v11, %v4387_v20  ;;  %v1905_v51 = vsel %vm4479_vm2, %v4389_v12, %v1901_v18  ;;  %v1931_v12 = vadd.f32 %v4430_v43, %v1930_v56  ;;  %vm1949_vm12 = vmor %vm1947_vm11, %vm1948_vm7 }
 0x2b7   : > { %2156 = vst.msk [vmem:[%s4156_s26 + $0x30] sm:$0xff] %vm2149_vm14, %v2123_v0  ;;  %2073 = vrot.lane.b32.xlu2 %v1983_v19, %s2820_s23  ;;  %v1910_v34 = vsel %vm1907_vm4, %v1909_v16, %v1905_v51  ;;  %v1954_v14 = vor.u32 1.1754944e-38, %v1953_v42  ;;  %vm1937_vm13 = vcmp.eq.f32.partialorder %v1936_v44, 8.507059e+37  ;;  %vm1952_vm15 = vcmp.eq.f32.partialorder %v1951_v33, 8.507059e+37  ;;  %v4775_v19 = vld [vmem:[#allocation5_spill] sm:$0xff]  ;;  %v4777_v51 = vld [vmem:[#allocation11_spill] sm:$0xff] }
 0x2b8   : > { %v1944_v45 = vsub.f32 1.0, %v1943_v5  ;;  %v1985_v40 = vmul.f32 %v1910_v34, %v4229_v25  ;;  %v1935_v26 = vsel %vm4504_vm10, %v4430_v43, %v1931_v12  ;;  %v1939_v25 = vor.u32 1.1754944e-38, %v1938_v59  ;;  %v4779_v34 = vld [vmem:[#allocation13_spill] sm:$0xff]  ;;  %v4781_v42 = vld [vmem:[#allocation16_spill] sm:$0xff] }
 0x2b9   : > { %2079 = vrot.lane.b32.xlu1 %v1986_v54, %s2820_s23  ;;  %v4780_v12 = vld [vmem:[#allocation9_spill] sm:$0xff] }
 0x2ba   : > { %v1945_v58 = vmul.f32 %v4433_v11, %v1944_v45  ;;  %v1940_v20 = vsel %vm1937_vm13, %v1939_v25, %v1935_v26  ;;  %v4774_v45 = vld [vmem:[#allocation8_spill] sm:$0xff] }
 0x2bb   : > { %v1987_v49 = vmul.f32 %v1940_v20, %v4279_v1  ;;  %v4783_v26 = vld [vmem:[#allocation12_spill] sm:$0xff]  ;;  %v4785_v20 = vld [vmem:[#allocation17_spill] sm:$0xff] }
 0x2bc   : > { %v1946_v4 = vadd.f32 %v4433_v11, %v1945_v58  ;;  %v4778_v58 = vld [vmem:[#allocation7_spill] sm:$0xff] }
 0x2be   : > { %v1950_v13 = vsel %vm1949_vm12, %v4433_v11, %v1946_v4 }
 0x2bf   : > { %2077 = vrot.lane.b32.xlu2 %v1985_v40, %s2820_s23  ;;  %v1955_v61 = vsel %vm1952_vm15, %v1954_v14, %v1950_v13  ;;  %v4784_v14 = vld [vmem:[#allocation18_spill] sm:$0xff] }
 0x2c0   : > { %v1988_v36 = vmul.f32 %v1955_v61, %v4286_v35 }
 0x2c1   : > { %2055 = vrot.lane.b32.xlu1 %v1974_v55, %s2820_s23 }
 0x2c5   : > { %v2038_v57 = vpop.permute.xlu1 %2037  ;;  %v2044_v43 = vpop.permute.xlu2 %2043 }
 0x2c6   : > { %v2125_v31 = vsel %vm397_vm0, %v3480_v22, %v2038_v57  ;;  %v2128_v11 = vsel %vm397_vm0, %v3591_v37, %v2044_v43 }
 0x2c7   : > { %2158 = vst.msk [vmem:[%s4156_s26 + $0x40] sm:$0xff] %vm2149_vm14, %v2125_v31  ;;  %2081 = vrot.lane.b32.xlu2 %v1987_v49, %s2820_s23 }
 0x2c8   : > { %2161 = vst.msk [vmem:[%s4156_s26 + $0x58] sm:$0xff] %vm2149_vm14, %v2128_v11 }
 0x2c9   : > { %2083 = vrot.lane.b32.xlu1 %v1988_v36, %s2820_s23 }
 0x2d6   : > { %v2042_v22 = vpop.permute.xlu1 %2041 }
 0x2d7   : > { %v2127_v52 = vsel %vm397_vm0, %v3604_v30, %v2042_v22 }
 0x2d8   : > { %2160 = vst.msk [vmem:[%s4156_s26 + $0x50] sm:$0xff] %vm2149_vm14, %v2127_v52 }
 0x2db   : > { %v2048_v53 = vpop.permute.xlu2 %2047 }
 0x2dc   : > { %v2130_v37 = vsel %vm397_vm0, %v3730_v3, %v2048_v53 }
 0x2dd   : > { %2163 = vst.msk [vmem:[%s4156_s26 + $0x68] sm:$0xff] %vm2149_vm14, %v2130_v37 }
 0x2e9   : > { %v2046_v1 = vpop.permute.xlu1 %2045  ;;  %v2052_v2 = vpop.permute.xlu2 %2051 }
 0x2ea   : > { %v2129_v35 = vsel %vm397_vm0, %v3716_v41, %v2046_v1  ;;  %v2132_v30 = vsel %vm397_vm0, %v4768_v32, %v2052_v2  ;;  %v4770_v41 = vld [vmem:[#allocation4_spill] sm:$0xff] }
 0x2eb   : > { %2162 = vst.msk [vmem:[%s4156_s26 + $0x60] sm:$0xff] %vm2149_vm14, %v2129_v35 }
 0x2ec   : > { %2165 = vst.msk [vmem:[%s4156_s26 + $0x78] sm:$0xff] %vm2149_vm14, %v2132_v30 }
 0x2f1   : > { %v2058_v23 = vpop.permute.xlu2 %2057 }
 0x2f2   : > { %v2135_v3 = vsel %vm397_vm0, %v4769_v28, %v2058_v23 }
 0x2f3   : > { %2168 = vst.msk [vmem:[%s4156_s26 + $0x90] sm:$0xff] %vm2149_vm14, %v2135_v3 }
 0x2f9   : > { %v2062_v0 = vpop.permute.xlu2 %2061 }
 0x2fa   : > { %v2137_v47 = vsel %vm397_vm0, %v4770_v41, %v2062_v0 }
 0x2fb   : > { %v2050_v46 = vpop.permute.xlu1 %2049  ;;  %2170 = vst.msk [vmem:[%s4156_s26 + $0xa0] sm:$0xff] %vm2149_vm14, %v2137_v47 }
 0x2fc   : > { %v2131_v10 = vsel %vm397_vm0, %v4771_v6, %v2050_v46 }
 0x2fd   : > { %2164 = vst.msk [vmem:[%s4156_s26 + $0x70] sm:$0xff] %vm2149_vm14, %v2131_v10 }
 0x301   : > { %v2066_v8 = vpop.permute.xlu2 %2065 }
 0x302   : > { %v2139_v50 = vsel %vm397_vm0, %v4772_v38, %v2066_v8 }
 0x303   : > { %v2060_v5 = vpop.permute.xlu1 %2059  ;;  %2172 = vst.msk [vmem:[%s4156_s26 + $0xb0] sm:$0xff] %vm2149_vm14, %v2139_v50 }
 0x304   : > { %v2136_v18 = vsel %vm397_vm0, %v4773_v62, %v2060_v5 }
 0x305   : > { %2169 = vst.msk [vmem:[%s4156_s26 + $0x98] sm:$0xff] %vm2149_vm14, %v2136_v18 }
 0x309   : > { %v2070_v48 = vpop.permute.xlu2 %2069 }
 0x30a   : > { %v2141_v29 = vsel %vm397_vm0, %v4774_v45, %v2070_v48 }
 0x30b   : > { %v2064_v63 = vpop.permute.xlu1 %2063  ;;  %2174 = vst.msk [vmem:[%s4156_s26 + $0xc0] sm:$0xff] %vm2149_vm14, %v2141_v29 }
 0x30c   : > { %v2138_v39 = vsel %vm397_vm0, %v4775_v19, %v2064_v63 }
 0x30d   : > { %2171 = vst.msk [vmem:[%s4156_s26 + $0xa8] sm:$0xff] %vm2149_vm14, %v2138_v39  ;;  %v2054_v27 = vpop.permute.xlu0 %2053 }
 0x30e   : > { %v2133_v21 = vsel %vm397_vm0, %v4776_v17, %v2054_v27 }
 0x30f   : > { %2166 = vst.msk [vmem:[%s4156_s26 + $0x80] sm:$0xff] %vm2149_vm14, %v2133_v21 }
 0x311   : > { %v2074_v54 = vpop.permute.xlu2 %2073 }
 0x312   : > { %v2143_v56 = vsel %vm397_vm0, %v4777_v51, %v2074_v54 }
 0x313   : > { %v2068_v15 = vpop.permute.xlu1 %2067  ;;  %2176 = vst.msk [vmem:[%s4156_s26 + $0xd0] sm:$0xff] %vm2149_vm14, %v2143_v56 }
 0x314   : > { %v2140_v9 = vsel %vm397_vm0, %v4778_v58, %v2068_v15 }
 0x315   : > { %2173 = vst.msk [vmem:[%s4156_s26 + $0xb8] sm:$0xff] %vm2149_vm14, %v2140_v9 }
 0x319   : > { %v2078_v16 = vpop.permute.xlu2 %2077 }
 0x31a   : > { %v2145_v24 = vsel %vm397_vm0, %v4779_v34, %v2078_v16 }
 0x31b   : > { %v2072_v7 = vpop.permute.xlu1 %2071  ;;  %2178 = vst.msk [vmem:[%s4156_s26 + $0xe0] sm:$0xff] %vm2149_vm14, %v2145_v24 }
 0x31c   : > { %v2142_v4 = vsel %vm397_vm0, %v4780_v12, %v2072_v7 }
 0x31d   : > { %2175 = vst.msk [vmem:[%s4156_s26 + $0xc8] sm:$0xff] %vm2149_vm14, %v2142_v4 }
 0x321   : > { %v2082_v44 = vpop.permute.xlu2 %2081 }
 0x322   : > { %v2147_v40 = vsel %vm397_vm0, %v4781_v42, %v2082_v44 }
 0x323   : > { %v2076_v59 = vpop.permute.xlu1 %2075  ;;  %2180 = vst.msk [vmem:[%s4156_s26 + $0xf0] sm:$0xff] %vm2149_vm14, %v2147_v40 }
 0x324   : > { %v2144_v33 = vsel %vm397_vm0, %v4782_v60, %v2076_v59 }
 0x325   : > { %2177 = vst.msk [vmem:[%s4156_s26 + $0xd8] sm:$0xff] %vm2149_vm14, %v2144_v33 }
 0x32b   : > { %v2080_v55 = vpop.permute.xlu1 %2079 }
 0x32c   : > { %v2146_v13 = vsel %vm397_vm0, %v4783_v26, %v2080_v55 }
 0x32d   : > { %2179 = vst.msk [vmem:[%s4156_s26 + $0xe8] sm:$0xff] %vm2149_vm14, %v2146_v13 }
 0x333   : > { %v2056_v25 = vpop.permute.xlu1 %2055 }
 0x334   : > { %v2134_v57 = vsel %vm397_vm0, %v4784_v14, %v2056_v25 }
 0x335   : > { %2167 = vst.msk [vmem:[%s4156_s26 + $0x88] sm:$0xff] %vm2149_vm14, %v2134_v57 }
 0x33b   : > { %v2084_v31 = vpop.permute.xlu1 %2083 }
 0x33c   : > { %v2148_v61 = vsel %vm397_vm0, %v4785_v20, %v2084_v31 }
 0x33d   : > { %2181 = vst.msk [vmem:[%s4156_s26 + $0xf8] sm:$0xff] %vm2149_vm14, %v2148_v61 }
 0x33e PF: > { %s15_s20 = sadd.s32 1, %s2818_s20   ;;  %s4786_s18 = smov %s2814_s19 }
 0x33f   : > { %p12_p5 = scmp.ge.s32.totalorder %s15_s20, 4   ;;  %s4787_s19 = smov %s4789_s21 }
 0x341   :  { %14 = sbr.rel (!%p12_p5) target bundleno = 2 (0x2), region = 70 }

// kernel: c3_forward.3
= control target key start
LH: loop header
LB: loop body
LE: loop exit
PB: predicated region body
PF: predicated region fallthrough
CT: control target
= control target key end

     0   :  { %s5224_s24 = smov 0   ;;  %s7497_s0 = inlined_call_operand.vmem [shape: f32[2,18,18,32], index: 0, kind: input, shape index: {}]   ;;  %s7498_s1 = inlined_call_operand.vmem [shape: f32[2,256,96], index: 1, kind: input, shape index: {}]   ;;  %s7499_s2 = inlined_call_operand.vmem [shape: bf16[9,32,32], index: 2, kind: input, shape index: {}]   ;;  %s7500_s3 = inlined_call_operand.vmem [shape: f32[1,32], index: 3, kind: input, shape index: {}]   ;;  %s7501_s4 = inlined_call_operand.vmem [shape: bf16[32,64], index: 4, kind: input, shape index: {}]   ;;  %s7502_s5 = inlined_call_operand.vmem [shape: bf16[32,64], index: 5, kind: input, shape index: {}]   ;;  %s7503_s6 = inlined_call_operand.vmem [shape: f32[1,64], index: 6, kind: input, shape index: {}]   ;;  %s7504_s7 = inlined_call_operand.vmem [shape: f32[2,64,256], index: 7, kind: output, shape index: {}]  }
   0x1 LB: > { %s4293_s25 = sadd.s32 4294967295, %s5181_s24   ;;  %p4297_p0 = scmp.ge.s32.totalorder %s5181_s24, 1  ;;  %s5181_s24 = sphi %s5224_s24, %s17_s24  }
   0x2   : > { %p247_p1 = scmp.lt.s32.totalorder %s5181_s24, 3 }
   0x4   : > { %p248_p2 = pnand %p4297_p0, %p247_p1 }
   0x6   : > { %251 = sbr.rel (%p248_p2) target bundleno = 1168 (0x490), region = 48 }
   0xb   : > { %v4862_v0 = vld [vmem:[%s7499_s2 + $0x18] sm:$0xff]  ;;  %v4860_v1 = vld [vmem:[%s7499_s2 + $0x8] sm:$0xff]  ;;  %p284_p3 = scmp.lt.s32.totalorder %s4293_s25, 1  ;;  %v4861_v3 = vld [vmem:[%s7499_s2 + $0x10] sm:$0xff]  ;;  %vm449_vm0 = vcmask 261120   ;;  %s5183_s14 = smov 96  }
   0xc   : > { %v4864_v2 = vld [vmem:[%s7499_s2 + $0x28] sm:$0xff]  ;;  %504 = vmatpush.bf16.msra.mxu0 %v4862_v0  ;;  %4881 = vmatpush.bf16.msra.mxu3 %v4862_v0  ;;  %v4859_v4 = vld [vmem:[%s7499_s2] sm:$0xff] }
   0xd   : > { %s7645_s25 = smov (!%p284_p3, %s4293_s25), 1  ;;  %653 = vmatpush.bf16.msra.mxu1 %v4860_v1  ;;  %855 = vmatpush.bf16.msra.mxu2 %v4864_v2  ;;  %v4863_v5 = vld [vmem:[%s7499_s2 + $0x20] sm:$0xff]  ;;  %v4868_v6 = vld [vmem:[%s7499_s2 + $0x48] sm:$0xff] }
   0xe   : > { %s4887_s15 = smul.u32 432, %s7645_s25  ;;  %s4857_s8 = sshll.u32 %s7645_s25, 8 }
   0xf   : > { %s5905_s11 = scalar_lea.vmem %s7498_s1, %s4857_s8  ;;  %s4858_s29 = sshll.u32 %s7645_s25, 7 }
  0x10   : > { %505 = vmatpush.bf16.msra.mxu0 %v4861_v3  ;;  %4882 = vmatpush.bf16.msra.mxu3 %v4861_v3  ;;  %s5259_s20 = scalar_lea.vmem %s7497_s0, %s4887_s15  ;;  %v4867_v3 = vld [vmem:[%s7499_s2 + $0x40] sm:$0xff]  ;;  %s7476_s9 = scalar_lea.vmem %s7504_s7, %s4858_s29 }
  0x11   : > { %654 = vmatpush.bf16.msra.mxu1 %v4859_v4  ;;  %856 = vmatpush.bf16.msra.mxu2 %v4863_v5  ;;  %v384_v7 = vld [vmem:[%s5259_s20 + $0x1] sm:$0xff]  ;;  %v385_v8 = vld [vmem:[%s5259_s20 + $0x9] sm:$0xff]  ;;  %v386_v19 = vld [vmem:[%s5259_s20 + $0x19] sm:$0xff] }
  0x12   : > { %v408_v9 = vld [vmem:[%s5259_s20 + $0x121] sm:$0xff]  ;;  %v416_v10 = vpack.c.bf16 %v385_v8, %v384_v7  ;;  %v409_v11 = vld [vmem:[%s5259_s20 + $0x129] sm:$0xff]  ;;  %v410_v21 = vld [vmem:[%s5259_s20 + $0x139] sm:$0xff] }
  0x13   : > { %v332_v12 = vld [vmem:[%s5259_s20] sm:$0xff]  ;;  %v333_v13 = vld [vmem:[%s5259_s20 + $0x8] sm:$0xff]  ;;  %v428_v14 = vpack.c.bf16 %v409_v11, %v408_v9  ;;  %v334_v23 = vld [vmem:[%s5259_s20 + $0x18] sm:$0xff] }
  0x14   : > { %4883 = vmatpush.bf16.msrb.mxu3 %v4860_v1  ;;  %1324 = vmatpush.bf16.msrb.mxu0 %v4868_v6  ;;  %v364_v15 = vpack.c.bf16 %v333_v13, %v332_v12  ;;  %v736_v16 = vld [vmem:[%s5259_s20 + $0x2] sm:$0xff]  ;;  %v737_v17 = vld [vmem:[%s5259_s20 + $0xa] sm:$0xff]  ;;  %v738_v25 = vld [vmem:[%s5259_s20 + $0x1a] sm:$0xff] }
  0x15   : > { %4315 = vmatmul.msk.bf16.vlgmr.msra.gmra.mxu0 %vm449_vm0, %v416_v10  ;;  %v768_v18 = vpack.c.bf16 %v737_v17, %v736_v16  ;;  %4327 = vmatmul.msk.bf16.vlgmr.msra.gmra.mxu3 %vm449_vm0, %v428_v14  ;;  %v387_v20 = vld [vmem:[%s5259_s20 + $0x21] sm:$0xff]  ;;  %v388_v31 = vld [vmem:[%s5259_s20 + $0x31] sm:$0xff]  ;;  %v389_v32 = vld [vmem:[%s5259_s20 + $0x39] sm:$0xff] }
  0x16   : > { %4339 = vmatmul.msk.bf16.vlgmr.msra.gmra.mxu1 %vm449_vm0, %v364_v15  ;;  %v411_v22 = vld [vmem:[%s5259_s20 + $0x141] sm:$0xff]  ;;  %v5281_v27 = vpack.c.bf16 %v387_v20, %v386_v19  ;;  %v412_v33 = vld [vmem:[%s5259_s20 + $0x151] sm:$0xff]  ;;  %v413_v34 = vld [vmem:[%s5259_s20 + $0x159] sm:$0xff]  ;;  %v5302_v39 = vpack.c.bf16 %v389_v32, %v388_v31 }
  0x17   : > { %4367 = vmatmul.msk.bf16.vlgmr.msra.gmra.mxu2 %vm449_vm0, %v768_v18  ;;  %v335_v24 = vld [vmem:[%s5259_s20 + $0x20] sm:$0xff]  ;;  %v429_v28 = vpack.c.bf16 %v411_v22, %v410_v21  ;;  %v336_v35 = vld [vmem:[%s5259_s20 + $0x30] sm:$0xff]  ;;  %v337_v36 = vld [vmem:[%s5259_s20 + $0x38] sm:$0xff]  ;;  %v430_v40 = vpack.c.bf16 %v413_v34, %v412_v33 }
  0x18   : > { %4884 = vmatpush.bf16.msrb.mxu3 %v4859_v4  ;;  %v739_v26 = vld [vmem:[%s5259_s20 + $0x22] sm:$0xff]  ;;  %v5283_v29 = vpack.c.bf16 %v335_v24, %v334_v23  ;;  %v740_v37 = vld [vmem:[%s5259_s20 + $0x32] sm:$0xff]  ;;  %v741_v38 = vld [vmem:[%s5259_s20 + $0x3a] sm:$0xff]  ;;  %v5304_v41 = vpack.c.bf16 %v337_v36, %v336_v35  ;;  %1325 = vmatpush.bf16.msrb.mxu0 %v4867_v3 }
  0x19   : > { %v5285_v30 = vpack.c.bf16 %v739_v26, %v738_v25  ;;  %v5306_v42 = vpack.c.bf16 %v741_v38, %v740_v37  ;;  %v390_v43 = vld [vmem:[%s5259_s20 + $0x49] sm:$0xff]  ;;  %v391_v44 = vld [vmem:[%s5259_s20 + $0x51] sm:$0xff]  ;;  %v392_v55 = vld [vmem:[%s5259_s20 + $0x61] sm:$0xff] }
  0x1a   : > { %v414_v45 = vld [vmem:[%s5259_s20 + $0x169] sm:$0xff]  ;;  %v415_v46 = vld [vmem:[%s5259_s20 + $0x171] sm:$0xff]  ;;  %v5323_v51 = vpack.c.bf16 %v391_v44, %v390_v43  ;;  %v340_v57 = vld [vmem:[%s5259_s20 + $0x60] sm:$0xff] }
  0x1b   : > { %v338_v47 = vld [vmem:[%s5259_s20 + $0x48] sm:$0xff]  ;;  %v339_v48 = vld [vmem:[%s5259_s20 + $0x50] sm:$0xff]  ;;  %v431_v52 = vpack.c.bf16 %v415_v46, %v414_v45  ;;  %v356_v59 = vld [vmem:[%s5259_s20 + $0x120] sm:$0xff] }
  0x1c   : > { %4885 = vmatpush.bf16.msra.mxu3 %v4864_v2  ;;  %v742_v49 = vld [vmem:[%s5259_s20 + $0x4a] sm:$0xff]  ;;  %v743_v50 = vld [vmem:[%s5259_s20 + $0x52] sm:$0xff]  ;;  %v5325_v53 = vpack.c.bf16 %v339_v48, %v338_v47  ;;  %v744_v61 = vld [vmem:[%s5259_s20 + $0x62] sm:$0xff] }
  0x1d   : > { %v5327_v54 = vpack.c.bf16 %v743_v50, %v742_v49  ;;  %v393_v56 = vld [vmem:[%s5259_s20 + $0x69] sm:$0xff]  ;;  %v394_v4 = vld [vmem:[%s5259_s20 + $0x79] sm:$0xff]  ;;  %v396_v16 = vld [vmem:[%s5259_s20 + $0x91] sm:$0xff] }
  0x1e   : > { %v341_v58 = vld [vmem:[%s5259_s20 + $0x68] sm:$0xff]  ;;  %v5344_v63 = vpack.c.bf16 %v393_v56, %v392_v55  ;;  %v342_v6 = vld [vmem:[%s5259_s20 + $0x78] sm:$0xff]  ;;  %v343_v7 = vld [vmem:[%s5259_s20 + $0x80] sm:$0xff] }
  0x1f   : > { %v357_v60 = vld [vmem:[%s5259_s20 + $0x128] sm:$0xff]  ;;  %v5346_v0 = vpack.c.bf16 %v341_v58, %v340_v57  ;;  %v358_v8 = vld [vmem:[%s5259_s20 + $0x138] sm:$0xff]  ;;  %v359_v9 = vld [vmem:[%s5259_s20 + $0x140] sm:$0xff]  ;;  %v5370_v13 = vpack.c.bf16 %v343_v7, %v342_v6 }
  0x20   : > { %4886 = vmatpush.bf16.msra.mxu3 %v4863_v5  ;;  %v745_v62 = vld [vmem:[%s5259_s20 + $0x6a] sm:$0xff]  ;;  %v376_v1 = vpack.c.bf16 %v357_v60, %v356_v59  ;;  %v395_v5 = vld [vmem:[%s5259_s20 + $0x81] sm:$0xff]  ;;  %v377_v14 = vpack.c.bf16 %v359_v9, %v358_v8  ;;  %v397_v17 = vld [vmem:[%s5259_s20 + $0x99] sm:$0xff] }
  0x21   : > { %v5348_v2 = vpack.c.bf16 %v745_v62, %v744_v61  ;;  %v746_v10 = vld [vmem:[%s5259_s20 + $0x7a] sm:$0xff]  ;;  %v747_v11 = vld [vmem:[%s5259_s20 + $0x82] sm:$0xff]  ;;  %v5368_v12 = vpack.c.bf16 %v395_v5, %v394_v4  ;;  %v344_v18 = vld [vmem:[%s5259_s20 + $0x90] sm:$0xff]  ;;  %v5389_v24 = vpack.c.bf16 %v397_v17, %v396_v16 }
  0x22   : > { %v5372_v15 = vpack.c.bf16 %v747_v11, %v746_v10  ;;  %v345_v19 = vld [vmem:[%s5259_s20 + $0x98] sm:$0xff]  ;;  %v360_v20 = vld [vmem:[%s5259_s20 + $0x150] sm:$0xff]  ;;  %v346_v34 = vld [vmem:[%s5259_s20 + $0xa8] sm:$0xff] }
  0x23   : > { %v361_v21 = vld [vmem:[%s5259_s20 + $0x158] sm:$0xff]  ;;  %v5391_v25 = vpack.c.bf16 %v345_v19, %v344_v18  ;;  %v398_v32 = vld [vmem:[%s5259_s20 + $0xa9] sm:$0xff]  ;;  %v400_v47 = vld [vmem:[%s5259_s20 + $0xc1] sm:$0xff] }
  0x24   : > { %v748_v22 = vld [vmem:[%s5259_s20 + $0x92] sm:$0xff]  ;;  %v749_v23 = vld [vmem:[%s5259_s20 + $0x9a] sm:$0xff]  ;;  %v378_v26 = vpack.c.bf16 %v361_v21, %v360_v20  ;;  %v362_v36 = vld [vmem:[%s5259_s20 + $0x168] sm:$0xff] }
  0x25   : > { %4316 = vmatmul.msk.bf16.gmra.mxu0 %vm449_vm0, %v5281_v27  ;;  %4328 = vmatmul.msk.bf16.gmra.mxu3 %vm449_vm0, %v429_v28  ;;  %v5393_v28 = vpack.c.bf16 %v749_v23, %v748_v22  ;;  %v4866_v31 = vld [vmem:[%s7499_s2 + $0x38] sm:$0xff]  ;;  %v347_v35 = vld [vmem:[%s5259_s20 + $0xb0] sm:$0xff]  ;;  %v348_v49 = vld [vmem:[%s5259_s20 + $0xc0] sm:$0xff] }
  0x26   : > { %4340 = vmatmul.msk.bf16.gmra.mxu1 %vm449_vm0, %v5283_v29  ;;  %v399_v33 = vld [vmem:[%s5259_s20 + $0xb1] sm:$0xff]  ;;  %v5415_v44 = vpack.c.bf16 %v347_v35, %v346_v34  ;;  %v401_v48 = vld [vmem:[%s5259_s20 + $0xc9] sm:$0xff]  ;;  %v402_v11 = vld [vmem:[%s5259_s20 + $0xd9] sm:$0xff] }
  0x27   : > { %4368 = vmatmul.msk.bf16.gmra.mxu2 %vm449_vm0, %v5285_v30  ;;  %v363_v37 = vld [vmem:[%s5259_s20 + $0x170] sm:$0xff]  ;;  %v5413_v43 = vpack.c.bf16 %v399_v33, %v398_v32  ;;  %v349_v50 = vld [vmem:[%s5259_s20 + $0xc8] sm:$0xff]  ;;  %v5434_v58 = vpack.c.bf16 %v401_v48, %v400_v47  ;;  %v350_v16 = vld [vmem:[%s5259_s20 + $0xd8] sm:$0xff] }
  0x28   : > { %v750_v38 = vld [vmem:[%s5259_s20 + $0xaa] sm:$0xff]  ;;  %v379_v45 = vpack.c.bf16 %v363_v37, %v362_v36  ;;  %v752_v56 = vld [vmem:[%s5259_s20 + $0xc2] sm:$0xff]  ;;  %v5436_v60 = vpack.c.bf16 %v349_v50, %v348_v49  ;;  %v762_v18 = vld [vmem:[%s5259_s20 + $0x13a] sm:$0xff] }
  0x29   : > { %v761_v55 = vld [vmem:[%s5259_s20 + $0x12a] sm:$0xff]  ;;  %v351_v17 = vld [vmem:[%s5259_s20 + $0xe0] sm:$0xff] }
  0x2a   : > { %v753_v57 = vld [vmem:[%s5259_s20 + $0xca] sm:$0xff]  ;;  %v763_v19 = vld [vmem:[%s5259_s20 + $0x142] sm:$0xff]  ;;  %v754_v20 = vld [vmem:[%s5259_s20 + $0xda] sm:$0xff]  ;;  %v5469_v32 = vpack.c.bf16 %v351_v17, %v350_v16 }
  0x2b   : > { %v4865_v4 = vld [vmem:[%s7499_s2 + $0x30] sm:$0xff]  ;;  %v755_v21 = vld [vmem:[%s5259_s20 + $0xe2] sm:$0xff]  ;;  %v5471_v33 = vpack.c.bf16 %v763_v19, %v762_v18 }
  0x2c   : > { %v5475_v36 = vpack.c.bf16 %v755_v21, %v754_v20  ;;  %v4872_v49 = vld [vmem:[%s7499_s2 + $0x68] sm:$0xff]  ;;  %v4874_v21 = vld [vmem:[%s7499_s2 + $0x78] sm:$0xff] }
  0x2d   : > { %1793 = vmatpush.bf16.msrb.mxu2 %v4872_v49  ;;  %v4869_v49 = vld [vmem:[%s7499_s2 + $0x50] sm:$0xff] }
  0x35   : > { %4317 = vmatmul.msk.bf16.gmra.mxu0 %vm449_vm0, %v5302_v39  ;;  %4329 = vmatmul.msk.bf16.gmra.mxu3 %vm449_vm0, %v430_v40  ;;  %v751_v40 = vld [vmem:[%s5259_s20 + $0xb2] sm:$0xff] }
  0x36   : > { %4341 = vmatmul.msk.bf16.gmra.mxu1 %vm449_vm0, %v5304_v41  ;;  %v5417_v46 = vpack.c.bf16 %v751_v40, %v750_v38 }
  0x37   : > { %4369 = vmatmul.msk.bf16.gmra.mxu2 %vm449_vm0, %v5306_v42 }
  0x45   : > { %4318 = vmatmul.msk.bf16.gmra.mxu0 %vm449_vm0, %v5323_v51  ;;  %4330 = vmatmul.msk.bf16.gmra.mxu3 %vm449_vm0, %v431_v52  ;;  %v760_v52 = vld [vmem:[%s5259_s20 + $0x122] sm:$0xff] }
  0x46   : > { %4342 = vmatmul.msk.bf16.gmra.mxu1 %vm449_vm0, %v5325_v53  ;;  %v5438_v61 = vpack.c.bf16 %v761_v55, %v760_v52  ;;  %v4870_v52 = vld [vmem:[%s7499_s2 + $0x58] sm:$0xff] }
  0x47   : > { %4370 = vmatmul.msk.bf16.gmra.mxu2 %vm449_vm0, %v5327_v54  ;;  %v404_v55 = vld [vmem:[%s5259_s20 + $0xf1] sm:$0xff]  ;;  %1558 = vmatpush.bf16.msrb.mxu1 %v4870_v52  ;;  %v406_v52 = vld [vmem:[%s5259_s20 + $0x109] sm:$0xff] }
  0x4b   : > { %1559 = vmatpush.bf16.msrb.mxu1 %v4869_v49 }
  0x55   : > { %4319 = vmatmul.msk.bf16.gmra.mxu0 %vm449_vm0, %v5344_v63  ;;  %4351 = vmatmul.msk.bf16.vlgmr.msrb.gmra.mxu3 %vm449_vm0, %v376_v1  ;;  %v5440_v1 = vpack.c.bf16 %v753_v57, %v752_v56  ;;  %v405_v56 = vld [vmem:[%s5259_s20 + $0xf9] sm:$0xff]  ;;  %v352_v57 = vld [vmem:[%s5259_s20 + $0xf0] sm:$0xff] }
  0x56   : > { %4343 = vmatmul.msk.bf16.gmra.mxu1 %vm449_vm0, %v5346_v0  ;;  %1090 = vmatpush.bf16.msrb.mxu3 %v4866_v31 }
  0x57   : > { %4371 = vmatmul.msk.bf16.gmra.mxu2 %vm449_vm0, %v5348_v2 }
  0x5a   : > { %1091 = vmatpush.bf16.msrb.mxu3 %v4865_v4  ;;  %v756_v4 = vld [vmem:[%s5259_s20 + $0xf2] sm:$0xff] }
  0x65   : > { %4320 = vmatmul.msk.bf16.gmra.mxu0 %vm449_vm0, %v5368_v12  ;;  %4352 = vmatmul.msk.bf16.gmra.mxu3 %vm449_vm0, %v377_v14  ;;  %v403_v14 = vld [vmem:[%s5259_s20 + $0xe1] sm:$0xff] }
  0x66   : > { %4344 = vmatmul.msk.bf16.gmra.mxu1 %vm449_vm0, %v5370_v13  ;;  %v5467_v23 = vpack.c.bf16 %v403_v14, %v402_v11 }
  0x67   : > { %4372 = vmatmul.msk.bf16.gmra.mxu2 %vm449_vm0, %v5372_v15 }
  0x75   : > { %4321 = vmatmul.msk.bf16.gmra.mxu0 %vm449_vm0, %v5389_v24  ;;  %4353 = vmatmul.msk.bf16.gmra.mxu3 %vm449_vm0, %v378_v26 }
  0x76   : > { %4345 = vmatmul.msk.bf16.gmra.mxu1 %vm449_vm0, %v5391_v25 }
  0x77   : > { %4373 = vmatmul.msk.bf16.gmra.mxu2 %vm449_vm0, %v5393_v28 }
  0x85   : > { %4322 = vmatmul.msk.bf16.gmra.mxu0 %vm449_vm0, %v5413_v43  ;;  %4354 = vmatmul.msk.bf16.gmra.mxu3 %vm449_vm0, %v379_v45 }
  0x86   : > { %4346 = vmatmul.msk.bf16.gmra.mxu1 %vm449_vm0, %v5415_v44 }
  0x87   : > { %4374 = vmatmul.msk.bf16.gmra.mxu2 %vm449_vm0, %v5417_v46 }
  0x92   : > { %v507_v59 = vpop.f32.mrf.mxu0 }
  0x93   : > { %v656_v62 = vpop.f32.mrf.mxu1 }
  0x94   : > { %v657_v3 = vadd.f32 %v656_v62, %v507_v59  ;;  %v353_v59 = vld [vmem:[%s5259_s20 + $0xf8] sm:$0xff] }
  0x95   : > { %4323 = vmatmul.msk.bf16.gmra.mxu0 %vm449_vm0, %v5434_v58  ;;  %4379 = vmatmul.msk.bf16.vlgmr.msra.gmra.mxu3 %vm449_vm0, %v5438_v61  ;;  %v764_v62 = vld [vmem:[%s5259_s20 + $0x152] sm:$0xff]  ;;  %v5507_v14 = vpack.c.bf16 %v353_v59, %v352_v57  ;;  %v766_v59 = vld [vmem:[%s5259_s20 + $0x16a] sm:$0xff] }
  0x96   : > { %4347 = vmatmul.msk.bf16.gmra.mxu1 %vm449_vm0, %v5436_v60  ;;  %2027 = vmatpush.bf16.msra.mxu3 %v4874_v21  ;;  %v355_v57 = vld [vmem:[%s5259_s20 + $0x110] sm:$0xff] }
  0x97   : > { %4375 = vmatmul.msk.bf16.gmra.mxu2 %vm449_vm0, %v5440_v1 }
  0x98   : > { %v5453_v5 = vpop.f32.mrf.mxu3 }
  0x9a   : > { %v858_v6 = vpop.f32.mrf.mxu2  ;;  %v509_v7 = vpop.f32.mrf.mxu0 }
  0x9b   : > { %v5455_v8 = vadd.f32 %v858_v6, %v657_v3  ;;  %v658_v9 = vpop.f32.mrf.mxu1  ;;  %v765_v3 = vld [vmem:[%s5259_s20 + $0x15a] sm:$0xff] }
  0x9c   : > { %v659_v10 = vadd.f32 %v658_v9, %v509_v7  ;;  %v757_v6 = vld [vmem:[%s5259_s20 + $0xfa] sm:$0xff]  ;;  %v5505_v9 = vpack.c.bf16 %v405_v56, %v404_v55  ;;  %v5509_v16 = vpack.c.bf16 %v765_v3, %v764_v62  ;;  %v407_v55 = vld [vmem:[%s5259_s20 + $0x111] sm:$0xff]  ;;  %v354_v56 = vld [vmem:[%s5259_s20 + $0x108] sm:$0xff] }
  0x9d   : > { %v5513_v19 = vpack.c.bf16 %v757_v6, %v756_v4  ;;  %v767_v62 = vld [vmem:[%s5259_s20 + $0x172] sm:$0xff]  ;;  %v758_v3 = vld [vmem:[%s5259_s20 + $0x10a] sm:$0xff] }
  0x9e   : > { %v759_v4 = vld [vmem:[%s5259_s20 + $0x112] sm:$0xff]  ;;  %v5553_v21 = vpack.c.bf16 %v767_v62, %v766_v59 }
  0xa0   : > { %v5465_v22 = vpop.f32.mrf.mxu3  ;;  %7506 = vst [vmem:[#allocation2_spill] sm:$0xff] %v5553_v21 }
  0xa2   : > { %v860_v26 = vpop.f32.mrf.mxu2  ;;  %v512_v31 = vpop.f32.mrf.mxu0 }
  0xa3   : > { %v5473_v34 = vadd.f32 %v860_v26, %v659_v10  ;;  %v661_v35 = vpop.f32.mrf.mxu1  ;;  %v4871_v26 = vld [vmem:[%s7499_s2 + $0x60] sm:$0xff] }
  0xa4   : > { %v662_v37 = vadd.f32 %v661_v35, %v512_v31  ;;  %1794 = vmatpush.bf16.msrb.mxu2 %v4871_v26 }
  0xa5   : > { %4324 = vmatmul.msk.bf16.gmra.mxu0 %vm449_vm0, %v5467_v23  ;;  %4380 = vmatmul.msk.bf16.gmra.mxu3 %vm449_vm0, %v5471_v33 }
  0xa6   : > { %4348 = vmatmul.msk.bf16.gmra.mxu1 %vm449_vm0, %v5469_v32 }
  0xa7   : > { %4376 = vmatmul.msk.bf16.gmra.mxu2 %vm449_vm0, %v5475_v36 }
  0xa8   : > { %v5485_v38 = vpop.f32.mrf.mxu3 }
  0xaa   : > { %v863_v40 = vpop.f32.mrf.mxu2  ;;  %v514_v45 = vpop.f32.mrf.mxu0 }
  0xab   : > { %v5487_v47 = vadd.f32 %v863_v40, %v662_v37  ;;  %v663_v48 = vpop.f32.mrf.mxu1 }
  0xac   : > { %v664_v50 = vadd.f32 %v663_v48, %v514_v45 }
  0xb0   : > { %v5503_v7 = vpop.f32.mrf.mxu3 }
  0xb2   : > { %v865_v10 = vpop.f32.mrf.mxu2  ;;  %v517_v11 = vpop.f32.mrf.mxu0 }
  0xb3   : > { %v5511_v17 = vadd.f32 %v865_v10, %v664_v50  ;;  %v666_v18 = vpop.f32.mrf.mxu1  ;;  %v4876_v50 = vld [vmem:[%s7499_s2 + $0x88] sm:$0xff]  ;;  %v5549_v10 = vpack.c.bf16 %v407_v55, %v406_v52 }
  0xb4   : > { %v667_v20 = vadd.f32 %v666_v18, %v517_v11  ;;  %2261 = vmatpush.bf16.msra.mxu0 %v4876_v50 }
  0xb5   : > { %4325 = vmatmul.msk.bf16.gmra.mxu0 %vm449_vm0, %v5505_v9  ;;  %4381 = vmatmul.msk.bf16.gmra.mxu3 %vm449_vm0, %v5509_v16 }
  0xb6   : > { %4349 = vmatmul.msk.bf16.gmra.mxu1 %vm449_vm0, %v5507_v14 }
  0xb7   : > { %4377 = vmatmul.msk.bf16.gmra.mxu2 %vm449_vm0, %v5513_v19 }
  0xb8   : > { %v5529_v31 = vpop.f32.mrf.mxu3 }
  0xba   : > { %v868_v35 = vpop.f32.mrf.mxu2  ;;  %v519_v37 = vpop.f32.mrf.mxu0 }
  0xbb   : > { %v5531_v40 = vadd.f32 %v868_v35, %v667_v20  ;;  %v668_v45 = vpop.f32.mrf.mxu1  ;;  %v5551_v20 = vpack.c.bf16 %v355_v57, %v354_v56 }
  0xbc   : > { %v669_v48 = vadd.f32 %v668_v45, %v519_v37  ;;  %v5557_v37 = vpack.c.bf16 %v759_v4, %v758_v3 }
  0xc0   : > { %v5547_v6 = vpop.f32.mrf.mxu3 }
  0xc2   : > { %v870_v11 = vpop.f32.mrf.mxu2  ;;  %v522_v18 = vpop.f32.mrf.mxu0 }
  0xc3   : > { %v5555_v26 = vadd.f32 %v870_v11, %v669_v48  ;;  %v671_v35 = vpop.f32.mrf.mxu1 }
  0xc4   : > { %v672_v45 = vadd.f32 %v671_v35, %v522_v18 }
  0xc5   : > { %4326 = vmatmul.msk.bf16.gmra.mxu0 %vm449_vm0, %v5549_v10  ;;  %4382 = vmatmul.msk.bf16.gmra.mxu3 %vm449_vm0, %v5553_v21 }
  0xc6   : > { %4350 = vmatmul.msk.bf16.gmra.mxu1 %vm449_vm0, %v5551_v20 }
  0xc7   : > { %4378 = vmatmul.msk.bf16.gmra.mxu2 %vm449_vm0, %v5557_v37 }
  0xc8   : > { %v5567_v49 = vpop.f32.mrf.mxu3 }
  0xca   : > { %v873_v48 = vpop.f32.mrf.mxu2  ;;  %v524_v50 = vpop.f32.mrf.mxu0 }
  0xcb   : > { %v5569_v52 = vadd.f32 %v873_v48, %v672_v45  ;;  %v673_v55 = vpop.f32.mrf.mxu1 }
  0xcc   : > { %v674_v56 = vadd.f32 %v673_v55, %v524_v50 }
  0xd0   : > { %v5571_v57 = vpop.f32.mrf.mxu3 }
  0xd2   : > { %v875_v59 = vpop.f32.mrf.mxu2  ;;  %v527_v62 = vpop.f32.mrf.mxu0 }
  0xd3   : > { %v5573_v3 = vadd.f32 %v875_v59, %v674_v56  ;;  %v676_v4 = vpop.f32.mrf.mxu1 }
  0xd4   : > { %v677_v11 = vadd.f32 %v676_v4, %v527_v62 }
  0xd5   : > { %4487 = vmatmul.msk.bf16.vlgmr.msrb.gmra.mxu0 %vm449_vm0, %v5281_v27  ;;  %4427 = vmatmul.msk.bf16.vlgmr.msrb.gmra.mxu3 %vm449_vm0, %v5283_v29 }
  0xd6   : > { %4547 = vmatmul.msk.bf16.vlgmr.msrb.gmra.mxu1 %vm449_vm0, %v5285_v30 }
  0xd7   : > { %4607 = vmatmul.msk.bf16.vlgmr.msrb.gmra.mxu2 %vm449_vm0, %v5304_v41 }
  0xd8   : > { %v716_v18 = vpop.f32.mrf.mxu3 }
  0xd9   : > { %v5584_v35 = vadd.f32 %v716_v18, %v5453_v5 }
  0xda   : > { %v878_v45 = vpop.f32.mrf.mxu2  ;;  %v529_v48 = vpop.f32.mrf.mxu0 }
  0xdb   : > { %v5586_v50 = vadd.f32 %v878_v45, %v677_v11  ;;  %v678_v55 = vpop.f32.mrf.mxu1 }
  0xdc   : > { %v679_v56 = vadd.f32 %v678_v55, %v529_v48 }
  0xe0   : > { %v718_v27 = vpop.f32.mrf.mxu3 }
  0xe1   : > { %v5589_v59 = vadd.f32 %v718_v27, %v5465_v22 }
  0xe2   : > { %v880_v29 = vpop.f32.mrf.mxu2  ;;  %v532_v62 = vpop.f32.mrf.mxu0 }
  0xe3   : > { %v5591_v30 = vadd.f32 %v880_v29, %v679_v56  ;;  %v681_v4 = vpop.f32.mrf.mxu1 }
  0xe4   : > { %v682_v21 = vadd.f32 %v681_v4, %v532_v62 }
  0xe5   : > { %4488 = vmatmul.msk.bf16.gmra.mxu0 %vm449_vm0, %v5302_v39  ;;  %4428 = vmatmul.msk.bf16.gmra.mxu3 %vm449_vm0, %v5304_v41 }
  0xe6   : > { %4548 = vmatmul.msk.bf16.gmra.mxu1 %vm449_vm0, %v5306_v42 }
  0xe7   : > { %4608 = vmatmul.msk.bf16.gmra.mxu2 %vm449_vm0, %v5325_v53 }
  0xe8   : > { %v721_v5 = vpop.f32.mrf.mxu3 }
  0xe9   : > { %v5602_v22 = vadd.f32 %v721_v5, %v5485_v38 }
  0xea   : > { %v883_v11 = vpop.f32.mrf.mxu2  ;;  %v534_v18 = vpop.f32.mrf.mxu0 }
  0xeb   : > { %v5604_v45 = vadd.f32 %v883_v11, %v682_v21  ;;  %v683_v48 = vpop.f32.mrf.mxu1 }
  0xec   : > { %v684_v55 = vadd.f32 %v683_v48, %v534_v18 }
  0xf0   : > { %v723_v39 = vpop.f32.mrf.mxu3 }
  0xf1   : > { %v5607_v56 = vadd.f32 %v723_v39, %v5503_v7 }
  0xf2   : > { %v885_v41 = vpop.f32.mrf.mxu2  ;;  %v537_v27 = vpop.f32.mrf.mxu0 }
  0xf3   : > { %v5609_v42 = vadd.f32 %v885_v41, %v684_v55  ;;  %v686_v29 = vpop.f32.mrf.mxu1 }
  0xf4   : > { %v687_v62 = vadd.f32 %v686_v29, %v537_v27 }
  0xf5   : > { %4489 = vmatmul.msk.bf16.gmra.mxu0 %vm449_vm0, %v5323_v51  ;;  %4429 = vmatmul.msk.bf16.gmra.mxu3 %vm449_vm0, %v5325_v53 }
  0xf6   : > { %4549 = vmatmul.msk.bf16.gmra.mxu1 %vm449_vm0, %v5327_v54 }
  0xf7   : > { %4609 = vmatmul.msk.bf16.gmra.mxu2 %vm449_vm0, %v5346_v0 }
  0xf8   : > { %v726_v38 = vpop.f32.mrf.mxu3 }
  0xf9   : > { %v5620_v7 = vadd.f32 %v726_v38, %v5529_v31 }
  0xfa   : > { %v888_v21 = vpop.f32.mrf.mxu2  ;;  %v539_v4 = vpop.f32.mrf.mxu0 }
  0xfb   : > { %v5622_v5 = vadd.f32 %v888_v21, %v687_v62  ;;  %v688_v11 = vpop.f32.mrf.mxu1 }
  0xfc   : > { %v689_v18 = vadd.f32 %v688_v11, %v539_v4 }
 0x100   : > { %v728_v51 = vpop.f32.mrf.mxu3 }
 0x101   : > { %v5625_v48 = vadd.f32 %v728_v51, %v5547_v6 }
 0x102   : > { %v890_v53 = vpop.f32.mrf.mxu2  ;;  %v542_v55 = vpop.f32.mrf.mxu0 }
 0x103   : > { %v5627_v54 = vadd.f32 %v890_v53, %v689_v18  ;;  %v691_v39 = vpop.f32.mrf.mxu1 }
 0x104   : > { %v692_v41 = vadd.f32 %v691_v39, %v542_v55 }
 0x105   : > { %4490 = vmatmul.msk.bf16.gmra.mxu0 %vm449_vm0, %v5344_v63  ;;  %4430 = vmatmul.msk.bf16.gmra.mxu3 %vm449_vm0, %v5346_v0 }
 0x106   : > { %4550 = vmatmul.msk.bf16.gmra.mxu1 %vm449_vm0, %v5348_v2 }
 0x107   : > { %4610 = vmatmul.msk.bf16.gmra.mxu2 %vm449_vm0, %v5370_v13 }
 0x108   : > { %v731_v31 = vpop.f32.mrf.mxu3 }
 0x109   : > { %v5638_v6 = vadd.f32 %v731_v31, %v5567_v49 }
 0x10a   : > { %v893_v27 = vpop.f32.mrf.mxu2  ;;  %v544_v29 = vpop.f32.mrf.mxu0 }
 0x10b   : > { %v5640_v62 = vadd.f32 %v893_v27, %v692_v41  ;;  %v693_v38 = vpop.f32.mrf.mxu1 }
 0x10c   : > { %v694_v21 = vadd.f32 %v693_v38, %v544_v29 }
 0x110   : > { %v733_v63 = vpop.f32.mrf.mxu3 }
 0x111   : > { %v5643_v4 = vadd.f32 %v733_v63, %v5571_v57 }
 0x112   : > { %v895_v0 = vpop.f32.mrf.mxu2  ;;  %v547_v11 = vpop.f32.mrf.mxu0 }
 0x113   : > { %v5645_v2 = vadd.f32 %v895_v0, %v694_v21  ;;  %v696_v18 = vpop.f32.mrf.mxu1 }
 0x114   : > { %v697_v51 = vadd.f32 %v696_v18, %v547_v11 }
 0x115   : > { %4491 = vmatmul.msk.bf16.gmra.mxu0 %vm449_vm0, %v5368_v12  ;;  %4431 = vmatmul.msk.bf16.gmra.mxu3 %vm449_vm0, %v5370_v13 }
 0x116   : > { %4551 = vmatmul.msk.bf16.gmra.mxu1 %vm449_vm0, %v5372_v15 }
 0x117   : > { %4611 = vmatmul.msk.bf16.gmra.mxu2 %vm449_vm0, %v5391_v25 }
 0x118   : > { %v918_v49 = vpop.f32.mrf.mxu3 }
 0x119   : > { %v5656_v53 = vadd.f32 %v918_v49, %v5584_v35 }
 0x11a   : > { %v898_v57 = vpop.f32.mrf.mxu2  ;;  %v549_v55 = vpop.f32.mrf.mxu0 }
 0x11b   : > { %v5658_v39 = vadd.f32 %v898_v57, %v697_v51  ;;  %v698_v41 = vpop.f32.mrf.mxu1 }
 0x11c   : > { %v699_v31 = vadd.f32 %v698_v41, %v549_v55 }
 0x120   : > { %v920_v12 = vpop.f32.mrf.mxu3 }
 0x121   : > { %v5661_v13 = vadd.f32 %v920_v12, %v5589_v59 }
 0x122   : > { %v900_v27 = vpop.f32.mrf.mxu2  ;;  %v552_v29 = vpop.f32.mrf.mxu0 }
 0x123   : > { %v5663_v15 = vadd.f32 %v900_v27, %v699_v31  ;;  %v701_v38 = vpop.f32.mrf.mxu1 }
 0x124   : > { %v702_v21 = vadd.f32 %v701_v38, %v552_v29 }
 0x125   : > { %4492 = vmatmul.msk.bf16.gmra.mxu0 %vm449_vm0, %v5389_v24  ;;  %4432 = vmatmul.msk.bf16.gmra.mxu3 %vm449_vm0, %v5391_v25 }
 0x126   : > { %4552 = vmatmul.msk.bf16.gmra.mxu1 %vm449_vm0, %v5393_v28 }
 0x127   : > { %4612 = vmatmul.msk.bf16.gmra.mxu2 %vm449_vm0, %v5415_v44 }
 0x128   : > { %v923_v35 = vpop.f32.mrf.mxu3 }
 0x129   : > { %v5674_v63 = vadd.f32 %v923_v35, %v5602_v22  ;;  %v4873_v22 = vld [vmem:[%s7499_s2 + $0x70] sm:$0xff] }
 0x12a   : > { %v903_v59 = vpop.f32.mrf.mxu2  ;;  %v554_v0 = vpop.f32.mrf.mxu0  ;;  %2028 = vmatpush.bf16.msra.mxu3 %v4873_v22 }
 0x12b   : > { %v5676_v11 = vadd.f32 %v903_v59, %v702_v21  ;;  %v703_v18 = vpop.f32.mrf.mxu1 }
 0x12c   : > { %v704_v51 = vadd.f32 %v703_v18, %v554_v0 }
 0x130   : > { %v925_v24 = vpop.f32.mrf.mxu3 }
 0x131   : > { %v5679_v25 = vadd.f32 %v925_v24, %v5607_v56 }
 0x132   : > { %v905_v49 = vpop.f32.mrf.mxu2  ;;  %v557_v57 = vpop.f32.mrf.mxu0 }
 0x133   : > { %v5681_v28 = vadd.f32 %v905_v49, %v704_v51  ;;  %v706_v55 = vpop.f32.mrf.mxu1 }
 0x134   : > { %v707_v41 = vadd.f32 %v706_v55, %v557_v57 }
 0x135   : > { %4493 = vmatmul.msk.bf16.gmra.mxu0 %vm449_vm0, %v5413_v43  ;;  %4433 = vmatmul.msk.bf16.gmra.mxu3 %vm449_vm0, %v5415_v44 }
 0x136   : > { %4553 = vmatmul.msk.bf16.gmra.mxu1 %vm449_vm0, %v5417_v46  ;;  %v4875_v46 = vld [vmem:[%s7499_s2 + $0x80] sm:$0xff] }
 0x137   : > { %4613 = vmatmul.msk.bf16.gmra.mxu2 %vm449_vm0, %v5436_v60  ;;  %2262 = vmatpush.bf16.msra.mxu0 %v4875_v46 }
 0x138   : > { %v928_v56 = vpop.f32.mrf.mxu3 }
 0x139   : > { %v5695_v12 = vadd.f32 %v928_v56, %v5620_v7 }
 0x13a   : > { %v908_v31 = vpop.f32.mrf.mxu2  ;;  %v559_v43 = vpop.f32.mrf.mxu0 }
 0x13b   : > { %v5697_v27 = vadd.f32 %v908_v31, %v707_v41  ;;  %v708_v44 = vpop.f32.mrf.mxu1 }
 0x13c   : > { %v709_v29 = vadd.f32 %v708_v44, %v559_v43 }
 0x140   : > { %v930_v38 = vpop.f32.mrf.mxu3 }
 0x141   : > { %v5703_v35 = vadd.f32 %v930_v38, %v5625_v48 }
 0x142   : > { %v910_v21 = vpop.f32.mrf.mxu2  ;;  %v562_v59 = vpop.f32.mrf.mxu0 }
 0x143   : > { %v5705_v0 = vadd.f32 %v910_v21, %v709_v29  ;;  %v711_v7 = vpop.f32.mrf.mxu1 }
 0x144   : > { %v712_v18 = vadd.f32 %v711_v7, %v562_v59 }
 0x145   : > { %4494 = vmatmul.msk.bf16.gmra.mxu0 %vm449_vm0, %v5434_v58  ;;  %4434 = vmatmul.msk.bf16.gmra.mxu3 %vm449_vm0, %v5436_v60 }
 0x146   : > { %4554 = vmatmul.msk.bf16.gmra.mxu1 %vm449_vm0, %v5440_v1 }
 0x147   : > { %4614 = vmatmul.msk.bf16.gmra.mxu2 %vm449_vm0, %v5469_v32 }
 0x148   : > { %v933_v51 = vpop.f32.mrf.mxu3 }
 0x149   : > { %v5716_v24 = vadd.f32 %v933_v51, %v5638_v6 }
 0x14a   : > { %v913_v48 = vpop.f32.mrf.mxu2  ;;  %v564_v49 = vpop.f32.mrf.mxu0 }
 0x14b   : > { %v5718_v57 = vadd.f32 %v913_v48, %v712_v18  ;;  %v713_v55 = vpop.f32.mrf.mxu1 }
 0x14c   : > { %v714_v41 = vadd.f32 %v713_v55, %v564_v49 }
 0x150   : > { %v935_v58 = vpop.f32.mrf.mxu3 }
 0x151   : > { %v5721_v60 = vadd.f32 %v935_v58, %v5643_v4 }
 0x152   : > { %v915_v22 = vpop.f32.mrf.mxu2  ;;  %v1327_v56 = vpop.f32.mrf.mxu0 }
 0x153   : > { %v5723_v1 = vadd.f32 %v915_v22, %v714_v41  ;;  %v1561_v31 = vpop.f32.mrf.mxu1 }
 0x155   : > { %4495 = vmatmul.msk.bf16.gmra.mxu0 %vm449_vm0, %v5467_v23  ;;  %4435 = vmatmul.msk.bf16.gmra.mxu3 %vm449_vm0, %v5469_v32 }
 0x156   : > { %4555 = vmatmul.msk.bf16.gmra.mxu1 %vm449_vm0, %v5475_v36 }
 0x157   : > { %4615 = vmatmul.msk.bf16.gmra.mxu2 %vm449_vm0, %v5507_v14 }
 0x158   : > { %v1093_v6 = vpop.f32.mrf.mxu3 }
 0x159   : > { %v1173_v4 = vadd.f32 %v1093_v6, %v5455_v8 }
 0x15a   : > { %v1329_v43 = vpop.f32.mrf.mxu0  ;;  %v1796_v44 = vpop.f32.mrf.mxu2 }
 0x15b   : > { %v1563_v29 = vpop.f32.mrf.mxu1  ;;  %v1407_v46 = vadd.f32 %v1327_v56, %v1173_v4  ;;  %v4584_v56 = vld [vmem:[%s5259_s20 + $0x128] sm:$0xff] }
 0x15d   : > { %v1641_v38 = vadd.f32 %v1561_v31, %v1407_v46  ;;  %v4880_v31 = vld [vmem:[%s7502_s5 + $0x8] sm:$0xff] }
 0x15e   : > { %3238 = vmatpush.bf16.msra.mxu1 %v4880_v31 }
 0x15f   : > { %v5734_v21 = vadd.f32 %v1796_v44, %v1641_v38 }
 0x160   : > { %v1095_v23 = vpop.f32.mrf.mxu3 }
 0x161   : > { %v1174_v59 = vadd.f32 %v1095_v23, %v5473_v34 }
 0x162   : > { %v1332_v32 = vpop.f32.mrf.mxu0  ;;  %v1798_v7 = vpop.f32.mrf.mxu2 }
 0x163   : > { %v1566_v18 = vpop.f32.mrf.mxu1  ;;  %v1408_v36 = vadd.f32 %v1329_v43, %v1174_v59 }
 0x165   : > { %4496 = vmatmul.msk.bf16.gmra.mxu0 %vm449_vm0, %v5505_v9  ;;  %v1642_v51 = vadd.f32 %v1563_v29, %v1408_v36  ;;  %4436 = vmatmul.msk.bf16.gmra.mxu3 %vm449_vm0, %v5507_v14  ;;  %v4878_v9 = vld [vmem:[%s7501_s4 + $0x8] sm:$0xff] }
 0x166   : > { %4556 = vmatmul.msk.bf16.gmra.mxu1 %vm449_vm0, %v5513_v19  ;;  %3387 = vmatpush.bf16.msra.mxu2 %v4878_v9  ;;  %v4583_v19 = vld [vmem:[%s5259_s20 + $0x120] sm:$0xff] }
 0x167   : > { %4616 = vmatmul.msk.bf16.gmra.mxu2 %vm449_vm0, %v5551_v20  ;;  %v5745_v8 = vadd.f32 %v1798_v7, %v1642_v51  ;;  %v1716_v44 = vpack.c.bf16 %v4584_v56, %v4583_v19  ;;  %v4465_v51 = vld [vmem:[%s5259_s20 + $0x121] sm:$0xff] }
 0x168   : > { %v1098_v34 = vpop.f32.mrf.mxu3 }
 0x169   : > { %v1175_v48 = vadd.f32 %v1098_v34, %v5487_v47  ;;  %v4466_v34 = vld [vmem:[%s5259_s20 + $0x129] sm:$0xff] }
 0x16a   : > { %v1334_v49 = vpop.f32.mrf.mxu0  ;;  %v1801_v55 = vpop.f32.mrf.mxu2 }
 0x16b   : > { %v1568_v41 = vpop.f32.mrf.mxu1  ;;  %v1409_v58 = vadd.f32 %v1332_v32, %v1175_v48 }
 0x16d   : > { %v1643_v14 = vadd.f32 %v1566_v18, %v1409_v58 }
 0x16f   : > { %v5751_v22 = vadd.f32 %v1801_v55, %v1643_v14 }
 0x170   : > { %v1100_v6 = vpop.f32.mrf.mxu3 }
 0x171   : > { %v1176_v47 = vadd.f32 %v1100_v6, %v5511_v17 }
 0x172   : > { %v1337_v4 = vpop.f32.mrf.mxu0  ;;  %v1803_v43 = vpop.f32.mrf.mxu2 }
 0x173   : > { %v1571_v29 = vpop.f32.mrf.mxu1  ;;  %v1410_v46 = vadd.f32 %v1334_v49, %v1176_v47  ;;  %v4586_v49 = vld [vmem:[%s5259_s20 + $0x140] sm:$0xff] }
 0x175   : > { %4497 = vmatmul.msk.bf16.gmra.mxu0 %vm449_vm0, %v5549_v10  ;;  %v1644_v38 = vadd.f32 %v1568_v41, %v1410_v46  ;;  %4437 = vmatmul.msk.bf16.gmra.mxu3 %vm449_vm0, %v5551_v20  ;;  %v4585_v20 = vld [vmem:[%s5259_s20 + $0x138] sm:$0xff] }
 0x176   : > { %4557 = vmatmul.msk.bf16.gmra.mxu1 %vm449_vm0, %v5557_v37  ;;  %v5775_v37 = vpack.c.bf16 %v4466_v34, %v4465_v51  ;;  %v1717_v14 = vpack.c.bf16 %v4586_v49, %v4585_v20 }
 0x177   : > { %4617 = vmatmul.msk.bf16.gmra.mxu2 %vm449_vm0, %v1716_v44  ;;  %v5766_v17 = vadd.f32 %v1803_v43, %v1644_v38  ;;  %v4467_v38 = vld [vmem:[%s5259_s20 + $0x139] sm:$0xff] }
 0x178   : > { %v1103_v23 = vpop.f32.mrf.mxu3 }
 0x179   : > { %v1177_v59 = vadd.f32 %v1103_v23, %v5531_v40  ;;  %v4468_v23 = vld [vmem:[%s5259_s20 + $0x141] sm:$0xff] }
 0x17a   : > { %v1339_v32 = vpop.f32.mrf.mxu0  ;;  %v1806_v7 = vpop.f32.mrf.mxu2 }
 0x17b   : > { %v1573_v18 = vpop.f32.mrf.mxu1  ;;  %v1411_v10 = vadd.f32 %v1337_v4, %v1177_v59 }
 0x17d   : > { %v1645_v36 = vadd.f32 %v1571_v29, %v1411_v10 }
 0x17f   : > { %v5771_v48 = vadd.f32 %v1806_v7, %v1645_v36 }
 0x180   : > { %v1105_v55 = vpop.f32.mrf.mxu3 }
 0x181   : > { %v1178_v9 = vadd.f32 %v1105_v55, %v5555_v26 }
 0x182   : > { %v1342_v41 = vpop.f32.mrf.mxu0  ;;  %v1808_v58 = vpop.f32.mrf.mxu2 }
 0x183   : > { %v1576_v40 = vpop.f32.mrf.mxu1  ;;  %v1412_v19 = vadd.f32 %v1339_v32, %v1178_v9  ;;  %v4588_v32 = vld [vmem:[%s5259_s20 + $0x158] sm:$0xff] }
 0x185   : > { %4498 = vmatmul.msk.bf16.gmra.mxu0 %vm449_vm0, %v5775_v37  ;;  %v1646_v56 = vadd.f32 %v1573_v18, %v1412_v19  ;;  %4438 = vmatmul.msk.bf16.gmra.mxu3 %vm449_vm0, %v1716_v44  ;;  %v4587_v44 = vld [vmem:[%s5259_s20 + $0x150] sm:$0xff] }
 0x186   : > { %4558 = vmatmul.msk.bf16.gmra.mxu1 %vm449_vm0, %v5438_v61  ;;  %v1249_v61 = vpack.c.bf16 %v4468_v23, %v4467_v38  ;;  %v1718_v51 = vpack.c.bf16 %v4588_v32, %v4587_v44 }
 0x187   : > { %4618 = vmatmul.msk.bf16.gmra.mxu2 %vm449_vm0, %v1717_v14  ;;  %v5784_v26 = vadd.f32 %v1808_v58, %v1646_v56  ;;  %v4469_v56 = vld [vmem:[%s5259_s20 + $0x151] sm:$0xff] }
 0x188   : > { %v1108_v31 = vpop.f32.mrf.mxu3 }
 0x189   : > { %v1179_v6 = vadd.f32 %v1108_v31, %v5569_v52  ;;  %v4470_v31 = vld [vmem:[%s5259_s20 + $0x159] sm:$0xff] }
 0x18a   : > { %v1344_v47 = vpop.f32.mrf.mxu0  ;;  %v1811_v4 = vpop.f32.mrf.mxu2 }
 0x18b   : > { %v1578_v43 = vpop.f32.mrf.mxu1  ;;  %v1413_v29 = vadd.f32 %v1342_v41, %v1179_v6 }
 0x18d   : > { %v1647_v46 = vadd.f32 %v1576_v40, %v1413_v29 }
 0x18f   : > { %v5789_v59 = vadd.f32 %v1811_v4, %v1647_v46  ;;  %v1250_v4 = vpack.c.bf16 %v4470_v31, %v4469_v56  ;;  %v7507_v56 = vld [vmem:[#allocation2_spill] sm:$0xff] }
 0x190   : > { %v1110_v7 = vpop.f32.mrf.mxu3 }
 0x191   : > { %v1180_v18 = vadd.f32 %v1110_v7, %v5573_v3 }
 0x192   : > { %v1347_v10 = vpop.f32.mrf.mxu0  ;;  %v1813_v36 = vpop.f32.mrf.mxu2 }
 0x193   : > { %v1581_v52 = vpop.f32.mrf.mxu1  ;;  %v1414_v34 = vadd.f32 %v1344_v47, %v1180_v18  ;;  %v4590_v47 = vld [vmem:[%s5259_s20 + $0x170] sm:$0xff] }
 0x195   : > { %4499 = vmatmul.msk.bf16.gmra.mxu0 %vm449_vm0, %v1249_v61  ;;  %v1648_v20 = vadd.f32 %v1578_v43, %v1414_v34  ;;  %4439 = vmatmul.msk.bf16.gmra.mxu3 %vm449_vm0, %v1717_v14  ;;  %v4589_v14 = vld [vmem:[%s5259_s20 + $0x168] sm:$0xff] }
 0x196   : > { %4559 = vmatmul.msk.bf16.gmra.mxu1 %vm449_vm0, %v5471_v33 }
 0x197   : > { %4619 = vmatmul.msk.bf16.gmra.mxu2 %vm449_vm0, %v1718_v51  ;;  %v5799_v3 = vadd.f32 %v1813_v36, %v1648_v20  ;;  %v4471_v36 = vld [vmem:[%s5259_s20 + $0x169] sm:$0xff]  ;;  %v4591_v20 = vld [vmem:[%s5259_s20 + $0x180] sm:$0xff] }
 0x198   : > { %v1113_v49 = vpop.f32.mrf.mxu3 }
 0x199   : > { %v1181_v55 = vadd.f32 %v1113_v49, %v5586_v50  ;;  %v1719_v50 = vpack.c.bf16 %v4590_v47, %v4589_v14 }
 0x19a   : > { %v1349_v9 = vpop.f32.mrf.mxu0  ;;  %v1816_v41 = vpop.f32.mrf.mxu2 }
 0x19b   : > { %v5802_v58 = vpop.f32.mrf.mxu1  ;;  %v1415_v40 = vadd.f32 %v1347_v10, %v1181_v55 }
 0x19d   : > { %v1649_v19 = vadd.f32 %v1581_v52, %v1415_v40  ;;  %v4472_v52 = vld [vmem:[%s5259_s20 + $0x171] sm:$0xff] }
 0x19e   : > { %v1251_v55 = vpack.c.bf16 %v4472_v52, %v4471_v36 }
 0x19f   : > { %v5806_v6 = vadd.f32 %v1816_v41, %v1649_v19 }
 0x1a0   : > { %v1115_v33 = vpop.f32.mrf.mxu3 }
 0x1a1   : > { %v1182_v43 = vadd.f32 %v1115_v33, %v5591_v30 }
 0x1a2   : > { %v1352_v29 = vpop.f32.mrf.mxu0  ;;  %v5811_v46 = vpop.f32.mrf.mxu2 }
 0x1a3   : > { %v1586_v38 = vpop.f32.mrf.mxu1  ;;  %v5813_v23 = vadd.f32 %v1349_v9, %v1182_v43 }
 0x1a5   : > { %4500 = vmatmul.msk.bf16.gmra.mxu0 %vm449_vm0, %v1250_v4  ;;  %4440 = vmatmul.msk.bf16.gmra.mxu3 %vm449_vm0, %v1718_v51  ;;  %v4592_v51 = vld [vmem:[%s5259_s20 + $0x188] sm:$0xff] }
 0x1a6   : > { %4560 = vmatmul.msk.bf16.gmra.mxu1 %vm449_vm0, %v5509_v16 }
 0x1a7   : > { %4620 = vmatmul.msk.bf16.gmra.mxu2 %vm449_vm0, %v1719_v50 }
 0x1a8   : > { %v1118_v30 = vpop.f32.mrf.mxu3 }
 0x1a9   : > { %v1183_v44 = vadd.f32 %v1118_v30, %v5604_v45  ;;  %v1720_v45 = vpack.c.bf16 %v4592_v51, %v4591_v20  ;;  %v4533_v30 = vld [vmem:[%s5259_s20 + $0x182] sm:$0xff] }
 0x1aa   : > { %v1354_v32 = vpop.f32.mrf.mxu0  ;;  %v1821_v7 = vpop.f32.mrf.mxu2 }
 0x1ab   : > { %v5821_v61 = vpop.f32.mrf.mxu1  ;;  %v1417_v18 = vadd.f32 %v1352_v29, %v1183_v44  ;;  %v4473_v29 = vld [vmem:[%s5259_s20 + $0x181] sm:$0xff]  ;;  %v4534_v44 = vld [vmem:[%s5259_s20 + $0x18a] sm:$0xff] }
 0x1ac   : > { %v1486_v20 = vpack.c.bf16 %v4534_v44, %v4533_v30 }
 0x1ad   : > { %v1651_v10 = vadd.f32 %v1586_v38, %v1417_v18  ;;  %v4474_v38 = vld [vmem:[%s5259_s20 + $0x189] sm:$0xff] }
 0x1af   : > { %v5825_v34 = vadd.f32 %v1821_v7, %v1651_v10  ;;  %v4594_v7 = vld [vmem:[%s5259_s20 + $0x1a0] sm:$0xff]  ;;  %v1252_v10 = vpack.c.bf16 %v4474_v38, %v4473_v29 }
 0x1b0   : > { %v1120_v49 = vpop.f32.mrf.mxu3 }
 0x1b1   : > { %v1184_v16 = vadd.f32 %v1120_v49, %v5609_v42 }
 0x1b2   : > { %v1357_v9 = vpop.f32.mrf.mxu0  ;;  %v5830_v41 = vpop.f32.mrf.mxu2 }
 0x1b3   : > { %v1591_v40 = vpop.f32.mrf.mxu1  ;;  %v5832_v19 = vadd.f32 %v1354_v32, %v1184_v16  ;;  %v4593_v32 = vld [vmem:[%s5259_s20 + $0x198] sm:$0xff] }
 0x1b4   : > { %v1721_v51 = vpack.c.bf16 %v4594_v7, %v4593_v32 }
 0x1b5   : > { %4501 = vmatmul.msk.bf16.gmra.mxu0 %vm449_vm0, %v1251_v55  ;;  %4441 = vmatmul.msk.bf16.gmra.mxu3 %vm449_vm0, %v1719_v50 }
 0x1b6   : > { %4561 = vmatmul.msk.bf16.gmra.mxu1 %vm449_vm0, %v7507_v56 }
 0x1b7   : > { %4621 = vmatmul.msk.bf16.gmra.mxu2 %vm449_vm0, %v1720_v45 }
 0x1b8   : > { %v1123_v42 = vpop.f32.mrf.mxu3 }
 0x1b9   : > { %v1185_v31 = vadd.f32 %v1123_v42, %v5622_v5 }
 0x1ba   : > { %v1359_v14 = vpop.f32.mrf.mxu0  ;;  %v1826_v47 = vpop.f32.mrf.mxu2 }
 0x1bb   : > { %v5840_v33 = vpop.f32.mrf.mxu1  ;;  %v1419_v4 = vadd.f32 %v1357_v9, %v1185_v31 }
 0x1bd   : > { %v1653_v43 = vadd.f32 %v1591_v40, %v1419_v4  ;;  %v4623_v4 = vld [vmem:[%s5259_s20 + $0x31] sm:$0xff] }
 0x1bf   : > { %v5846_v50 = vadd.f32 %v1826_v47, %v1653_v43  ;;  %v4683_v47 = vld [vmem:[%s5259_s20 + $0x32] sm:$0xff] }
 0x1c0   : > { %v1125_v18 = vpop.f32.mrf.mxu3  ;;  %v4624_v43 = vld [vmem:[%s5259_s20 + $0x39] sm:$0xff] }
 0x1c1   : > { %v1186_v36 = vadd.f32 %v1125_v18, %v5627_v54 }
 0x1c2   : > { %v1362_v52 = vpop.f32.mrf.mxu0  ;;  %v5851_v5 = vpop.f32.mrf.mxu2 }
 0x1c3   : > { %v1596_v49 = vpop.f32.mrf.mxu1  ;;  %v5853_v55 = vadd.f32 %v1359_v14, %v1186_v36  ;;  %v4684_v14 = vld [vmem:[%s5259_s20 + $0x3a] sm:$0xff] }
 0x1c4   : > { %v2174_v38 = vpack.c.bf16 %v4684_v14, %v4683_v47 }
 0x1c5   : > { %4502 = vmatmul.msk.bf16.gmra.mxu0 %vm449_vm0, %v1252_v10  ;;  %4442 = vmatmul.msk.bf16.gmra.mxu3 %vm449_vm0, %v1720_v45 }
 0x1c6   : > { %4562 = vmatmul.msk.bf16.gmra.mxu1 %vm449_vm0, %v1486_v20 }
 0x1c7   : > { %4622 = vmatmul.msk.bf16.gmra.mxu2 %vm449_vm0, %v1721_v51 }
 0x1c8   : > { %v1128_v54 = vpop.f32.mrf.mxu3 }
 0x1c9   : > { %v1187_v16 = vadd.f32 %v1128_v54, %v5640_v62  ;;  %v1940_v62 = vpack.c.bf16 %v4624_v43, %v4623_v4  ;;  %v4685_v54 = vld [vmem:[%s5259_s20 + $0x4a] sm:$0xff] }
 0x1ca   : > { %v1364_v9 = vpop.f32.mrf.mxu0  ;;  %v1831_v40 = vpop.f32.mrf.mxu2 }
 0x1cb   : > { %v5860_v56 = vpop.f32.mrf.mxu1  ;;  %v1421_v42 = vadd.f32 %v1362_v52, %v1187_v16  ;;  %v4686_v16 = vld [vmem:[%s5259_s20 + $0x52] sm:$0xff] }
 0x1cc   : > { %v2175_v47 = vpack.c.bf16 %v4686_v16, %v4685_v54  ;;  %v4628_v54 = vld [vmem:[%s5259_s20 + $0x69] sm:$0xff]  ;;  %v4879_v16 = vld [vmem:[%s7502_s5] sm:$0xff] }
 0x1cd   : > { %v1655_v31 = vadd.f32 %v1596_v49, %v1421_v42  ;;  %v4626_v42 = vld [vmem:[%s5259_s20 + $0x51] sm:$0xff]  ;;  %3239 = vmatpush.bf16.msra.mxu1 %v4879_v16  ;;  %v4629_v16 = vld [vmem:[%s5259_s20 + $0x79] sm:$0xff] }
 0x1cf   : > { %v5866_v29 = vadd.f32 %v1831_v40, %v1655_v31  ;;  %v4625_v40 = vld [vmem:[%s5259_s20 + $0x49] sm:$0xff] }
 0x1d0   : > { %v1130_v45 = vpop.f32.mrf.mxu3  ;;  %v1941_v43 = vpack.c.bf16 %v4626_v42, %v4625_v40 }
 0x1d1   : > { %v1188_v30 = vadd.f32 %v1130_v45, %v5645_v2 }
 0x1d2   : > { %v1367_v44 = vpop.f32.mrf.mxu0  ;;  %v5869_v32 = vpop.f32.mrf.mxu2 }
 0x1d3   : > { %v1601_v7 = vpop.f32.mrf.mxu1  ;;  %v5871_v18 = vadd.f32 %v1364_v9, %v1188_v30 }
 0x1d5   : > { %4727 = vmatmul.msk.bf16.vlgmr.msra.gmra.mxu0 %vm449_vm0, %v2174_v38  ;;  %4667 = vmatmul.msk.bf16.vlgmr.msra.gmra.mxu3 %vm449_vm0, %v1940_v62 }
 0x1d8   : > { %v1133_v10 = vpop.f32.mrf.mxu3 }
 0x1d9   : > { %v1189_v36 = vadd.f32 %v1133_v10, %v5658_v39 }
 0x1da   : > { %v1369_v52 = vpop.f32.mrf.mxu0  ;;  %v1836_v20 = vpop.f32.mrf.mxu2 }
 0x1db   : > { %v5876_v2 = vpop.f32.mrf.mxu1  ;;  %v1423_v51 = vadd.f32 %v1367_v44, %v1189_v36 }
 0x1dc   : > { %7508 = vst [vmem:[#allocation2_spill] sm:$0xff] %v5876_v2  ;;  %v4706_v2 = vld [vmem:[%s5259_s20 + $0x142] sm:$0xff] }
 0x1dd   : > { %v1657_v49 = vadd.f32 %v1601_v7, %v1423_v51  ;;  %v4877_v7 = vld [vmem:[%s7501_s4] sm:$0xff]  ;;  %v4688_v51 = vld [vmem:[%s5259_s20 + $0x6a] sm:$0xff] }
 0x1de   : > { %3388 = vmatpush.bf16.msra.mxu2 %v4877_v7 }
 0x1df   : > { %v5882_v31 = vadd.f32 %v1836_v20, %v1657_v49  ;;  %v4687_v20 = vld [vmem:[%s5259_s20 + $0x62] sm:$0xff] }
 0x1e0   : > { %v1135_v9 = vpop.f32.mrf.mxu3  ;;  %v4627_v49 = vld [vmem:[%s5259_s20 + $0x61] sm:$0xff]  ;;  %v2176_v42 = vpack.c.bf16 %v4688_v51, %v4687_v20 }
 0x1e1   : > { %7509 = vst [vmem:[#allocation3_spill] sm:$0xff] %v5882_v31  ;;  %v1190_v14 = vadd.f32 %v1135_v9, %v5663_v15 }
 0x1e2   : > { %v1372_v4 = vpop.f32.mrf.mxu0  ;;  %v5885_v39 = vpop.f32.mrf.mxu2 }
 0x1e3   : > { %7510 = vst [vmem:[#allocation4_spill] sm:$0xff] %v5885_v39  ;;  %v1606_v45 = vpop.f32.mrf.mxu1  ;;  %v5887_v38 = vadd.f32 %v1369_v52, %v1190_v14  ;;  %v1942_v14 = vpack.c.bf16 %v4628_v54, %v4627_v49  ;;  %v4690_v54 = vld [vmem:[%s5259_s20 + $0x82] sm:$0xff]  ;;  %v4705_v39 = vld [vmem:[%s5259_s20 + $0x13a] sm:$0xff] }
 0x1e5   : > { %7511 = vst [vmem:[#allocation5_spill] sm:$0xff] %v5887_v38  ;;  %4728 = vmatmul.msk.bf16.gmra.mxu0 %vm449_vm0, %v2175_v47  ;;  %4668 = vmatmul.msk.bf16.gmra.mxu3 %vm449_vm0, %v1941_v43  ;;  %v5916_v43 = vld [vmem:[%s5905_s11] sm:$0xff] }
 0x1e8   : > { %v1138_v30 = vpop.f32.mrf.mxu3 }
 0x1e9   : > { %v1191_v44 = vadd.f32 %v1138_v30, %v5676_v11 }
 0x1ea   : > { %v1374_v15 = vpop.f32.mrf.mxu0  ;;  %v1841_v62 = vpop.f32.mrf.mxu2 }
 0x1eb   : > { %v5895_v10 = vpop.f32.mrf.mxu1  ;;  %v1425_v36 = vadd.f32 %v1372_v4, %v1191_v44 }
 0x1ec   : > { %7512 = vst [vmem:[#allocation6_spill] sm:$0xff] %v5895_v10  ;;  %v5941_v10 = vld [vmem:[%s5905_s11 + $0x10] sm:$0xff] }
 0x1ed   : > { %v1659_v52 = vadd.f32 %v1606_v45, %v1425_v36  ;;  %v5919_v45 = vld [vmem:[%s5905_s11 + $0x8] sm:$0xff] }
 0x1ee   : > { %v3104_v44 = vpack.c.bf16 %v5919_v45, %v5916_v43 }
 0x1ef   : > { %v5907_v11 = vadd.f32 %v1841_v62, %v1659_v52 }
 0x1f0   : > { %v1140_v40 = vpop.f32.mrf.mxu3  ;;  %3140 = vrot.lane.b32.xlu0 %v3104_v44, %s5183_s14 }
 0x1f1   : > { %7513 = vst [vmem:[#allocation7_spill] sm:$0xff] %v5907_v11  ;;  %v1192_v9 = vadd.f32 %v1140_v40, %v5681_v28  ;;  %v4630_v40 = vld [vmem:[%s5259_s20 + $0x81] sm:$0xff] }
 0x1f2   : > { %v1377_v47 = vpop.f32.mrf.mxu0  ;;  %v5913_v4 = vpop.f32.mrf.mxu2 }
 0x1f3   : > { %7514 = vst [vmem:[#allocation8_spill] sm:$0xff] %v5913_v4  ;;  %v1611_v30 = vpop.f32.mrf.mxu1  ;;  %v5923_v62 = vadd.f32 %v1374_v15, %v1192_v9  ;;  %v4689_v15 = vld [vmem:[%s5259_s20 + $0x7a] sm:$0xff] }
 0x1f4   : > { %v2177_v44 = vpack.c.bf16 %v4690_v54, %v4689_v15 }
 0x1f5   : > { %7515 = vst [vmem:[#allocation9_spill] sm:$0xff] %v5923_v62  ;;  %4729 = vmatmul.msk.bf16.gmra.mxu0 %vm449_vm0, %v2176_v42  ;;  %4669 = vmatmul.msk.bf16.gmra.mxu3 %vm449_vm0, %v1942_v14 }
 0x1f8   : > { %v1143_v28 = vpop.f32.mrf.mxu3 }
 0x1f9   : > { %v1193_v7 = vadd.f32 %v1143_v28, %v5697_v27  ;;  %v1943_v27 = vpack.c.bf16 %v4630_v40, %v4629_v16 }
 0x1fa   : > { %v1379_v36 = vpop.f32.mrf.mxu0  ;;  %v1846_v52 = vpop.f32.mrf.mxu2 }
 0x1fb   : > { %v5929_v20 = vpop.f32.mrf.mxu1  ;;  %v1427_v51 = vadd.f32 %v1377_v47, %v1193_v7  ;;  %v5944_v47 = vld [vmem:[%s5905_s11 + $0x18] sm:$0xff] }
 0x1fc   : > { %7516 = vst [vmem:[#allocation10_spill] sm:$0xff] %v5929_v20  ;;  %v3105_v7 = vpack.c.bf16 %v5944_v47, %v5941_v10 }
 0x1fd   : > { %v1661_v49 = vadd.f32 %v1611_v30, %v1427_v51 }
 0x1fe   : > { %3142 = vrot.lane.b32.xlu0 %v3105_v7, %s5183_s14 }
 0x1ff   : > { %v5935_v42 = vadd.f32 %v1846_v52, %v1661_v49 }
 0x200   : > { %v1145_v9 = vpop.f32.mrf.mxu3 }
 0x201   : > { %7517 = vst [vmem:[#allocation11_spill] sm:$0xff] %v5935_v42  ;;  %v1194_v14 = vadd.f32 %v1145_v9, %v5705_v0  ;;  %v4691_v9 = vld [vmem:[%s5259_s20 + $0x92] sm:$0xff]  ;;  %v5966_v42 = vld [vmem:[%s5905_s11 + $0x20] sm:$0xff] }
 0x202   : > { %v1382_v4 = vpop.f32.mrf.mxu0  ;;  %v5938_v28 = vpop.f32.mrf.mxu2 }
 0x203   : > { %7518 = vst [vmem:[#allocation12_spill] sm:$0xff] %v5938_v28  ;;  %v1616_v30 = vpop.f32.mrf.mxu1  ;;  %v5948_v52 = vadd.f32 %v1379_v36, %v1194_v14  ;;  %v4692_v36 = vld [vmem:[%s5259_s20 + $0x9a] sm:$0xff]  ;;  %v4631_v14 = vld [vmem:[%s5259_s20 + $0x91] sm:$0xff] }
 0x204   : > { %v4632_v28 = vld [vmem:[%s5259_s20 + $0x99] sm:$0xff]  ;;  %v2178_v20 = vpack.c.bf16 %v4692_v36, %v4691_v9 }
 0x205   : > { %7519 = vst [vmem:[#allocation13_spill] sm:$0xff] %v5948_v52  ;;  %4730 = vmatmul.msk.bf16.gmra.mxu0 %vm449_vm0, %v2177_v44  ;;  %4670 = vmatmul.msk.bf16.gmra.mxu3 %vm449_vm0, %v1943_v27 }
 0x208   : > { %v1148_v0 = vpop.f32.mrf.mxu3 }
 0x209   : > { %v1195_v51 = vadd.f32 %v1148_v0, %v5718_v57  ;;  %v1944_v57 = vpack.c.bf16 %v4632_v28, %v4631_v14 }
 0x20a   : > { %v1384_v49 = vpop.f32.mrf.mxu0  ;;  %v1851_v15 = vpop.f32.mrf.mxu2 }
 0x20b   : > { %v5954_v54 = vpop.f32.mrf.mxu1  ;;  %v1429_v16 = vadd.f32 %v1382_v4, %v1195_v51  ;;  %v5969_v4 = vld [vmem:[%s5905_s11 + $0x28] sm:$0xff] }
 0x20c   : > { %7520 = vst [vmem:[#allocation14_spill] sm:$0xff] %v5954_v54  ;;  %v3106_v51 = vpack.c.bf16 %v5969_v4, %v5966_v42 }
 0x20d   : > { %v1663_v40 = vadd.f32 %v1616_v30, %v1429_v16 }
 0x20e   : > { %3144 = vrot.lane.b32.xlu1 %v3106_v51, %s5183_s14 }
 0x20f   : > { %v5960_v44 = vadd.f32 %v1851_v15, %v1663_v40 }
 0x210   : > { %v1150_v7 = vpop.f32.mrf.mxu3 }
 0x211   : > { %7521 = vst [vmem:[#allocation15_spill] sm:$0xff] %v5960_v44  ;;  %v1196_v27 = vadd.f32 %v1150_v7, %v5723_v1  ;;  %v4693_v7 = vld [vmem:[%s5259_s20 + $0xaa] sm:$0xff] }
 0x212   : > { %v1387_v52 = vpop.f32.mrf.mxu0  ;;  %v5963_v0 = vpop.f32.mrf.mxu2 }
 0x213   : > { %7522 = vst [vmem:[#allocation16_spill] sm:$0xff] %v5963_v0  ;;  %v1621_v30 = vpop.f32.mrf.mxu1  ;;  %v5973_v15 = vadd.f32 %v1384_v49, %v1196_v27  ;;  %v4694_v49 = vld [vmem:[%s5259_s20 + $0xb2] sm:$0xff]  ;;  %v4633_v27 = vld [vmem:[%s5259_s20 + $0xa9] sm:$0xff] }
 0x214   : > { %v4634_v0 = vld [vmem:[%s5259_s20 + $0xb1] sm:$0xff]  ;;  %v2179_v44 = vpack.c.bf16 %v4694_v49, %v4693_v7 }
 0x215   : > { %7523 = vst [vmem:[#allocation17_spill] sm:$0xff] %v5973_v15  ;;  %4731 = vmatmul.msk.bf16.gmra.mxu0 %vm449_vm0, %v2178_v20  ;;  %4671 = vmatmul.msk.bf16.gmra.mxu3 %vm449_vm0, %v1944_v57  ;;  %v5991_v15 = vld [vmem:[%s5905_s11 + $0x30] sm:$0xff] }
 0x218   : > { %v1153_v1 = vpop.f32.mrf.mxu3 }
 0x219   : > { %v1197_v28 = vadd.f32 %v1153_v1, %v5656_v53  ;;  %v1945_v53 = vpack.c.bf16 %v4634_v0, %v4633_v27 }
 0x21a   : > { %v1389_v16 = vpop.f32.mrf.mxu0  ;;  %v1856_v40 = vpop.f32.mrf.mxu2 }
 0x21b   : > { %v5979_v9 = vpop.f32.mrf.mxu1  ;;  %v1431_v36 = vadd.f32 %v1387_v52, %v1197_v28  ;;  %v5994_v52 = vld [vmem:[%s5905_s11 + $0x38] sm:$0xff] }
 0x21c   : > { %7524 = vst [vmem:[#allocation18_spill] sm:$0xff] %v5979_v9  ;;  %v3107_v28 = vpack.c.bf16 %v5994_v52, %v5991_v15  ;;  %v4645_v9 = vld [vmem:[%s5259_s20 + $0x139] sm:$0xff] }
 0x21d   : > { %v1665_v14 = vadd.f32 %v1621_v30, %v1431_v36 }
 0x21e   : > { %3146 = vrot.lane.b32.xlu1 %v3107_v28, %s5183_s14 }
 0x21f   : > { %v5985_v20 = vadd.f32 %v1856_v40, %v1665_v14 }
 0x220   : > { %v1155_v51 = vpop.f32.mrf.mxu3 }
 0x221   : > { %7525 = vst [vmem:[#allocation19_spill] sm:$0xff] %v5985_v20  ;;  %v1198_v57 = vadd.f32 %v1155_v51, %v5661_v13  ;;  %v4695_v51 = vld [vmem:[%s5259_s20 + $0xc2] sm:$0xff]  ;;  %v4696_v20 = vld [vmem:[%s5259_s20 + $0xca] sm:$0xff] }
 0x222   : > { %v1392_v54 = vpop.f32.mrf.mxu0  ;;  %v5988_v1 = vpop.f32.mrf.mxu2  ;;  %v2180_v28 = vpack.c.bf16 %v4696_v20, %v4695_v51 }
 0x223   : > { %7526 = vst [vmem:[#allocation20_spill] sm:$0xff] %v5988_v1  ;;  %v1626_v30 = vpop.f32.mrf.mxu1  ;;  %v5998_v40 = vadd.f32 %v1389_v16, %v1198_v57  ;;  %v4635_v1 = vld [vmem:[%s5259_s20 + $0xc1] sm:$0xff]  ;;  %v4636_v16 = vld [vmem:[%s5259_s20 + $0xc9] sm:$0xff] }
 0x225   : > { %7527 = vst [vmem:[#allocation21_spill] sm:$0xff] %v5998_v40  ;;  %4732 = vmatmul.msk.bf16.gmra.mxu0 %vm449_vm0, %v2179_v44  ;;  %4672 = vmatmul.msk.bf16.gmra.mxu3 %vm449_vm0, %v1945_v53  ;;  %v4646_v40 = vld [vmem:[%s5259_s20 + $0x141] sm:$0xff] }
 0x228   : > { %v1158_v13 = vpop.f32.mrf.mxu3 }
 0x229   : > { %v1199_v0 = vadd.f32 %v1158_v13, %v5674_v63  ;;  %v1946_v13 = vpack.c.bf16 %v4636_v16, %v4635_v1  ;;  %v4638_v1 = vld [vmem:[%s5259_s20 + $0xe1] sm:$0xff] }
 0x22a   : > { %v1394_v36 = vpop.f32.mrf.mxu0  ;;  %v1861_v14 = vpop.f32.mrf.mxu2 }
 0x22b   : > { %v1433_v7 = vadd.f32 %v1392_v54, %v1199_v0  ;;  %v6004_v49 = vpop.f32.mrf.mxu1 }
 0x22c   : > { %7528 = vst [vmem:[#allocation22_spill] sm:$0xff] %v6004_v49  ;;  %v4637_v49 = vld [vmem:[%s5259_s20 + $0xd9] sm:$0xff] }
 0x22d   : > { %v1667_v27 = vadd.f32 %v1626_v30, %v1433_v7 }
 0x22f   : > { %v6010_v57 = vadd.f32 %v1861_v14, %v1667_v27 }
 0x230   : > { %v1160_v44 = vpop.f32.mrf.mxu3 }
 0x231   : > { %7529 = vst [vmem:[#allocation23_spill] sm:$0xff] %v6010_v57  ;;  %v1200_v53 = vadd.f32 %v1160_v44, %v5679_v25  ;;  %v4697_v44 = vld [vmem:[%s5259_s20 + $0xda] sm:$0xff]  ;;  %v4698_v57 = vld [vmem:[%s5259_s20 + $0xe2] sm:$0xff] }
 0x232   : > { %v1397_v63 = vpop.f32.mrf.mxu0  ;;  %v6013_v54 = vpop.f32.mrf.mxu2 }
 0x233   : > { %7530 = vst [vmem:[#allocation24_spill] sm:$0xff] %v6013_v54  ;;  %v6015_v0 = vadd.f32 %v1394_v36, %v1200_v53  ;;  %v1631_v30 = vpop.f32.mrf.mxu1  ;;  %v2181_v53 = vpack.c.bf16 %v4698_v57, %v4697_v44 }
 0x235   : > { %7531 = vst [vmem:[#allocation25_spill] sm:$0xff] %v6015_v0  ;;  %4733 = vmatmul.msk.bf16.gmra.mxu0 %vm449_vm0, %v2180_v28  ;;  %4673 = vmatmul.msk.bf16.gmra.mxu3 %vm449_vm0, %v1946_v13 }
 0x238   : > { %v1163_v14 = vpop.f32.mrf.mxu3 }
 0x239   : > { %v1201_v7 = vadd.f32 %v1163_v14, %v5695_v12  ;;  %v1947_v12 = vpack.c.bf16 %v4638_v1, %v4637_v49  ;;  %v4699_v1 = vld [vmem:[%s5259_s20 + $0xf2] sm:$0xff] }
 0x23a   : > { %v1399_v20 = vpop.f32.mrf.mxu0  ;;  %v1866_v27 = vpop.f32.mrf.mxu2 }
 0x23b   : > { %v1435_v51 = vadd.f32 %v1397_v63, %v1201_v7  ;;  %v6026_v28 = vpop.f32.mrf.mxu1 }
 0x23c   : > { %7533 = vst [vmem:[#allocation27_spill] sm:$0xff] %v6026_v28  ;;  %v313_v28 = vld [vmem:[%s5905_s11 + $0x68] sm:$0xff] }
 0x23d   : > { %v1669_v25 = vadd.f32 %v1631_v30, %v1435_v51  ;;  %v6040_v51 = vld [vmem:[%s5905_s11 + $0x48] sm:$0xff] }
 0x23f   : > { %v6024_v16 = vadd.f32 %v1866_v27, %v1669_v25 }
 0x240   : > { %v1165_v36 = vpop.f32.mrf.mxu3 }
 0x241   : > { %7532 = vst [vmem:[#allocation26_spill] sm:$0xff] %v6024_v16  ;;  %v1202_v13 = vadd.f32 %v1165_v36, %v5703_v35  ;;  %v6037_v35 = vld [vmem:[%s5905_s11 + $0x40] sm:$0xff] }
 0x242   : > { %v1402_v54 = vpop.f32.mrf.mxu0  ;;  %v6029_v63 = vpop.f32.mrf.mxu2  ;;  %v4700_v36 = vld [vmem:[%s5259_s20 + $0xfa] sm:$0xff] }
 0x243   : > { %7534 = vst [vmem:[#allocation28_spill] sm:$0xff] %v6029_v63  ;;  %v6031_v30 = vadd.f32 %v1399_v20, %v1202_v13  ;;  %v1636_v27 = vpop.f32.mrf.mxu1  ;;  %v3108_v20 = vpack.c.bf16 %v6040_v51, %v6037_v35  ;;  %v312_v63 = vld [vmem:[%s5905_s11 + $0x60] sm:$0xff] }
 0x245   : > { %7535 = vst [vmem:[#allocation29_spill] sm:$0xff] %v6031_v30  ;;  %4734 = vmatmul.msk.bf16.gmra.mxu0 %vm449_vm0, %v2181_v53  ;;  %4674 = vmatmul.msk.bf16.gmra.mxu3 %vm449_vm0, %v1947_v12  ;;  %v4639_v53 = vld [vmem:[%s5259_s20 + $0xf1] sm:$0xff] }
 0x246   : > { %3148 = vrot.lane.b32.xlu2 %v3108_v20, %s5183_s14 }
 0x248   : > { %v1168_v14 = vpop.f32.mrf.mxu3 }
 0x249   : > { %v1203_v7 = vadd.f32 %v1168_v14, %v5716_v24  ;;  %v4640_v24 = vld [vmem:[%s5259_s20 + $0xf9] sm:$0xff]  ;;  %v2182_v14 = vpack.c.bf16 %v4700_v36, %v4699_v1  ;;  %v4701_v36 = vld [vmem:[%s5259_s20 + $0x10a] sm:$0xff] }
 0x24a   : > { %v1404_v57 = vpop.f32.mrf.mxu0  ;;  %v1871_v25 = vpop.f32.mrf.mxu2 }
 0x24b   : > { %v1437_v49 = vadd.f32 %v1402_v54, %v1203_v7  ;;  %v1948_v7 = vpack.c.bf16 %v4640_v24, %v4639_v53  ;;  %v4641_v53 = vld [vmem:[%s5259_s20 + $0x109] sm:$0xff]  ;;  %v4642_v24 = vld [vmem:[%s5259_s20 + $0x111] sm:$0xff] }
 0x24d   : > { %v1671_v44 = vadd.f32 %v1636_v27, %v1437_v49  ;;  %v3110_v49 = vpack.c.bf16 %v313_v28, %v312_v63  ;;  %v6069_v28 = vld [vmem:[%s5905_s11 + $0x58] sm:$0xff] }
 0x24f   : > { %v6049_v13 = vadd.f32 %v1871_v25, %v1671_v44  ;;  %3152 = vrot.lane.b32.xlu0 %v3110_v49, %s5183_s14  ;;  %v6063_v25 = vld [vmem:[%s7500_s3] ss:$0 sm:$0xff] }
 0x250   : > { %v1170_v12 = vpop.f32.mrf.mxu3 }
 0x251   : > { %7536 = vst [vmem:[#allocation30_spill] sm:$0xff] %v6049_v13  ;;  %v1204_v16 = vadd.f32 %v1170_v12, %v5721_v60  ;;  %v314_v13 = vld [vmem:[%s5905_s11 + $0x70] sm:$0xff] }
 0x252   : > { %v2264_v54 = vpop.f32.mrf.mxu0 }
 0x253   : > { %v6054_v27 = vadd.f32 %v1404_v57, %v1204_v16  ;;  %v6066_v57 = vld [vmem:[%s5905_s11 + $0x50] sm:$0xff] }
 0x254   : > { %v3109_v63 = vpack.c.bf16 %v6069_v28, %v6066_v57 }
 0x255   : > { %7537 = vst [vmem:[#allocation31_spill] sm:$0xff] %v6054_v27  ;;  %4735 = vmatmul.msk.bf16.gmra.mxu0 %vm449_vm0, %v2182_v14  ;;  %4675 = vmatmul.msk.bf16.gmra.mxu3 %vm449_vm0, %v1948_v7 }
 0x256   : > { %3150 = vrot.lane.b32.xlu2 %v3109_v63, %s5183_s14  ;;  %v315_v63 = vld [vmem:[%s5905_s11 + $0x78] sm:$0xff] }
 0x257   : > { %v3111_v27 = vpack.c.bf16 %v315_v63, %v314_v13  ;;  %v4703_v13 = vld [vmem:[%s5259_s20 + $0x122] sm:$0xff] }
 0x258   : > { %v2030_v20 = vpop.f32.mrf.mxu3 }
 0x259   : > { %v2110_v60 = vadd.f32 %v2030_v20, %v5734_v21  ;;  %v4702_v21 = vld [vmem:[%s5259_s20 + $0x112] sm:$0xff]  ;;  %v1949_v20 = vpack.c.bf16 %v4642_v24, %v4641_v53  ;;  %3154 = vrot.lane.b32.xlu1 %v3111_v27, %s5183_s14 }
 0x25a   : > { %v2266_v44 = vpop.f32.mrf.mxu0 }
 0x25b   : > { %v2344_v16 = vadd.f32 %v2264_v54, %v2110_v60  ;;  %v2183_v54 = vpack.c.bf16 %v4702_v21, %v4701_v36 }
 0x25d   : > { %v6074_v1 = vadd.f32 %v6063_v25, %v2344_v16 }
 0x25f   : > { %v4743_v12 = vmul.f32 -1.442695, %v6074_v1 }
 0x260   : > { %v2032_v14 = vpop.f32.mrf.mxu3 }
 0x261   : > { %4899 = vpow2.f32 %v4743_v12  ;;  %v2111_v7 = vadd.f32 %v2032_v14, %v5745_v8 }
 0x262   : > { %v2269_v49 = vpop.f32.mrf.mxu0  ;;  %v3141_v24 = vpop.permute.xlu0 %3140 }
 0x263   : > { %v2345_v60 = vadd.f32 %v2266_v44, %v2111_v7  ;;  %4783 = vmatmul.msk.bf16.vlgmr.msra.gmra.mxu1 %vm449_vm0, %v3141_v24 }
 0x265   : > { %4736 = vmatmul.msk.bf16.gmra.mxu0 %vm449_vm0, %v2183_v54  ;;  %v6085_v16 = vadd.f32 %v6063_v25, %v2345_v60  ;;  %4676 = vmatmul.msk.bf16.gmra.mxu3 %vm449_vm0, %v1949_v20  ;;  %v4704_v54 = vld [vmem:[%s5259_s20 + $0x12a] sm:$0xff] }
 0x266   : > { %v2184_v63 = vpack.c.bf16 %v4704_v54, %v4703_v13 }
 0x267   : > { %v4900_v30 = vpop.eup %4899  ;;  %v4744_v36 = vmul.f32 -1.442695, %v6085_v16 }
 0x268   : > { %v2508_v21 = vadd.f32 1.0, %v4900_v30  ;;  %v2035_v8 = vpop.f32.mrf.mxu3 }
 0x269   : > { %4901 = vpow2.f32 %v4744_v36  ;;  %v2112_v44 = vadd.f32 %v2035_v8, %v5751_v22 }
 0x26a   : > { %v2271_v53 = vpop.f32.mrf.mxu0  ;;  %4903 = vrcp.f32 %v2508_v21  ;;  %vm2545_vm2 = vweird.f32 %v2508_v21 }
 0x26b   : > { %v2346_v12 = vadd.f32 %v2269_v49, %v2112_v44 }
 0x26d   : > { %v6095_v14 = vadd.f32 %v6063_v25, %v2346_v12 }
 0x26f   : > { %v4902_v7 = vpop.eup %4901  ;;  %v4745_v30 = vmul.f32 -1.442695, %v6095_v14 }
 0x270   : > { %v4904_v20 = vpop.eup %4903  ;;  %v2509_v60 = vadd.f32 1.0, %v4902_v7  ;;  %v2037_v27 = vpop.f32.mrf.mxu3 }
 0x271   : > { %v2541_v36 = vmul.f32 %v4904_v20, %v2508_v21  ;;  %4905 = vpow2.f32 %v4745_v30  ;;  %v2113_v22 = vadd.f32 %v2037_v27, %v5766_v17  ;;  %vm2546_vm1 = vweird.f32 %v4904_v20 }
 0x272   : > { %v2274_v8 = vpop.f32.mrf.mxu0  ;;  %4907 = vrcp.f32 %v2509_v60  ;;  %v2551_v17 = vand.u32 2147483648, %v2508_v21  ;;  %vm6110_vm3 = vmor %vm2545_vm2, %vm2546_vm1  ;;  %vm2560_vm6 = vweird.f32 %v2509_v60 }
 0x273   : > { %v2542_v49 = vsub.f32 1.0, %v2541_v36  ;;  %v2347_v44 = vadd.f32 %v2271_v53, %v2113_v22  ;;  %v2549_v53 = vand.u32 2147483647, %v2508_v21 }
 0x274   : > { %v2552_v21 = vor.u32 1.1754944e-38, %v2551_v17 }
 0x275   : > { %4737 = vmatmul.msk.bf16.gmra.mxu0 %vm449_vm0, %v2184_v63  ;;  %v2543_v24 = vmul.f32 %v4904_v20, %v2542_v49  ;;  %v6103_v12 = vadd.f32 %v6063_v25, %v2347_v44  ;;  %4677 = vmatmul.msk.bf16.gmra.mxu3 %vm449_vm0, %v5775_v37  ;;  %v3143_v37 = vpop.permute.xlu0 %3142  ;;  %vm2550_vm4 = vcmp.eq.f32.partialorder %v2549_v53, 8.507059e+37 }
 0x276   : > { %4784 = vmatmul.msk.bf16.gmra.mxu1 %vm449_vm0, %v3143_v37 }
 0x277   : > { %v4906_v7 = vpop.eup %4905  ;;  %v2544_v0 = vadd.f32 %v4904_v20, %v2543_v24  ;;  %v4746_v13 = vmul.f32 -1.442695, %v6103_v12 }
 0x278   : > { %v4908_v54 = vpop.eup %4907  ;;  %v6108_v30 = vadd.f32 1.0, %v4906_v7  ;;  %v2040_v27 = vpop.f32.mrf.mxu3  ;;  %v2564_v7 = vand.u32 2147483647, %v2509_v60 }
 0x279   : > { %v2556_v63 = vmul.f32 %v4908_v54, %v2509_v60  ;;  %4909 = vpow2.f32 %v4746_v13  ;;  %v2548_v49 = vsel %vm6110_vm3, %v4904_v20, %v2544_v0  ;;  %v2114_v24 = vadd.f32 %v2040_v27, %v5771_v48 }
 0x27a   : > { %v2276_v36 = vpop.f32.mrf.mxu0  ;;  %4911 = vrcp.f32 %v6108_v30  ;;  %v2566_v13 = vand.u32 2147483648, %v2509_v60  ;;  %vm2561_vm5 = vweird.f32 %v4908_v54  ;;  %v2553_v38 = vsel %vm2550_vm4, %v2552_v21, %v2548_v49 }
 0x27b   : > { %v2557_v44 = vsub.f32 1.0, %v2556_v63  ;;  %v2348_v11 = vadd.f32 %v2274_v8, %v2114_v24  ;;  %v1951_v48 = vpack.c.bf16 %v4646_v40, %v4645_v9  ;;  %vm2562_vm7 = vmor %vm2560_vm6, %vm2561_vm5  ;;  %vm2565_vm8 = vcmp.eq.f32.partialorder %v2564_v7, 8.507059e+37 }
 0x27c   : > { %v2567_v17 = vor.u32 1.1754944e-38, %v2566_v13  ;;  %v2185_v63 = vpack.c.bf16 %v4706_v2, %v4705_v39  ;;  %v3020_v8 = vmul.f32 %v2553_v38, %v6074_v1  ;;  %v318_v1 = vld [vmem:[%s5905_s11 + $0x90] sm:$0xff]  ;;  %v2579_v7 = vand.u32 2147483647, %v6108_v30 }
 0x27d   : > { %v2558_v62 = vmul.f32 %v4908_v54, %v2557_v44  ;;  %v6124_v0 = vadd.f32 %v6063_v25, %v2348_v11  ;;  %vm2575_vm10 = vweird.f32 %v6108_v30 }
 0x27e   : > { %v3052_v2 = vadd.f32 %v3020_v8, %v5916_v43  ;;  %vm2580_vm12 = vcmp.eq.f32.partialorder %v2579_v7, 8.507059e+37 }
 0x27f   : > { %v4910_v31 = vpop.eup %4909  ;;  %v2559_v22 = vadd.f32 %v4908_v54, %v2558_v62  ;;  %v4747_v60 = vmul.f32 -1.442695, %v6124_v0 }
 0x280   : > { %v4912_v20 = vpop.eup %4911  ;;  %v6126_v27 = vadd.f32 1.0, %v4910_v31  ;;  %v2042_v53 = vpop.f32.mrf.mxu3 }
 0x281   : > { %v2563_v37 = vsel %vm2562_vm7, %v4908_v54, %v2559_v22  ;;  %v2571_v62 = vmul.f32 %v4912_v20, %v6108_v30  ;;  %v2115_v31 = vadd.f32 %v2042_v53, %v5784_v26  ;;  %v319_v54 = vld [vmem:[%s5905_s11 + $0x98] sm:$0xff]  ;;  %vm2576_vm9 = vweird.f32 %v4912_v20 }
 0x282   : > { %v2279_v11 = vpop.f32.mrf.mxu0  ;;  %v2568_v49 = vsel %vm2565_vm8, %v2567_v17, %v2563_v37  ;;  %4913 = vrcp.f32 %v6126_v27  ;;  %v3113_v24 = vpack.c.bf16 %v319_v54, %v318_v1  ;;  %v2581_v26 = vand.u32 2147483648, %v6108_v30  ;;  %vm6147_vm11 = vmor %vm2575_vm10, %vm2576_vm9  ;;  %v3145_v37 = vpop.permute.xlu1 %3144 }
 0x283   : > { %v3021_v9 = vmul.f32 %v2568_v49, %v6085_v16  ;;  %v2572_v40 = vsub.f32 1.0, %v2571_v62  ;;  %4915 = vpow2.f32 %v4747_v60  ;;  %v2349_v44 = vadd.f32 %v2276_v36, %v2115_v31 }
 0x284   : > { %3158 = vrot.lane.b32.xlu0 %v3113_v24, %s5183_s14  ;;  %v2582_v62 = vor.u32 1.1754944e-38, %v2581_v26  ;;  %vm2590_vm14 = vweird.f32 %v6126_v27  ;;  %v6175_v26 = vld [vmem:[%s5905_s11 + $0x80] sm:$0xff] }
 0x285   : > { %4738 = vmatmul.msk.bf16.gmra.mxu0 %vm449_vm0, %v2185_v63  ;;  %v3053_v39 = vadd.f32 %v3021_v9, %v5919_v45  ;;  %v2573_v38 = vmul.f32 %v4912_v20, %v2572_v40  ;;  %4678 = vmatmul.msk.bf16.gmra.mxu3 %vm449_vm0, %v1951_v48  ;;  %v6144_v43 = vadd.f32 %v6063_v25, %v2349_v44  ;;  %v2596_v9 = vand.u32 2147483648, %v6126_v27  ;;  %v4648_v40 = vld [vmem:[%s5259_s20 + $0x159] sm:$0xff] }
 0x286   : > { %4785 = vmatmul.msk.bf16.gmra.mxu1 %vm449_vm0, %v3145_v37 }
 0x287   : > { %v3084_v21 = vpack.c.bf16 %v3053_v39, %v3052_v2  ;;  %v2574_v16 = vadd.f32 %v4912_v20, %v2573_v38  ;;  %v4748_v8 = vmul.f32 -1.442695, %v6144_v43  ;;  %v4708_v38 = vld [vmem:[%s5259_s20 + $0x15a] sm:$0xff] }
 0x288   : > { %v4914_v13 = vpop.eup %4913  ;;  %v2045_v45 = vpop.f32.mrf.mxu3 }
 0x289   : > { %v4916_v22 = vpop.eup %4915  ;;  %v2586_v36 = vmul.f32 %v4914_v13, %v6126_v27  ;;  %v2116_v17 = vadd.f32 %v2045_v45, %v5789_v59  ;;  %4807 = vmatmul.msk.bf16.vlgmr.msra.gmra.mxu2 %vm449_vm0, %v3084_v21  ;;  %v2578_v53 = vsel %vm6147_vm11, %v4912_v20, %v2574_v16  ;;  %vm2591_vm13 = vweird.f32 %v4914_v13  ;;  %v4647_v20 = vld [vmem:[%s5259_s20 + $0x151] sm:$0xff]  ;;  %v6178_v45 = vld [vmem:[%s5905_s11 + $0x88] sm:$0xff] }
 0x28a   : > { %v2281_v30 = vpop.f32.mrf.mxu0  ;;  %v6156_v63 = vadd.f32 1.0, %v4916_v22  ;;  %v2594_v59 = vand.u32 2147483647, %v6126_v27  ;;  %v2583_v31 = vsel %vm2580_vm12, %v2582_v62, %v2578_v53  ;;  %v1952_v44 = vpack.c.bf16 %v4648_v40, %v4647_v20  ;;  %vm2592_vm15 = vmor %vm2590_vm14, %vm2591_vm13 }
 0x28b   : > { %v2587_v60 = vsub.f32 1.0, %v2586_v36  ;;  %v2350_v49 = vadd.f32 %v2279_v11, %v2116_v17  ;;  %v4707_v11 = vld [vmem:[%s5259_s20 + $0x152] sm:$0xff]  ;;  %v3022_v24 = vmul.f32 %v2583_v31, %v6095_v14  ;;  %v2597_v21 = vor.u32 1.1754944e-38, %v2596_v9  ;;  %v321_v31 = vld [vmem:[%s5905_s11 + $0xa8] sm:$0xff] }
 0x28c   : > { %4917 = vrcp.f32 %v6156_v63  ;;  %vm2595_vm1 = vcmp.eq.f32.partialorder %v2594_v59, 8.507059e+37  ;;  %v2186_v7 = vpack.c.bf16 %v4708_v38, %v4707_v11  ;;  %v3112_v36 = vpack.c.bf16 %v6178_v45, %v6175_v26 }
 0x28d   : > { %v2588_v2 = vmul.f32 %v4914_v13, %v2587_v60  ;;  %4919 = vpow2.f32 %v4748_v8  ;;  %v6166_v39 = vadd.f32 %v6063_v25, %v2350_v49  ;;  %vm2605_vm3 = vweird.f32 %v6156_v63 }
 0x28e   : > { %3156 = vrot.lane.b32.xlu2 %v3112_v36, %s5183_s14 }
 0x28f   : > { %v2589_v1 = vadd.f32 %v4914_v13, %v2588_v2  ;;  %v4749_v54 = vmul.f32 -1.442695, %v6166_v39  ;;  %v1650_v2 = vadd.f32 %v5802_v58, %v5813_v23 }
 0x290   : > { %v2047_v16 = vpop.f32.mrf.mxu3 }
 0x291   : > { %v2593_v22 = vsel %vm2592_vm15, %v4914_v13, %v2589_v1  ;;  %4921 = vpow2.f32 %v4749_v54  ;;  %v2117_v48 = vadd.f32 %v2047_v16, %v5799_v3  ;;  %v3054_v3 = vadd.f32 %v3022_v24, %v5941_v10  ;;  %v320_v10 = vld [vmem:[%s5905_s11 + $0xa0] sm:$0xff]  ;;  %v4650_v24 = vld [vmem:[%s5259_s20 + $0x171] sm:$0xff] }
 0x292   : > { %v2284_v27 = vpop.f32.mrf.mxu0  ;;  %v6183_v17 = vpop.eup %4917  ;;  %v2598_v14 = vsel %vm2595_vm1, %v2597_v21, %v2593_v22  ;;  %v3114_v38 = vpack.c.bf16 %v321_v31, %v320_v10  ;;  %v4709_v16 = vld [vmem:[%s5259_s20 + $0x16a] sm:$0xff]  ;;  %v1885_v58 = vadd.f32 %v5811_v46, %v1650_v2 }
 0x293   : > { %v4920_v53 = vpop.eup %4919  ;;  %v3023_v8 = vmul.f32 %v2598_v14, %v6103_v12  ;;  %v2601_v37 = vmul.f32 %v6183_v17, %v6156_v63  ;;  %v2351_v62 = vadd.f32 %v2281_v30, %v2117_v48  ;;  %v3147_v22 = vpop.permute.xlu1 %3146  ;;  %vm2606_vm2 = vweird.f32 %v6183_v17 }
 0x294   : > { %v6189_v13 = vadd.f32 1.0, %v4920_v53  ;;  %3160 = vrot.lane.b32.xlu1 %v3114_v38, %s5183_s14  ;;  %vm6233_vm4 = vmor %vm2605_vm3, %vm2606_vm2 }
 0x295   : > { %4739 = vmatmul.msk.bf16.gmra.mxu0 %vm449_vm0, %v2186_v7  ;;  %v6194_v60 = vadd.f32 %v6063_v25, %v2351_v62  ;;  %4679 = vmatmul.msk.bf16.gmra.mxu3 %vm449_vm0, %v1952_v44  ;;  %v3055_v12 = vadd.f32 %v3023_v8, %v5944_v47  ;;  %v2602_v49 = vsub.f32 1.0, %v2601_v37  ;;  %v4649_v44 = vld [vmem:[%s5259_s20 + $0x169] sm:$0xff]  ;;  %v4710_v7 = vld [vmem:[%s5259_s20 + $0x172] sm:$0xff]  ;;  %v2609_v62 = vand.u32 2147483647, %v6156_v63 }
 0x296   : > { %4923 = vrcp.f32 %v6189_v13  ;;  %v1953_v36 = vpack.c.bf16 %v4650_v24, %v4649_v44  ;;  %4786 = vmatmul.msk.bf16.gmra.mxu1 %vm449_vm0, %v3147_v22  ;;  %v2187_v8 = vpack.c.bf16 %v4710_v7, %v4709_v16  ;;  %vm2620_vm6 = vweird.f32 %v6189_v13 }
 0x297   : > { %v4922_v30 = vpop.eup %4921  ;;  %v4750_v59 = vmul.f32 -1.442695, %v6194_v60  ;;  %v3085_v9 = vpack.c.bf16 %v3055_v12, %v3054_v3  ;;  %v2603_v1 = vmul.f32 %v6183_v17, %v2602_v49  ;;  %v2624_v3 = vand.u32 2147483647, %v6189_v13 }
 0x298   : > { %v6200_v20 = vadd.f32 1.0, %v4922_v30  ;;  %v2050_v40 = vpop.f32.mrf.mxu3  ;;  %v2626_v12 = vand.u32 2147483648, %v6189_v13  ;;  %vm2610_vm7 = vcmp.eq.f32.partialorder %v2609_v62, 8.507059e+37 }
 0x299   : > { %4925 = vpow2.f32 %v4750_v59  ;;  %v2118_v47 = vadd.f32 %v2050_v40, %v5806_v6  ;;  %4808 = vmatmul.msk.bf16.gmra.mxu2 %vm449_vm0, %v3085_v9  ;;  %v2604_v48 = vadd.f32 %v6183_v17, %v2603_v1  ;;  %vm2625_vm9 = vcmp.eq.f32.partialorder %v2624_v3, 8.507059e+37 }
 0x29a   : > { %v2286_v11 = vpop.f32.mrf.mxu0  ;;  %4927 = vrcp.f32 %v6200_v20  ;;  %v2627_v1 = vor.u32 1.1754944e-38, %v2626_v12  ;;  %vm2635_vm11 = vweird.f32 %v6200_v20 }
 0x29b   : > { %v2352_v54 = vadd.f32 %v2284_v27, %v2118_v47  ;;  %v2611_v27 = vand.u32 2147483648, %v6156_v63  ;;  %v2608_v63 = vsel %vm6233_vm4, %v6183_v17, %v2604_v48 }
 0x29c   : > { %v4924_v21 = vpop.eup %4923 }
 0x29d   : > { %v2616_v6 = vmul.f32 %v4924_v21, %v6189_v13  ;;  %v6218_v23 = vadd.f32 %v6063_v25, %v2352_v54  ;;  %vm2621_vm5 = vweird.f32 %v4924_v21  ;;  %v2612_v31 = vor.u32 1.1754944e-38, %v2611_v27 }
 0x29e   : > { %vm2622_vm8 = vmor %vm2620_vm6, %vm2621_vm5  ;;  %v2639_v13 = vand.u32 2147483647, %v6200_v20 }
 0x29f   : > { %v4926_v14 = vpop.eup %4925  ;;  %v2617_v53 = vsub.f32 1.0, %v2616_v6  ;;  %v4751_v46 = vmul.f32 -1.442695, %v6218_v23  ;;  %v2613_v54 = vsel %vm2610_vm7, %v2612_v31, %v2608_v63  ;;  %v4711_v63 = vld [vmem:[%s5259_s20 + $0x182] sm:$0xff]  ;;  %v4712_v31 = vld [vmem:[%s5259_s20 + $0x18a] sm:$0xff] }
 0x2a0   : > { %v4928_v37 = vpop.eup %4927  ;;  %v6229_v49 = vadd.f32 1.0, %v4926_v14  ;;  %v2052_v30 = vpop.f32.mrf.mxu3  ;;  %v3024_v27 = vmul.f32 %v2613_v54, %v6124_v0  ;;  %v1652_v0 = vadd.f32 %v5821_v61, %v5832_v19  ;;  %vm2640_vm13 = vcmp.eq.f32.partialorder %v2639_v13, 8.507059e+37  ;;  %v4651_v61 = vld [vmem:[%s5259_s20 + $0x181] sm:$0xff]  ;;  %v4652_v19 = vld [vmem:[%s5259_s20 + $0x189] sm:$0xff] }
 0x2a1   : > { %v2618_v9 = vmul.f32 %v4924_v21, %v2617_v53  ;;  %v2631_v40 = vmul.f32 %v4928_v37, %v6200_v20  ;;  %4929 = vpow2.f32 %v4751_v46  ;;  %v2119_v38 = vadd.f32 %v2052_v30, %v1885_v58 }
 0x2a2   : > { %v2289_v10 = vpop.f32.mrf.mxu0  ;;  %4931 = vrcp.f32 %v6229_v49  ;;  %vm2636_vm10 = vweird.f32 %v4928_v37  ;;  %v2641_v58 = vand.u32 2147483648, %v6200_v20  ;;  %v3056_v3 = vadd.f32 %v3024_v27, %v5966_v42 }
 0x2a3   : > { %v2619_v2 = vadd.f32 %v4924_v21, %v2618_v9  ;;  %v2632_v47 = vsub.f32 1.0, %v2631_v40  ;;  %v2353_v16 = vadd.f32 %v2286_v11, %v2119_v38  ;;  %vm6255_vm12 = vmor %vm2635_vm11, %vm2636_vm10  ;;  %v2656_v12 = vand.u32 2147483648, %v6229_v49 }
 0x2a4   : > { %v2642_v20 = vor.u32 1.1754944e-38, %v2641_v58  ;;  %v2654_v40 = vand.u32 2147483647, %v6229_v49  ;;  %v1887_v42 = vadd.f32 %v5830_v41, %v1652_v0  ;;  %vm2650_vm15 = vweird.f32 %v6229_v49 }
 0x2a5   : > { %4740 = vmatmul.msk.bf16.gmra.mxu0 %vm449_vm0, %v2187_v8  ;;  %v2623_v44 = vsel %vm2622_vm8, %v4924_v21, %v2619_v2  ;;  %v2633_v24 = vmul.f32 %v4928_v37, %v2632_v47  ;;  %4680 = vmatmul.msk.bf16.gmra.mxu3 %vm449_vm0, %v1953_v36  ;;  %v6248_v22 = vadd.f32 %v6063_v25, %v2353_v16  ;;  %v3149_v2 = vpop.permute.xlu2 %3148 }
 0x2a6   : > { %v2628_v17 = vsel %vm2625_vm9, %v2627_v1, %v2623_v44  ;;  %4787 = vmatmul.msk.bf16.gmra.mxu1 %vm449_vm0, %v3149_v2  ;;  %v2657_v44 = vor.u32 1.1754944e-38, %v2656_v12  ;;  %v2188_v16 = vpack.c.bf16 %v4712_v31, %v4711_v63  ;;  %vm2655_vm2 = vcmp.eq.f32.partialorder %v2654_v40, 8.507059e+37 }
 0x2a7   : > { %v4930_v7 = vpop.eup %4929  ;;  %v2634_v6 = vadd.f32 %v4928_v37, %v2633_v24  ;;  %v3025_v21 = vmul.f32 %v2628_v17, %v6144_v43  ;;  %v4752_v46 = vmul.f32 -1.442695, %v6248_v22 }
 0x2a8   : > { %v4932_v48 = vpop.eup %4931  ;;  %v6253_v11 = vadd.f32 1.0, %v4930_v7  ;;  %v2055_v36 = vpop.f32.mrf.mxu3 }
 0x2a9   : > { %v2646_v53 = vmul.f32 %v4932_v48, %v6229_v49  ;;  %v2638_v43 = vsel %vm6255_vm12, %v4928_v37, %v2634_v6  ;;  %v2120_v30 = vadd.f32 %v2055_v36, %v5825_v34  ;;  %v3057_v59 = vadd.f32 %v3025_v21, %v5969_v4 }
 0x2aa   : > { %v2291_v8 = vpop.f32.mrf.mxu0  ;;  %4933 = vrcp.f32 %v6253_v11  ;;  %v2643_v9 = vsel %vm2640_vm13, %v2642_v20, %v2638_v43  ;;  %vm2651_vm14 = vweird.f32 %v4932_v48  ;;  %v1954_v34 = vpack.c.bf16 %v4652_v19, %v4651_v61  ;;  %v324_v20 = vld [vmem:[%s5905_s11 + $0xc0] sm:$0xff] }
 0x2ab   : > { %v2647_v62 = vsub.f32 1.0, %v2646_v53  ;;  %4935 = vpow2.f32 %v4752_v46  ;;  %v2354_v47 = vadd.f32 %v2289_v10, %v2120_v30  ;;  %v3086_v38 = vpack.c.bf16 %v3057_v59, %v3056_v3  ;;  %vm2652_vm1 = vmor %vm2650_vm15, %vm2651_vm14 }
 0x2ac   : > { %v3026_v54 = vmul.f32 %v2643_v9, %v6166_v39  ;;  %v2669_v0 = vand.u32 2147483647, %v6253_v11  ;;  %vm2665_vm4 = vweird.f32 %v6253_v11  ;;  %v4653_v9 = vld [vmem:[%s5259_s20 + $0x199] sm:$0xff] }
 0x2ad   : > { %v2648_v37 = vmul.f32 %v4932_v48, %v2647_v62  ;;  %v6282_v24 = vadd.f32 %v6063_v25, %v2354_v47  ;;  %4809 = vmatmul.msk.bf16.gmra.mxu2 %vm449_vm0, %v3086_v38  ;;  %v325_v62 = vld [vmem:[%s5905_s11 + $0xc8] sm:$0xff] }
 0x2ae   : > { %v3058_v14 = vadd.f32 %v3026_v54, %v5991_v15  ;;  %v1654_v15 = vadd.f32 %v5840_v33, %v5853_v55  ;;  %v3116_v30 = vpack.c.bf16 %v325_v62, %v324_v20  ;;  %v2671_v33 = vand.u32 2147483648, %v6253_v11  ;;  %v4714_v38 = vld [vmem:[%s5259_s20 + $0x1a2] sm:$0xff] }
 0x2af   : > { %v2649_v1 = vadd.f32 %v4932_v48, %v2648_v37  ;;  %v4753_v39 = vmul.f32 -1.442695, %v6282_v24  ;;  %v4654_v37 = vld [vmem:[%s5259_s20 + $0x1a1] sm:$0xff]  ;;  %vm6327_vm6 = vcmp.eq.f32.partialorder %v2669_v0, 8.507059e+37 }
 0x2b0   : > { %v6278_v4 = vpop.eup %4933  ;;  %v2057_v10 = vpop.f32.mrf.mxu3  ;;  %3164 = vrot.lane.b32.xlu0 %v3116_v30, %s5183_s14  ;;  %v1889_v40 = vadd.f32 %v5851_v5, %v1654_v15  ;;  %v4713_v5 = vld [vmem:[%s5259_s20 + $0x19a] sm:$0xff]  ;;  %v1955_v54 = vpack.c.bf16 %v4654_v37, %v4653_v9  ;;  %v326_v9 = vld [vmem:[%s5905_s11 + $0xd0] sm:$0xff] }
 0x2b1   : > { %v4936_v17 = vpop.eup %4935  ;;  %v2653_v7 = vsel %vm2652_vm1, %v4932_v48, %v2649_v1  ;;  %v2661_v41 = vmul.f32 %v6278_v4, %v6253_v11  ;;  %v2121_v49 = vadd.f32 %v2057_v10, %v1887_v42  ;;  %vm2666_vm3 = vweird.f32 %v6278_v4  ;;  %v3151_v42 = vpop.permute.xlu2 %3150  ;;  %v327_v37 = vld [vmem:[%s5905_s11 + $0xd8] sm:$0xff] }
 0x2b2   : > { %v2294_v6 = vpop.f32.mrf.mxu0  ;;  %v2658_v13 = vsel %vm2655_vm2, %v2657_v44, %v2653_v7  ;;  %v6287_v58 = vadd.f32 1.0, %v4936_v17  ;;  %vm6318_vm5 = vmor %vm2665_vm4, %vm2666_vm3  ;;  %v2672_v1 = vor.u32 1.1754944e-38, %v2671_v33 }
 0x2b3   : > { %v3027_v27 = vmul.f32 %v2658_v13, %v6194_v60  ;;  %v2662_v21 = vsub.f32 1.0, %v2661_v41  ;;  %v2355_v36 = vadd.f32 %v2291_v8, %v2121_v49  ;;  %v2189_v49 = vpack.c.bf16 %v4714_v38, %v4713_v5  ;;  %v6351_v13 = vld [vmem:[%s5905_s11 + $0xb8] sm:$0xff] }
 0x2b4   : > { %4937 = vrcp.f32 %v6287_v58  ;;  %v2684_v10 = vand.u32 2147483647, %v6287_v58  ;;  %vm2680_vm8 = vweird.f32 %v6287_v58  ;;  %v3117_v38 = vpack.c.bf16 %v327_v37, %v326_v9 }
 0x2b5   : > { %4741 = vmatmul.msk.bf16.gmra.mxu0 %vm449_vm0, %v2188_v16  ;;  %v2663_v48 = vmul.f32 %v6278_v4, %v2662_v21  ;;  %4939 = vpow2.f32 %v4753_v39  ;;  %v6296_v53 = vadd.f32 %v6063_v25, %v2355_v36  ;;  %4681 = vmatmul.msk.bf16.gmra.mxu3 %vm449_vm0, %v1954_v34  ;;  %v3059_v60 = vadd.f32 %v3027_v27, %v5994_v52 }
 0x2b6   : > { %v2686_v34 = vand.u32 2147483648, %v6287_v58  ;;  %4788 = vmatmul.msk.bf16.gmra.mxu1 %vm449_vm0, %v3151_v42  ;;  %vm2685_vm10 = vcmp.eq.f32.partialorder %v2684_v10, 8.507059e+37  ;;  %3166 = vrot.lane.b32.xlu1 %v3117_v38, %s5183_s14 }
 0x2b7   : > { %v4754_v46 = vmul.f32 -1.442695, %v6296_v53  ;;  %v3087_v8 = vpack.c.bf16 %v3059_v60, %v3058_v14  ;;  %v2664_v3 = vadd.f32 %v6278_v4, %v2663_v48 }
 0x2b8   : > { %v2060_v43 = vpop.f32.mrf.mxu3 }
 0x2b9   : > { %4941 = vpow2.f32 %v4754_v46  ;;  %v2122_v52 = vadd.f32 %v2060_v43, %v5846_v50  ;;  %v2668_v11 = vsel %vm6318_vm5, %v6278_v4, %v2664_v3 }
 0x2ba   : > { %v2296_v12 = vpop.f32.mrf.mxu0  ;;  %v4938_v59 = vpop.eup %4937  ;;  %v2673_v17 = vsel %vm6327_vm6, %v2672_v1, %v2668_v11 }
 0x2bb   : > { %v4940_v55 = vpop.eup %4939  ;;  %v2676_v61 = vmul.f32 %v4938_v59, %v6287_v58  ;;  %v2356_v19 = vadd.f32 %v2294_v6, %v2122_v52  ;;  %vm2681_vm7 = vweird.f32 %v4938_v59  ;;  %v6348_v6 = vld [vmem:[%s5905_s11 + $0xb0] sm:$0xff]  ;;  %v2687_v58 = vor.u32 1.1754944e-38, %v2686_v34 }
 0x2bc   : > { %v6322_v63 = vadd.f32 1.0, %v4940_v55  ;;  %v3115_v36 = vpack.c.bf16 %v6351_v13, %v6348_v6  ;;  %vm2682_vm9 = vmor %vm2680_vm8, %vm2681_vm7  ;;  %v3028_v46 = vmul.f32 %v2673_v17, %v6218_v23 }
 0x2bd   : > { %v2677_v2 = vsub.f32 1.0, %v2676_v61  ;;  %v6332_v47 = vadd.f32 %v6063_v25, %v2356_v19  ;;  %4810 = vmatmul.msk.bf16.gmra.mxu2 %vm449_vm0, %v3087_v8 }
 0x2be   : > { %4943 = vrcp.f32 %v6322_v63  ;;  %3162 = vrot.lane.b32.xlu2 %v3115_v36, %s5183_s14  ;;  %v2699_v20 = vand.u32 2147483647, %v6322_v63  ;;  %v2701_v30 = vand.u32 2147483648, %v6322_v63  ;;  %vm2695_vm12 = vweird.f32 %v6322_v63 }
 0x2bf   : > { %v4942_v4 = vpop.eup %4941  ;;  %v2678_v44 = vmul.f32 %v4938_v59, %v2677_v2  ;;  %v4755_v16 = vmul.f32 -1.442695, %v6332_v47 }
 0x2c0   : > { %v6344_v7 = vadd.f32 1.0, %v4942_v4  ;;  %v2062_v41 = vpop.f32.mrf.mxu3  ;;  %vm6377_vm13 = vcmp.eq.f32.partialorder %v2699_v20, 8.507059e+37  ;;  %v2702_v31 = vor.u32 1.1754944e-38, %v2701_v30 }
 0x2c1   : > { %v2679_v39 = vadd.f32 %v4938_v59, %v2678_v44  ;;  %4945 = vpow2.f32 %v4755_v16  ;;  %v2123_v27 = vadd.f32 %v2062_v41, %v1889_v40  ;;  %v3153_v34 = vpop.permute.xlu0 %3152 }
 0x2c2   : > { %v2299_v21 = vpop.f32.mrf.mxu0  ;;  %4947 = vrcp.f32 %v6344_v7  ;;  %v2714_v2 = vand.u32 2147483647, %v6344_v7  ;;  %v2716_v5 = vand.u32 2147483648, %v6344_v7  ;;  %vm2710_vm1 = vweird.f32 %v6344_v7 }
 0x2c3   : > { %v2683_v14 = vsel %vm2682_vm9, %v4938_v59, %v2679_v39  ;;  %v2357_v48 = vadd.f32 %v2296_v12, %v2123_v27 }
 0x2c4   : > { %v4944_v60 = vpop.eup %4943  ;;  %v2688_v8 = vsel %vm2685_vm10, %v2687_v58, %v2683_v14  ;;  %v2717_v17 = vor.u32 1.1754944e-38, %v2716_v5  ;;  %vm2715_vm3 = vcmp.eq.f32.partialorder %v2714_v2, 8.507059e+37  ;;  %v7557_v5 = vld [vmem:[#allocation4_spill] sm:$0xff] }
 0x2c5   : > { %4742 = vmatmul.msk.bf16.gmra.mxu0 %vm449_vm0, %v2189_v49  ;;  %v3029_v15 = vmul.f32 %v2688_v8, %v6248_v22  ;;  %v2691_v0 = vmul.f32 %v4944_v60, %v6322_v63  ;;  %v6363_v43 = vadd.f32 %v6063_v25, %v2357_v48  ;;  %4682 = vmatmul.msk.bf16.gmra.mxu3 %vm449_vm0, %v1955_v54  ;;  %vm2696_vm11 = vweird.f32 %v4944_v60 }
 0x2c6   : > { %v3060_v22 = vadd.f32 %v3028_v46, %v6037_v35  ;;  %vm2697_vm14 = vmor %vm2695_vm12, %vm2696_vm11  ;;  %v1656_v54 = vadd.f32 %v5860_v56, %v5871_v18  ;;  %4789 = vmatmul.msk.bf16.gmra.mxu1 %vm449_vm0, %v3153_v34 }
 0x2c7   : > { %v4946_v62 = vpop.eup %4945  ;;  %v3061_v3 = vadd.f32 %v3029_v15, %v6040_v51  ;;  %v2692_v23 = vsub.f32 1.0, %v2691_v0  ;;  %v4756_v52 = vmul.f32 -1.442695, %v6363_v43 }
 0x2c8   : > { %v4948_v12 = vpop.eup %4947  ;;  %v6371_v59 = vadd.f32 1.0, %v4946_v62  ;;  %v2065_v33 = vpop.f32.mrf.mxu3 }
 0x2c9   : > { %v2693_v55 = vmul.f32 %v4944_v60, %v2692_v23  ;;  %v2706_v61 = vmul.f32 %v4948_v12, %v6344_v7  ;;  %4949 = vpow2.f32 %v4756_v52  ;;  %v2124_v50 = vadd.f32 %v2065_v33, %v5866_v29  ;;  %v7552_v23 = vld [vmem:[#allocation3_spill] sm:$0xff] }
 0x2ca   : > { %v2301_v19 = vpop.f32.mrf.mxu0  ;;  %4951 = vrcp.f32 %v6371_v59  ;;  %v3088_v11 = vpack.c.bf16 %v3061_v3, %v3060_v22  ;;  %vm2711_vm15 = vweird.f32 %v4948_v12  ;;  %v2731_v0 = vand.u32 2147483648, %v6371_v59  ;;  %v7554_v22 = vld [vmem:[#allocation2_spill] sm:$0xff] }
 0x2cb   : > { %v2694_v35 = vadd.f32 %v4944_v60, %v2693_v55  ;;  %v2707_v40 = vsub.f32 1.0, %v2706_v61  ;;  %v2358_v1 = vadd.f32 %v2299_v21, %v2124_v50  ;;  %vm2712_vm2 = vmor %vm2710_vm1, %vm2711_vm15  ;;  %v1891_v21 = vadd.f32 %v5869_v32, %v1656_v54 }
 0x2cc   : > { %vm2725_vm5 = vweird.f32 %v6371_v59  ;;  %v2729_v3 = vand.u32 2147483647, %v6371_v59  ;;  %v2732_v9 = vor.u32 1.1754944e-38, %v2731_v0  ;;  %v7558_v0 = vld [vmem:[#allocation7_spill] sm:$0xff] }
 0x2cd   : > { %v2698_v42 = vsel %vm2697_vm14, %v4944_v60, %v2694_v35  ;;  %v2708_v63 = vmul.f32 %v4948_v12, %v2707_v40  ;;  %v6393_v10 = vadd.f32 %v6063_v25, %v2358_v1  ;;  %4811 = vmatmul.msk.bf16.gmra.mxu2 %vm449_vm0, %v3088_v11 }
 0x2ce   : > { %v2703_v4 = vsel %vm6377_vm13, %v2702_v31, %v2698_v42  ;;  %vm2730_vm7 = vcmp.eq.f32.partialorder %v2729_v3, 8.507059e+37  ;;  %v3155_v31 = vpop.permute.xlu1 %3154  ;;  %v7559_v3 = vld [vmem:[#allocation9_spill] sm:$0xff] }
 0x2cf   : > { %v4950_v29 = vpop.eup %4949  ;;  %v2709_v44 = vadd.f32 %v4948_v12, %v2708_v63  ;;  %v3030_v18 = vmul.f32 %v2703_v4, %v6282_v24  ;;  %v4757_v14 = vmul.f32 -1.442695, %v6393_v10 }
 0x2d0   : > { %v4952_v16 = vpop.eup %4951  ;;  %v2521_v41 = vadd.f32 1.0, %v4950_v29  ;;  %v2067_v56 = vpop.f32.mrf.mxu3 }
 0x2d1   : > { %v2713_v49 = vsel %vm2712_vm2, %v4948_v12, %v2709_v44  ;;  %v2721_v39 = vmul.f32 %v4952_v16, %v6371_v59  ;;  %v2125_v48 = vadd.f32 %v2067_v56, %v1891_v21  ;;  %v3062_v60 = vadd.f32 %v3030_v18, %v6066_v57  ;;  %v7553_v12 = vld [vmem:[#allocation5_spill] sm:$0xff] }
 0x2d2   : > { %v2304_v27 = vpop.f32.mrf.mxu0  ;;  %v2718_v7 = vsel %vm2715_vm3, %v2717_v17, %v2713_v49  ;;  %4953 = vrcp.f32 %v2521_v41  ;;  %vm2726_vm4 = vweird.f32 %v4952_v16  ;;  %v1658_v30 = vadd.f32 %v7554_v22, %v7553_v12  ;;  %v5155_v49 = vld [vmem:[%s5905_s11 + $0x60] sm:$0xff] }
 0x2d3   : > { %v3031_v36 = vmul.f32 %v2718_v7, %v6296_v53  ;;  %v2722_v58 = vsub.f32 1.0, %v2721_v39  ;;  %4955 = vpow2.f32 %v4757_v14  ;;  %v2359_v8 = vadd.f32 %v2301_v19, %v2125_v48  ;;  %vm6412_vm6 = vmor %vm2725_vm5, %vm2726_vm4 }
 0x2d4   : > { %v2744_v51 = vand.u32 2147483647, %v2521_v41  ;;  %v2746_v35 = vand.u32 2147483648, %v2521_v41  ;;  %v1893_v38 = vadd.f32 %v7557_v5, %v1658_v30  ;;  %vm2740_vm9 = vweird.f32 %v2521_v41 }
 0x2d5   : > { %v3063_v46 = vadd.f32 %v3031_v36, %v6069_v28  ;;  %v2723_v24 = vmul.f32 %v4952_v16, %v2722_v58  ;;  %v6405_v62 = vadd.f32 %v6063_v25, %v2359_v8  ;;  %v6452_v8 = vpop.f32.mrf.mxu1 }
 0x2d6   : > { %4790 = vmatmul.msk.bf16.gmra.mxu1 %vm449_vm0, %v3155_v31  ;;  %vm2745_vm11 = vcmp.eq.f32.partialorder %v2744_v51, 8.507059e+37  ;;  %v2747_v1 = vor.u32 1.1754944e-38, %v2746_v35 }
 0x2d7   : > { %v2724_v15 = vadd.f32 %v4952_v16, %v2723_v24  ;;  %v3089_v32 = vpack.c.bf16 %v3063_v46, %v3062_v60  ;;  %v4758_v55 = vmul.f32 -1.442695, %v6405_v62  ;;  %v330_v24 = vld [vmem:[%s5905_s11 + $0xf0] sm:$0xff] }
 0x2d8   : > { %v4954_v20 = vpop.eup %4953  ;;  %v2070_v53 = vpop.f32.mrf.mxu3 }
 0x2d9   : > { %v2736_v57 = vmul.f32 %v4954_v20, %v2521_v41  ;;  %v2126_v28 = vadd.f32 %v2070_v53, %v7552_v23  ;;  %v4956_v61 = vpop.eup %4955  ;;  %v2728_v19 = vsel %vm6412_vm6, %v4952_v16, %v2724_v15  ;;  %4957 = vpow2.f32 %v4758_v55  ;;  %v331_v53 = vld [vmem:[%s5905_s11 + $0xf8] sm:$0xff] }
 0x2da   : > { %v2306_v52 = vpop.f32.mrf.mxu0  ;;  %v6419_v40 = vadd.f32 1.0, %v4956_v61  ;;  %vm2741_vm8 = vweird.f32 %v4954_v20  ;;  %v2733_v2 = vsel %vm2730_vm7, %v2732_v9, %v2728_v19  ;;  %v3119_v22 = vpack.c.bf16 %v331_v53, %v330_v24 }
 0x2db   : > { %v2737_v37 = vsub.f32 1.0, %v2736_v57  ;;  %v2360_v59 = vadd.f32 %v2304_v27, %v2126_v28  ;;  %vm2742_vm10 = vmor %vm2740_vm9, %vm2741_vm8  ;;  %v3032_v34 = vmul.f32 %v2733_v2, %v6332_v47  ;;  %v5156_v27 = vld [vmem:[%s5905_s11 + $0x68] sm:$0xff]  ;;  %v7560_v57 = vld [vmem:[#allocation6_spill] sm:$0xff] }
 0x2dc   : > { %4959 = vrcp.f32 %v6419_v40  ;;  %v1660_v23 = vadd.f32 %v7560_v57, %v7559_v3  ;;  %v2761_v55 = vand.u32 2147483648, %v6419_v40  ;;  %3170 = vrot.lane.b32.xlu0 %v3119_v22, %s5183_s14  ;;  %vm2755_vm13 = vweird.f32 %v6419_v40 }
 0x2dd   : > { %v2738_v50 = vmul.f32 %v4954_v20, %v2737_v37  ;;  %v6422_v11 = vadd.f32 %v6063_v25, %v2360_v59  ;;  %4812 = vmatmul.msk.bf16.gmra.mxu2 %vm449_vm0, %v3089_v32  ;;  %v3064_v39 = vadd.f32 %v5155_v49, %v3032_v34  ;;  %v7561_v37 = vld [vmem:[#allocation8_spill] sm:$0xff] }
 0x2de   : > { %v1895_v59 = vadd.f32 %v7561_v37, %v1660_v23  ;;  %v2762_v34 = vor.u32 1.1754944e-38, %v2761_v55 }
 0x2df   : > { %v2739_v42 = vadd.f32 %v4954_v20, %v2738_v50  ;;  %v4759_v63 = vmul.f32 -1.442695, %v6422_v11  ;;  %v4958_v44 = vpop.eup %4957 }
 0x2e0   : > { %v2072_v25 = vpop.f32.mrf.mxu3  ;;  %v6431_v41 = vadd.f32 1.0, %v4958_v44 }
 0x2e1   : > { %v2743_v54 = vsel %vm2742_vm10, %v4954_v20, %v2739_v42  ;;  %4961 = vpow2.f32 %v4759_v63  ;;  %v2127_v4 = vadd.f32 %v2072_v25, %v1893_v38  ;;  %v328_v63 = vld [vmem:[%s5905_s11 + $0xe0] sm:$0xff] }
 0x2e2   : > { %v2309_v29 = vpop.f32.mrf.mxu0  ;;  %v2748_v16 = vsel %vm2745_vm11, %v2747_v1, %v2743_v54  ;;  %v6433_v18 = vpop.eup %4959  ;;  %4963 = vrcp.f32 %v6431_v41  ;;  %v2776_v50 = vand.u32 2147483648, %v6431_v41  ;;  %v2774_v38 = vand.u32 2147483647, %v6431_v41  ;;  %v329_v1 = vld [vmem:[%s5905_s11 + $0xe8] sm:$0xff] }
 0x2e3   : > { %v3033_v17 = vmul.f32 %v2748_v16, %v6363_v43  ;;  %v2361_v56 = vadd.f32 %v2306_v52, %v2127_v4  ;;  %v2751_v47 = vmul.f32 %v6433_v18, %v6419_v40  ;;  %v6443_v43 = vld [vmem:[%s7500_s3] ss:$0 sm:$0xff]  ;;  %v2759_v52 = vand.u32 2147483647, %v6419_v40 }
 0x2e4   : > { %vm2756_vm12 = vweird.f32 %v6433_v18  ;;  %vm2770_vm2 = vweird.f32 %v6431_v41  ;;  %v2777_v49 = vor.u32 1.1754944e-38, %v2776_v50  ;;  %vm2775_vm4 = vcmp.eq.f32.partialorder %v2774_v38, 8.507059e+37 }
 0x2e5   : > { %v3065_v21 = vadd.f32 %v5156_v27, %v3033_v17  ;;  %v6446_v7 = vadd.f32 %v6443_v43, %v2361_v56  ;;  %v2752_v58 = vsub.f32 1.0, %v2751_v47  ;;  %vm6472_vm14 = vmor %vm2755_vm13, %vm2756_vm12  ;;  %vm6476_vm15 = vcmp.eq.f32.partialorder %v2759_v52, 8.507059e+37  ;;  %v7567_v52 = vld [vmem:[#allocation13_spill] sm:$0xff] }
 0x2e6   : > { %v3118_v56 = vpack.c.bf16 %v329_v1, %v328_v63 }
 0x2e7   : > { %v4962_v36 = vpop.eup %4961  ;;  %v3090_v14 = vpack.c.bf16 %v3065_v21, %v3064_v39  ;;  %v4760_v60 = vmul.f32 -1.442695, %v6446_v7  ;;  %v2753_v15 = vmul.f32 %v6433_v18, %v2752_v58 }
 0x2e8   : > { %v6448_v48 = vadd.f32 1.0, %v4962_v36  ;;  %v2075_v46 = vpop.f32.mrf.mxu3  ;;  %v4964_v28 = vpop.eup %4963  ;;  %3168 = vrot.lane.b32.xlu2 %v3118_v56, %s5183_s14 }
 0x2e9   : > { %v2128_v32 = vadd.f32 %v2075_v46, %v7558_v0  ;;  %v2754_v30 = vadd.f32 %v6433_v18, %v2753_v15  ;;  %v2766_v33 = vmul.f32 %v4964_v28, %v6431_v41  ;;  %v3157_v19 = vpop.permute.xlu2 %3156  ;;  %vm2771_vm1 = vweird.f32 %v4964_v28  ;;  %v5158_v46 = vld [vmem:[%s5905_s11 + $0x78] sm:$0xff] }
 0x2ea   : > { %v2311_v20 = vpop.f32.mrf.mxu0  ;;  %4965 = vrcp.f32 %v6448_v48  ;;  %4791 = vmatmul.msk.bf16.gmra.mxu1 %vm449_vm0, %v3157_v19  ;;  %vm2772_vm3 = vmor %vm2770_vm2, %vm2771_vm1  ;;  %vm2785_vm6 = vweird.f32 %v6448_v48 }
 0x2eb   : > { %4967 = vpow2.f32 %v4760_v60  ;;  %v2362_v12 = vadd.f32 %v2309_v29, %v2128_v32  ;;  %v2767_v9 = vsub.f32 1.0, %v2766_v33  ;;  %v2758_v40 = vsel %vm6472_vm14, %v6433_v18, %v2754_v30  ;;  %v6494_v29 = vpop.f32.mrf.mxu1 }
 0x2ec   : > { %v2763_v18 = vsel %vm6476_vm15, %v2762_v34, %v2758_v40  ;;  %v2789_v30 = vand.u32 2147483647, %v6448_v48 }
 0x2ed   : > { %v6466_v61 = vadd.f32 %v6443_v43, %v2362_v12  ;;  %v2768_v5 = vmul.f32 %v4964_v28, %v2767_v9  ;;  %4813 = vmatmul.msk.bf16.gmra.mxu2 %vm449_vm0, %v3090_v14  ;;  %v3034_v36 = vmul.f32 %v2763_v18, %v6393_v10  ;;  %v7568_v12 = vld [vmem:[#allocation10_spill] sm:$0xff] }
 0x2ee   : > { %v1662_v22 = vadd.f32 %v7568_v12, %v7567_v52  ;;  %vm2790_vm8 = vcmp.eq.f32.partialorder %v2789_v30, 8.507059e+37 }
 0x2ef   : > { %v4761_v31 = vmul.f32 -1.442695, %v6466_v61  ;;  %v2769_v44 = vadd.f32 %v4964_v28, %v2768_v5  ;;  %v7571_v5 = vld [vmem:[#allocation12_spill] sm:$0xff] }
 0x2f0   : > { %v6482_v2 = vpop.eup %4965  ;;  %v2077_v42 = vpop.f32.mrf.mxu3  ;;  %v1897_v38 = vadd.f32 %v7571_v5, %v1662_v22 }
 0x2f1   : > { %v4968_v25 = vpop.eup %4967  ;;  %v2781_v54 = vmul.f32 %v6482_v2, %v6448_v48  ;;  %4969 = vpow2.f32 %v4761_v31  ;;  %v2129_v17 = vadd.f32 %v2077_v42, %v1895_v59  ;;  %v2773_v39 = vsel %vm2772_vm3, %v4964_v28, %v2769_v44 }
 0x2f2   : > { %v2314_v4 = vpop.f32.mrf.mxu0  ;;  %v6496_v16 = vadd.f32 1.0, %v4968_v25  ;;  %v2778_v27 = vsel %vm2775_vm4, %v2777_v49, %v2773_v39  ;;  %vm2786_vm5 = vweird.f32 %v6482_v2  ;;  %v2791_v28 = vand.u32 2147483648, %v6448_v48 }
 0x2f3   : > { %v2782_v41 = vsub.f32 1.0, %v2781_v54  ;;  %v2363_v47 = vadd.f32 %v2311_v20, %v2129_v17  ;;  %v3035_v58 = vmul.f32 %v2778_v27, %v6405_v62  ;;  %v7566_v20 = vld [vmem:[#allocation11_spill] sm:$0xff]  ;;  %v5159_v62 = vld [vmem:[%s5905_s11 + $0x70] sm:$0xff]  ;;  %v6524_v55 = vpop.f32.mrf.mxu1  ;;  %vm6526_vm7 = vmor %vm2785_vm6, %vm2786_vm5  ;;  %v6550_v27 = vpop.f32.mrf.mxu2 }
 0x2f4   : > { %4971 = vrcp.f32 %v6496_v16  ;;  %v3066_v23 = vadd.f32 %v5159_v62, %v3034_v36  ;;  %v2792_v50 = vor.u32 1.1754944e-38, %v2791_v28  ;;  %v2804_v48 = vand.u32 2147483647, %v6496_v16 }
 0x2f5   : > { %v2783_v21 = vmul.f32 %v6482_v2, %v2782_v41  ;;  %v6507_v60 = vadd.f32 %v6443_v43, %v2363_v47  ;;  %v3067_v24 = vadd.f32 %v5158_v46, %v3035_v58  ;;  %v2806_v31 = vand.u32 2147483648, %v6496_v16 }
 0x2f6   : > { %v3159_v35 = vpop.permute.xlu0 %3158  ;;  %vm2800_vm10 = vweird.f32 %v6496_v16  ;;  %vm2805_vm12 = vcmp.eq.f32.partialorder %v2804_v48, 8.507059e+37  ;;  %v7578_v48 = vld [vmem:[#allocation25_spill] sm:$0xff] }
 0x2f7   : > { %v4970_v14 = vpop.eup %4969  ;;  %v2784_v32 = vadd.f32 %v6482_v2, %v2783_v21  ;;  %v4762_v53 = vmul.f32 -1.442695, %v6507_v60  ;;  %v3091_v37 = vpack.c.bf16 %v3067_v24, %v3066_v23  ;;  %v2807_v56 = vor.u32 1.1754944e-38, %v2806_v31  ;;  %v7579_v31 = vld [vmem:[#allocation22_spill] sm:$0xff] }
 0x2f8   : > { %v6510_v15 = vadd.f32 1.0, %v4970_v14  ;;  %v2080_v0 = vpop.f32.mrf.mxu3  ;;  %v1668_v5 = vadd.f32 %v7579_v31, %v7578_v48 }
 0x2f9   : > { %v2130_v3 = vadd.f32 %v2080_v0, %v7566_v20  ;;  %v2788_v59 = vsel %vm6526_vm7, %v6482_v2, %v2784_v32  ;;  %v7573_v20 = vld [vmem:[#allocation14_spill] sm:$0xff] }
 0x2fa   : > { %v2316_v10 = vpop.f32.mrf.mxu0  ;;  %v4972_v57 = vpop.eup %4971  ;;  %4973 = vrcp.f32 %v6510_v15  ;;  %4792 = vmatmul.msk.bf16.gmra.mxu1 %vm449_vm0, %v3159_v35  ;;  %v2793_v2 = vsel %vm2790_vm8, %v2792_v50, %v2788_v59  ;;  %vm2815_vm14 = vweird.f32 %v6510_v15 }
 0x2fb   : > { %v2796_v33 = vmul.f32 %v4972_v57, %v6496_v16  ;;  %4975 = vpow2.f32 %v4762_v53  ;;  %v2364_v9 = vadd.f32 %v2314_v4, %v2130_v3  ;;  %vm2801_vm9 = vweird.f32 %v4972_v57  ;;  %v6554_v36 = vpop.f32.mrf.mxu1  ;;  %v7572_v53 = vld [vmem:[#allocation17_spill] sm:$0xff] }
 0x2fc   : > { %vm2802_vm11 = vmor %vm2800_vm10, %vm2801_vm9  ;;  %v3036_v18 = vmul.f32 %v2793_v2, %v6422_v11 }
 0x2fd   : > { %v2797_v51 = vsub.f32 1.0, %v2796_v33  ;;  %v6536_v40 = vadd.f32 %v6443_v43, %v2364_v9  ;;  %4814 = vmatmul.msk.bf16.gmra.mxu2 %vm449_vm0, %v3091_v37  ;;  %v7575_v33 = vld [vmem:[#allocation16_spill] sm:$0xff]  ;;  %v7576_v9 = vld [vmem:[#allocation21_spill] sm:$0xff]  ;;  %v7577_v37 = vld [vmem:[#allocation18_spill] sm:$0xff] }
 0x2fe   : > { %v3068_v14 = vadd.f32 %v3036_v18, %v6175_v26  ;;  %v2819_v26 = vand.u32 2147483647, %v6510_v15  ;;  %v1666_v59 = vadd.f32 %v7577_v37, %v7576_v9  ;;  %v5160_v37 = vld [vmem:[%s5905_s11 + $0x98] sm:$0xff] }
 0x2ff   : > { %v2798_v42 = vmul.f32 %v4972_v57, %v2797_v51  ;;  %v4763_v1 = vmul.f32 -1.442695, %v6536_v40  ;;  %v2821_v51 = vand.u32 2147483648, %v6510_v15 }
 0x300   : > { %v6540_v63 = vpop.eup %4973  ;;  %v2082_v25 = vpop.f32.mrf.mxu3  ;;  %vm6594_vm1 = vcmp.eq.f32.partialorder %v2819_v26, 8.507059e+37 }
 0x301   : > { %v2799_v34 = vadd.f32 %v4972_v57, %v2798_v42  ;;  %v2811_v54 = vmul.f32 %v6540_v63, %v6510_v15  ;;  %v2131_v4 = vadd.f32 %v2082_v25, %v1897_v38  ;;  %v4976_v17 = vpop.eup %4975  ;;  %4977 = vpow2.f32 %v4763_v1 }
 0x302   : > { %v2319_v44 = vpop.f32.mrf.mxu0  ;;  %v6548_v41 = vadd.f32 1.0, %v4976_v17  ;;  %vm2816_vm13 = vweird.f32 %v6540_v63 }
 0x303   : > { %v2803_v49 = vsel %vm2802_vm11, %v4972_v57, %v2799_v34  ;;  %v2365_v39 = vadd.f32 %v2316_v10, %v2131_v4  ;;  %v2812_v16 = vsub.f32 1.0, %v2811_v54  ;;  %v7574_v10 = vld [vmem:[#allocation15_spill] sm:$0xff]  ;;  %vm6590_vm15 = vmor %vm2815_vm14, %vm2816_vm13  ;;  %v6603_v34 = vpop.f32.mrf.mxu1 }
 0x304   : > { %v2808_v21 = vsel %vm2805_vm12, %v2807_v56, %v2803_v49  ;;  %4979 = vrcp.f32 %v6548_v41  ;;  %v2836_v25 = vand.u32 2147483648, %v6548_v41  ;;  %v2822_v49 = vor.u32 1.1754944e-38, %v2821_v51 }
 0x305   : > { %v3037_v47 = vmul.f32 %v2808_v21, %v6446_v7  ;;  %v6557_v58 = vadd.f32 %v6443_v43, %v2365_v39  ;;  %v2813_v24 = vmul.f32 %v6540_v63, %v2812_v16  ;;  %v1664_v7 = vadd.f32 %v7573_v20, %v7572_v53  ;;  %v7584_v20 = vld [vmem:[#allocation20_spill] sm:$0xff] }
 0x306   : > { %v3161_v50 = vpop.permute.xlu1 %3160  ;;  %vm2830_vm3 = vweird.f32 %v6548_v41 }
 0x307   : > { %v3069_v11 = vadd.f32 %v3037_v47, %v6178_v45  ;;  %v4978_v46 = vpop.eup %4977  ;;  %v4764_v0 = vmul.f32 -1.442695, %v6557_v58  ;;  %v6573_v45 = vld [vmem:[%s7503_s6] ss:$0 sm:$0xff]  ;;  %v2814_v52 = vadd.f32 %v6540_v63, %v2813_v24  ;;  %v1899_v19 = vadd.f32 %v7575_v33, %v1664_v7 }
 0x308   : > { %v2085_v32 = vpop.f32.mrf.mxu3  ;;  %v6565_v3 = vadd.f32 1.0, %v4978_v46  ;;  %v6619_v7 = vadd.f32 %v7584_v20, %v1666_v59 }
 0x309   : > { %v2132_v57 = vadd.f32 %v2085_v32, %v7574_v10  ;;  %v3092_v62 = vpack.c.bf16 %v3069_v11, %v3068_v14  ;;  %4981 = vpow2.f32 %v4764_v0  ;;  %v2818_v4 = vsel %vm6590_vm15, %v6540_v63, %v2814_v52 }
 0x30a   : > { %v2321_v23 = vpop.f32.mrf.mxu0  ;;  %v4980_v28 = vpop.eup %4979  ;;  %4983 = vrcp.f32 %v6565_v3  ;;  %4793 = vmatmul.msk.bf16.gmra.mxu1 %vm449_vm0, %v3161_v50  ;;  %v2823_v63 = vsel %vm6594_vm1, %v2822_v49, %v2818_v4  ;;  %v2837_v11 = vor.u32 1.1754944e-38, %v2836_v25  ;;  %vm2845_vm7 = vweird.f32 %v6565_v3  ;;  %v7588_v50 = vld [vmem:[#allocation19_spill] sm:$0xff]  ;;  %v5161_v4 = vld [vmem:[%s5905_s11 + $0x90] sm:$0xff] }
 0x30b   : > { %v2826_v12 = vmul.f32 %v4980_v28, %v6548_v41  ;;  %v2366_v22 = vadd.f32 %v2319_v44, %v2132_v57  ;;  %vm2831_vm2 = vweird.f32 %v4980_v28  ;;  %v6647_v31 = vpop.f32.mrf.mxu1  ;;  %v7591_v25 = vld [vmem:[#allocation31_spill] sm:$0xff] }
 0x30c   : > { %v3390_v30 = vpop.f32.mrf.mxu2  ;;  %vm2832_vm4 = vmor %vm2830_vm3, %vm2831_vm2 }
 0x30d   : > { %v3391_v35 = vadd.f32 %v3390_v30, %v6494_v29  ;;  %v2827_v38 = vsub.f32 1.0, %v2826_v12  ;;  %v6587_v42 = vadd.f32 %v6443_v43, %v2366_v22  ;;  %v2834_v29 = vand.u32 2147483647, %v6548_v41  ;;  %4815 = vmatmul.msk.bf16.gmra.mxu2 %vm449_vm0, %v3092_v62 }
 0x30e   : > { %v2851_v12 = vand.u32 2147483648, %v6565_v3 }
 0x30f   : > { %v6601_v15 = vadd.f32 %v6573_v45, %v3391_v35  ;;  %v4982_v54 = vpop.eup %4981  ;;  %v2828_v44 = vmul.f32 %v4980_v28, %v2827_v38  ;;  %v4765_v17 = vmul.f32 -1.442695, %v6587_v42  ;;  %vm2835_vm5 = vcmp.eq.f32.partialorder %v2834_v29, 8.507059e+37  ;;  %v7590_v38 = vld [vmem:[#allocation27_spill] sm:$0xff] }
 0x310   : > { %v2087_v56 = vpop.f32.mrf.mxu3  ;;  %v4984_v18 = vpop.eup %4983  ;;  %v6610_v39 = vadd.f32 1.0, %v4982_v54  ;;  %v1672_v54 = vadd.f32 %v6452_v8, %v7591_v25 }
 0x311   : > { %v4823_v21 = vmul.f32 -1.442695, %v6601_v15  ;;  %v2133_v16 = vadd.f32 %v2087_v56, %v1899_v19  ;;  %v2829_v47 = vadd.f32 %v4980_v28, %v2828_v44  ;;  %v2841_v14 = vmul.f32 %v4984_v18, %v6565_v3 }
 0x312   : > { %4985 = vpow2.f32 %v4765_v17  ;;  %v2324_v32 = vpop.f32.mrf.mxu0  ;;  %vm2846_vm6 = vweird.f32 %v4984_v18  ;;  %v2852_v17 = vor.u32 1.1754944e-38, %v2851_v12  ;;  %v2866_v49 = vand.u32 2147483648, %v6610_v39 }
 0x313   : > { %4987 = vrcp.f32 %v6610_v39  ;;  %v2833_v46 = vsel %vm2832_vm4, %v4980_v28, %v2829_v47  ;;  %v2842_v24 = vsub.f32 1.0, %v2841_v14  ;;  %v2367_v0 = vadd.f32 %v2321_v23, %v2133_v16  ;;  %v7585_v28 = vld [vmem:[#allocation24_spill] sm:$0xff]  ;;  %vm6639_vm8 = vmor %vm2845_vm7, %vm2846_vm6 }
 0x314   : > { %4989 = vpow2.f32 %v4823_v21  ;;  %v3392_v53 = vpop.f32.mrf.mxu2  ;;  %v2838_v41 = vsel %vm2835_vm5, %v2837_v11, %v2833_v46  ;;  %v6627_v52 = vadd.f32 %v7585_v28, %v1668_v5  ;;  %v3038_v23 = vmul.f32 %v2823_v63, %v6466_v61  ;;  %v7589_v5 = vld [vmem:[#allocation29_spill] sm:$0xff]  ;;  %v7592_v46 = vld [vmem:[#allocation28_spill] sm:$0xff] }
 0x315   : > { %v3393_v10 = vadd.f32 %v3392_v53, %v6524_v55  ;;  %v3039_v57 = vmul.f32 %v2838_v41, %v6507_v60  ;;  %v2843_v62 = vmul.f32 %v4984_v18, %v2842_v24  ;;  %v6624_v26 = vadd.f32 %v6443_v43, %v2367_v0 }
 0x316   : > { %v2849_v60 = vand.u32 2147483647, %v6565_v3  ;;  %v1670_v2 = vadd.f32 %v7590_v38, %v7589_v5  ;;  %v3070_v44 = vadd.f32 %v5161_v4, %v3038_v23  ;;  %v2864_v8 = vand.u32 2147483647, %v6610_v39 }
 0x317   : > { %v6632_v22 = vadd.f32 %v6573_v45, %v3393_v10  ;;  %v2844_v55 = vadd.f32 %v4984_v18, %v2843_v62  ;;  %v4766_v33 = vmul.f32 -1.442695, %v6624_v26  ;;  %v3071_v59 = vadd.f32 %v5160_v37, %v3039_v57 }
 0x318   : > { %v4986_v30 = vpop.eup %4985  ;;  %v2090_v19 = vpop.f32.mrf.mxu3  ;;  %vm2850_vm9 = vcmp.eq.f32.partialorder %v2849_v60, 8.507059e+37  ;;  %v6664_v24 = vadd.f32 %v7592_v46, %v1670_v2  ;;  %v6667_v0 = vadd.f32 %v6550_v27, %v1672_v54  ;;  %vm2860_vm11 = vweird.f32 %v6610_v39  ;;  %v5163_v2 = vld [vmem:[%s5905_s11 + $0xa8] sm:$0xff] }
 0x319   : > { %v4988_v9 = vpop.eup %4987  ;;  %v6643_v51 = vadd.f32 1.0, %v4986_v30  ;;  %v4824_v35 = vmul.f32 -1.442695, %v6632_v22  ;;  %v2134_v48 = vadd.f32 %v2090_v19, %v7588_v50  ;;  %v2848_v1 = vsel %vm6639_vm8, %v4984_v18, %v2844_v55  ;;  %v3163_v28 = vpop.permute.xlu2 %3162 }
 0x31a   : > { %v4990_v3 = vpop.eup %4989  ;;  %v2856_v29 = vmul.f32 %v4988_v9, %v6610_v39  ;;  %4991 = vpow2.f32 %v4766_v33  ;;  %v2853_v47 = vsel %vm2850_vm9, %v2852_v17, %v2848_v1  ;;  %v3093_v14 = vpack.c.bf16 %v3071_v59, %v3070_v44  ;;  %v2326_v11 = vpop.f32.mrf.mxu0  ;;  %4794 = vmatmul.msk.bf16.gmra.mxu1 %vm449_vm0, %v3163_v28 }
 0x31b   : > { %4993 = vrcp.f32 %v6643_v51  ;;  %v6659_v21 = vadd.f32 1.0, %v4990_v3  ;;  %v2368_v18 = vadd.f32 %v2324_v32, %v2134_v48  ;;  %vm2861_vm10 = vweird.f32 %v4988_v9 }
 0x31c   : > { %v2857_v56 = vsub.f32 1.0, %v2856_v29  ;;  %v3395_v16 = vpop.f32.mrf.mxu2  ;;  %4995 = vpow2.f32 %v4824_v35  ;;  %v3040_v41 = vmul.f32 %v2853_v47, %v6536_v40  ;;  %v2879_v57 = vand.u32 2147483647, %v6643_v51  ;;  %vm2862_vm12 = vmor %vm2860_vm11, %vm2861_vm10 }
 0x31d   : > { %4997 = vrcp.f32 %v6659_v21  ;;  %v6670_v53 = vadd.f32 %v6443_v43, %v2368_v18  ;;  %v3396_v20 = vadd.f32 %v3395_v16, %v6554_v36  ;;  %4816 = vmatmul.msk.bf16.gmra.mxu2 %vm449_vm0, %v3093_v14  ;;  %v2867_v27 = vor.u32 1.1754944e-38, %v2866_v49 }
 0x31e   : > { %v2858_v63 = vmul.f32 %v4988_v9, %v2857_v56  ;;  %vm2865_vm13 = vcmp.eq.f32.partialorder %v2864_v8, 8.507059e+37  ;;  %vm2875_vm14 = vweird.f32 %v6643_v51  ;;  %v2881_v19 = vand.u32 2147483648, %v6643_v51  ;;  %v7597_v8 = vld [vmem:[#allocation23_spill] sm:$0xff] }
 0x31f   : > { %v4767_v36 = vmul.f32 -1.442695, %v6670_v53  ;;  %v6688_v55 = vadd.f32 %v6573_v45, %v3396_v20  ;;  %vm6699_vm15 = vcmp.eq.f32.partialorder %v2879_v57, 8.507059e+37  ;;  %v3643_v38 = vand.u32 2147483647, %v6659_v21 }
 0x320   : > { %v4992_v32 = vpop.eup %4991  ;;  %v2859_v10 = vadd.f32 %v4988_v9, %v2858_v63  ;;  %v2092_v62 = vpop.f32.mrf.mxu3  ;;  %v2882_v25 = vor.u32 1.1754944e-38, %v2881_v19  ;;  %vm3639_vm2 = vweird.f32 %v6659_v21  ;;  %v3645_v47 = vand.u32 2147483648, %v6659_v21 }
 0x321   : > { %v6677_v23 = vpop.eup %4993  ;;  %v6680_v12 = vadd.f32 1.0, %v4992_v32  ;;  %v2135_v40 = vadd.f32 %v2092_v62, %v6619_v7  ;;  %v6693_v7 = vpop.f32.mrf.mxu1  ;;  %vm6737_vm4 = vcmp.eq.f32.partialorder %v3643_v38, 8.507059e+37 }
 0x322   : > { %v2863_v39 = vsel %vm2862_vm12, %v4988_v9, %v2859_v10  ;;  %v2871_v30 = vmul.f32 %v6677_v23, %v6643_v51  ;;  %v4996_v60 = vpop.eup %4995  ;;  %v5162_v9 = vld [vmem:[%s5905_s11 + $0xa0] sm:$0xff]  ;;  %vm2876_vm1 = vweird.f32 %v6677_v23  ;;  %v2329_v56 = vpop.f32.mrf.mxu0 }
 0x323   : > { %v2868_v33 = vsel %vm2865_vm13, %v2867_v27, %v2863_v39  ;;  %4999 = vrcp.f32 %v6680_v12  ;;  %v6695_v37 = vpop.eup %4997  ;;  %v3072_v59 = vadd.f32 %v5162_v9, %v3040_v41  ;;  %v6703_v48 = vadd.f32 1.0, %v4996_v60  ;;  %vm6724_vm3 = vmor %vm2875_vm14, %vm2876_vm1 }
 0x324   : > { %v3041_v61 = vmul.f32 %v2868_v33, %v6557_v58  ;;  %v2872_v35 = vsub.f32 1.0, %v2871_v30  ;;  %v3397_v3 = vpop.f32.mrf.mxu2  ;;  %5001 = vpow2.f32 %v4767_v36  ;;  %v2369_v5 = vadd.f32 %v2326_v11, %v2135_v40 }
 0x325   : > { %5003 = vrcp.f32 %v6703_v48  ;;  %v4825_v58 = vmul.f32 -1.442695, %v6688_v55  ;;  %v3398_v4 = vadd.f32 %v3397_v3, %v6603_v34  ;;  %v3635_v44 = vmul.f32 %v6695_v37, %v6659_v21 }
 0x326   : > { %v3073_v1 = vadd.f32 %v5163_v2, %v3041_v61  ;;  %v2873_v29 = vmul.f32 %v6677_v23, %v2872_v35  ;;  %v6712_v54 = vadd.f32 %v6443_v43, %v2369_v5  ;;  %v2894_v10 = vand.u32 2147483647, %v6680_v12 }
 0x327   : > { %v6730_v63 = vadd.f32 %v6573_v45, %v3398_v4  ;;  %v3636_v46 = vsub.f32 1.0, %v3635_v44  ;;  %5005 = vpow2.f32 %v4825_v58  ;;  %v2896_v57 = vand.u32 2147483648, %v6680_v12 }
 0x328   : > { %v2874_v17 = vadd.f32 %v6677_v23, %v2873_v29  ;;  %v2095_v49 = vpop.f32.mrf.mxu3  ;;  %v3094_v16 = vpack.c.bf16 %v3073_v1, %v3072_v59  ;;  %v4768_v34 = vmul.f32 -1.442695, %v6712_v54  ;;  %vm3640_vm5 = vweird.f32 %v6695_v37 }
 0x329   : > { %v5000_v18 = vpop.eup %4999  ;;  %v2136_v11 = vadd.f32 %v2095_v49, %v7597_v8  ;;  %v4826_v39 = vmul.f32 -1.442695, %v6730_v63  ;;  %v6755_v60 = vpop.f32.mrf.mxu1  ;;  %vm2890_vm6 = vweird.f32 %v6680_v12  ;;  %vm6761_vm8 = vcmp.eq.f32.partialorder %v2894_v10, 8.507059e+37  ;;  %vm6773_vm9 = vmor %vm3639_vm2, %vm3640_vm5 }
 0x32a   : > { %v2878_v20 = vsel %vm6724_vm3, %v6677_v23, %v2874_v17  ;;  %v2886_v32 = vmul.f32 %v5000_v18, %v6680_v12  ;;  %v5002_v41 = vpop.eup %5001  ;;  %5007 = vpow2.f32 %v4768_v34  ;;  %v3637_v23 = vmul.f32 %v6695_v37, %v3636_v46  ;;  %v2331_v17 = vpop.f32.mrf.mxu0 }
 0x32b   : > { %v2370_v62 = vadd.f32 %v2329_v56, %v2136_v11  ;;  %v6743_v28 = vpop.eup %5003  ;;  %v6745_v36 = vadd.f32 1.0, %v5002_v41  ;;  %v2883_v40 = vsel %vm6699_vm15, %v2882_v25, %v2878_v20  ;;  %vm2891_vm7 = vweird.f32 %v5000_v18 }
 0x32c   : > { %v2887_v27 = vsub.f32 1.0, %v2886_v32  ;;  %v3650_v33 = vmul.f32 %v6743_v28, %v6703_v48  ;;  %v2897_v59 = vor.u32 1.1754944e-38, %v2896_v57  ;;  %v3646_v35 = vor.u32 1.1754944e-38, %v3645_v47  ;;  %vm2892_vm10 = vmor %vm2890_vm6, %vm2891_vm7 }
 0x32d   : > { %v6753_v30 = vadd.f32 %v6443_v43, %v2370_v62  ;;  %5009 = vrcp.f32 %v6745_v36  ;;  %v5006_v50 = vpop.eup %5005  ;;  %v3042_v3 = vmul.f32 %v2883_v40, %v6587_v42  ;;  %4817 = vmatmul.msk.bf16.gmra.mxu2 %vm449_vm0, %v3094_v16  ;;  %v3638_v38 = vadd.f32 %v6695_v37, %v3637_v23 }
 0x32e   : > { %v2888_v19 = vmul.f32 %v5000_v18, %v2887_v27  ;;  %v3651_v29 = vsub.f32 1.0, %v3650_v33  ;;  %v2909_v42 = vand.u32 2147483647, %v6745_v36  ;;  %v2911_v25 = vand.u32 2147483648, %v6745_v36 }
 0x32f   : > { %v4769_v61 = vmul.f32 -1.442695, %v6753_v30  ;;  %5011 = vpow2.f32 %v4826_v39  ;;  %vm3654_vm11 = vweird.f32 %v6703_v48  ;;  %v3642_v56 = vsel %vm6773_vm9, %v6695_v37, %v3638_v38 }
 0x330   : > { %v2889_v5 = vadd.f32 %v5000_v18, %v2888_v19  ;;  %v2097_v1 = vpop.f32.mrf.mxu3  ;;  %v5008_v58 = vpop.eup %5007  ;;  %v6791_v49 = vadd.f32 1.0, %v5006_v50  ;;  %v3652_v34 = vmul.f32 %v6743_v28, %v3651_v29  ;;  %vm3655_vm12 = vweird.f32 %v6743_v28  ;;  %v5164_v50 = vld [vmem:[%s5905_s11 + $0xc0] sm:$0xff] }
 0x331   : > { %v2137_v4 = vadd.f32 %v2097_v1, %v6627_v52  ;;  %v6784_v44 = vadd.f32 1.0, %v5008_v58  ;;  %5013 = vpow2.f32 %v4769_v61  ;;  %v3400_v16 = vpop.f32.mrf.mxu2  ;;  %v3647_v52 = vsel %vm6737_vm4, %v3646_v35, %v3642_v56  ;;  %v6815_v62 = vpop.f32.mrf.mxu1  ;;  %vm6834_vm2 = vmor %vm3654_vm11, %vm3655_vm12  ;;  %v7610_v58 = vld [vmem:[#allocation26_spill] sm:$0xff] }
 0x332   : > { %v2893_v21 = vsel %vm2892_vm10, %v5000_v18, %v2889_v5  ;;  %v3074_v37 = vadd.f32 %v3042_v3, %v6348_v6  ;;  %vm2905_vm13 = vweird.f32 %v6745_v36  ;;  %v3658_v11 = vand.u32 2147483647, %v6703_v48 }
 0x333   : > { %v2898_v12 = vsel %vm6761_vm8, %v2897_v59, %v2893_v21  ;;  %v2371_v47 = vadd.f32 %v2331_v17, %v2137_v4  ;;  %v5010_v14 = vpop.eup %5009  ;;  %5015 = vrcp.f32 %v6784_v44  ;;  %vm6804_vm14 = vcmp.eq.f32.partialorder %v2909_v42, 8.507059e+37 }
 0x334   : > { %v3043_v18 = vmul.f32 %v2898_v12, %v6624_v26  ;;  %v2901_v8 = vmul.f32 %v5010_v14, %v6745_v36  ;;  %v2912_v26 = vor.u32 1.1754944e-38, %v2911_v25  ;;  %v3401_v32 = vadd.f32 %v3400_v16, %v6647_v31 }
 0x335   : > { %v4114_v51 = vmul.f32 %v3647_v52, %v6601_v15  ;;  %v5012_v41 = vpop.eup %5011  ;;  %5017 = vrcp.f32 %v6791_v49  ;;  %v2924_v6 = vand.u32 2147483647, %v6784_v44  ;;  %v6813_v57 = vadd.f32 %v6443_v43, %v2371_v47  ;;  %v2334_v52 = vpop.f32.mrf.mxu0 }
 0x336   : > { %v3075_v46 = vadd.f32 %v3043_v18, %v6351_v13  ;;  %v2902_v10 = vsub.f32 1.0, %v2901_v8  ;;  %vm2906_vm15 = vweird.f32 %v5010_v14  ;;  %v6818_v27 = vadd.f32 %v6573_v45, %v3401_v32 }
 0x337   : > { %v5014_v13 = vpop.eup %5013  ;;  %4146 = vxpose.xlu1.b32.start [1/16] (narrow) %v4114_v51, 64  ;;  %v3653_v31 = vadd.f32 %v6743_v28, %v3652_v34  ;;  %v3660_v15 = vand.u32 2147483648, %v6703_v48  ;;  %vm2920_vm1 = vweird.f32 %v6784_v44  ;;  %v2926_v40 = vand.u32 2147483648, %v6784_v44  ;;  %vm2907_vm4 = vmor %vm2905_vm13, %vm2906_vm15 }
 0x338   : > { %v2903_v23 = vmul.f32 %v5010_v14, %v2902_v10  ;;  %v6824_v39 = vadd.f32 1.0, %v5014_v13  ;;  %v4770_v33 = vmul.f32 -1.442695, %v6813_v57  ;;  %v2100_v19 = vpop.f32.mrf.mxu3  ;;  %v6827_v59 = vadd.f32 1.0, %v5012_v41 }
 0x339   : > { %v5016_v9 = vpop.eup %5015  ;;  %v4827_v61 = vmul.f32 -1.442695, %v6818_v27  ;;  %vm6838_vm3 = vcmp.eq.f32.partialorder %v3658_v11, 8.507059e+37  ;;  %v3095_v3 = vpack.c.bf16 %v3075_v46, %v3074_v37  ;;  %v3402_v2 = vpop.f32.mrf.mxu2  ;;  %v3657_v1 = vsel %vm6834_vm2, %v6743_v28, %v3653_v31 }
 0x33a   : > { %v2904_v5 = vadd.f32 %v5010_v14, %v2903_v23  ;;  %v2916_v38 = vmul.f32 %v5016_v9, %v6784_v44  ;;  %5019 = vrcp.f32 %v6824_v39  ;;  %v2941_v48 = vand.u32 2147483648, %v6824_v39  ;;  %v6874_v20 = vpop.f32.mrf.mxu1 }
 0x33b   : > { %5021 = vpow2.f32 %v4827_v61  ;;  %v3661_v29 = vor.u32 1.1754944e-38, %v3660_v15  ;;  %v2138_v42 = vadd.f32 %v2100_v19, %v7610_v58  ;;  %v6852_v25 = vpop.eup %5017  ;;  %v3403_v17 = vadd.f32 %v3402_v2, %v6693_v7 }
 0x33c   : > { %v2908_v4 = vsel %vm2907_vm4, %v5010_v14, %v2904_v5  ;;  %v2917_v21 = vsub.f32 1.0, %v2916_v38  ;;  %5023 = vpow2.f32 %v4770_v33  ;;  %vm2921_vm5 = vweird.f32 %v5016_v9 }
 0x33d   : > { %vm6855_vm6 = vcmp.eq.f32.partialorder %v2924_v6, 8.507059e+37  ;;  %v2939_v36 = vand.u32 2147483647, %v6824_v39  ;;  %v3662_v56 = vsel %vm6838_vm3, %v3661_v29, %v3657_v1  ;;  %v2913_v12 = vsel %vm6804_vm14, %v2912_v26, %v2908_v4  ;;  %4818 = vmatmul.msk.bf16.gmra.mxu2 %vm449_vm0, %v3095_v3  ;;  %vm2922_vm8 = vmor %vm2920_vm1, %vm2921_vm5  ;;  %v3165_v6 = vpop.permute.xlu0 %3164 }
 0x33e   : > { %v2918_v16 = vmul.f32 %v5016_v9, %v2917_v21  ;;  %v6865_v47 = vadd.f32 %v6573_v45, %v3403_v17  ;;  %v4115_v7 = vmul.f32 %v3662_v56, %v6632_v22  ;;  %v2927_v14 = vor.u32 1.1754944e-38, %v2926_v40  ;;  %4795 = vmatmul.msk.bf16.gmra.mxu1 %vm449_vm0, %v3165_v6 }
 0x33f   : > { %5025 = vrcp.f32 %v6827_v59  ;;  %v2372_v18 = vadd.f32 %v2334_v52, %v2138_v42  ;;  %v3665_v34 = vmul.f32 %v6852_v25, %v6791_v49  ;;  %vm2935_vm7 = vweird.f32 %v6824_v39 }
 0x340   : > { %v5020_v37 = vpop.eup %5019  ;;  %v2919_v8 = vadd.f32 %v5016_v9, %v2918_v16  ;;  %v2942_v11 = vor.u32 1.1754944e-38, %v2941_v48  ;;  %v4828_v46 = vmul.f32 -1.442695, %v6865_v47  ;;  %4147 = vxpose.xlu1.b32.cont [2/16] (narrow) %v4115_v7, 64  ;;  %v3044_v26 = vmul.f32 %v2913_v12, %v6670_v53  ;;  %v2102_v38 = vpop.f32.mrf.mxu3 }
 0x341   : > { %v5022_v22 = vpop.eup %5021  ;;  %v2931_v32 = vmul.f32 %v5020_v37, %v6824_v39  ;;  %vm6881_vm9 = vcmp.eq.f32.partialorder %v2939_v36, 8.507059e+37  ;;  %v6886_v41 = vadd.f32 %v6443_v43, %v2372_v18  ;;  %v3666_v10 = vsub.f32 1.0, %v3665_v34  ;;  %v3405_v53 = vpop.f32.mrf.mxu2 }
 0x342   : > { %v5024_v13 = vpop.eup %5023  ;;  %v2923_v31 = vsel %vm2922_vm8, %v5016_v9, %v2919_v8  ;;  %v6888_v15 = vadd.f32 1.0, %v5022_v22  ;;  %5027 = vpow2.f32 %v4828_v46  ;;  %v3673_v44 = vand.u32 2147483647, %v6791_v49  ;;  %v2336_v12 = vpop.f32.mrf.mxu0  ;;  %v5165_v46 = vld [vmem:[%s5905_s11 + $0xc8] sm:$0xff] }
 0x343   : > { %v2928_v23 = vsel %vm6855_vm6, %v2927_v14, %v2923_v31  ;;  %v2932_v40 = vsub.f32 1.0, %v2931_v32  ;;  %v6894_v33 = vadd.f32 1.0, %v5024_v13  ;;  %v4771_v19 = vmul.f32 -1.442695, %v6886_v41  ;;  %v6940_v14 = vpop.f32.mrf.mxu1 }
 0x344   : > { %v3406_v61 = vadd.f32 %v3405_v53, %v6755_v60  ;;  %v3667_v9 = vmul.f32 %v6852_v25, %v3666_v10  ;;  %vm3669_vm10 = vweird.f32 %v6791_v49  ;;  %vm3670_vm11 = vweird.f32 %v6852_v25 }
 0x345   : > { %v6901_v35 = vpop.eup %5025  ;;  %v6904_v3 = vadd.f32 %v5164_v50, %v3044_v26  ;;  %v2933_v5 = vmul.f32 %v5020_v37, %v2932_v40  ;;  %vm2936_vm12 = vweird.f32 %v5020_v37  ;;  %5029 = vrcp.f32 %v6894_v33  ;;  %vm6921_vm14 = vmor %vm3669_vm10, %vm3670_vm11 }
 0x346   : > { %v3045_v2 = vmul.f32 %v2928_v23, %v6712_v54  ;;  %5031 = vpow2.f32 %v4771_v19  ;;  %v6909_v60 = vadd.f32 %v6573_v45, %v3406_v61  ;;  %vm6911_vm13 = vcmp.eq.f32.partialorder %v3673_v44, 8.507059e+37  ;;  %vm2937_vm15 = vmor %vm2935_vm7, %vm2936_vm12  ;;  %v5166_v61 = vld [vmem:[%s5905_s11 + $0xd0] sm:$0xff] }
 0x347   : > { %v2934_v48 = vadd.f32 %v5020_v37, %v2933_v5  ;;  %5033 = vrcp.f32 %v6888_v15  ;;  %v3668_v29 = vadd.f32 %v6852_v25, %v3667_v9  ;;  %v3675_v54 = vand.u32 2147483648, %v6791_v49 }
 0x348   : > { %v5028_v42 = vpop.eup %5027  ;;  %v2954_v4 = vand.u32 2147483647, %v6894_v33  ;;  %v4829_v21 = vmul.f32 -1.442695, %v6909_v60  ;;  %v2139_v17 = vadd.f32 %v2102_v38, %v6664_v24  ;;  %v3680_v28 = vmul.f32 %v6901_v35, %v6827_v59 }
 0x349   : > { %v2938_v36 = vsel %vm2937_vm15, %v5020_v37, %v2934_v48  ;;  %v6933_v56 = vadd.f32 1.0, %v5028_v42  ;;  %v3672_v49 = vsel %vm6921_vm14, %v6852_v25, %v3668_v29  ;;  %v3676_v39 = vor.u32 1.1754944e-38, %v3675_v54  ;;  %v3407_v7 = vpop.f32.mrf.mxu2 }
 0x34a   : > { %v2943_v16 = vsel %vm6881_vm9, %v2942_v11, %v2938_v36  ;;  %5035 = vpow2.f32 %v4829_v21  ;;  %v2373_v52 = vadd.f32 %v2336_v12, %v2139_v17  ;;  %v3681_v24 = vsub.f32 1.0, %v3680_v28  ;;  %v2339_v54 = vpop.f32.mrf.mxu0 }
 0x34b   : > { %v5030_v18 = vpop.eup %5029  ;;  %vm2950_vm1 = vweird.f32 %v6894_v33  ;;  %v2956_v34 = vand.u32 2147483648, %v6894_v33  ;;  %v3677_v37 = vsel %vm6911_vm13, %v3676_v39, %v3672_v49  ;;  %v3408_v25 = vadd.f32 %v3407_v7, %v6815_v62  ;;  %v7001_v49 = vpop.f32.mrf.mxu1 }
 0x34c   : > { %v5032_v8 = vpop.eup %5031  ;;  %v3077_v22 = vadd.f32 %v5165_v46, %v3045_v2  ;;  %v2946_v11 = vmul.f32 %v5030_v18, %v6894_v33  ;;  %v4116_v26 = vmul.f32 %v3677_v37, %v6688_v55  ;;  %v6951_v32 = vadd.f32 %v6443_v43, %v2373_v52 }
 0x34d   : > { %v6953_v51 = vpop.eup %5033  ;;  %v3046_v10 = vmul.f32 %v2943_v16, %v6753_v30  ;;  %v6956_v6 = vadd.f32 1.0, %v5032_v8  ;;  %v6959_v13 = vadd.f32 %v6573_v45, %v3408_v25  ;;  %v3682_v62 = vmul.f32 %v6901_v35, %v3681_v24  ;;  %v2105_v30 = vpop.f32.mrf.mxu3  ;;  %v5167_v8 = vld [vmem:[%s7500_s3] ss:$0 sm:$0xff] }
 0x34e   : > { %v2947_v31 = vsub.f32 1.0, %v2946_v11  ;;  %vm6962_vm2 = vcmp.eq.f32.partialorder %v2954_v4, 8.507059e+37  ;;  %5037 = vrcp.f32 %v6933_v56  ;;  %4148 = vxpose.xlu1.b32.cont [3/16] (narrow) %v4116_v26, 64  ;;  %v4772_v43 = vmul.f32 -1.442695, %v6951_v32  ;;  %v7623_v4 = vld [vmem:[#allocation30_spill] sm:$0xff] }
 0x34f   : > { %vm2951_vm3 = vweird.f32 %v5030_v18  ;;  %v2957_v55 = vor.u32 1.1754944e-38, %v2956_v34  ;;  %5039 = vrcp.f32 %v6956_v6  ;;  %vm3685_vm4 = vweird.f32 %v6901_v35  ;;  %v3167_v34 = vpop.permute.xlu1 %3166 }
 0x350   : > { %v5036_v44 = vpop.eup %5035  ;;  %v2948_v23 = vmul.f32 %v5030_v18, %v2947_v31  ;;  %5041 = vpow2.f32 %v4772_v43  ;;  %v4830_v40 = vmul.f32 -1.442695, %v6959_v13  ;;  %v3683_v19 = vadd.f32 %v6901_v35, %v3682_v62  ;;  %vm2952_vm7 = vmor %vm2950_vm1, %vm2951_vm3  ;;  %4796 = vmatmul.msk.bf16.gmra.mxu1 %vm449_vm0, %v3167_v34  ;;  %v5168_v62 = vld [vmem:[%s5905_s11 + $0xd8] sm:$0xff] }
 0x351   : > { %v6973_v9 = vadd.f32 %v5166_v61, %v3046_v10  ;;  %v2969_v50 = vand.u32 2147483647, %v6956_v6  ;;  %vm3684_vm5 = vweird.f32 %v6827_v59  ;;  %v3688_v5 = vand.u32 2147483647, %v6827_v59  ;;  %v3410_v29 = vpop.f32.mrf.mxu2 }
 0x352   : > { %v2949_v38 = vadd.f32 %v5030_v18, %v2948_v23  ;;  %v2971_v2 = vand.u32 2147483648, %v6956_v6  ;;  %5043 = vpow2.f32 %v4830_v40  ;;  %vm6981_vm6 = vmor %vm3684_vm5, %vm3685_vm4  ;;  %v3690_v48 = vand.u32 2147483648, %v6827_v59 }
 0x353   : > { %v6989_v58 = vadd.f32 1.0, %v5036_v44  ;;  %v3687_v42 = vsel %vm6981_vm6, %v6901_v35, %v3683_v19  ;;  %v2140_v21 = vadd.f32 %v2105_v30, %v7623_v4  ;;  %v3096_v17 = vpack.c.bf16 %v3077_v22, %v6904_v3 }
 0x354   : > { %v6996_v28 = vpop.eup %5037  ;;  %v2953_v36 = vsel %vm2952_vm7, %v5030_v18, %v2949_v38  ;;  %v3691_v59 = vor.u32 1.1754944e-38, %v3690_v48  ;;  %v3411_v12 = vadd.f32 %v3410_v29, %v6874_v20  ;;  %v3695_v33 = vmul.f32 %v6953_v51, %v6888_v15 }
 0x355   : > { %v5040_v39 = vpop.eup %5039  ;;  %v2958_v16 = vsel %vm6962_vm2, %v2957_v55, %v2953_v36  ;;  %vm2965_vm8 = vweird.f32 %v6956_v6  ;;  %vm3689_vm9 = vcmp.eq.f32.partialorder %v3688_v5, 8.507059e+37  ;;  %v2374_v35 = vadd.f32 %v2339_v54, %v2140_v21  ;;  %4819 = vmatmul.msk.bf16.gmra.mxu2 %vm449_vm0, %v3096_v17  ;;  %v7053_v54 = vpop.f32.mrf.mxu1 }
 0x356   : > { %v5042_v3 = vpop.eup %5041  ;;  %v3047_v52 = vmul.f32 %v2958_v16, %v6813_v57  ;;  %v2961_v20 = vmul.f32 %v5040_v39, %v6956_v6  ;;  %vm7009_vm10 = vcmp.eq.f32.partialorder %v2969_v50, 8.507059e+37  ;;  %v2972_v24 = vor.u32 1.1754944e-38, %v2971_v2  ;;  %v2341_v2 = vpop.f32.mrf.mxu0 }
 0x357   : > { %v3692_v18 = vsel %vm3689_vm9, %v3691_v59, %v3687_v42  ;;  %v7013_v37 = vadd.f32 1.0, %v5042_v3  ;;  %v7019_v46 = vadd.f32 %v5167_v8, %v2374_v35  ;;  %v7022_v57 = vadd.f32 %v6573_v45, %v3411_v12 }
 0x358   : > { %v4117_v25 = vmul.f32 %v3692_v18, %v6730_v63  ;;  %v5044_v22 = vpop.eup %5043  ;;  %v2962_v11 = vsub.f32 1.0, %v2961_v20  ;;  %5045 = vrcp.f32 %v6989_v58  ;;  %v3696_v26 = vsub.f32 1.0, %v3695_v33  ;;  %v2107_v63 = vpop.f32.mrf.mxu3 }
 0x359   : > { %v3703_v10 = vand.u32 2147483647, %v6888_v15  ;;  %vm2966_vm11 = vweird.f32 %v5040_v39  ;;  %5047 = vrcp.f32 %v7013_v37  ;;  %vm3699_vm12 = vweird.f32 %v6888_v15  ;;  %v3412_v30 = vpop.f32.mrf.mxu2 }
 0x35a   : > { %4149 = vxpose.xlu1.b32.cont [4/16] (narrow) %v4117_v25, 64  ;;  %vm3700_vm13 = vweird.f32 %v6953_v51  ;;  %v7031_v31 = vadd.f32 %v5168_v62, %v3047_v52  ;;  %v2963_v53 = vmul.f32 %v5040_v39, %v2962_v11  ;;  %v4773_v43 = vmul.f32 -1.442695, %v7019_v46  ;;  %vm2967_vm15 = vmor %vm2965_vm8, %vm2966_vm11 }
 0x35b   : > { %v4831_v55 = vmul.f32 -1.442695, %v7022_v57  ;;  %v2984_v44 = vand.u32 2147483647, %v7013_v37  ;;  %v2986_v23 = vand.u32 2147483648, %v7013_v37  ;;  %v7037_v40 = vadd.f32 1.0, %v5044_v22  ;;  %vm3701_vm1 = vmor %vm3699_vm12, %vm3700_vm13  ;;  %v3169_v22 = vpop.permute.xlu2 %3168 }
 0x35c   : > { %v3697_v19 = vmul.f32 %v6953_v51, %v3696_v26  ;;  %v2964_v61 = vadd.f32 %v5040_v39, %v2963_v53  ;;  %vm7040_vm14 = vcmp.eq.f32.partialorder %v3703_v10, 8.507059e+37  ;;  %v3705_v5 = vand.u32 2147483648, %v6888_v15 }
 0x35d   : > { %v2141_v38 = vadd.f32 %v2107_v63, %v6667_v0  ;;  %5049 = vpow2.f32 %v4773_v43  ;;  %v3413_v48 = vadd.f32 %v3412_v30, %v6940_v14  ;;  %v3710_v29 = vmul.f32 %v6996_v28, %v6933_v56  ;;  %v7100_v10 = vpop.f32.mrf.mxu1 }
 0x35e   : > { %v3698_v1 = vadd.f32 %v6953_v51, %v3697_v19  ;;  %v7055_v42 = vpop.eup %5045  ;;  %v2968_v4 = vsel %vm2967_vm15, %v5040_v39, %v2964_v61  ;;  %5051 = vpow2.f32 %v4831_v55  ;;  %v3706_v0 = vor.u32 1.1754944e-38, %v3705_v5 }
 0x35f   : > { %v2375_v6 = vadd.f32 %v2341_v2, %v2141_v38  ;;  %v5048_v21 = vpop.eup %5047  ;;  %v2973_v14 = vsel %vm7009_vm10, %v2972_v24, %v2968_v4  ;;  %v7065_v36 = vadd.f32 %v6573_v45, %v3413_v48  ;;  %v3711_v59 = vsub.f32 1.0, %v3710_v29 }
 0x360   : > { %v3702_v17 = vsel %vm3701_vm1, %v6953_v51, %v3698_v1  ;;  %v3048_v12 = vmul.f32 %v2973_v14, %v6886_v41  ;;  %v2976_v33 = vmul.f32 %v5048_v21, %v7013_v37  ;;  %5053 = vrcp.f32 %v7037_v40  ;;  %4797 = vmatmul.msk.bf16.gmra.mxu1 %vm449_vm0, %v3169_v22 }
 0x361   : > { %v3707_v15 = vsel %vm7040_vm14, %v3706_v0, %v3702_v17  ;;  %v7073_v16 = vadd.f32 %v5167_v8, %v2375_v6  ;;  %v4832_v35 = vmul.f32 -1.442695, %v7065_v36  ;;  %v3712_v51 = vmul.f32 %v6996_v28, %v3711_v59  ;;  %v3415_v41 = vpop.f32.mrf.mxu2 }
 0x362   : > { %v4118_v39 = vmul.f32 %v3707_v15, %v6818_v27  ;;  %v2977_v3 = vsub.f32 1.0, %v2976_v33  ;;  %vm2981_vm2 = vweird.f32 %v5048_v21  ;;  %vm3714_vm3 = vweird.f32 %v6933_v56 }
 0x363   : > { %vm3715_vm4 = vweird.f32 %v6996_v28  ;;  %v5050_v52 = vpop.eup %5049  ;;  %v4774_v20 = vmul.f32 -1.442695, %v7073_v16  ;;  %5055 = vpow2.f32 %v4832_v35  ;;  %v3713_v27 = vadd.f32 %v6996_v28, %v3712_v51 }
 0x364   : > { %4150 = vxpose.xlu1.b32.cont [5/16] (narrow) %v4118_v39, 64  ;;  %v3718_v7 = vand.u32 2147483647, %v6933_v56  ;;  %v5052_v24 = vpop.eup %5051  ;;  %v2978_v18 = vmul.f32 %v5048_v21, %v2977_v3  ;;  %v7082_v34 = vadd.f32 1.0, %v5050_v52  ;;  %v3720_v25 = vand.u32 2147483648, %v6933_v56  ;;  %vm7096_vm7 = vmor %vm3714_vm3, %vm3715_vm4 }
 0x365   : > { %v3097_v8 = vpack.c.bf16 %v7031_v31, %v6973_v9  ;;  %vm2980_vm5 = vweird.f32 %v7013_v37  ;;  %vm7088_vm6 = vcmp.eq.f32.partialorder %v2984_v44, 8.507059e+37  ;;  %5057 = vpow2.f32 %v4774_v20  ;;  %v5169_v31 = vld [vmem:[%s5905_s11 + $0xe0] sm:$0xff]  ;;  %v7146_v59 = vpop.f32.mrf.mxu1 }
 0x366   : > { %v7102_v63 = vpop.eup %5053  ;;  %v2979_v9 = vadd.f32 %v5048_v21, %v2978_v18  ;;  %v2987_v62 = vor.u32 1.1754944e-38, %v2986_v23  ;;  %5059 = vrcp.f32 %v7082_v34  ;;  %v3717_v37 = vsel %vm7096_vm7, %v6996_v28, %v3713_v27  ;;  %vm2982_vm8 = vmor %vm2980_vm5, %vm2981_vm2 }
 0x367   : > { %4820 = vmatmul.msk.bf16.gmra.mxu2 %vm449_vm0, %v3097_v8  ;;  %v7110_v56 = vadd.f32 %v5169_v31, %v3048_v12  ;;  %v7113_v53 = vadd.f32 1.0, %v5052_v24  ;;  %v3721_v43 = vor.u32 1.1754944e-38, %v3720_v25  ;;  %v3416_v55 = vadd.f32 %v3415_v41, %v7001_v49  ;;  %v5170_v12 = vld [vmem:[%s5905_s11 + $0xe8] sm:$0xff] }
 0x368   : > { %v2983_v30 = vsel %vm2982_vm8, %v5048_v21, %v2979_v9  ;;  %v2999_v44 = vand.u32 2147483647, %v7082_v34  ;;  %vm3719_vm9 = vcmp.eq.f32.partialorder %v3718_v7, 8.507059e+37  ;;  %v3725_v28 = vmul.f32 %v7055_v42, %v6989_v58 }
 0x369   : > { %v5056_v23 = vpop.eup %5055  ;;  %v2988_v19 = vsel %vm7088_vm6, %v2987_v62, %v2983_v30  ;;  %v3001_v61 = vand.u32 2147483648, %v7082_v34  ;;  %v3722_v50 = vsel %vm3719_vm9, %v3721_v43, %v3717_v37  ;;  %v7124_v5 = vadd.f32 %v6573_v45, %v3416_v55  ;;  %v3417_v48 = vpop.f32.mrf.mxu2 }
 0x36a   : > { %v3049_v49 = vmul.f32 %v2988_v19, %v6951_v32  ;;  %v7127_v38 = vadd.f32 1.0, %v5056_v23  ;;  %v4119_v2 = vmul.f32 %v3722_v50, %v6865_v47  ;;  %v3726_v1 = vsub.f32 1.0, %v3725_v28 }
 0x36b   : > { %v5058_v29 = vpop.eup %5057  ;;  %vm2995_vm10 = vweird.f32 %v7082_v34  ;;  %5061 = vrcp.f32 %v7113_v53  ;;  %v4833_v4 = vmul.f32 -1.442695, %v7124_v5  ;;  %vm3729_vm11 = vweird.f32 %v6989_v58 }
 0x36c   : > { %v3733_v45 = vand.u32 2147483647, %v6989_v58  ;;  %v5060_v0 = vpop.eup %5059  ;;  %v7135_v32 = vadd.f32 1.0, %v5058_v29  ;;  %5063 = vrcp.f32 %v7127_v38  ;;  %4151 = vxpose.xlu1.b32.cont [6/16] (narrow) %v4119_v2, 64  ;;  %v3727_v47 = vmul.f32 %v7055_v42, %v3726_v1 }
 0x36d   : > { %v3735_v6 = vand.u32 2147483648, %v6989_v58  ;;  %v2991_v21 = vmul.f32 %v5060_v0, %v7082_v34  ;;  %vm7141_vm12 = vcmp.eq.f32.partialorder %v2999_v44, 8.507059e+37  ;;  %v3002_v17 = vor.u32 1.1754944e-38, %v3001_v61  ;;  %v7196_v19 = vpop.f32.mrf.mxu1 }
 0x36e   : > { %5065 = vpow2.f32 %v4833_v4  ;;  %vm3730_vm13 = vweird.f32 %v7055_v42  ;;  %v3081_v33 = vadd.f32 %v5170_v12, %v3049_v49  ;;  %vm2996_vm14 = vweird.f32 %v5060_v0 }
 0x36f   : > { %5067 = vrcp.f32 %v7135_v32  ;;  %v3016_v15 = vand.u32 2147483648, %v7135_v32  ;;  %v2992_v39 = vsub.f32 1.0, %v2991_v21  ;;  %v3728_v35 = vadd.f32 %v7055_v42, %v3727_v47  ;;  %vm3731_vm1 = vmor %vm3729_vm11, %vm3730_vm13 }
 0x370   : > { %vm3734_vm15 = vcmp.eq.f32.partialorder %v3733_v45, 8.507059e+37  ;;  %v3418_v51 = vadd.f32 %v3417_v48, %v7053_v54  ;;  %v3014_v3 = vand.u32 2147483647, %v7135_v32  ;;  %v3736_v52 = vor.u32 1.1754944e-38, %v3735_v6  ;;  %v7166_v54 = vld [vmem:[%s7503_s6] ss:$0 sm:$0xff]  ;;  %vm2997_vm4 = vmor %vm2995_vm10, %vm2996_vm14 }
 0x371   : > { %v7154_v41 = vor.u32 1.1754944e-38, %v3016_v15  ;;  %v3740_v20 = vmul.f32 %v7102_v63, %v7037_v40  ;;  %v7160_v27 = vpop.eup %5061  ;;  %v2993_v7 = vmul.f32 %v5060_v0, %v2992_v39  ;;  %v3732_v24 = vsel %vm3731_vm1, %v7055_v42, %v3728_v35  ;;  %v3420_v26 = vpop.f32.mrf.mxu2 }
 0x372   : > { %v7169_v18 = vadd.f32 %v7166_v54, %v3418_v51  ;;  %vm3744_vm2 = vweird.f32 %v7037_v40  ;;  %v7172_v58 = vpop.eup %5063  ;;  %v3737_v25 = vsel %vm3734_vm15, %v3736_v52, %v3732_v24  ;;  %v3748_v22 = vand.u32 2147483647, %v7037_v40 }
 0x373   : > { %v3741_v8 = vsub.f32 1.0, %v3740_v20  ;;  %v3750_v11 = vand.u32 2147483648, %v7037_v40  ;;  %v2994_v9 = vadd.f32 %v5060_v0, %v2993_v7  ;;  %vm3010_vm3 = vweird.f32 %v7135_v32 }
 0x374   : > { %v5066_v42 = vpop.eup %5065  ;;  %v4120_v62 = vmul.f32 %v3737_v25, %v6909_v60  ;;  %v4834_v37 = vmul.f32 -1.442695, %v7169_v18  ;;  %v3098_v31 = vpack.c.bf16 %v3081_v33, %v7110_v56  ;;  %vm3745_vm5 = vweird.f32 %v7102_v63  ;;  %v3171_v60 = vpop.permute.xlu0 %3170 }
 0x375   : > { %v5068_v43 = vpop.eup %5067  ;;  %v7183_v55 = vadd.f32 1.0, %v5066_v42  ;;  %v3742_v30 = vmul.f32 %v7102_v63, %v3741_v8  ;;  %vm7187_vm6 = vcmp.eq.f32.partialorder %v3748_v22, 8.507059e+37  ;;  %v2998_v28 = vsel %vm2997_vm4, %v5060_v0, %v2994_v9  ;;  %vm3746_vm9 = vmor %vm3744_vm2, %vm3745_vm5  ;;  %4798 = vmatmul.msk.bf16.gmra.mxu1 %vm449_vm0, %v3171_v60  ;;  %v5172_v0 = vld [vmem:[%s5905_s11 + $0xf0] sm:$0xff]  ;;  %v3278_v7 = vpop.f32.mrf.mxu1  ;;  %v5173_v9 = vld [vmem:[%s5905_s11 + $0xf8] sm:$0xff] }
 0x376   : > { %v3006_v23 = vmul.f32 %v5068_v43, %v7135_v32  ;;  %vm7192_vm7 = vcmp.eq.f32.partialorder %v3014_v3, 8.507059e+37  ;;  %4152 = vxpose.xlu1.b32.cont [7/16] (narrow) %v4120_v62, 64  ;;  %5069 = vpow2.f32 %v4834_v37  ;;  %v3751_v34 = vor.u32 1.1754944e-38, %v3750_v11 }
 0x377   : > { %v3003_v61 = vsel %vm7141_vm12, %v3002_v17, %v2998_v28  ;;  %vm3011_vm8 = vweird.f32 %v5068_v43  ;;  %v3743_v50 = vadd.f32 %v7102_v63, %v3742_v30  ;;  %4821 = vmatmul.msk.bf16.gmra.mxu2 %vm449_vm0, %v3098_v31  ;;  %v3421_v49 = vadd.f32 %v3420_v26, %v7100_v10 }
 0x378   : > { %v3050_v2 = vmul.f32 %v3003_v61, %v7019_v46  ;;  %v3007_v1 = vsub.f32 1.0, %v3006_v23  ;;  %5071 = vrcp.f32 %v7183_v55  ;;  %v3755_v48 = vmul.f32 %v7160_v27, %v7113_v53  ;;  %vm3012_vm12 = vmor %vm3010_vm3, %vm3011_vm8 }
 0x379   : > { %v3747_v29 = vsel %vm3746_vm9, %v7102_v63, %v3743_v50  ;;  %v7214_v4 = vadd.f32 %v7166_v54, %v3421_v49  ;;  %vm3759_vm10 = vweird.f32 %v7113_v53  ;;  %v3763_v46 = vand.u32 2147483647, %v7113_v53  ;;  %v3422_v14 = vpop.f32.mrf.mxu2 }
 0x37a   : > { %v3008_v10 = vmul.f32 %v5068_v43, %v3007_v1  ;;  %v3752_v45 = vsel %vm7187_vm6, %v3751_v34, %v3747_v29  ;;  %v3756_v40 = vsub.f32 1.0, %v3755_v48  ;;  %vm3760_vm11 = vweird.f32 %v7160_v27 }
 0x37b   : > { %v3082_v47 = vadd.f32 %v5172_v0, %v3050_v2  ;;  %v4121_v6 = vmul.f32 %v3752_v45, %v6959_v13  ;;  %v4835_v63 = vmul.f32 -1.442695, %v7214_v4  ;;  %v3765_v21 = vand.u32 2147483648, %v7113_v53  ;;  %vm3761_vm14 = vmor %vm3759_vm10, %vm3760_vm11 }
 0x37c   : > { %v5070_v17 = vpop.eup %5069  ;;  %v3009_v12 = vadd.f32 %v5068_v43, %v3008_v10  ;;  %v3757_v33 = vmul.f32 %v7160_v27, %v3756_v40  ;;  %v3423_v15 = vadd.f32 %v3422_v14, %v7146_v59  ;;  %v3770_v39 = vmul.f32 %v7172_v58, %v7127_v38 }
 0x37d   : > { %v7232_v35 = vadd.f32 1.0, %v5070_v17  ;;  %5073 = vpow2.f32 %v4835_v63  ;;  %vm7234_vm13 = vcmp.eq.f32.partialorder %v3763_v46, 8.507059e+37  ;;  %v3766_v51 = vor.u32 1.1754944e-38, %v3765_v21  ;;  %v3281_v61 = vpop.f32.mrf.mxu1 }
 0x37e   : > { %v7238_v3 = vpop.eup %5071  ;;  %v3013_v52 = vsel %vm3012_vm12, %v5068_v43, %v3009_v12  ;;  %4153 = vxpose.xlu1.b32.cont [8/16] (narrow) %v4121_v6, 64  ;;  %v3758_v59 = vadd.f32 %v7160_v27, %v3757_v33  ;;  %v7242_v20 = vadd.f32 %v7166_v54, %v3423_v15  ;;  %v3771_v32 = vsub.f32 1.0, %v3770_v39 }
 0x37f   : > { %v3018_v24 = vsel %vm7192_vm7, %v7154_v41, %v3013_v52  ;;  %5075 = vrcp.f32 %v7232_v35  ;;  %vm3774_vm15 = vweird.f32 %v7127_v38  ;;  %vm3775_vm1 = vweird.f32 %v7172_v58 }
 0x380   : > { %v3051_v25 = vmul.f32 %v3018_v24, %v7073_v16  ;;  %v3762_v8 = vsel %vm3761_vm14, %v7160_v27, %v3758_v59  ;;  %v4836_v22 = vmul.f32 -1.442695, %v7242_v20  ;;  %v3772_v11 = vmul.f32 %v7172_v58, %v3771_v32  ;;  %vm7271_vm2 = vmor %vm3774_vm15, %vm3775_vm1 }
 0x381   : > { %v3767_v41 = vsel %vm7234_vm13, %v3766_v51, %v3762_v8  ;;  %v3778_v26 = vand.u32 2147483647, %v7127_v38  ;;  %v3780_v53 = vand.u32 2147483648, %v7127_v38  ;;  %v3785_v42 = vmul.f32 %v7238_v3, %v7183_v55  ;;  %v3425_v43 = vpop.f32.mrf.mxu2 }
 0x382   : > { %v3083_v62 = vadd.f32 %v5173_v9, %v3051_v25  ;;  %v4122_v16 = vmul.f32 %v3767_v41, %v7022_v57  ;;  %5077 = vpow2.f32 %v4836_v22  ;;  %v3773_v27 = vadd.f32 %v7172_v58, %v3772_v11 }
 0x383   : > { %v5074_v37 = vpop.eup %5073  ;;  %v3786_v30 = vsub.f32 1.0, %v3785_v42  ;;  %v3426_v28 = vadd.f32 %v3425_v43, %v7196_v19  ;;  %v3781_v56 = vor.u32 1.1754944e-38, %v3780_v53  ;;  %vm3779_vm3 = vcmp.eq.f32.partialorder %v3778_v26, 8.507059e+37 }
 0x384   : > { %v7275_v44 = vadd.f32 1.0, %v5074_v37  ;;  %v3777_v57 = vsel %vm7271_vm2, %v7172_v58, %v3773_v27  ;;  %v3099_v60 = vpack.c.bf16 %v3083_v62, %v3082_v47  ;;  %vm3790_vm4 = vweird.f32 %v7238_v3 }
 0x385   : > { %v5076_v23 = vpop.eup %5075  ;;  %v3787_v34 = vmul.f32 %v7238_v3, %v3786_v30  ;;  %v7284_v38 = vadd.f32 %v7166_v54, %v3426_v28  ;;  %v3782_v49 = vsel %vm3779_vm3, %v3781_v56, %v3777_v57  ;;  %v3795_v29 = vand.u32 2147483648, %v7183_v55 }
 0x386   : > { %5079 = vrcp.f32 %v7275_v44  ;;  %4154 = vxpose.xlu1.b32.cont [9/16] (narrow) %v4122_v16, 64  ;;  %v3800_v50 = vmul.f32 %v5076_v23, %v7232_v35  ;;  %v4123_v46 = vmul.f32 %v3782_v49, %v7065_v36  ;;  %vm3789_vm5 = vweird.f32 %v7183_v55 }
 0x387   : > { %4822 = vmatmul.msk.bf16.gmra.mxu2 %vm449_vm0, %v3099_v60  ;;  %v4837_v19 = vmul.f32 -1.442695, %v7284_v38  ;;  %v3788_v2 = vadd.f32 %v7238_v3, %v3787_v34  ;;  %v3793_v10 = vand.u32 2147483647, %v7183_v55  ;;  %vm3791_vm0 = vmor %vm3789_vm5, %vm3790_vm4  ;;  %v3796_v63 = vor.u32 1.1754944e-38, %v3795_v29  ;;  %v3283_v55 = vpop.f32.mrf.mxu1 }
 0x388   : > { %v5078_v58 = vpop.eup %5077  ;;  %v3801_v1 = vsub.f32 1.0, %v3800_v50  ;;  %vm3805_vm7 = vweird.f32 %v5076_v23  ;;  %v3810_v51 = vand.u32 2147483648, %v7232_v35  ;;  %vm3804_vm8 = vweird.f32 %v7232_v35 }
 0x389   : > { %v7291_v48 = vadd.f32 1.0, %v5078_v58  ;;  %5081 = vpow2.f32 %v4837_v19  ;;  %v3427_v45 = vpop.f32.mrf.mxu2  ;;  %v3792_v0 = vsel %vm3791_vm0, %v7238_v3, %v3788_v2  ;;  %vm3794_vm6 = vcmp.eq.f32.partialorder %v3793_v10, 8.507059e+37  ;;  %vm3806_vm9 = vmor %vm3804_vm8, %vm3805_vm7 }
 0x38a   : > { %v3428_v47 = vadd.f32 %v3427_v45, %v3278_v7  ;;  %v3802_v6 = vmul.f32 %v5076_v23, %v3801_v1  ;;  %v3797_v14 = vsel %vm3794_vm6, %v3796_v63, %v3792_v0  ;;  %v3808_v52 = vand.u32 2147483647, %v7232_v35 }
 0x38b   : > { %5083 = vrcp.f32 %v7291_v48  ;;  %v4124_v3 = vmul.f32 %v3797_v14, %v7124_v5  ;;  %v3811_v8 = vor.u32 1.1754944e-38, %v3810_v51  ;;  %vm3819_vm12 = vweird.f32 %v7275_v44 }
 0x38c   : > { %v7298_v40 = vpop.eup %5079  ;;  %v7304_v36 = vadd.f32 %v7166_v54, %v3428_v47  ;;  %v3803_v33 = vadd.f32 %v5076_v23, %v3802_v6  ;;  %vm3809_vm10 = vcmp.eq.f32.partialorder %v3808_v52, 8.507059e+37  ;;  %v3825_v62 = vand.u32 2147483648, %v7275_v44 }
 0x38d   : > { %v3815_v21 = vmul.f32 %v7298_v40, %v7275_v44  ;;  %vm3820_vm11 = vweird.f32 %v7298_v40  ;;  %v3823_v27 = vand.u32 2147483647, %v7275_v44  ;;  %v3840_v50 = vand.u32 2147483648, %v7291_v48 }
 0x38e   : > { %4155 = vxpose.xlu1.b32.cont [10/16] (narrow) %v4123_v46, 64  ;;  %v4838_v12 = vmul.f32 -1.442695, %v7304_v36  ;;  %v3807_v7 = vsel %vm3806_vm9, %v5076_v23, %v3803_v33  ;;  %vm3821_vm13 = vmor %vm3819_vm12, %vm3820_vm11  ;;  %v3826_v60 = vor.u32 1.1754944e-38, %v3825_v62  ;;  %vm3834_vm1 = vweird.f32 %v7291_v48 }
 0x38f   : > { %v5082_v17 = vpop.eup %5081  ;;  %v3816_v15 = vsub.f32 1.0, %v3815_v21  ;;  %v3286_v22 = vpop.f32.mrf.mxu1  ;;  %v3812_v11 = vsel %vm3809_vm10, %v3811_v8, %v3807_v7  ;;  %vm3824_vm14 = vcmp.eq.f32.partialorder %v3823_v27, 8.507059e+37  ;;  %v3838_v19 = vand.u32 2147483647, %v7291_v48 }
 0x390   : > { %v7309_v13 = vadd.f32 1.0, %v5082_v17  ;;  %5085 = vpow2.f32 %v4838_v12  ;;  %v4125_v16 = vmul.f32 %v3812_v11, %v7169_v18  ;;  %v3841_v45 = vor.u32 1.1754944e-38, %v3840_v50 }
 0x391   : > { %v7307_v39 = vpop.eup %5083  ;;  %v3430_v59 = vpop.f32.mrf.mxu2  ;;  %v3817_v25 = vmul.f32 %v7298_v40, %v3816_v15  ;;  %vm3839_vm3 = vcmp.eq.f32.partialorder %v3838_v19, 8.507059e+37 }
 0x392   : > { %5087 = vrcp.f32 %v7309_v13  ;;  %v3830_v32 = vmul.f32 %v7307_v39, %v7291_v48  ;;  %v3431_v24 = vadd.f32 %v3430_v59, %v3281_v61  ;;  %vm3835_vm15 = vweird.f32 %v7307_v39 }
 0x393   : > { %v3818_v53 = vadd.f32 %v7298_v40, %v3817_v25  ;;  %vm3836_vm2 = vmor %vm3834_vm1, %vm3835_vm15  ;;  %v3855_v63 = vand.u32 2147483648, %v7309_v13  ;;  %vm3849_vm5 = vweird.f32 %v7309_v13  ;;  %v3853_v14 = vand.u32 2147483647, %v7309_v13 }
 0x394   : > { %v7320_v5 = vadd.f32 %v7166_v54, %v3431_v24  ;;  %v3831_v35 = vsub.f32 1.0, %v3830_v32 }
 0x395   : > { %v3822_v30 = vsel %vm3821_vm13, %v7298_v40, %v3818_v53  ;;  %vm3854_vm6 = vcmp.eq.f32.partialorder %v3853_v14, 8.507059e+37 }
 0x396   : > { %4156 = vxpose.xlu1.b32.cont [11/16] (narrow) %v4124_v3, 64  ;;  %v5086_v41 = vpop.eup %5085  ;;  %v4839_v26 = vmul.f32 -1.442695, %v7320_v5  ;;  %v3832_v43 = vmul.f32 %v7307_v39, %v3831_v35  ;;  %v3827_v23 = vsel %vm3824_vm14, %v3826_v60, %v3822_v30  ;;  %v3856_v3 = vor.u32 1.1754944e-38, %v3855_v63 }
 0x397   : > { %v7327_v9 = vadd.f32 1.0, %v5086_v41  ;;  %v3288_v28 = vpop.f32.mrf.mxu1  ;;  %v4126_v2 = vmul.f32 %v3827_v23, %v7214_v4 }
 0x398   : > { %v7325_v42 = vpop.eup %5087  ;;  %5089 = vpow2.f32 %v4839_v26  ;;  %v3833_v56 = vadd.f32 %v7307_v39, %v3832_v43 }
 0x399   : > { %v3845_v37 = vmul.f32 %v7325_v42, %v7309_v13  ;;  %5091 = vrcp.f32 %v7327_v9  ;;  %v3432_v31 = vpop.f32.mrf.mxu2  ;;  %vm3850_vm4 = vweird.f32 %v7325_v42  ;;  %vm3864_vm9 = vweird.f32 %v7327_v9 }
 0x39a   : > { %v3433_v57 = vadd.f32 %v3432_v31, %v3283_v55  ;;  %v3837_v46 = vsel %vm3836_vm2, %v7307_v39, %v3833_v56  ;;  %vm3851_vm0 = vmor %vm3849_vm5, %vm3850_vm4  ;;  %v3870_v11 = vand.u32 2147483648, %v7327_v9  ;;  %v3868_v53 = vand.u32 2147483647, %v7327_v9 }
 0x39b   : > { %v3846_v44 = vsub.f32 1.0, %v3845_v37  ;;  %v3842_v48 = vsel %vm3839_vm3, %v3841_v45, %v3837_v46 }
 0x39c   : > { %v7339_v18 = vadd.f32 %v7166_v54, %v3433_v57  ;;  %v4127_v33 = vmul.f32 %v3842_v48, %v7242_v20  ;;  %vm3869_vm14 = vcmp.eq.f32.partialorder %v3868_v53, 8.507059e+37 }
 0x39d   : > { %v3847_v1 = vmul.f32 %v7325_v42, %v3846_v44 }
 0x39e   : > { %4157 = vxpose.xlu1.b32.cont [12/16] (narrow) %v4125_v16, 64  ;;  %v5090_v34 = vpop.eup %5089  ;;  %v4840_v61 = vmul.f32 -1.442695, %v7339_v18 }
 0x39f   : > { %v7345_v49 = vpop.eup %5091  ;;  %v7347_v58 = vadd.f32 1.0, %v5090_v34  ;;  %v3848_v0 = vadd.f32 %v7325_v42, %v3847_v1  ;;  %v3291_v47 = vpop.f32.mrf.mxu1 }
 0x3a0   : > { %5093 = vpow2.f32 %v4840_v61  ;;  %v3860_v29 = vmul.f32 %v7345_v49, %v7327_v9  ;;  %vm3865_vm7 = vweird.f32 %v7345_v49  ;;  %v3871_v9 = vor.u32 1.1754944e-38, %v3870_v11 }
 0x3a1   : > { %5095 = vrcp.f32 %v7347_v58  ;;  %v3435_v10 = vpop.f32.mrf.mxu2  ;;  %v3852_v15 = vsel %vm3851_vm0, %v7325_v42, %v3848_v0  ;;  %v3883_v20 = vand.u32 2147483647, %v7347_v58  ;;  %v3885_v7 = vand.u32 2147483648, %v7347_v58  ;;  %vm7385_vm10 = vmor %vm3864_vm9, %vm3865_vm7 }
 0x3a2   : > { %v3436_v40 = vadd.f32 %v3435_v10, %v3286_v22  ;;  %v3861_v6 = vsub.f32 1.0, %v3860_v29  ;;  %v3857_v32 = vsel %vm3854_vm6, %v3856_v3, %v3852_v15  ;;  %vm3879_vm11 = vweird.f32 %v7347_v58 }
 0x3a3   : > { %v4128_v27 = vmul.f32 %v3857_v32, %v7284_v38  ;;  %vm3884_vm13 = vcmp.eq.f32.partialorder %v3883_v20, 8.507059e+37  ;;  %v3886_v37 = vor.u32 1.1754944e-38, %v3885_v7 }
 0x3a4   : > { %v7359_v4 = vadd.f32 %v7166_v54, %v3436_v40  ;;  %v3862_v39 = vmul.f32 %v7345_v49, %v3861_v6 }
 0x3a6   : > { %4158 = vxpose.xlu1.b32.cont [13/16] (narrow) %v4126_v2, 64  ;;  %v5094_v21 = vpop.eup %5093  ;;  %v4841_v55 = vmul.f32 -1.442695, %v7359_v4  ;;  %v3863_v25 = vadd.f32 %v7345_v49, %v3862_v39 }
 0x3a7   : > { %v5096_v17 = vpop.eup %5095  ;;  %v7366_v12 = vadd.f32 1.0, %v5094_v21  ;;  %v3293_v8 = vpop.f32.mrf.mxu1 }
 0x3a8   : > { %5097 = vpow2.f32 %v4841_v55  ;;  %v3875_v51 = vmul.f32 %v5096_v17, %v7347_v58  ;;  %vm3880_vm8 = vweird.f32 %v5096_v17  ;;  %v3867_v31 = vsel %vm7385_vm10, %v7345_v49, %v3863_v25 }
 0x3a9   : > { %5099 = vrcp.f32 %v7366_v12  ;;  %v3437_v52 = vpop.f32.mrf.mxu2  ;;  %vm3881_vm12 = vmor %vm3879_vm11, %vm3880_vm8  ;;  %v3872_v23 = vsel %vm3869_vm14, %v3871_v9, %v3867_v31  ;;  %v3900_v56 = vand.u32 2147483648, %v7366_v12  ;;  %v3898_v50 = vand.u32 2147483647, %v7366_v12 }
 0x3aa   : > { %v3438_v13 = vadd.f32 %v3437_v52, %v3288_v28  ;;  %v3876_v59 = vsub.f32 1.0, %v3875_v51  ;;  %vm3894_vm1 = vweird.f32 %v7366_v12  ;;  %v4129_v29 = vmul.f32 %v3872_v23, %v7304_v36 }
 0x3ab   : > { %v3901_v46 = vor.u32 1.1754944e-38, %v3900_v56  ;;  %vm3899_vm3 = vcmp.eq.f32.partialorder %v3898_v50, 8.507059e+37 }
 0x3ac   : > { %v7379_v24 = vadd.f32 %v7166_v54, %v3438_v13  ;;  %v3877_v22 = vmul.f32 %v5096_v17, %v3876_v59 }
 0x3ae   : > { %4159 = vxpose.xlu1.b32.cont [14/16] (narrow) %v4127_v33, 64  ;;  %v5098_v35 = vpop.eup %5097  ;;  %v4842_v41 = vmul.f32 -1.442695, %v7379_v24  ;;  %v3878_v42 = vadd.f32 %v5096_v17, %v3877_v22 }
 0x3af   : > { %v5100_v62 = vpop.eup %5099  ;;  %v7391_v16 = vadd.f32 1.0, %v5098_v35  ;;  %v3296_v19 = vpop.f32.mrf.mxu1 }
 0x3b0   : > { %5101 = vpow2.f32 %v4842_v41  ;;  %v3882_v43 = vsel %vm3881_vm12, %v5096_v17, %v3878_v42  ;;  %v3890_v30 = vmul.f32 %v5100_v62, %v7366_v12  ;;  %vm3895_vm15 = vweird.f32 %v5100_v62 }
 0x3b1   : > { %5103 = vrcp.f32 %v7391_v16  ;;  %v3440_v57 = vpop.f32.mrf.mxu2  ;;  %v3887_v60 = vsel %vm3884_vm13, %v3886_v37, %v3882_v43  ;;  %vm3896_vm2 = vmor %vm3894_vm1, %vm3895_vm15  ;;  %v3915_v63 = vand.u32 2147483648, %v7391_v16  ;;  %v3913_v55 = vand.u32 2147483647, %v7391_v16 }
 0x3b2   : > { %v3441_v28 = vadd.f32 %v3440_v57, %v3291_v47  ;;  %v4130_v38 = vmul.f32 %v3887_v60, %v7320_v5  ;;  %v3891_v44 = vsub.f32 1.0, %v3890_v30  ;;  %vm3909_vm5 = vweird.f32 %v7391_v16 }
 0x3b3   : > { %v3916_v15 = vor.u32 1.1754944e-38, %v3915_v63  ;;  %vm3914_vm6 = vcmp.eq.f32.partialorder %v3913_v55, 8.507059e+37 }
 0x3b4   : > { %v7402_v34 = vadd.f32 %v7166_v54, %v3441_v28  ;;  %4178 = vxpose.xlu2.b32.start [1/16] (narrow) %v4130_v38, 64  ;;  %v3892_v61 = vmul.f32 %v5100_v62, %v3891_v44 }
 0x3b6   : > { %4160 = vxpose.xlu1.b32.cont [15/16] (narrow) %v4128_v27, 64  ;;  %v5102_v49 = vpop.eup %5101  ;;  %v4843_v58 = vmul.f32 -1.442695, %v7402_v34  ;;  %v3893_v2 = vadd.f32 %v5100_v62, %v3892_v61 }
 0x3b7   : > { %v5104_v5 = vpop.eup %5103  ;;  %v3621_v1 = vadd.f32 1.0, %v5102_v49  ;;  %v3298_v39 = vpop.f32.mrf.mxu1 }
 0x3b8   : > { %5105 = vpow2.f32 %v4843_v58  ;;  %v3897_v10 = vsel %vm3896_vm2, %v5100_v62, %v3893_v2  ;;  %v3905_v45 = vmul.f32 %v5104_v5, %v7391_v16  ;;  %vm3910_vm4 = vweird.f32 %v5104_v5 }
 0x3b9   : > { %5107 = vrcp.f32 %v3621_v1  ;;  %v3442_v40 = vpop.f32.mrf.mxu2  ;;  %v3902_v48 = vsel %vm3899_vm3, %v3901_v46, %v3897_v10  ;;  %vm3911_vm0 = vmor %vm3909_vm5, %vm3910_vm4  ;;  %v3930_v7 = vand.u32 2147483648, %v3621_v1  ;;  %v3928_v22 = vand.u32 2147483647, %v3621_v1 }
 0x3ba   : > { %v3443_v0 = vadd.f32 %v3442_v40, %v3293_v8  ;;  %v4131_v47 = vmul.f32 %v3902_v48, %v7339_v18  ;;  %v3906_v6 = vsub.f32 1.0, %v3905_v45  ;;  %vm3924_vm8 = vweird.f32 %v3621_v1 }
 0x3bb   : > { %v3931_v42 = vor.u32 1.1754944e-38, %v3930_v7  ;;  %vm3929_vm10 = vcmp.eq.f32.partialorder %v3928_v22, 8.507059e+37 }
 0x3bc   : > { %v7412_v21 = vadd.f32 %v7166_v54, %v3443_v0  ;;  %4179 = vxpose.xlu2.b32.cont [2/16] (narrow) %v4131_v47, 64  ;;  %v3907_v36 = vmul.f32 %v5104_v5, %v3906_v6 }
 0x3be   : > { %4161 = vxpose.xlu1.b32.end [16/16] (narrow) %v4129_v29, 64  ;;  %v5106_v14 = vpop.eup %5105  ;;  %v4844_v17 = vmul.f32 -1.442695, %v7412_v21  ;;  %v3908_v12 = vadd.f32 %v5104_v5, %v3907_v36 }
 0x3bf   : > { %v5108_v33 = vpop.eup %5107  ;;  %v3622_v18 = vadd.f32 1.0, %v5106_v14  ;;  %v3301_v37 = vpop.f32.mrf.mxu1 }
 0x3c0   : > { %5109 = vpow2.f32 %v4844_v17  ;;  %v3912_v51 = vsel %vm3911_vm0, %v5104_v5, %v3908_v12  ;;  %v3920_v3 = vmul.f32 %v5108_v33, %v3621_v1  ;;  %vm3925_vm7 = vweird.f32 %v5108_v33 }
 0x3c1   : > { %5111 = vrcp.f32 %v3622_v18  ;;  %v3445_v52 = vpop.f32.mrf.mxu2  ;;  %v3917_v13 = vsel %vm3914_vm6, %v3916_v15, %v3912_v51  ;;  %vm3926_vm9 = vmor %vm3924_vm8, %vm3925_vm7  ;;  %v3945_v9 = vand.u32 2147483648, %v3622_v18  ;;  %v3943_v28 = vand.u32 2147483647, %v3622_v18 }
 0x3c2   : > { %v3446_v59 = vadd.f32 %v3445_v52, %v3296_v19  ;;  %v4132_v32 = vmul.f32 %v3917_v13, %v7359_v4  ;;  %v3921_v20 = vsub.f32 1.0, %v3920_v3  ;;  %vm3939_vm12 = vweird.f32 %v3622_v18 }
 0x3c3   : > { %v3946_v50 = vor.u32 1.1754944e-38, %v3945_v9  ;;  %vm3944_vm14 = vcmp.eq.f32.partialorder %v3943_v28, 8.507059e+37 }
 0x3c4   : > { %v7419_v25 = vadd.f32 %v7166_v54, %v3446_v59  ;;  %4180 = vxpose.xlu2.b32.cont [3/16] (narrow) %v4132_v32, 64  ;;  %v3922_v8 = vmul.f32 %v5108_v33, %v3921_v20 }
 0x3c6   : > { %v5110_v11 = vpop.eup %5109  ;;  %v4845_v35 = vmul.f32 -1.442695, %v7419_v25  ;;  %v3923_v41 = vadd.f32 %v5108_v33, %v3922_v8 }
 0x3c7   : > { %v5112_v26 = vpop.eup %5111  ;;  %v3623_v53 = vadd.f32 1.0, %v5110_v11  ;;  %v3303_v1 = vpop.f32.mrf.mxu1 }
 0x3c8   : > { %5113 = vpow2.f32 %v4845_v35  ;;  %v3927_v4 = vsel %vm3926_vm9, %v5108_v33, %v3923_v41  ;;  %v3935_v62 = vmul.f32 %v5112_v26, %v3622_v18  ;;  %vm3940_vm11 = vweird.f32 %v5112_v26 }
 0x3c9   : > { %5115 = vrcp.f32 %v3623_v53  ;;  %v3447_v16 = vpop.f32.mrf.mxu2  ;;  %v3932_v27 = vsel %vm3929_vm10, %v3931_v42, %v3927_v4  ;;  %vm3941_vm13 = vmor %vm3939_vm12, %vm3940_vm11  ;;  %v3960_v5 = vand.u32 2147483648, %v3623_v53  ;;  %v3958_v46 = vand.u32 2147483647, %v3623_v53 }
 0x3ca   : > { %v3448_v31 = vadd.f32 %v3447_v16, %v3298_v39  ;;  %v4133_v43 = vmul.f32 %v3932_v27, %v7379_v24  ;;  %v3936_v30 = vsub.f32 1.0, %v3935_v62  ;;  %vm3954_vm1 = vweird.f32 %v3623_v53 }
 0x3cb   : > { %v3961_v47 = vor.u32 1.1754944e-38, %v3960_v5  ;;  %vm3959_vm3 = vcmp.eq.f32.partialorder %v3958_v46, 8.507059e+37 }
 0x3cc   : > { %v7424_v57 = vadd.f32 %v7166_v54, %v3448_v31  ;;  %4181 = vxpose.xlu2.b32.cont [4/16] (narrow) %v4133_v43, 64  ;;  %v3937_v60 = vmul.f32 %v5112_v26, %v3936_v30 }
 0x3ce   : > { %v5114_v38 = vpop.eup %5113  ;;  %v4846_v44 = vmul.f32 -1.442695, %v7424_v57  ;;  %v3938_v23 = vadd.f32 %v5112_v26, %v3937_v60 }
 0x3cf   : > { %v5116_v56 = vpop.eup %5115  ;;  %v3624_v61 = vadd.f32 1.0, %v5114_v38  ;;  %v3306_v39 = vpop.f32.mrf.mxu1 }
 0x3d0   : > { %5117 = vpow2.f32 %v4846_v44  ;;  %v3942_v24 = vsel %vm3941_vm13, %v5112_v26, %v3938_v23  ;;  %v3950_v49 = vmul.f32 %v5116_v56, %v3623_v53  ;;  %vm3955_vm15 = vweird.f32 %v5116_v56 }
 0x3d1   : > { %5119 = vrcp.f32 %v3624_v61  ;;  %v3947_v58 = vsel %vm3944_vm14, %v3946_v50, %v3942_v24  ;;  %vm3956_vm2 = vmor %vm3954_vm1, %vm3955_vm15  ;;  %v3975_v12 = vand.u32 2147483648, %v3624_v61  ;;  %v3973_v15 = vand.u32 2147483647, %v3624_v61 }
 0x3d2   : > { %v4134_v19 = vmul.f32 %v3947_v58, %v7402_v34  ;;  %v3951_v2 = vsub.f32 1.0, %v3950_v49  ;;  %vm3969_vm5 = vweird.f32 %v3624_v61 }
 0x3d3   : > { %v3976_v13 = vor.u32 1.1754944e-38, %v3975_v12  ;;  %vm3974_vm6 = vcmp.eq.f32.partialorder %v3973_v15, 8.507059e+37 }
 0x3d4   : > { %4182 = vxpose.xlu2.b32.cont [5/16] (narrow) %v4134_v19, 64  ;;  %v3952_v29 = vmul.f32 %v5116_v56, %v3951_v2 }
 0x3d6   : > { %v5118_v10 = vpop.eup %5117  ;;  %v3953_v45 = vadd.f32 %v5116_v56, %v3952_v29 }
 0x3d7   : > { %v5120_v40 = vpop.eup %5119  ;;  %v3625_v48 = vadd.f32 1.0, %v5118_v10  ;;  %v3308_v16 = vpop.f32.mrf.mxu1 }
 0x3d8   : > { %v3450_v0 = vpop.f32.mrf.mxu2  ;;  %v3957_v63 = vsel %vm3956_vm2, %v5116_v56, %v3953_v45  ;;  %v3965_v36 = vmul.f32 %v5120_v40, %v3624_v61  ;;  %vm3970_vm4 = vweird.f32 %v5120_v40 }
 0x3d9   : > { %v3451_v6 = vadd.f32 %v3450_v0, %v3301_v37  ;;  %5121 = vrcp.f32 %v3625_v48  ;;  %v3962_v34 = vsel %vm3959_vm3, %v3961_v47, %v3957_v63  ;;  %vm3971_vm0 = vmor %vm3969_vm5, %vm3970_vm4  ;;  %v3990_v11 = vand.u32 2147483648, %v3625_v48 }
 0x3da   : > { %v4135_v14 = vmul.f32 %v3962_v34, %v7412_v21  ;;  %v3966_v17 = vsub.f32 1.0, %v3965_v36  ;;  %v3988_v53 = vand.u32 2147483647, %v3625_v48  ;;  %vm3984_vm8 = vweird.f32 %v3625_v48 }
 0x3db   : > { %v7429_v55 = vadd.f32 %v7166_v54, %v3451_v6  ;;  %v3991_v62 = vor.u32 1.1754944e-38, %v3990_v11 }
 0x3dc   : > { %4183 = vxpose.xlu2.b32.cont [6/16] (narrow) %v4135_v14, 64  ;;  %v3967_v18 = vmul.f32 %v5120_v40, %v3966_v17  ;;  %vm3989_vm10 = vcmp.eq.f32.partialorder %v3988_v53, 8.507059e+37 }
 0x3dd   : > { %v4847_v33 = vmul.f32 -1.442695, %v7429_v55 }
 0x3de   : > { %v3968_v51 = vadd.f32 %v5120_v40, %v3967_v18 }
 0x3df   : > { %5123 = vpow2.f32 %v4847_v33  ;;  %v5122_v3 = vpop.eup %5121  ;;  %v3311_v24 = vpop.f32.mrf.mxu1 }
 0x3e0   : > { %v3452_v52 = vpop.f32.mrf.mxu2  ;;  %v3972_v32 = vsel %vm3971_vm0, %v5120_v40, %v3968_v51  ;;  %v3980_v21 = vmul.f32 %v5122_v3, %v3625_v48  ;;  %vm3985_vm7 = vweird.f32 %v5122_v3 }
 0x3e1   : > { %v3453_v59 = vadd.f32 %v3452_v52, %v3303_v1  ;;  %v3977_v20 = vsel %vm3974_vm6, %v3976_v13, %v3972_v32  ;;  %vm3986_vm9 = vmor %vm3984_vm8, %vm3985_vm7 }
 0x3e2   : > { %v4136_v8 = vmul.f32 %v3977_v20, %v7419_v25  ;;  %v3981_v22 = vsub.f32 1.0, %v3980_v21 }
 0x3e3   : > { %v7434_v7 = vadd.f32 %v7166_v54, %v3453_v59 }
 0x3e4   : > { %4184 = vxpose.xlu2.b32.cont [7/16] (narrow) %v4136_v8, 64  ;;  %v3982_v26 = vmul.f32 %v5122_v3, %v3981_v22 }
 0x3e5   : > { %v5124_v35 = vpop.eup %5123  ;;  %v4848_v41 = vmul.f32 -1.442695, %v7434_v7 }
 0x3e6   : > { %v3626_v42 = vadd.f32 1.0, %v5124_v35  ;;  %v3983_v4 = vadd.f32 %v5122_v3, %v3982_v26 }
 0x3e7   : > { %5125 = vpow2.f32 %v4848_v41  ;;  %v3313_v17 = vpop.f32.mrf.mxu1 }
 0x3e8   : > { %5127 = vrcp.f32 %v3626_v42  ;;  %v3987_v37 = vsel %vm3986_vm9, %v5122_v3, %v3983_v4  ;;  %v4005_v50 = vand.u32 2147483648, %v3626_v42  ;;  %vm3999_vm12 = vweird.f32 %v3626_v42 }
 0x3e9   : > { %v3992_v31 = vsel %vm3989_vm10, %v3991_v62, %v3987_v37 }
 0x3ea   : > { %v3455_v27 = vpop.f32.mrf.mxu2  ;;  %v4137_v43 = vmul.f32 %v3992_v31, %v7424_v57  ;;  %v4003_v57 = vand.u32 2147483647, %v3626_v42  ;;  %v4006_v1 = vor.u32 1.1754944e-38, %v4005_v50 }
 0x3eb   : > { %v3456_v25 = vadd.f32 %v3455_v27, %v3306_v39 }
 0x3ec   : > { %4185 = vxpose.xlu2.b32.cont [8/16] (narrow) %v4137_v43, 64  ;;  %vm4004_vm14 = vcmp.eq.f32.partialorder %v4003_v57, 8.507059e+37 }
 0x3ed   : > { %v7440_v30 = vadd.f32 %v7166_v54, %v3456_v25  ;;  %v5126_v9 = vpop.eup %5125 }
 0x3ee   : > { %v5128_v60 = vpop.eup %5127  ;;  %v3627_v28 = vadd.f32 1.0, %v5126_v9  ;;  %v5174_v9 = vld [vmem:[%s7503_s6] ss:$0 sm:$0xff] }
 0x3ef   : > { %v4849_v38 = vmul.f32 -1.442695, %v7440_v30  ;;  %v3995_v44 = vmul.f32 %v5128_v60, %v3626_v42  ;;  %vm4000_vm11 = vweird.f32 %v5128_v60 }
 0x3f0   : > { %5129 = vrcp.f32 %v3627_v28  ;;  %vm4001_vm13 = vmor %vm3999_vm12, %vm4000_vm11  ;;  %v4020_v63 = vand.u32 2147483648, %v3627_v28  ;;  %v4018_v34 = vand.u32 2147483647, %v3627_v28  ;;  %vm4014_vm1 = vweird.f32 %v3627_v28 }
 0x3f1   : > { %5131 = vpow2.f32 %v4849_v38  ;;  %v3996_v56 = vsub.f32 1.0, %v3995_v44 }
 0x3f2   : > { %v3457_v23 = vpop.f32.mrf.mxu2  ;;  %v4021_v15 = vor.u32 1.1754944e-38, %v4020_v63  ;;  %vm4019_vm3 = vcmp.eq.f32.partialorder %v4018_v34, 8.507059e+37  ;;  %v3316_v42 = vpop.f32.mrf.mxu1 }
 0x3f3   : > { %v3458_v61 = vadd.f32 %v3457_v23, %v3308_v16  ;;  %v3997_v49 = vmul.f32 %v5128_v60, %v3996_v56 }
 0x3f5   : > { %v7444_v58 = vadd.f32 %v7166_v54, %v3458_v61  ;;  %v3998_v19 = vadd.f32 %v5128_v60, %v3997_v49 }
 0x3f6   : > { %v5130_v2 = vpop.eup %5129 }
 0x3f7   : > { %v4850_v5 = vmul.f32 -1.442695, %v7444_v58  ;;  %v5132_v29 = vpop.eup %5131  ;;  %v4002_v46 = vsel %vm4001_vm13, %v5128_v60, %v3998_v19  ;;  %v4010_v10 = vmul.f32 %v5130_v2, %v3627_v28  ;;  %vm4015_vm15 = vweird.f32 %v5130_v2 }
 0x3f8   : > { %v3628_v45 = vadd.f32 1.0, %v5132_v29  ;;  %v4007_v40 = vsel %vm4004_vm14, %v4006_v1, %v4002_v46  ;;  %vm4016_vm2 = vmor %vm4014_vm1, %vm4015_vm15 }
 0x3f9   : > { %5133 = vpow2.f32 %v4850_v5  ;;  %v4138_v0 = vmul.f32 %v4007_v40, %v7429_v55  ;;  %v4011_v47 = vsub.f32 1.0, %v4010_v10 }
 0x3fa   : > { %v3460_v48 = vpop.f32.mrf.mxu2  ;;  %5135 = vrcp.f32 %v3628_v45  ;;  %v4035_v8 = vand.u32 2147483648, %v3628_v45  ;;  %v4033_v11 = vand.u32 2147483647, %v3628_v45  ;;  %vm4029_vm5 = vweird.f32 %v3628_v45  ;;  %v3318_v57 = vpop.f32.mrf.mxu1 }
 0x3fb   : > { %v3461_v6 = vadd.f32 %v3460_v48, %v3311_v24  ;;  %4186 = vxpose.xlu2.b32.cont [9/16] (narrow) %v4138_v0, 64  ;;  %v4012_v36 = vmul.f32 %v5130_v2, %v4011_v47 }
 0x3fc   : > { %vm4034_vm6 = vcmp.eq.f32.partialorder %v4033_v11, 8.507059e+37 }
 0x3fd   : > { %v7449_v14 = vadd.f32 %v7166_v54, %v3461_v6  ;;  %v4013_v12 = vadd.f32 %v5130_v2, %v4012_v36 }
 0x3ff   : > { %v5134_v33 = vpop.eup %5133  ;;  %v4851_v18 = vmul.f32 -1.442695, %v7449_v14  ;;  %v4017_v39 = vsel %vm4016_vm2, %v5130_v2, %v4013_v12 }
 0x400   : > { %v3629_v55 = vadd.f32 1.0, %v5134_v33  ;;  %v5136_v51 = vpop.eup %5135  ;;  %v4022_v3 = vsel %vm4019_vm3, %v4021_v15, %v4017_v39 }
 0x401   : > { %5137 = vpow2.f32 %v4851_v18  ;;  %v4139_v13 = vmul.f32 %v4022_v3, %v7434_v7  ;;  %v4025_v59 = vmul.f32 %v5136_v51, %v3628_v45  ;;  %vm4030_vm4 = vweird.f32 %v5136_v51 }
 0x402   : > { %5139 = vrcp.f32 %v3629_v55  ;;  %v3462_v52 = vpop.f32.mrf.mxu2  ;;  %vm4031_vm0 = vmor %vm4029_vm5, %vm4030_vm4  ;;  %v4036_v7 = vor.u32 1.1754944e-38, %v4035_v8  ;;  %v4050_v43 = vand.u32 2147483648, %v3629_v55  ;;  %v4048_v38 = vand.u32 2147483647, %v3629_v55 }
 0x403   : > { %v3463_v32 = vadd.f32 %v3462_v52, %v3313_v17  ;;  %4187 = vxpose.xlu2.b32.cont [10/16] (narrow) %v4139_v13, 64  ;;  %v4026_v21 = vsub.f32 1.0, %v4025_v59  ;;  %vm4044_vm8 = vweird.f32 %v3629_v55 }
 0x404   : > { %vm4049_vm10 = vcmp.eq.f32.partialorder %v4048_v38, 8.507059e+37 }
 0x405   : > { %v7454_v20 = vadd.f32 %v7166_v54, %v3463_v32  ;;  %v4027_v22 = vmul.f32 %v5136_v51, %v4026_v21 }
 0x407   : > { %v5138_v35 = vpop.eup %5137  ;;  %v4852_v41 = vmul.f32 -1.442695, %v7454_v20  ;;  %v4028_v4 = vadd.f32 %v5136_v51, %v4027_v22 }
 0x408   : > { %v5140_v26 = vpop.eup %5139  ;;  %v3630_v53 = vadd.f32 1.0, %v5138_v35 }
 0x409   : > { %5141 = vpow2.f32 %v4852_v41  ;;  %v4040_v62 = vmul.f32 %v5140_v26, %v3629_v55  ;;  %v4032_v54 = vsel %vm4031_vm0, %v5136_v51, %v4028_v4  ;;  %vm4045_vm7 = vweird.f32 %v5140_v26 }
 0x40a   : > { %5143 = vrcp.f32 %v3630_v53  ;;  %v3465_v16 = vpop.f32.mrf.mxu2  ;;  %v4037_v37 = vsel %vm4034_vm6, %v4036_v7, %v4032_v54  ;;  %vm4046_vm9 = vmor %vm4044_vm8, %vm4045_vm7  ;;  %v4065_v46 = vand.u32 2147483648, %v3630_v53  ;;  %v4063_v40 = vand.u32 2147483647, %v3630_v53 }
 0x40b   : > { %v3466_v27 = vadd.f32 %v3465_v16, %v3316_v42  ;;  %v4041_v25 = vsub.f32 1.0, %v4040_v62  ;;  %v4140_v31 = vmul.f32 %v4037_v37, %v7440_v30  ;;  %v4051_v30 = vor.u32 1.1754944e-38, %v4050_v43 }
 0x40c   : > { %vm4059_vm12 = vweird.f32 %v3630_v53  ;;  %v4066_v36 = vor.u32 1.1754944e-38, %v4065_v46  ;;  %vm4064_vm14 = vcmp.eq.f32.partialorder %v4063_v40, 8.507059e+37 }
 0x40d   : > { %v7461_v60 = vadd.f32 %v5174_v9, %v3466_v27  ;;  %v4042_v28 = vmul.f32 %v5140_v26, %v4041_v25  ;;  %4188 = vxpose.xlu2.b32.cont [11/16] (narrow) %v4140_v31, 64 }
 0x40f   : > { %v5142_v44 = vpop.eup %5141  ;;  %v4853_v23 = vmul.f32 -1.442695, %v7461_v60  ;;  %v4043_v56 = vadd.f32 %v5140_v26, %v4042_v28 }
 0x410   : > { %v5144_v61 = vpop.eup %5143  ;;  %v3631_v50 = vadd.f32 1.0, %v5142_v44 }
 0x411   : > { %5145 = vpow2.f32 %v4853_v23  ;;  %v4047_v24 = vsel %vm4046_vm9, %v5140_v26, %v4043_v56  ;;  %v4055_v49 = vmul.f32 %v5144_v61, %v3630_v53  ;;  %vm4060_vm11 = vweird.f32 %v5144_v61 }
 0x412   : > { %5147 = vrcp.f32 %v3631_v50  ;;  %v3467_v19 = vpop.f32.mrf.mxu2  ;;  %v4052_v2 = vsel %vm4049_vm10, %v4051_v30, %v4047_v24  ;;  %vm4061_vm13 = vmor %vm4059_vm12, %vm4060_vm11  ;;  %v4080_v18 = vand.u32 2147483648, %v3631_v50  ;;  %v4078_v55 = vand.u32 2147483647, %v3631_v50 }
 0x413   : > { %v3468_v5 = vadd.f32 %v3467_v19, %v3318_v57  ;;  %v4141_v1 = vmul.f32 %v4052_v2, %v7444_v58  ;;  %v4056_v29 = vsub.f32 1.0, %v4055_v49  ;;  %vm4074_vm1 = vweird.f32 %v3631_v50 }
 0x414   : > { %v4081_v13 = vor.u32 1.1754944e-38, %v4080_v18  ;;  %vm4079_vm3 = vcmp.eq.f32.partialorder %v4078_v55, 8.507059e+37 }
 0x415   : > { %v7465_v10 = vadd.f32 %v5174_v9, %v3468_v5  ;;  %v4057_v45 = vmul.f32 %v5144_v61, %v4056_v29  ;;  %4189 = vxpose.xlu2.b32.cont [12/16] (narrow) %v4141_v1, 64 }
 0x417   : > { %v5146_v48 = vpop.eup %5145  ;;  %v4854_v0 = vmul.f32 -1.442695, %v7465_v10  ;;  %v4058_v47 = vadd.f32 %v5144_v61, %v4057_v45 }
 0x418   : > { %v5148_v6 = vpop.eup %5147  ;;  %v3632_v63 = vadd.f32 1.0, %v5146_v48 }
 0x419   : > { %5149 = vpow2.f32 %v4854_v0  ;;  %v4062_v34 = vsel %vm4061_vm13, %v5144_v61, %v4058_v47  ;;  %v4070_v58 = vmul.f32 %v5148_v6, %v3631_v50  ;;  %vm4075_vm15 = vweird.f32 %v5148_v6 }
 0x41a   : > { %5151 = vrcp.f32 %v3632_v63  ;;  %v4067_v17 = vsel %vm4064_vm14, %v4066_v36, %v4062_v34  ;;  %vm4076_vm2 = vmor %vm4074_vm1, %vm4075_vm15  ;;  %v4095_v22 = vand.u32 2147483648, %v3632_v63  ;;  %v4093_v35 = vand.u32 2147483647, %v3632_v63 }
 0x41b   : > { %v4142_v12 = vmul.f32 %v4067_v17, %v7449_v14  ;;  %v4071_v33 = vsub.f32 1.0, %v4070_v58  ;;  %vm4089_vm5 = vweird.f32 %v3632_v63 }
 0x41c   : > { %v4096_v53 = vor.u32 1.1754944e-38, %v4095_v22  ;;  %vm4094_vm6 = vcmp.eq.f32.partialorder %v4093_v35, 8.507059e+37 }
 0x41d   : > { %v4072_v15 = vmul.f32 %v5148_v6, %v4071_v33  ;;  %4190 = vxpose.xlu2.b32.cont [13/16] (narrow) %v4142_v12, 64 }
 0x41f   : > { %v5150_v39 = vpop.eup %5149  ;;  %v4073_v51 = vadd.f32 %v5148_v6, %v4072_v15 }
 0x420   : > { %v5152_v3 = vpop.eup %5151  ;;  %v3633_v52 = vadd.f32 1.0, %v5150_v39 }
 0x421   : > { %v4077_v59 = vsel %vm4076_vm2, %v5148_v6, %v4073_v51  ;;  %v4085_v32 = vmul.f32 %v5152_v3, %v3632_v63  ;;  %vm4090_vm4 = vweird.f32 %v5152_v3 }
 0x422   : > { %5153 = vrcp.f32 %v3633_v52  ;;  %v4082_v21 = vsel %vm4079_vm3, %v4081_v13, %v4077_v59  ;;  %vm4091_vm0 = vmor %vm4089_vm5, %vm4090_vm4  ;;  %v4108_v27 = vand.u32 2147483647, %v3633_v52  ;;  %vm4104_vm8 = vweird.f32 %v3633_v52 }
 0x423   : > { %v4143_v14 = vmul.f32 %v4082_v21, %v7454_v20  ;;  %v4086_v8 = vsub.f32 1.0, %v4085_v32  ;;  %v4110_v20 = vand.u32 2147483648, %v3633_v52 }
 0x424   : > { %vm4109_vm10 = vcmp.eq.f32.partialorder %v4108_v27, 8.507059e+37 }
 0x425   : > { %v4087_v11 = vmul.f32 %v5152_v3, %v4086_v8  ;;  %4191 = vxpose.xlu2.b32.cont [14/16] (narrow) %v4143_v14, 64  ;;  %v4111_v25 = vor.u32 1.1754944e-38, %v4110_v20 }
 0x427   : > { %v4088_v41 = vadd.f32 %v5152_v3, %v4087_v11 }
 0x428   : > { %v5154_v26 = vpop.eup %5153 }
 0x429   : > { %v4092_v42 = vsel %vm4091_vm0, %v5152_v3, %v4088_v41  ;;  %v4100_v4 = vmul.f32 %v5154_v26, %v3633_v52  ;;  %vm4105_vm7 = vweird.f32 %v5154_v26 }
 0x42a   : > { %v4097_v7 = vsel %vm4094_vm6, %v4096_v53, %v4092_v42  ;;  %vm4106_vm9 = vmor %vm4104_vm8, %vm4105_vm7 }
 0x42b   : > { %v4144_v62 = vmul.f32 %v4097_v7, %v7461_v60  ;;  %v4101_v16 = vsub.f32 1.0, %v4100_v4  ;;  %v4162_v60 = vpop.trf.xlu1 }
 0x42c   : > { %4210 = vst [vmem:[%s7476_s9] sm:$0xff] %v4162_v60 }
 0x42d   : > { %v4102_v54 = vmul.f32 %v5154_v26, %v4101_v16  ;;  %4192 = vxpose.xlu2.b32.cont [15/16] (narrow) %v4144_v62, 64 }
 0x42f   : > { %v4103_v37 = vadd.f32 %v5154_v26, %v4102_v54 }
 0x431   : > { %v4107_v31 = vsel %vm4106_vm9, %v5154_v26, %v4103_v37 }
 0x432   : > { %v4112_v43 = vsel %vm4109_vm10, %v4111_v25, %v4107_v31 }
 0x433   : > { %v4145_v9 = vmul.f32 %v4112_v43, %v7465_v10  ;;  %v4163_v28 = vpop.trf.xlu1 }
 0x434   : > { %4212 = vst [vmem:[%s7476_s9 + $0x10] sm:$0xff] %v4163_v28 }
 0x435   : > { %4193 = vxpose.xlu2.b32.end [16/16] (narrow) %v4145_v9, 64 }
 0x43b   : > { %v4164_v38 = vpop.trf.xlu1 }
 0x43c   : > { %4214 = vst [vmem:[%s7476_s9 + $0x20] sm:$0xff] %v4164_v38 }
 0x443   : > { %v4165_v44 = vpop.trf.xlu1 }
 0x444   : > { %4216 = vst [vmem:[%s7476_s9 + $0x30] sm:$0xff] %v4165_v44 }
 0x44b   : > { %v4166_v56 = vpop.trf.xlu1 }
 0x44c   : > { %4218 = vst [vmem:[%s7476_s9 + $0x40] sm:$0xff] %v4166_v56 }
 0x453   : > { %v4167_v50 = vpop.trf.xlu1 }
 0x454   : > { %4220 = vst [vmem:[%s7476_s9 + $0x50] sm:$0xff] %v4167_v50 }
 0x456   : > { %v4194_v23 = vpop.trf.xlu2 }
 0x457   : > { %4211 = vst [vmem:[%s7476_s9 + $0x8] sm:$0xff] %v4194_v23 }
 0x45b   : > { %v4168_v24 = vpop.trf.xlu1 }
 0x45c   : > { %4222 = vst [vmem:[%s7476_s9 + $0x60] sm:$0xff] %v4168_v24 }
 0x45e   : > { %v4195_v61 = vpop.trf.xlu2 }
 0x45f   : > { %4213 = vst [vmem:[%s7476_s9 + $0x18] sm:$0xff] %v4195_v61 }
 0x463   : > { %v4169_v57 = vpop.trf.xlu1 }
 0x464   : > { %4224 = vst [vmem:[%s7476_s9 + $0x70] sm:$0xff] %v4169_v57 }
 0x466   : > { %v4196_v30 = vpop.trf.xlu2 }
 0x467   : > { %4215 = vst [vmem:[%s7476_s9 + $0x28] sm:$0xff] %v4196_v30 }
 0x46e   : > { %v4197_v49 = vpop.trf.xlu2 }
 0x46f   : > { %4217 = vst [vmem:[%s7476_s9 + $0x38] sm:$0xff] %v4197_v49 }
 0x476   : > { %v4198_v19 = vpop.trf.xlu2 }
 0x477   : > { %4219 = vst [vmem:[%s7476_s9 + $0x48] sm:$0xff] %v4198_v19 }
 0x47e   : > { %v4199_v2 = vpop.trf.xlu2 }
 0x47f   : > { %4221 = vst [vmem:[%s7476_s9 + $0x58] sm:$0xff] %v4199_v2 }
 0x486   : > { %v4200_v5 = vpop.trf.xlu2 }
 0x487   : > { %4223 = vst [vmem:[%s7476_s9 + $0x68] sm:$0xff] %v4200_v5 }
 0x48e   : > { %v4201_v1 = vpop.trf.xlu2 }
 0x48f   : > { %4225 = vst [vmem:[%s7476_s9 + $0x78] sm:$0xff] %v4201_v1 }
 0x490 PF: > { %s17_s24 = sadd.s32 1, %s5181_s24  }
 0x491   : > { %p14_p4 = scmp.ge.s32.totalorder %s17_s24, 4  }
 0x493   :  { %16 = sbr.rel (!%p14_p4) target bundleno = 1 (0x1), region = 91 }

</bundles_post_ra>
